<compile_context>
chip_gen: v7x
topology: tpu7x:2x2x1
jax: 0.10.0
libtpu: 0.0.40
codegen_flags: <defaults>
</compile_context>

<pallas_src>
import math
from functools import partial

import jax
import jax.numpy as jnp
from jax import lax
from jax.experimental import pallas as pl
from jax.experimental.pallas import tpu as pltpu

# ---------------- model hyper-parameters (small, consistent with the module) --
SRC_VOCAB = 50
TRG_VOCAB = 10
D_MODEL   = 128
N_LAYERS  = 2
HEADS     = 4
D_FF      = 256
LN_EPS    = 1e-5
OUT_PAD   = 128            # lane-padded output width (>= TRG_VOCAB)

B      = 2                 # batch
S_SRC  = 8                 # source sequence length
S_TRG  = 8                 # target sequence length


# ---------------- in-kernel helpers -------------------------------------------
def _ln(x, g, b, eps=LN_EPS):
    mu  = jnp.mean(x, axis=-1, keepdims=True)
    var = jnp.mean(jnp.square(x - mu), axis=-1, keepdims=True)
    return (x - mu) * lax.rsqrt(var + eps) * g + b


# ---------------- the single fused kernel --------------------------------------
def transformer_kernel(src_ids_ref, trg_ids_ref, pe_src_ref, pe_trg_ref,
                       src_emb_ref, trg_emb_ref,
                       enc_vec_ref, enc_bqkv_ref, enc_b1_ref,
                       enc_wqkv_ref, enc_wo_ref, enc_w1_ref, enc_w2_ref,
                       dec_vec_ref, dec_bqkv_ref, dec_bkv_ref, dec_b1_ref,
                       dec_wqkv_ref, dec_wo_s_ref, dec_wq_c_ref, dec_wkv_c_ref,
                       dec_wo_c_ref, dec_w1_ref, dec_w2_ref,
                       final_ref, w_out_ref, b_out_ref,
                       o_ref, *, batch, s_src, s_trg, heads, n_layers):
    d = D_MODEL
    dh = d // heads
    sqrt_d = math.sqrt(d)
    bf16 = jnp.bfloat16
    f32 = jnp.float32

    def onehot_embed(ids, table):
        # ids: (M, 1) int32, table: (V, d) f32  ->  (M, d) f32 via one-hot matmul
        m, v = ids.shape[0], table.shape[0]
        iota = lax.broadcasted_iota(jnp.int32, (m, v), 1)
        onehot = (iota == ids).astype(f32)
        return jnp.dot(onehot, table, preferred_element_type=f32)

    def bdot(x, w):
        # bf16 x bf16 MXU dot, f32 accumulation
        return jnp.dot(x.astype(bf16), w, preferred_element_type=f32)

    def mha(q, k, v, s_q, s_kv):
        # q: (batch*s_q, d) f32 ; k, v: (batch*s_kv, d) f32
        # TODO(synk): src/look-ahead/trg masks are None in the reference default
        # path, so no masking is applied here.
        scale = 1.0 / math.sqrt(dh)
        rows = []
        for bi in range(batch):
            qb = q[bi * s_q:(bi + 1) * s_q]
            kb = k[bi * s_kv:(bi + 1) * s_kv]
            vb = v[bi * s_kv:(bi + 1) * s_kv]
            head_outs = []
            for h in range(heads):
                lo, hi = h * dh, (h + 1) * dh
                s = lax.dot_general(qb[:, lo:hi], kb[:, lo:hi],
                                    (((1,), (1,)), ((), ())),
                                    preferred_element_type=f32) * scale
                s = s - jnp.max(s, axis=-1, keepdims=True)
                p = jnp.exp(s)
                p = p * pl.reciprocal(jnp.sum(p, axis=-1, keepdims=True),
                                      approx=True)
                head_outs.append(jnp.dot(p, vb[:, lo:hi],
                                         preferred_element_type=f32))
            rows.append(jnp.concatenate(head_outs, axis=-1))
        return jnp.concatenate(rows, axis=0)

    # ------------------------------ encoder ------------------------------
    x = onehot_embed(src_ids_ref[...], src_emb_ref[...]) * sqrt_d + pe_src_ref[...]
    for l in range(n_layers):
        vec = enc_vec_ref[l]                                  # (8, d) f32
        # multi-head self-attention sub-layer (fused QKV matmul)
        x2 = _ln(x, vec[0:1], vec[1:2])
        qkv = bdot(x2, enc_wqkv_ref[l]) + enc_bqkv_ref[l]     # (M, 3d)
        attn = mha(qkv[:, :d], qkv[:, d:2 * d], qkv[:, 2 * d:], s_src, s_src)
        x = x + bdot(attn, enc_wo_ref[l]) + vec[4:5]
        # feed-forward sub-layer
        x2 = _ln(x, vec[2:3], vec[3:4])
        h1 = jnp.maximum(bdot(x2, enc_w1_ref[l]) + enc_b1_ref[l], 0.0)
        x = x + bdot(h1, enc_w2_ref[l]) + vec[5:6]

    fin = final_ref[...]                                      # (4, d) f32
    e = _ln(x, fin[0:1], fin[1:2])                            # encoder output
    e_bf = e.astype(bf16)

    # ------------------------------ decoder ------------------------------
    y = onehot_embed(trg_ids_ref[...], trg_emb_ref[...]) * sqrt_d + pe_trg_ref[...]
    for l in range(n_layers):
        vec = dec_vec_ref[l]                                  # (16, d) f32
        # self-attention sub-layer
        y2 = _ln(y, vec[0:1], vec[1:2])
        qkv = bdot(y2, dec_wqkv_ref[l]) + dec_bqkv_ref[l]
        sa = mha(qkv[:, :d], qkv[:, d:2 * d], qkv[:, 2 * d:], s_trg, s_trg)
        y = y + bdot(sa, dec_wo_s_ref[l]) + vec[6:7]
        # cross-attention over encoder outputs (fused K/V matmul)
        y2 = _ln(y, vec[2:3], vec[3:4])
        qc = bdot(y2, dec_wq_c_ref[l]) + vec[7:8]
        kv = jnp.dot(e_bf, dec_wkv_c_ref[l], preferred_element_type=f32) \
             + dec_bkv_ref[l]                                 # (M_src, 2d)
        ca = mha(qc, kv[:, :d], kv[:, d:], s_trg, s_src)
        y = y + bdot(ca, dec_wo_c_ref[l]) + vec[8:9]
        # feed-forward sub-layer
        y2 = _ln(y, vec[4:5], vec[5:6])
        h1 = jnp.maximum(bdot(y2, dec_w1_ref[l]) + dec_b1_ref[l], 0.0)
        y = y + bdot(h1, dec_w2_ref[l]) + vec[9:10]

    yn = _ln(y, fin[2:3], fin[3:4])                           # decoder final LN

    # output projection, lane-padded to 128 columns (lane-dense store)
    logits = jnp.dot(yn.astype(bf16), w_out_ref[...],
                     preferred_element_type=f32) + b_out_ref[...]
    o_ref[...] = logits.astype(o_ref.dtype)


# ---------------- positional encoding (host-side constant) --------------------
def _positional_encoding(seq_len, d_model):
    pos = jnp.arange(seq_len, dtype=jnp.float32)[:, None]
    i = jnp.arange(0, d_model, 2, dtype=jnp.float32)[None, :]
    angle = pos / jnp.power(10000.0, i / d_model)
    pe = jnp.zeros((seq_len, d_model), jnp.float32)
    pe = pe.at[:, 0::2].set(jnp.sin(angle))
    pe = pe.at[:, 1::2].set(jnp.cos(angle))
    return pe


# ---------------- full forward pass (single pallas_call) ----------------------
def transformer_forward(params, src, trg,
                        src_mask=None, look_ahead_mask=None, trg_mask=None):
    # TODO(synk): src_mask / look_ahead_mask / trg_mask handling omitted — the
    # reference forward is exercised with the default None masks.
    b, s_s = src.shape
    _, s_t = trg.shape

    src_ids = src.reshape(b * s_s, 1).astype(jnp.int32)
    trg_ids = trg.reshape(b * s_t, 1).astype(jnp.int32)
    pe_s = jnp.tile(_positional_encoding(s_s, D_MODEL), (b, 1))   # (b*s_s, d)
    pe_t = jnp.tile(_positional_encoding(s_t, D_MODEL), (b, 1))   # (b*s_t, d)

    args = [
        src_ids, trg_ids, pe_s, pe_t,
        params["src_emb"], params["trg_emb"],
        params["enc_vec"], params["enc_bqkv"], params["enc_b1"],
        params["enc_wqkv"], params["enc_wo"], params["enc_w1"], params["enc_w2"],
        params["dec_vec"], params["dec_bqkv"], params["dec_bkv"], params["dec_b1"],
        params["dec_wqkv"], params["dec_wo_s"], params["dec_wq_c"],
        params["dec_wkv_c"], params["dec_wo_c"], params["dec_w1"], params["dec_w2"],
        params["final_norms"], params["w_out"], params["b_out"],
    ]

    def full_spec(a):
        nd = a.ndim
        return pl.BlockSpec(a.shape, lambda i, _nd=nd: (0,) * _nd)

    kern = partial(transformer_kernel, batch=b, s_src=s_s, s_trg=s_t,
                   heads=HEADS, n_layers=N_LAYERS)

    logits_pad = pl.pallas_call(
        kern,
        out_shape=jax.ShapeDtypeStruct((b * s_t, OUT_PAD), jnp.float32),
        grid=(1,),
        in_specs=[full_spec(a) for a in args],
        out_specs=pl.BlockSpec((b * s_t, OUT_PAD), lambda i: (0, 0)),
        compiler_params=pltpu.CompilerParams(
            dimension_semantics=("arbitrary",)),
    )(*args)

    return logits_pad[:, :TRG_VOCAB].reshape(b, s_t, TRG_VOCAB)


# ---------------- parameter construction (deterministic) ----------------------
def init_params(key):
    keys = jax.random.split(key, 32)
    it = iter(keys)

    def rnd(shape, scale=0.05):
        return (scale * jax.random.normal(next(it), shape)).astype(jnp.float32)

    d, dff, n = D_MODEL, D_FF, N_LAYERS
    BF = jnp.bfloat16

    src_emb = rnd((SRC_VOCAB, d), 0.1)
    trg_emb = rnd((TRG_VOCAB, d), 0.1)

    # ----- encoder stacks -----
    enc_wqkv = rnd((n, d, 3 * d))
    enc_wo   = rnd((n, d, d))
    enc_w1   = rnd((n, d, dff))
    enc_w2   = rnd((n, dff, d))
    enc_bqkv = rnd((n, 1, 3 * d), 0.02)
    enc_b1   = rnd((n, 1, dff), 0.02)
    # packed per-layer vectors: [ln1_g, ln1_b, ln2_g, ln2_b, bo, b_ff2, pad, pad]
    enc_vec = jnp.zeros((n, 8, d), jnp.float32)
    enc_vec = enc_vec.at[:, 0].set(1.0)
    enc_vec = enc_vec.at[:, 2].set(1.0)
    enc_vec = enc_vec.at[:, 4].set(rnd((n, d), 0.02))
    enc_vec = enc_vec.at[:, 5].set(rnd((n, d), 0.02))

    # ----- decoder stacks -----
    dec_wqkv  = rnd((n, d, 3 * d))
    dec_wo_s  = rnd((n, d, d))
    dec_wq_c  = rnd((n, d, d))
    dec_wkv_c = rnd((n, d, 2 * d))
    dec_wo_c  = rnd((n, d, d))
    dec_w1    = rnd((n, d, dff))
    dec_w2    = rnd((n, dff, d))
    dec_bqkv  = rnd((n, 1, 3 * d), 0.02)
    dec_bkv   = rnd((n, 1, 2 * d), 0.02)
    dec_b1    = rnd((n, 1, dff), 0.02)
    # packed: [ln1_g, ln1_b, ln2_g, ln2_b, ln3_g, ln3_b,
    #          b_self_o, b_cross_q, b_cross_o, b_ff2, pad...]
    dec_vec = jnp.zeros((n, 16, d), jnp.float32)
    dec_vec = dec_vec.at[:, 0].set(1.0)
    dec_vec = dec_vec.at[:, 2].set(1.0)
    dec_vec = dec_vec.at[:, 4].set(1.0)
    dec_vec = dec_vec.at[:, 6].set(rnd((n, d), 0.02))
    dec_vec = dec_vec.at[:, 7].set(rnd((n, d), 0.02))
    dec_vec = dec_vec.at[:, 8].set(rnd((n, d), 0.02))
    dec_vec = dec_vec.at[:, 9].set(rnd((n, d), 0.02))

    # final norms: [enc_g, enc_b, dec_g, dec_b]
    final_norms = jnp.stack([jnp.ones((d,)), jnp.zeros((d,)),
                             jnp.ones((d,)), jnp.zeros((d,))]).astype(jnp.float32)

    # output projection, zero-padded to 128 lanes
    w_out = rnd((d, TRG_VOCAB))
    b_out = rnd((1, TRG_VOCAB), 0.02)
    w_out_pad = jnp.zeros((d, OUT_PAD), jnp.float32).at[:, :TRG_VOCAB].set(w_out)
    b_out_pad = jnp.zeros((1, OUT_PAD), jnp.float32).at[:, :TRG_VOCAB].set(b_out)

    return dict(
        src_emb=src_emb, trg_emb=trg_emb,
        enc_vec=enc_vec, enc_bqkv=enc_bqkv, enc_b1=enc_b1,
        enc_wqkv=enc_wqkv.astype(BF), enc_wo=enc_wo.astype(BF),
        enc_w1=enc_w1.astype(BF), enc_w2=enc_w2.astype(BF),
        dec_vec=dec_vec, dec_bqkv=dec_bqkv, dec_bkv=dec_bkv, dec_b1=dec_b1,
        dec_wqkv=dec_wqkv.astype(BF), dec_wo_s=dec_wo_s.astype(BF),
        dec_wq_c=dec_wq_c.astype(BF), dec_wkv_c=dec_wkv_c.astype(BF),
        dec_wo_c=dec_wo_c.astype(BF),
        dec_w1=dec_w1.astype(BF), dec_w2=dec_w2.astype(BF),
        final_norms=final_norms,
        w_out=w_out_pad.astype(BF), b_out=b_out_pad,
    )


# ---------------- driver -------------------------------------------------------
if __name__ == "__main__":
    key = jax.random.PRNGKey(0)
    kp, ks, kt = jax.random.split(key, 3)

    params = init_params(kp)
    src = jax.random.randint(ks, (B, S_SRC), 0, SRC_VOCAB, dtype=jnp.int32)
    trg = jax.random.randint(kt, (B, S_TRG), 0, TRG_VOCAB, dtype=jnp.int32)

    out = transformer_forward(params, src, trg)
    jax.block_until_ready(out)
    assert out.shape == (B, S_TRG, TRG_VOCAB)
    assert bool(jnp.all(jnp.isfinite(out)))
    print("KERNEL_OK")
</pallas_src>

<mosaic_0001>
module attributes {stable_mosaic.version = 11 : i64} {
  func.func @transformer_kernel(%arg0: i32, %arg1: memref<16x1xi32, #tpu.memory_space<vmem>>, %arg2: memref<16x1xi32, #tpu.memory_space<vmem>>, %arg3: memref<16x128xf32, #tpu.memory_space<vmem>>, %arg4: memref<16x128xf32, #tpu.memory_space<vmem>>, %arg5: memref<50x128xf32, #tpu.memory_space<vmem>>, %arg6: memref<10x128xf32, #tpu.memory_space<vmem>>, %arg7: memref<2x8x128xf32, #tpu.memory_space<vmem>>, %arg8: memref<2x1x384xf32, #tpu.memory_space<vmem>>, %arg9: memref<2x1x256xf32, #tpu.memory_space<vmem>>, %arg10: memref<2x128x384xbf16, #tpu.memory_space<vmem>>, %arg11: memref<2x128x128xbf16, #tpu.memory_space<vmem>>, %arg12: memref<2x128x256xbf16, #tpu.memory_space<vmem>>, %arg13: memref<2x256x128xbf16, #tpu.memory_space<vmem>>, %arg14: memref<2x16x128xf32, #tpu.memory_space<vmem>>, %arg15: memref<2x1x384xf32, #tpu.memory_space<vmem>>, %arg16: memref<2x1x256xf32, #tpu.memory_space<vmem>>, %arg17: memref<2x1x256xf32, #tpu.memory_space<vmem>>, %arg18: memref<2x128x384xbf16, #tpu.memory_space<vmem>>, %arg19: memref<2x128x128xbf16, #tpu.memory_space<vmem>>, %arg20: memref<2x128x128xbf16, #tpu.memory_space<vmem>>, %arg21: memref<2x128x256xbf16, #tpu.memory_space<vmem>>, %arg22: memref<2x128x128xbf16, #tpu.memory_space<vmem>>, %arg23: memref<2x128x256xbf16, #tpu.memory_space<vmem>>, %arg24: memref<2x256x128xbf16, #tpu.memory_space<vmem>>, %arg25: memref<4x128xf32, #tpu.memory_space<vmem>>, %arg26: memref<128x128xbf16, #tpu.memory_space<vmem>>, %arg27: memref<1x128xf32, #tpu.memory_space<vmem>>, %arg28: memref<16x128xf32, #tpu.memory_space<vmem>>) attributes {dimension_semantics = [#tpu.dimension_semantics<arbitrary>], iteration_bounds = array<i64: 1>, scalar_prefetch = 0 : i64, scratch_operands = 0 : i64, tpu.core_type = #tpu.core_type<tc>, window_params = [{pipeline_mode = #tpu.pipeline_mode<synchronous>, transform_indices = @transform_0, window_bounds = array<i64: 16, 1>}, {pipeline_mode = #tpu.pipeline_mode<synchronous>, transform_indices = @transform_1, window_bounds = array<i64: 16, 1>}, {pipeline_mode = #tpu.pipeline_mode<synchronous>, transform_indices = @transform_2, window_bounds = array<i64: 16, 128>}, {pipeline_mode = #tpu.pipeline_mode<synchronous>, transform_indices = @transform_3, window_bounds = array<i64: 16, 128>}, {pipeline_mode = #tpu.pipeline_mode<synchronous>, transform_indices = @transform_4, window_bounds = array<i64: 50, 128>}, {pipeline_mode = #tpu.pipeline_mode<synchronous>, transform_indices = @transform_5, window_bounds = array<i64: 10, 128>}, {pipeline_mode = #tpu.pipeline_mode<synchronous>, transform_indices = @transform_6, window_bounds = array<i64: 2, 8, 128>}, {pipeline_mode = #tpu.pipeline_mode<synchronous>, transform_indices = @transform_7, window_bounds = array<i64: 2, 1, 384>}, {pipeline_mode = #tpu.pipeline_mode<synchronous>, transform_indices = @transform_8, window_bounds = array<i64: 2, 1, 256>}, {pipeline_mode = #tpu.pipeline_mode<synchronous>, transform_indices = @transform_9, window_bounds = array<i64: 2, 128, 384>}, {pipeline_mode = #tpu.pipeline_mode<synchronous>, transform_indices = @transform_10, window_bounds = array<i64: 2, 128, 128>}, {pipeline_mode = #tpu.pipeline_mode<synchronous>, transform_indices = @transform_11, window_bounds = array<i64: 2, 128, 256>}, {pipeline_mode = #tpu.pipeline_mode<synchronous>, transform_indices = @transform_12, window_bounds = array<i64: 2, 256, 128>}, {pipeline_mode = #tpu.pipeline_mode<synchronous>, transform_indices = @transform_13, window_bounds = array<i64: 2, 16, 128>}, {pipeline_mode = #tpu.pipeline_mode<synchronous>, transform_indices = @transform_14, window_bounds = array<i64: 2, 1, 384>}, {pipeline_mode = #tpu.pipeline_mode<synchronous>, transform_indices = @transform_15, window_bounds = array<i64: 2, 1, 256>}, {pipeline_mode = #tpu.pipeline_mode<synchronous>, transform_indices = @transform_16, window_bounds = array<i64: 2, 1, 256>}, {pipeline_mode = #tpu.pipeline_mode<synchronous>, transform_indices = @transform_17, window_bounds = array<i64: 2, 128, 384>}, {pipeline_mode = #tpu.pipeline_mode<synchronous>, transform_indices = @transform_18, window_bounds = array<i64: 2, 128, 128>}, {pipeline_mode = #tpu.pipeline_mode<synchronous>, transform_indices = @transform_19, window_bounds = array<i64: 2, 128, 128>}, {pipeline_mode = #tpu.pipeline_mode<synchronous>, transform_indices = @transform_20, window_bounds = array<i64: 2, 128, 256>}, {pipeline_mode = #tpu.pipeline_mode<synchronous>, transform_indices = @transform_21, window_bounds = array<i64: 2, 128, 128>}, {pipeline_mode = #tpu.pipeline_mode<synchronous>, transform_indices = @transform_22, window_bounds = array<i64: 2, 128, 256>}, {pipeline_mode = #tpu.pipeline_mode<synchronous>, transform_indices = @transform_23, window_bounds = array<i64: 2, 256, 128>}, {pipeline_mode = #tpu.pipeline_mode<synchronous>, transform_indices = @transform_24, window_bounds = array<i64: 4, 128>}, {pipeline_mode = #tpu.pipeline_mode<synchronous>, transform_indices = @transform_25, window_bounds = array<i64: 128, 128>}, {pipeline_mode = #tpu.pipeline_mode<synchronous>, transform_indices = @transform_26, window_bounds = array<i64: 1, 128>}, {pipeline_mode = #tpu.pipeline_mode<synchronous>, transform_indices = @transform_27, window_bounds = array<i64: 16, 128>}]} {
    %c0 = arith.constant 0 : index
    %c0_0 = arith.constant 0 : index
    %0 = vector.load %arg1[%c0, %c0_0] : memref<16x1xi32, #tpu.memory_space<vmem>>, vector<16x1xi32>
    %c0_1 = arith.constant 0 : index
    %c0_2 = arith.constant 0 : index
    %1 = vector.load %arg5[%c0_1, %c0_2] : memref<50x128xf32, #tpu.memory_space<vmem>>, vector<50x128xf32>
    %2 = tpu.iota {dimensions = array<i32: 1>} : vector<16x50xi32>
    %3 = vector.broadcast %0 : vector<16x1xi32> to vector<16x50xi32>
    %4 = arith.cmpi eq, %2, %3 : vector<16x50xi32>
    %5 = arith.extui %4 : vector<16x50xi1> to vector<16x50xi32>
    %6 = arith.sitofp %5 : vector<16x50xi32> to vector<16x50xf32>
    %cst = arith.constant dense<0.000000e+00> : vector<16x128xf32>
    %7 = tpu.matmul %6, %1, %cst {dimension_numbers = #tpu.dot_dimension_numbers<[1], [0], [0], [1], [0, 0, 1, 1], [], []>} : vector<16x50xf32>, vector<50x128xf32>, vector<16x128xf32> -> vector<16x128xf32>
    %cst_3 = arith.constant 11.3137083 : f32
    %8 = vector.broadcast %cst_3 : f32 to vector<16x128xf32>
    %9 = arith.mulf %7, %8 : vector<16x128xf32>
    %c0_4 = arith.constant 0 : index
    %c0_5 = arith.constant 0 : index
    %10 = vector.load %arg3[%c0_4, %c0_5] : memref<16x128xf32, #tpu.memory_space<vmem>>, vector<16x128xf32>
    %11 = arith.addf %9, %10 : vector<16x128xf32>
    %c0_6 = arith.constant 0 : index
    %c0_7 = arith.constant 0 : index
    %c0_8 = arith.constant 0 : index
    %12 = vector.load %arg7[%c0_6, %c0_7, %c0_8] : memref<2x8x128xf32, #tpu.memory_space<vmem>>, vector<1x8x128xf32>
    %13 = vector.shape_cast %12 : vector<1x8x128xf32> to vector<8x128xf32>
    %14 = vector.extract_strided_slice %13 {offsets = [0, 0], sizes = [1, 128], strides = [1, 1]} : vector<8x128xf32> to vector<1x128xf32>
    %15 = vector.extract_strided_slice %13 {offsets = [1, 0], sizes = [1, 128], strides = [1, 1]} : vector<8x128xf32> to vector<1x128xf32>
    %cst_9 = arith.constant dense<0.000000e+00> : vector<16xf32>
    %16 = vector.multi_reduction <add>, %11, %cst_9 [1] : vector<16x128xf32> to vector<16xf32>
    %17 = vector.shape_cast %16 : vector<16xf32> to vector<16x1xf32>
    %cst_10 = arith.constant 1.280000e+02 : f32
    %18 = vector.broadcast %cst_10 : f32 to vector<16x1xf32>
    %19 = arith.divf %17, %18 : vector<16x1xf32>
    %20 = vector.broadcast %19 : vector<16x1xf32> to vector<16x128xf32>
    %21 = arith.subf %11, %20 : vector<16x128xf32>
    %22 = arith.mulf %21, %21 : vector<16x128xf32>
    %cst_11 = arith.constant dense<0.000000e+00> : vector<16xf32>
    %23 = vector.multi_reduction <add>, %22, %cst_11 [1] : vector<16x128xf32> to vector<16xf32>
    %24 = vector.shape_cast %23 : vector<16xf32> to vector<16x1xf32>
    %cst_12 = arith.constant 1.280000e+02 : f32
    %25 = vector.broadcast %cst_12 : f32 to vector<16x1xf32>
    %26 = arith.divf %24, %25 : vector<16x1xf32>
    %27 = vector.broadcast %19 : vector<16x1xf32> to vector<16x128xf32>
    %28 = arith.subf %11, %27 : vector<16x128xf32>
    %cst_13 = arith.constant 9.99999974E-6 : f32
    %29 = vector.broadcast %cst_13 : f32 to vector<16x1xf32>
    %30 = arith.addf %26, %29 : vector<16x1xf32>
    %31 = math.rsqrt %30 : vector<16x1xf32>
    %32 = vector.broadcast %31 : vector<16x1xf32> to vector<16x128xf32>
    %33 = arith.mulf %28, %32 : vector<16x128xf32>
    %34 = vector.broadcast %14 : vector<1x128xf32> to vector<16x128xf32>
    %35 = arith.mulf %33, %34 : vector<16x128xf32>
    %36 = vector.broadcast %15 : vector<1x128xf32> to vector<16x128xf32>
    %37 = arith.addf %35, %36 : vector<16x128xf32>
    %c0_14 = arith.constant 0 : index
    %c0_15 = arith.constant 0 : index
    %c0_16 = arith.constant 0 : index
    %38 = vector.load %arg10[%c0_14, %c0_15, %c0_16] : memref<2x128x384xbf16, #tpu.memory_space<vmem>>, vector<1x128x384xbf16>
    %39 = vector.shape_cast %38 : vector<1x128x384xbf16> to vector<128x384xbf16>
    %40 = arith.truncf %37 : vector<16x128xf32> to vector<16x128xbf16>
    %cst_17 = arith.constant dense<0.000000e+00> : vector<16x384xf32>
    %41 = tpu.matmul %40, %39, %cst_17 {dimension_numbers = #tpu.dot_dimension_numbers<[1], [0], [0], [1], [0, 0, 1, 1], [], []>} : vector<16x128xbf16>, vector<128x384xbf16>, vector<16x384xf32> -> vector<16x384xf32>
    %c0_18 = arith.constant 0 : index
    %c0_19 = arith.constant 0 : index
    %c0_20 = arith.constant 0 : index
    %42 = vector.load %arg8[%c0_18, %c0_19, %c0_20] : memref<2x1x384xf32, #tpu.memory_space<vmem>>, vector<1x1x384xf32>
    %43 = vector.shape_cast %42 : vector<1x1x384xf32> to vector<1x384xf32>
    %44 = vector.broadcast %43 : vector<1x384xf32> to vector<16x384xf32>
    %45 = arith.addf %41, %44 : vector<16x384xf32>
    %46 = vector.extract_strided_slice %45 {offsets = [0, 0], sizes = [16, 128], strides = [1, 1]} : vector<16x384xf32> to vector<16x128xf32>
    %47 = vector.extract_strided_slice %45 {offsets = [0, 128], sizes = [16, 128], strides = [1, 1]} : vector<16x384xf32> to vector<16x128xf32>
    %48 = vector.extract_strided_slice %45 {offsets = [0, 256], sizes = [16, 128], strides = [1, 1]} : vector<16x384xf32> to vector<16x128xf32>
    %49 = vector.extract_strided_slice %46 {offsets = [0, 0], sizes = [8, 128], strides = [1, 1]} : vector<16x128xf32> to vector<8x128xf32>
    %50 = vector.extract_strided_slice %47 {offsets = [0, 0], sizes = [8, 128], strides = [1, 1]} : vector<16x128xf32> to vector<8x128xf32>
    %51 = vector.extract_strided_slice %48 {offsets = [0, 0], sizes = [8, 128], strides = [1, 1]} : vector<16x128xf32> to vector<8x128xf32>
    %52 = vector.extract_strided_slice %49 {offsets = [0, 0], sizes = [8, 32], strides = [1, 1]} : vector<8x128xf32> to vector<8x32xf32>
    %53 = vector.extract_strided_slice %50 {offsets = [0, 0], sizes = [8, 32], strides = [1, 1]} : vector<8x128xf32> to vector<8x32xf32>
    %cst_21 = arith.constant dense<0.000000e+00> : vector<8x8xf32>
    %54 = tpu.matmul %52, %53, %cst_21 {dimension_numbers = #tpu.dot_dimension_numbers<[1], [1], [0], [0], [0, 0, 1, 0], [], []>} : vector<8x32xf32>, vector<8x32xf32>, vector<8x8xf32> -> vector<8x8xf32>
    %cst_22 = arith.constant 0.176776692 : f32
    %55 = vector.broadcast %cst_22 : f32 to vector<8x8xf32>
    %56 = arith.mulf %54, %55 : vector<8x8xf32>
    %cst_23 = arith.constant dense<0xFF800000> : vector<8xf32>
    %57 = vector.multi_reduction <maximumf>, %56, %cst_23 [1] : vector<8x8xf32> to vector<8xf32>
    %58 = vector.shape_cast %57 : vector<8xf32> to vector<8x1xf32>
    %59 = vector.broadcast %58 : vector<8x1xf32> to vector<8x8xf32>
    %60 = arith.subf %56, %59 : vector<8x8xf32>
    %61 = math.exp %60 : vector<8x8xf32>
    %cst_24 = arith.constant dense<0.000000e+00> : vector<8xf32>
    %62 = vector.multi_reduction <add>, %61, %cst_24 [1] : vector<8x8xf32> to vector<8xf32>
    %63 = vector.shape_cast %62 : vector<8xf32> to vector<8x1xf32>
    %64 = tpu.reciprocal %63 {approx = true} : vector<8x1xf32> -> vector<8x1xf32>
    %65 = vector.broadcast %64 : vector<8x1xf32> to vector<8x8xf32>
    %66 = arith.mulf %61, %65 : vector<8x8xf32>
    %67 = vector.extract_strided_slice %51 {offsets = [0, 0], sizes = [8, 32], strides = [1, 1]} : vector<8x128xf32> to vector<8x32xf32>
    %cst_25 = arith.constant dense<0.000000e+00> : vector<8x32xf32>
    %68 = tpu.matmul %66, %67, %cst_25 {dimension_numbers = #tpu.dot_dimension_numbers<[1], [0], [0], [1], [0, 0, 1, 1], [], []>} : vector<8x8xf32>, vector<8x32xf32>, vector<8x32xf32> -> vector<8x32xf32>
    %69 = vector.extract_strided_slice %49 {offsets = [0, 32], sizes = [8, 32], strides = [1, 1]} : vector<8x128xf32> to vector<8x32xf32>
    %70 = vector.extract_strided_slice %50 {offsets = [0, 32], sizes = [8, 32], strides = [1, 1]} : vector<8x128xf32> to vector<8x32xf32>
    %cst_26 = arith.constant dense<0.000000e+00> : vector<8x8xf32>
    %71 = tpu.matmul %69, %70, %cst_26 {dimension_numbers = #tpu.dot_dimension_numbers<[1], [1], [0], [0], [0, 0, 1, 0], [], []>} : vector<8x32xf32>, vector<8x32xf32>, vector<8x8xf32> -> vector<8x8xf32>
    %cst_27 = arith.constant 0.176776692 : f32
    %72 = vector.broadcast %cst_27 : f32 to vector<8x8xf32>
    %73 = arith.mulf %71, %72 : vector<8x8xf32>
    %cst_28 = arith.constant dense<0xFF800000> : vector<8xf32>
    %74 = vector.multi_reduction <maximumf>, %73, %cst_28 [1] : vector<8x8xf32> to vector<8xf32>
    %75 = vector.shape_cast %74 : vector<8xf32> to vector<8x1xf32>
    %76 = vector.broadcast %75 : vector<8x1xf32> to vector<8x8xf32>
    %77 = arith.subf %73, %76 : vector<8x8xf32>
    %78 = math.exp %77 : vector<8x8xf32>
    %cst_29 = arith.constant dense<0.000000e+00> : vector<8xf32>
    %79 = vector.multi_reduction <add>, %78, %cst_29 [1] : vector<8x8xf32> to vector<8xf32>
    %80 = vector.shape_cast %79 : vector<8xf32> to vector<8x1xf32>
    %81 = tpu.reciprocal %80 {approx = true} : vector<8x1xf32> -> vector<8x1xf32>
    %82 = vector.broadcast %81 : vector<8x1xf32> to vector<8x8xf32>
    %83 = arith.mulf %78, %82 : vector<8x8xf32>
    %84 = vector.extract_strided_slice %51 {offsets = [0, 32], sizes = [8, 32], strides = [1, 1]} : vector<8x128xf32> to vector<8x32xf32>
    %cst_30 = arith.constant dense<0.000000e+00> : vector<8x32xf32>
    %85 = tpu.matmul %83, %84, %cst_30 {dimension_numbers = #tpu.dot_dimension_numbers<[1], [0], [0], [1], [0, 0, 1, 1], [], []>} : vector<8x8xf32>, vector<8x32xf32>, vector<8x32xf32> -> vector<8x32xf32>
    %86 = vector.extract_strided_slice %49 {offsets = [0, 64], sizes = [8, 32], strides = [1, 1]} : vector<8x128xf32> to vector<8x32xf32>
    %87 = vector.extract_strided_slice %50 {offsets = [0, 64], sizes = [8, 32], strides = [1, 1]} : vector<8x128xf32> to vector<8x32xf32>
    %cst_31 = arith.constant dense<0.000000e+00> : vector<8x8xf32>
    %88 = tpu.matmul %86, %87, %cst_31 {dimension_numbers = #tpu.dot_dimension_numbers<[1], [1], [0], [0], [0, 0, 1, 0], [], []>} : vector<8x32xf32>, vector<8x32xf32>, vector<8x8xf32> -> vector<8x8xf32>
    %cst_32 = arith.constant 0.176776692 : f32
    %89 = vector.broadcast %cst_32 : f32 to vector<8x8xf32>
    %90 = arith.mulf %88, %89 : vector<8x8xf32>
    %cst_33 = arith.constant dense<0xFF800000> : vector<8xf32>
    %91 = vector.multi_reduction <maximumf>, %90, %cst_33 [1] : vector<8x8xf32> to vector<8xf32>
    %92 = vector.shape_cast %91 : vector<8xf32> to vector<8x1xf32>
    %93 = vector.broadcast %92 : vector<8x1xf32> to vector<8x8xf32>
    %94 = arith.subf %90, %93 : vector<8x8xf32>
    %95 = math.exp %94 : vector<8x8xf32>
    %cst_34 = arith.constant dense<0.000000e+00> : vector<8xf32>
    %96 = vector.multi_reduction <add>, %95, %cst_34 [1] : vector<8x8xf32> to vector<8xf32>
    %97 = vector.shape_cast %96 : vector<8xf32> to vector<8x1xf32>
    %98 = tpu.reciprocal %97 {approx = true} : vector<8x1xf32> -> vector<8x1xf32>
    %99 = vector.broadcast %98 : vector<8x1xf32> to vector<8x8xf32>
    %100 = arith.mulf %95, %99 : vector<8x8xf32>
    %101 = vector.extract_strided_slice %51 {offsets = [0, 64], sizes = [8, 32], strides = [1, 1]} : vector<8x128xf32> to vector<8x32xf32>
    %cst_35 = arith.constant dense<0.000000e+00> : vector<8x32xf32>
    %102 = tpu.matmul %100, %101, %cst_35 {dimension_numbers = #tpu.dot_dimension_numbers<[1], [0], [0], [1], [0, 0, 1, 1], [], []>} : vector<8x8xf32>, vector<8x32xf32>, vector<8x32xf32> -> vector<8x32xf32>
    %103 = vector.extract_strided_slice %49 {offsets = [0, 96], sizes = [8, 32], strides = [1, 1]} : vector<8x128xf32> to vector<8x32xf32>
    %104 = vector.extract_strided_slice %50 {offsets = [0, 96], sizes = [8, 32], strides = [1, 1]} : vector<8x128xf32> to vector<8x32xf32>
    %cst_36 = arith.constant dense<0.000000e+00> : vector<8x8xf32>
    %105 = tpu.matmul %103, %104, %cst_36 {dimension_numbers = #tpu.dot_dimension_numbers<[1], [1], [0], [0], [0, 0, 1, 0], [], []>} : vector<8x32xf32>, vector<8x32xf32>, vector<8x8xf32> -> vector<8x8xf32>
    %cst_37 = arith.constant 0.176776692 : f32
    %106 = vector.broadcast %cst_37 : f32 to vector<8x8xf32>
    %107 = arith.mulf %105, %106 : vector<8x8xf32>
    %cst_38 = arith.constant dense<0xFF800000> : vector<8xf32>
    %108 = vector.multi_reduction <maximumf>, %107, %cst_38 [1] : vector<8x8xf32> to vector<8xf32>
    %109 = vector.shape_cast %108 : vector<8xf32> to vector<8x1xf32>
    %110 = vector.broadcast %109 : vector<8x1xf32> to vector<8x8xf32>
    %111 = arith.subf %107, %110 : vector<8x8xf32>
    %112 = math.exp %111 : vector<8x8xf32>
    %cst_39 = arith.constant dense<0.000000e+00> : vector<8xf32>
    %113 = vector.multi_reduction <add>, %112, %cst_39 [1] : vector<8x8xf32> to vector<8xf32>
    %114 = vector.shape_cast %113 : vector<8xf32> to vector<8x1xf32>
    %115 = tpu.reciprocal %114 {approx = true} : vector<8x1xf32> -> vector<8x1xf32>
    %116 = vector.broadcast %115 : vector<8x1xf32> to vector<8x8xf32>
    %117 = arith.mulf %112, %116 : vector<8x8xf32>
    %118 = vector.extract_strided_slice %51 {offsets = [0, 96], sizes = [8, 32], strides = [1, 1]} : vector<8x128xf32> to vector<8x32xf32>
    %cst_40 = arith.constant dense<0.000000e+00> : vector<8x32xf32>
    %119 = tpu.matmul %117, %118, %cst_40 {dimension_numbers = #tpu.dot_dimension_numbers<[1], [0], [0], [1], [0, 0, 1, 1], [], []>} : vector<8x8xf32>, vector<8x32xf32>, vector<8x32xf32> -> vector<8x32xf32>
    %120 = tpu.concatenate %68, %85, %102, %119 in 1 : vector<8x32xf32>, vector<8x32xf32>, vector<8x32xf32>, vector<8x32xf32> -> vector<8x128xf32>
    %121 = vector.extract_strided_slice %46 {offsets = [8, 0], sizes = [8, 128], strides = [1, 1]} : vector<16x128xf32> to vector<8x128xf32>
    %122 = vector.extract_strided_slice %47 {offsets = [8, 0], sizes = [8, 128], strides = [1, 1]} : vector<16x128xf32> to vector<8x128xf32>
    %123 = vector.extract_strided_slice %48 {offsets = [8, 0], sizes = [8, 128], strides = [1, 1]} : vector<16x128xf32> to vector<8x128xf32>
    %124 = vector.extract_strided_slice %121 {offsets = [0, 0], sizes = [8, 32], strides = [1, 1]} : vector<8x128xf32> to vector<8x32xf32>
    %125 = vector.extract_strided_slice %122 {offsets = [0, 0], sizes = [8, 32], strides = [1, 1]} : vector<8x128xf32> to vector<8x32xf32>
    %cst_41 = arith.constant dense<0.000000e+00> : vector<8x8xf32>
    %126 = tpu.matmul %124, %125, %cst_41 {dimension_numbers = #tpu.dot_dimension_numbers<[1], [1], [0], [0], [0, 0, 1, 0], [], []>} : vector<8x32xf32>, vector<8x32xf32>, vector<8x8xf32> -> vector<8x8xf32>
    %cst_42 = arith.constant 0.176776692 : f32
    %127 = vector.broadcast %cst_42 : f32 to vector<8x8xf32>
    %128 = arith.mulf %126, %127 : vector<8x8xf32>
    %cst_43 = arith.constant dense<0xFF800000> : vector<8xf32>
    %129 = vector.multi_reduction <maximumf>, %128, %cst_43 [1] : vector<8x8xf32> to vector<8xf32>
    %130 = vector.shape_cast %129 : vector<8xf32> to vector<8x1xf32>
    %131 = vector.broadcast %130 : vector<8x1xf32> to vector<8x8xf32>
    %132 = arith.subf %128, %131 : vector<8x8xf32>
    %133 = math.exp %132 : vector<8x8xf32>
    %cst_44 = arith.constant dense<0.000000e+00> : vector<8xf32>
    %134 = vector.multi_reduction <add>, %133, %cst_44 [1] : vector<8x8xf32> to vector<8xf32>
    %135 = vector.shape_cast %134 : vector<8xf32> to vector<8x1xf32>
    %136 = tpu.reciprocal %135 {approx = true} : vector<8x1xf32> -> vector<8x1xf32>
    %137 = vector.broadcast %136 : vector<8x1xf32> to vector<8x8xf32>
    %138 = arith.mulf %133, %137 : vector<8x8xf32>
    %139 = vector.extract_strided_slice %123 {offsets = [0, 0], sizes = [8, 32], strides = [1, 1]} : vector<8x128xf32> to vector<8x32xf32>
    %cst_45 = arith.constant dense<0.000000e+00> : vector<8x32xf32>
    %140 = tpu.matmul %138, %139, %cst_45 {dimension_numbers = #tpu.dot_dimension_numbers<[1], [0], [0], [1], [0, 0, 1, 1], [], []>} : vector<8x8xf32>, vector<8x32xf32>, vector<8x32xf32> -> vector<8x32xf32>
    %141 = vector.extract_strided_slice %121 {offsets = [0, 32], sizes = [8, 32], strides = [1, 1]} : vector<8x128xf32> to vector<8x32xf32>
    %142 = vector.extract_strided_slice %122 {offsets = [0, 32], sizes = [8, 32], strides = [1, 1]} : vector<8x128xf32> to vector<8x32xf32>
    %cst_46 = arith.constant dense<0.000000e+00> : vector<8x8xf32>
    %143 = tpu.matmul %141, %142, %cst_46 {dimension_numbers = #tpu.dot_dimension_numbers<[1], [1], [0], [0], [0, 0, 1, 0], [], []>} : vector<8x32xf32>, vector<8x32xf32>, vector<8x8xf32> -> vector<8x8xf32>
    %cst_47 = arith.constant 0.176776692 : f32
    %144 = vector.broadcast %cst_47 : f32 to vector<8x8xf32>
    %145 = arith.mulf %143, %144 : vector<8x8xf32>
    %cst_48 = arith.constant dense<0xFF800000> : vector<8xf32>
    %146 = vector.multi_reduction <maximumf>, %145, %cst_48 [1] : vector<8x8xf32> to vector<8xf32>
    %147 = vector.shape_cast %146 : vector<8xf32> to vector<8x1xf32>
    %148 = vector.broadcast %147 : vector<8x1xf32> to vector<8x8xf32>
    %149 = arith.subf %145, %148 : vector<8x8xf32>
    %150 = math.exp %149 : vector<8x8xf32>
    %cst_49 = arith.constant dense<0.000000e+00> : vector<8xf32>
    %151 = vector.multi_reduction <add>, %150, %cst_49 [1] : vector<8x8xf32> to vector<8xf32>
    %152 = vector.shape_cast %151 : vector<8xf32> to vector<8x1xf32>
    %153 = tpu.reciprocal %152 {approx = true} : vector<8x1xf32> -> vector<8x1xf32>
    %154 = vector.broadcast %153 : vector<8x1xf32> to vector<8x8xf32>
    %155 = arith.mulf %150, %154 : vector<8x8xf32>
    %156 = vector.extract_strided_slice %123 {offsets = [0, 32], sizes = [8, 32], strides = [1, 1]} : vector<8x128xf32> to vector<8x32xf32>
    %cst_50 = arith.constant dense<0.000000e+00> : vector<8x32xf32>
    %157 = tpu.matmul %155, %156, %cst_50 {dimension_numbers = #tpu.dot_dimension_numbers<[1], [0], [0], [1], [0, 0, 1, 1], [], []>} : vector<8x8xf32>, vector<8x32xf32>, vector<8x32xf32> -> vector<8x32xf32>
    %158 = vector.extract_strided_slice %121 {offsets = [0, 64], sizes = [8, 32], strides = [1, 1]} : vector<8x128xf32> to vector<8x32xf32>
    %159 = vector.extract_strided_slice %122 {offsets = [0, 64], sizes = [8, 32], strides = [1, 1]} : vector<8x128xf32> to vector<8x32xf32>
    %cst_51 = arith.constant dense<0.000000e+00> : vector<8x8xf32>
    %160 = tpu.matmul %158, %159, %cst_51 {dimension_numbers = #tpu.dot_dimension_numbers<[1], [1], [0], [0], [0, 0, 1, 0], [], []>} : vector<8x32xf32>, vector<8x32xf32>, vector<8x8xf32> -> vector<8x8xf32>
    %cst_52 = arith.constant 0.176776692 : f32
    %161 = vector.broadcast %cst_52 : f32 to vector<8x8xf32>
    %162 = arith.mulf %160, %161 : vector<8x8xf32>
    %cst_53 = arith.constant dense<0xFF800000> : vector<8xf32>
    %163 = vector.multi_reduction <maximumf>, %162, %cst_53 [1] : vector<8x8xf32> to vector<8xf32>
    %164 = vector.shape_cast %163 : vector<8xf32> to vector<8x1xf32>
    %165 = vector.broadcast %164 : vector<8x1xf32> to vector<8x8xf32>
    %166 = arith.subf %162, %165 : vector<8x8xf32>
    %167 = math.exp %166 : vector<8x8xf32>
    %cst_54 = arith.constant dense<0.000000e+00> : vector<8xf32>
    %168 = vector.multi_reduction <add>, %167, %cst_54 [1] : vector<8x8xf32> to vector<8xf32>
    %169 = vector.shape_cast %168 : vector<8xf32> to vector<8x1xf32>
    %170 = tpu.reciprocal %169 {approx = true} : vector<8x1xf32> -> vector<8x1xf32>
    %171 = vector.broadcast %170 : vector<8x1xf32> to vector<8x8xf32>
    %172 = arith.mulf %167, %171 : vector<8x8xf32>
    %173 = vector.extract_strided_slice %123 {offsets = [0, 64], sizes = [8, 32], strides = [1, 1]} : vector<8x128xf32> to vector<8x32xf32>
    %cst_55 = arith.constant dense<0.000000e+00> : vector<8x32xf32>
    %174 = tpu.matmul %172, %173, %cst_55 {dimension_numbers = #tpu.dot_dimension_numbers<[1], [0], [0], [1], [0, 0, 1, 1], [], []>} : vector<8x8xf32>, vector<8x32xf32>, vector<8x32xf32> -> vector<8x32xf32>
    %175 = vector.extract_strided_slice %121 {offsets = [0, 96], sizes = [8, 32], strides = [1, 1]} : vector<8x128xf32> to vector<8x32xf32>
    %176 = vector.extract_strided_slice %122 {offsets = [0, 96], sizes = [8, 32], strides = [1, 1]} : vector<8x128xf32> to vector<8x32xf32>
    %cst_56 = arith.constant dense<0.000000e+00> : vector<8x8xf32>
    %177 = tpu.matmul %175, %176, %cst_56 {dimension_numbers = #tpu.dot_dimension_numbers<[1], [1], [0], [0], [0, 0, 1, 0], [], []>} : vector<8x32xf32>, vector<8x32xf32>, vector<8x8xf32> -> vector<8x8xf32>
    %cst_57 = arith.constant 0.176776692 : f32
    %178 = vector.broadcast %cst_57 : f32 to vector<8x8xf32>
    %179 = arith.mulf %177, %178 : vector<8x8xf32>
    %cst_58 = arith.constant dense<0xFF800000> : vector<8xf32>
    %180 = vector.multi_reduction <maximumf>, %179, %cst_58 [1] : vector<8x8xf32> to vector<8xf32>
    %181 = vector.shape_cast %180 : vector<8xf32> to vector<8x1xf32>
    %182 = vector.broadcast %181 : vector<8x1xf32> to vector<8x8xf32>
    %183 = arith.subf %179, %182 : vector<8x8xf32>
    %184 = math.exp %183 : vector<8x8xf32>
    %cst_59 = arith.constant dense<0.000000e+00> : vector<8xf32>
    %185 = vector.multi_reduction <add>, %184, %cst_59 [1] : vector<8x8xf32> to vector<8xf32>
    %186 = vector.shape_cast %185 : vector<8xf32> to vector<8x1xf32>
    %187 = tpu.reciprocal %186 {approx = true} : vector<8x1xf32> -> vector<8x1xf32>
    %188 = vector.broadcast %187 : vector<8x1xf32> to vector<8x8xf32>
    %189 = arith.mulf %184, %188 : vector<8x8xf32>
    %190 = vector.extract_strided_slice %123 {offsets = [0, 96], sizes = [8, 32], strides = [1, 1]} : vector<8x128xf32> to vector<8x32xf32>
    %cst_60 = arith.constant dense<0.000000e+00> : vector<8x32xf32>
    %191 = tpu.matmul %189, %190, %cst_60 {dimension_numbers = #tpu.dot_dimension_numbers<[1], [0], [0], [1], [0, 0, 1, 1], [], []>} : vector<8x8xf32>, vector<8x32xf32>, vector<8x32xf32> -> vector<8x32xf32>
    %192 = tpu.concatenate %140, %157, %174, %191 in 1 : vector<8x32xf32>, vector<8x32xf32>, vector<8x32xf32>, vector<8x32xf32> -> vector<8x128xf32>
    %193 = tpu.concatenate %120, %192 in 0 : vector<8x128xf32>, vector<8x128xf32> -> vector<16x128xf32>
    %c0_61 = arith.constant 0 : index
    %c0_62 = arith.constant 0 : index
    %c0_63 = arith.constant 0 : index
    %194 = vector.load %arg11[%c0_61, %c0_62, %c0_63] : memref<2x128x128xbf16, #tpu.memory_space<vmem>>, vector<1x128x128xbf16>
    %195 = vector.shape_cast %194 : vector<1x128x128xbf16> to vector<128x128xbf16>
    %196 = arith.truncf %193 : vector<16x128xf32> to vector<16x128xbf16>
    %cst_64 = arith.constant dense<0.000000e+00> : vector<16x128xf32>
    %197 = tpu.matmul %196, %195, %cst_64 {dimension_numbers = #tpu.dot_dimension_numbers<[1], [0], [0], [1], [0, 0, 1, 1], [], []>} : vector<16x128xbf16>, vector<128x128xbf16>, vector<16x128xf32> -> vector<16x128xf32>
    %198 = arith.addf %11, %197 : vector<16x128xf32>
    %199 = vector.extract_strided_slice %13 {offsets = [4, 0], sizes = [1, 128], strides = [1, 1]} : vector<8x128xf32> to vector<1x128xf32>
    %200 = vector.broadcast %199 : vector<1x128xf32> to vector<16x128xf32>
    %201 = arith.addf %198, %200 : vector<16x128xf32>
    %202 = vector.extract_strided_slice %13 {offsets = [2, 0], sizes = [1, 128], strides = [1, 1]} : vector<8x128xf32> to vector<1x128xf32>
    %203 = vector.extract_strided_slice %13 {offsets = [3, 0], sizes = [1, 128], strides = [1, 1]} : vector<8x128xf32> to vector<1x128xf32>
    %cst_65 = arith.constant dense<0.000000e+00> : vector<16xf32>
    %204 = vector.multi_reduction <add>, %201, %cst_65 [1] : vector<16x128xf32> to vector<16xf32>
    %205 = vector.shape_cast %204 : vector<16xf32> to vector<16x1xf32>
    %cst_66 = arith.constant 1.280000e+02 : f32
    %206 = vector.broadcast %cst_66 : f32 to vector<16x1xf32>
    %207 = arith.divf %205, %206 : vector<16x1xf32>
    %208 = vector.broadcast %207 : vector<16x1xf32> to vector<16x128xf32>
    %209 = arith.subf %201, %208 : vector<16x128xf32>
    %210 = arith.mulf %209, %209 : vector<16x128xf32>
    %cst_67 = arith.constant dense<0.000000e+00> : vector<16xf32>
    %211 = vector.multi_reduction <add>, %210, %cst_67 [1] : vector<16x128xf32> to vector<16xf32>
    %212 = vector.shape_cast %211 : vector<16xf32> to vector<16x1xf32>
    %cst_68 = arith.constant 1.280000e+02 : f32
    %213 = vector.broadcast %cst_68 : f32 to vector<16x1xf32>
    %214 = arith.divf %212, %213 : vector<16x1xf32>
    %215 = vector.broadcast %207 : vector<16x1xf32> to vector<16x128xf32>
    %216 = arith.subf %201, %215 : vector<16x128xf32>
    %cst_69 = arith.constant 9.99999974E-6 : f32
    %217 = vector.broadcast %cst_69 : f32 to vector<16x1xf32>
    %218 = arith.addf %214, %217 : vector<16x1xf32>
    %219 = math.rsqrt %218 : vector<16x1xf32>
    %220 = vector.broadcast %219 : vector<16x1xf32> to vector<16x128xf32>
    %221 = arith.mulf %216, %220 : vector<16x128xf32>
    %222 = vector.broadcast %202 : vector<1x128xf32> to vector<16x128xf32>
    %223 = arith.mulf %221, %222 : vector<16x128xf32>
    %224 = vector.broadcast %203 : vector<1x128xf32> to vector<16x128xf32>
    %225 = arith.addf %223, %224 : vector<16x128xf32>
    %c0_70 = arith.constant 0 : index
    %c0_71 = arith.constant 0 : index
    %c0_72 = arith.constant 0 : index
    %226 = vector.load %arg12[%c0_70, %c0_71, %c0_72] : memref<2x128x256xbf16, #tpu.memory_space<vmem>>, vector<1x128x256xbf16>
    %227 = vector.shape_cast %226 : vector<1x128x256xbf16> to vector<128x256xbf16>
    %228 = arith.truncf %225 : vector<16x128xf32> to vector<16x128xbf16>
    %cst_73 = arith.constant dense<0.000000e+00> : vector<16x256xf32>
    %229 = tpu.matmul %228, %227, %cst_73 {dimension_numbers = #tpu.dot_dimension_numbers<[1], [0], [0], [1], [0, 0, 1, 1], [], []>} : vector<16x128xbf16>, vector<128x256xbf16>, vector<16x256xf32> -> vector<16x256xf32>
    %c0_74 = arith.constant 0 : index
    %c0_75 = arith.constant 0 : index
    %c0_76 = arith.constant 0 : index
    %230 = vector.load %arg9[%c0_74, %c0_75, %c0_76] : memref<2x1x256xf32, #tpu.memory_space<vmem>>, vector<1x1x256xf32>
    %231 = vector.shape_cast %230 : vector<1x1x256xf32> to vector<1x256xf32>
    %232 = vector.broadcast %231 : vector<1x256xf32> to vector<16x256xf32>
    %233 = arith.addf %229, %232 : vector<16x256xf32>
    %cst_77 = arith.constant 0.000000e+00 : f32
    %234 = vector.broadcast %cst_77 : f32 to vector<16x256xf32>
    %235 = arith.maximumf %233, %234 : vector<16x256xf32>
    %c0_78 = arith.constant 0 : index
    %c0_79 = arith.constant 0 : index
    %c0_80 = arith.constant 0 : index
    %236 = vector.load %arg13[%c0_78, %c0_79, %c0_80] : memref<2x256x128xbf16, #tpu.memory_space<vmem>>, vector<1x256x128xbf16>
    %237 = vector.shape_cast %236 : vector<1x256x128xbf16> to vector<256x128xbf16>
    %238 = arith.truncf %235 : vector<16x256xf32> to vector<16x256xbf16>
    %cst_81 = arith.constant dense<0.000000e+00> : vector<16x128xf32>
    %239 = tpu.matmul %238, %237, %cst_81 {dimension_numbers = #tpu.dot_dimension_numbers<[1], [0], [0], [1], [0, 0, 1, 1], [], []>} : vector<16x256xbf16>, vector<256x128xbf16>, vector<16x128xf32> -> vector<16x128xf32>
    %240 = arith.addf %201, %239 : vector<16x128xf32>
    %241 = vector.extract_strided_slice %13 {offsets = [5, 0], sizes = [1, 128], strides = [1, 1]} : vector<8x128xf32> to vector<1x128xf32>
    %242 = vector.broadcast %241 : vector<1x128xf32> to vector<16x128xf32>
    %243 = arith.addf %240, %242 : vector<16x128xf32>
    %c1 = arith.constant 1 : index
    %c0_82 = arith.constant 0 : index
    %c0_83 = arith.constant 0 : index
    %244 = vector.load %arg7[%c1, %c0_82, %c0_83] : memref<2x8x128xf32, #tpu.memory_space<vmem>>, vector<1x8x128xf32>
    %245 = vector.shape_cast %244 : vector<1x8x128xf32> to vector<8x128xf32>
    %246 = vector.extract_strided_slice %245 {offsets = [0, 0], sizes = [1, 128], strides = [1, 1]} : vector<8x128xf32> to vector<1x128xf32>
    %247 = vector.extract_strided_slice %245 {offsets = [1, 0], sizes = [1, 128], strides = [1, 1]} : vector<8x128xf32> to vector<1x128xf32>
    %cst_84 = arith.constant dense<0.000000e+00> : vector<16xf32>
    %248 = vector.multi_reduction <add>, %243, %cst_84 [1] : vector<16x128xf32> to vector<16xf32>
    %249 = vector.shape_cast %248 : vector<16xf32> to vector<16x1xf32>
    %cst_85 = arith.constant 1.280000e+02 : f32
    %250 = vector.broadcast %cst_85 : f32 to vector<16x1xf32>
    %251 = arith.divf %249, %250 : vector<16x1xf32>
    %252 = vector.broadcast %251 : vector<16x1xf32> to vector<16x128xf32>
    %253 = arith.subf %243, %252 : vector<16x128xf32>
    %254 = arith.mulf %253, %253 : vector<16x128xf32>
    %cst_86 = arith.constant dense<0.000000e+00> : vector<16xf32>
    %255 = vector.multi_reduction <add>, %254, %cst_86 [1] : vector<16x128xf32> to vector<16xf32>
    %256 = vector.shape_cast %255 : vector<16xf32> to vector<16x1xf32>
    %cst_87 = arith.constant 1.280000e+02 : f32
    %257 = vector.broadcast %cst_87 : f32 to vector<16x1xf32>
    %258 = arith.divf %256, %257 : vector<16x1xf32>
    %259 = vector.broadcast %251 : vector<16x1xf32> to vector<16x128xf32>
    %260 = arith.subf %243, %259 : vector<16x128xf32>
    %cst_88 = arith.constant 9.99999974E-6 : f32
    %261 = vector.broadcast %cst_88 : f32 to vector<16x1xf32>
    %262 = arith.addf %258, %261 : vector<16x1xf32>
    %263 = math.rsqrt %262 : vector<16x1xf32>
    %264 = vector.broadcast %263 : vector<16x1xf32> to vector<16x128xf32>
    %265 = arith.mulf %260, %264 : vector<16x128xf32>
    %266 = vector.broadcast %246 : vector<1x128xf32> to vector<16x128xf32>
    %267 = arith.mulf %265, %266 : vector<16x128xf32>
    %268 = vector.broadcast %247 : vector<1x128xf32> to vector<16x128xf32>
    %269 = arith.addf %267, %268 : vector<16x128xf32>
    %c1_89 = arith.constant 1 : index
    %c0_90 = arith.constant 0 : index
    %c0_91 = arith.constant 0 : index
    %270 = vector.load %arg10[%c1_89, %c0_90, %c0_91] : memref<2x128x384xbf16, #tpu.memory_space<vmem>>, vector<1x128x384xbf16>
    %271 = vector.shape_cast %270 : vector<1x128x384xbf16> to vector<128x384xbf16>
    %272 = arith.truncf %269 : vector<16x128xf32> to vector<16x128xbf16>
    %cst_92 = arith.constant dense<0.000000e+00> : vector<16x384xf32>
    %273 = tpu.matmul %272, %271, %cst_92 {dimension_numbers = #tpu.dot_dimension_numbers<[1], [0], [0], [1], [0, 0, 1, 1], [], []>} : vector<16x128xbf16>, vector<128x384xbf16>, vector<16x384xf32> -> vector<16x384xf32>
    %c1_93 = arith.constant 1 : index
    %c0_94 = arith.constant 0 : index
    %c0_95 = arith.constant 0 : index
    %274 = vector.load %arg8[%c1_93, %c0_94, %c0_95] : memref<2x1x384xf32, #tpu.memory_space<vmem>>, vector<1x1x384xf32>
    %275 = vector.shape_cast %274 : vector<1x1x384xf32> to vector<1x384xf32>
    %276 = vector.broadcast %275 : vector<1x384xf32> to vector<16x384xf32>
    %277 = arith.addf %273, %276 : vector<16x384xf32>
    %278 = vector.extract_strided_slice %277 {offsets = [0, 0], sizes = [16, 128], strides = [1, 1]} : vector<16x384xf32> to vector<16x128xf32>
    %279 = vector.extract_strided_slice %277 {offsets = [0, 128], sizes = [16, 128], strides = [1, 1]} : vector<16x384xf32> to vector<16x128xf32>
    %280 = vector.extract_strided_slice %277 {offsets = [0, 256], sizes = [16, 128], strides = [1, 1]} : vector<16x384xf32> to vector<16x128xf32>
    %281 = vector.extract_strided_slice %278 {offsets = [0, 0], sizes = [8, 128], strides = [1, 1]} : vector<16x128xf32> to vector<8x128xf32>
    %282 = vector.extract_strided_slice %279 {offsets = [0, 0], sizes = [8, 128], strides = [1, 1]} : vector<16x128xf32> to vector<8x128xf32>
    %283 = vector.extract_strided_slice %280 {offsets = [0, 0], sizes = [8, 128], strides = [1, 1]} : vector<16x128xf32> to vector<8x128xf32>
    %284 = vector.extract_strided_slice %281 {offsets = [0, 0], sizes = [8, 32], strides = [1, 1]} : vector<8x128xf32> to vector<8x32xf32>
    %285 = vector.extract_strided_slice %282 {offsets = [0, 0], sizes = [8, 32], strides = [1, 1]} : vector<8x128xf32> to vector<8x32xf32>
    %cst_96 = arith.constant dense<0.000000e+00> : vector<8x8xf32>
    %286 = tpu.matmul %284, %285, %cst_96 {dimension_numbers = #tpu.dot_dimension_numbers<[1], [1], [0], [0], [0, 0, 1, 0], [], []>} : vector<8x32xf32>, vector<8x32xf32>, vector<8x8xf32> -> vector<8x8xf32>
    %cst_97 = arith.constant 0.176776692 : f32
    %287 = vector.broadcast %cst_97 : f32 to vector<8x8xf32>
    %288 = arith.mulf %286, %287 : vector<8x8xf32>
    %cst_98 = arith.constant dense<0xFF800000> : vector<8xf32>
    %289 = vector.multi_reduction <maximumf>, %288, %cst_98 [1] : vector<8x8xf32> to vector<8xf32>
    %290 = vector.shape_cast %289 : vector<8xf32> to vector<8x1xf32>
    %291 = vector.broadcast %290 : vector<8x1xf32> to vector<8x8xf32>
    %292 = arith.subf %288, %291 : vector<8x8xf32>
    %293 = math.exp %292 : vector<8x8xf32>
    %cst_99 = arith.constant dense<0.000000e+00> : vector<8xf32>
    %294 = vector.multi_reduction <add>, %293, %cst_99 [1] : vector<8x8xf32> to vector<8xf32>
    %295 = vector.shape_cast %294 : vector<8xf32> to vector<8x1xf32>
    %296 = tpu.reciprocal %295 {approx = true} : vector<8x1xf32> -> vector<8x1xf32>
    %297 = vector.broadcast %296 : vector<8x1xf32> to vector<8x8xf32>
    %298 = arith.mulf %293, %297 : vector<8x8xf32>
    %299 = vector.extract_strided_slice %283 {offsets = [0, 0], sizes = [8, 32], strides = [1, 1]} : vector<8x128xf32> to vector<8x32xf32>
    %cst_100 = arith.constant dense<0.000000e+00> : vector<8x32xf32>
    %300 = tpu.matmul %298, %299, %cst_100 {dimension_numbers = #tpu.dot_dimension_numbers<[1], [0], [0], [1], [0, 0, 1, 1], [], []>} : vector<8x8xf32>, vector<8x32xf32>, vector<8x32xf32> -> vector<8x32xf32>
    %301 = vector.extract_strided_slice %281 {offsets = [0, 32], sizes = [8, 32], strides = [1, 1]} : vector<8x128xf32> to vector<8x32xf32>
    %302 = vector.extract_strided_slice %282 {offsets = [0, 32], sizes = [8, 32], strides = [1, 1]} : vector<8x128xf32> to vector<8x32xf32>
    %cst_101 = arith.constant dense<0.000000e+00> : vector<8x8xf32>
    %303 = tpu.matmul %301, %302, %cst_101 {dimension_numbers = #tpu.dot_dimension_numbers<[1], [1], [0], [0], [0, 0, 1, 0], [], []>} : vector<8x32xf32>, vector<8x32xf32>, vector<8x8xf32> -> vector<8x8xf32>
    %cst_102 = arith.constant 0.176776692 : f32
    %304 = vector.broadcast %cst_102 : f32 to vector<8x8xf32>
    %305 = arith.mulf %303, %304 : vector<8x8xf32>
    %cst_103 = arith.constant dense<0xFF800000> : vector<8xf32>
    %306 = vector.multi_reduction <maximumf>, %305, %cst_103 [1] : vector<8x8xf32> to vector<8xf32>
    %307 = vector.shape_cast %306 : vector<8xf32> to vector<8x1xf32>
    %308 = vector.broadcast %307 : vector<8x1xf32> to vector<8x8xf32>
    %309 = arith.subf %305, %308 : vector<8x8xf32>
    %310 = math.exp %309 : vector<8x8xf32>
    %cst_104 = arith.constant dense<0.000000e+00> : vector<8xf32>
    %311 = vector.multi_reduction <add>, %310, %cst_104 [1] : vector<8x8xf32> to vector<8xf32>
    %312 = vector.shape_cast %311 : vector<8xf32> to vector<8x1xf32>
    %313 = tpu.reciprocal %312 {approx = true} : vector<8x1xf32> -> vector<8x1xf32>
    %314 = vector.broadcast %313 : vector<8x1xf32> to vector<8x8xf32>
    %315 = arith.mulf %310, %314 : vector<8x8xf32>
    %316 = vector.extract_strided_slice %283 {offsets = [0, 32], sizes = [8, 32], strides = [1, 1]} : vector<8x128xf32> to vector<8x32xf32>
    %cst_105 = arith.constant dense<0.000000e+00> : vector<8x32xf32>
    %317 = tpu.matmul %315, %316, %cst_105 {dimension_numbers = #tpu.dot_dimension_numbers<[1], [0], [0], [1], [0, 0, 1, 1], [], []>} : vector<8x8xf32>, vector<8x32xf32>, vector<8x32xf32> -> vector<8x32xf32>
    %318 = vector.extract_strided_slice %281 {offsets = [0, 64], sizes = [8, 32], strides = [1, 1]} : vector<8x128xf32> to vector<8x32xf32>
    %319 = vector.extract_strided_slice %282 {offsets = [0, 64], sizes = [8, 32], strides = [1, 1]} : vector<8x128xf32> to vector<8x32xf32>
    %cst_106 = arith.constant dense<0.000000e+00> : vector<8x8xf32>
    %320 = tpu.matmul %318, %319, %cst_106 {dimension_numbers = #tpu.dot_dimension_numbers<[1], [1], [0], [0], [0, 0, 1, 0], [], []>} : vector<8x32xf32>, vector<8x32xf32>, vector<8x8xf32> -> vector<8x8xf32>
    %cst_107 = arith.constant 0.176776692 : f32
    %321 = vector.broadcast %cst_107 : f32 to vector<8x8xf32>
    %322 = arith.mulf %320, %321 : vector<8x8xf32>
    %cst_108 = arith.constant dense<0xFF800000> : vector<8xf32>
    %323 = vector.multi_reduction <maximumf>, %322, %cst_108 [1] : vector<8x8xf32> to vector<8xf32>
    %324 = vector.shape_cast %323 : vector<8xf32> to vector<8x1xf32>
    %325 = vector.broadcast %324 : vector<8x1xf32> to vector<8x8xf32>
    %326 = arith.subf %322, %325 : vector<8x8xf32>
    %327 = math.exp %326 : vector<8x8xf32>
    %cst_109 = arith.constant dense<0.000000e+00> : vector<8xf32>
    %328 = vector.multi_reduction <add>, %327, %cst_109 [1] : vector<8x8xf32> to vector<8xf32>
    %329 = vector.shape_cast %328 : vector<8xf32> to vector<8x1xf32>
    %330 = tpu.reciprocal %329 {approx = true} : vector<8x1xf32> -> vector<8x1xf32>
    %331 = vector.broadcast %330 : vector<8x1xf32> to vector<8x8xf32>
    %332 = arith.mulf %327, %331 : vector<8x8xf32>
    %333 = vector.extract_strided_slice %283 {offsets = [0, 64], sizes = [8, 32], strides = [1, 1]} : vector<8x128xf32> to vector<8x32xf32>
    %cst_110 = arith.constant dense<0.000000e+00> : vector<8x32xf32>
    %334 = tpu.matmul %332, %333, %cst_110 {dimension_numbers = #tpu.dot_dimension_numbers<[1], [0], [0], [1], [0, 0, 1, 1], [], []>} : vector<8x8xf32>, vector<8x32xf32>, vector<8x32xf32> -> vector<8x32xf32>
    %335 = vector.extract_strided_slice %281 {offsets = [0, 96], sizes = [8, 32], strides = [1, 1]} : vector<8x128xf32> to vector<8x32xf32>
    %336 = vector.extract_strided_slice %282 {offsets = [0, 96], sizes = [8, 32], strides = [1, 1]} : vector<8x128xf32> to vector<8x32xf32>
    %cst_111 = arith.constant dense<0.000000e+00> : vector<8x8xf32>
    %337 = tpu.matmul %335, %336, %cst_111 {dimension_numbers = #tpu.dot_dimension_numbers<[1], [1], [0], [0], [0, 0, 1, 0], [], []>} : vector<8x32xf32>, vector<8x32xf32>, vector<8x8xf32> -> vector<8x8xf32>
    %cst_112 = arith.constant 0.176776692 : f32
    %338 = vector.broadcast %cst_112 : f32 to vector<8x8xf32>
    %339 = arith.mulf %337, %338 : vector<8x8xf32>
    %cst_113 = arith.constant dense<0xFF800000> : vector<8xf32>
    %340 = vector.multi_reduction <maximumf>, %339, %cst_113 [1] : vector<8x8xf32> to vector<8xf32>
    %341 = vector.shape_cast %340 : vector<8xf32> to vector<8x1xf32>
    %342 = vector.broadcast %341 : vector<8x1xf32> to vector<8x8xf32>
    %343 = arith.subf %339, %342 : vector<8x8xf32>
    %344 = math.exp %343 : vector<8x8xf32>
    %cst_114 = arith.constant dense<0.000000e+00> : vector<8xf32>
    %345 = vector.multi_reduction <add>, %344, %cst_114 [1] : vector<8x8xf32> to vector<8xf32>
    %346 = vector.shape_cast %345 : vector<8xf32> to vector<8x1xf32>
    %347 = tpu.reciprocal %346 {approx = true} : vector<8x1xf32> -> vector<8x1xf32>
    %348 = vector.broadcast %347 : vector<8x1xf32> to vector<8x8xf32>
    %349 = arith.mulf %344, %348 : vector<8x8xf32>
    %350 = vector.extract_strided_slice %283 {offsets = [0, 96], sizes = [8, 32], strides = [1, 1]} : vector<8x128xf32> to vector<8x32xf32>
    %cst_115 = arith.constant dense<0.000000e+00> : vector<8x32xf32>
    %351 = tpu.matmul %349, %350, %cst_115 {dimension_numbers = #tpu.dot_dimension_numbers<[1], [0], [0], [1], [0, 0, 1, 1], [], []>} : vector<8x8xf32>, vector<8x32xf32>, vector<8x32xf32> -> vector<8x32xf32>
    %352 = tpu.concatenate %300, %317, %334, %351 in 1 : vector<8x32xf32>, vector<8x32xf32>, vector<8x32xf32>, vector<8x32xf32> -> vector<8x128xf32>
    %353 = vector.extract_strided_slice %278 {offsets = [8, 0], sizes = [8, 128], strides = [1, 1]} : vector<16x128xf32> to vector<8x128xf32>
    %354 = vector.extract_strided_slice %279 {offsets = [8, 0], sizes = [8, 128], strides = [1, 1]} : vector<16x128xf32> to vector<8x128xf32>
    %355 = vector.extract_strided_slice %280 {offsets = [8, 0], sizes = [8, 128], strides = [1, 1]} : vector<16x128xf32> to vector<8x128xf32>
    %356 = vector.extract_strided_slice %353 {offsets = [0, 0], sizes = [8, 32], strides = [1, 1]} : vector<8x128xf32> to vector<8x32xf32>
    %357 = vector.extract_strided_slice %354 {offsets = [0, 0], sizes = [8, 32], strides = [1, 1]} : vector<8x128xf32> to vector<8x32xf32>
    %cst_116 = arith.constant dense<0.000000e+00> : vector<8x8xf32>
    %358 = tpu.matmul %356, %357, %cst_116 {dimension_numbers = #tpu.dot_dimension_numbers<[1], [1], [0], [0], [0, 0, 1, 0], [], []>} : vector<8x32xf32>, vector<8x32xf32>, vector<8x8xf32> -> vector<8x8xf32>
    %cst_117 = arith.constant 0.176776692 : f32
    %359 = vector.broadcast %cst_117 : f32 to vector<8x8xf32>
    %360 = arith.mulf %358, %359 : vector<8x8xf32>
    %cst_118 = arith.constant dense<0xFF800000> : vector<8xf32>
    %361 = vector.multi_reduction <maximumf>, %360, %cst_118 [1] : vector<8x8xf32> to vector<8xf32>
    %362 = vector.shape_cast %361 : vector<8xf32> to vector<8x1xf32>
    %363 = vector.broadcast %362 : vector<8x1xf32> to vector<8x8xf32>
    %364 = arith.subf %360, %363 : vector<8x8xf32>
    %365 = math.exp %364 : vector<8x8xf32>
    %cst_119 = arith.constant dense<0.000000e+00> : vector<8xf32>
    %366 = vector.multi_reduction <add>, %365, %cst_119 [1] : vector<8x8xf32> to vector<8xf32>
    %367 = vector.shape_cast %366 : vector<8xf32> to vector<8x1xf32>
    %368 = tpu.reciprocal %367 {approx = true} : vector<8x1xf32> -> vector<8x1xf32>
    %369 = vector.broadcast %368 : vector<8x1xf32> to vector<8x8xf32>
    %370 = arith.mulf %365, %369 : vector<8x8xf32>
    %371 = vector.extract_strided_slice %355 {offsets = [0, 0], sizes = [8, 32], strides = [1, 1]} : vector<8x128xf32> to vector<8x32xf32>
    %cst_120 = arith.constant dense<0.000000e+00> : vector<8x32xf32>
    %372 = tpu.matmul %370, %371, %cst_120 {dimension_numbers = #tpu.dot_dimension_numbers<[1], [0], [0], [1], [0, 0, 1, 1], [], []>} : vector<8x8xf32>, vector<8x32xf32>, vector<8x32xf32> -> vector<8x32xf32>
    %373 = vector.extract_strided_slice %353 {offsets = [0, 32], sizes = [8, 32], strides = [1, 1]} : vector<8x128xf32> to vector<8x32xf32>
    %374 = vector.extract_strided_slice %354 {offsets = [0, 32], sizes = [8, 32], strides = [1, 1]} : vector<8x128xf32> to vector<8x32xf32>
    %cst_121 = arith.constant dense<0.000000e+00> : vector<8x8xf32>
    %375 = tpu.matmul %373, %374, %cst_121 {dimension_numbers = #tpu.dot_dimension_numbers<[1], [1], [0], [0], [0, 0, 1, 0], [], []>} : vector<8x32xf32>, vector<8x32xf32>, vector<8x8xf32> -> vector<8x8xf32>
    %cst_122 = arith.constant 0.176776692 : f32
    %376 = vector.broadcast %cst_122 : f32 to vector<8x8xf32>
    %377 = arith.mulf %375, %376 : vector<8x8xf32>
    %cst_123 = arith.constant dense<0xFF800000> : vector<8xf32>
    %378 = vector.multi_reduction <maximumf>, %377, %cst_123 [1] : vector<8x8xf32> to vector<8xf32>
    %379 = vector.shape_cast %378 : vector<8xf32> to vector<8x1xf32>
    %380 = vector.broadcast %379 : vector<8x1xf32> to vector<8x8xf32>
    %381 = arith.subf %377, %380 : vector<8x8xf32>
    %382 = math.exp %381 : vector<8x8xf32>
    %cst_124 = arith.constant dense<0.000000e+00> : vector<8xf32>
    %383 = vector.multi_reduction <add>, %382, %cst_124 [1] : vector<8x8xf32> to vector<8xf32>
    %384 = vector.shape_cast %383 : vector<8xf32> to vector<8x1xf32>
    %385 = tpu.reciprocal %384 {approx = true} : vector<8x1xf32> -> vector<8x1xf32>
    %386 = vector.broadcast %385 : vector<8x1xf32> to vector<8x8xf32>
    %387 = arith.mulf %382, %386 : vector<8x8xf32>
    %388 = vector.extract_strided_slice %355 {offsets = [0, 32], sizes = [8, 32], strides = [1, 1]} : vector<8x128xf32> to vector<8x32xf32>
    %cst_125 = arith.constant dense<0.000000e+00> : vector<8x32xf32>
    %389 = tpu.matmul %387, %388, %cst_125 {dimension_numbers = #tpu.dot_dimension_numbers<[1], [0], [0], [1], [0, 0, 1, 1], [], []>} : vector<8x8xf32>, vector<8x32xf32>, vector<8x32xf32> -> vector<8x32xf32>
    %390 = vector.extract_strided_slice %353 {offsets = [0, 64], sizes = [8, 32], strides = [1, 1]} : vector<8x128xf32> to vector<8x32xf32>
    %391 = vector.extract_strided_slice %354 {offsets = [0, 64], sizes = [8, 32], strides = [1, 1]} : vector<8x128xf32> to vector<8x32xf32>
    %cst_126 = arith.constant dense<0.000000e+00> : vector<8x8xf32>
    %392 = tpu.matmul %390, %391, %cst_126 {dimension_numbers = #tpu.dot_dimension_numbers<[1], [1], [0], [0], [0, 0, 1, 0], [], []>} : vector<8x32xf32>, vector<8x32xf32>, vector<8x8xf32> -> vector<8x8xf32>
    %cst_127 = arith.constant 0.176776692 : f32
    %393 = vector.broadcast %cst_127 : f32 to vector<8x8xf32>
    %394 = arith.mulf %392, %393 : vector<8x8xf32>
    %cst_128 = arith.constant dense<0xFF800000> : vector<8xf32>
    %395 = vector.multi_reduction <maximumf>, %394, %cst_128 [1] : vector<8x8xf32> to vector<8xf32>
    %396 = vector.shape_cast %395 : vector<8xf32> to vector<8x1xf32>
    %397 = vector.broadcast %396 : vector<8x1xf32> to vector<8x8xf32>
    %398 = arith.subf %394, %397 : vector<8x8xf32>
    %399 = math.exp %398 : vector<8x8xf32>
    %cst_129 = arith.constant dense<0.000000e+00> : vector<8xf32>
    %400 = vector.multi_reduction <add>, %399, %cst_129 [1] : vector<8x8xf32> to vector<8xf32>
    %401 = vector.shape_cast %400 : vector<8xf32> to vector<8x1xf32>
    %402 = tpu.reciprocal %401 {approx = true} : vector<8x1xf32> -> vector<8x1xf32>
    %403 = vector.broadcast %402 : vector<8x1xf32> to vector<8x8xf32>
    %404 = arith.mulf %399, %403 : vector<8x8xf32>
    %405 = vector.extract_strided_slice %355 {offsets = [0, 64], sizes = [8, 32], strides = [1, 1]} : vector<8x128xf32> to vector<8x32xf32>
    %cst_130 = arith.constant dense<0.000000e+00> : vector<8x32xf32>
    %406 = tpu.matmul %404, %405, %cst_130 {dimension_numbers = #tpu.dot_dimension_numbers<[1], [0], [0], [1], [0, 0, 1, 1], [], []>} : vector<8x8xf32>, vector<8x32xf32>, vector<8x32xf32> -> vector<8x32xf32>
    %407 = vector.extract_strided_slice %353 {offsets = [0, 96], sizes = [8, 32], strides = [1, 1]} : vector<8x128xf32> to vector<8x32xf32>
    %408 = vector.extract_strided_slice %354 {offsets = [0, 96], sizes = [8, 32], strides = [1, 1]} : vector<8x128xf32> to vector<8x32xf32>
    %cst_131 = arith.constant dense<0.000000e+00> : vector<8x8xf32>
    %409 = tpu.matmul %407, %408, %cst_131 {dimension_numbers = #tpu.dot_dimension_numbers<[1], [1], [0], [0], [0, 0, 1, 0], [], []>} : vector<8x32xf32>, vector<8x32xf32>, vector<8x8xf32> -> vector<8x8xf32>
    %cst_132 = arith.constant 0.176776692 : f32
    %410 = vector.broadcast %cst_132 : f32 to vector<8x8xf32>
    %411 = arith.mulf %409, %410 : vector<8x8xf32>
    %cst_133 = arith.constant dense<0xFF800000> : vector<8xf32>
    %412 = vector.multi_reduction <maximumf>, %411, %cst_133 [1] : vector<8x8xf32> to vector<8xf32>
    %413 = vector.shape_cast %412 : vector<8xf32> to vector<8x1xf32>
    %414 = vector.broadcast %413 : vector<8x1xf32> to vector<8x8xf32>
    %415 = arith.subf %411, %414 : vector<8x8xf32>
    %416 = math.exp %415 : vector<8x8xf32>
    %cst_134 = arith.constant dense<0.000000e+00> : vector<8xf32>
    %417 = vector.multi_reduction <add>, %416, %cst_134 [1] : vector<8x8xf32> to vector<8xf32>
    %418 = vector.shape_cast %417 : vector<8xf32> to vector<8x1xf32>
    %419 = tpu.reciprocal %418 {approx = true} : vector<8x1xf32> -> vector<8x1xf32>
    %420 = vector.broadcast %419 : vector<8x1xf32> to vector<8x8xf32>
    %421 = arith.mulf %416, %420 : vector<8x8xf32>
    %422 = vector.extract_strided_slice %355 {offsets = [0, 96], sizes = [8, 32], strides = [1, 1]} : vector<8x128xf32> to vector<8x32xf32>
    %cst_135 = arith.constant dense<0.000000e+00> : vector<8x32xf32>
    %423 = tpu.matmul %421, %422, %cst_135 {dimension_numbers = #tpu.dot_dimension_numbers<[1], [0], [0], [1], [0, 0, 1, 1], [], []>} : vector<8x8xf32>, vector<8x32xf32>, vector<8x32xf32> -> vector<8x32xf32>
    %424 = tpu.concatenate %372, %389, %406, %423 in 1 : vector<8x32xf32>, vector<8x32xf32>, vector<8x32xf32>, vector<8x32xf32> -> vector<8x128xf32>
    %425 = tpu.concatenate %352, %424 in 0 : vector<8x128xf32>, vector<8x128xf32> -> vector<16x128xf32>
    %c1_136 = arith.constant 1 : index
    %c0_137 = arith.constant 0 : index
    %c0_138 = arith.constant 0 : index
    %426 = vector.load %arg11[%c1_136, %c0_137, %c0_138] : memref<2x128x128xbf16, #tpu.memory_space<vmem>>, vector<1x128x128xbf16>
    %427 = vector.shape_cast %426 : vector<1x128x128xbf16> to vector<128x128xbf16>
    %428 = arith.truncf %425 : vector<16x128xf32> to vector<16x128xbf16>
    %cst_139 = arith.constant dense<0.000000e+00> : vector<16x128xf32>
    %429 = tpu.matmul %428, %427, %cst_139 {dimension_numbers = #tpu.dot_dimension_numbers<[1], [0], [0], [1], [0, 0, 1, 1], [], []>} : vector<16x128xbf16>, vector<128x128xbf16>, vector<16x128xf32> -> vector<16x128xf32>
    %430 = arith.addf %243, %429 : vector<16x128xf32>
    %431 = vector.extract_strided_slice %245 {offsets = [4, 0], sizes = [1, 128], strides = [1, 1]} : vector<8x128xf32> to vector<1x128xf32>
    %432 = vector.broadcast %431 : vector<1x128xf32> to vector<16x128xf32>
    %433 = arith.addf %430, %432 : vector<16x128xf32>
    %434 = vector.extract_strided_slice %245 {offsets = [2, 0], sizes = [1, 128], strides = [1, 1]} : vector<8x128xf32> to vector<1x128xf32>
    %435 = vector.extract_strided_slice %245 {offsets = [3, 0], sizes = [1, 128], strides = [1, 1]} : vector<8x128xf32> to vector<1x128xf32>
    %cst_140 = arith.constant dense<0.000000e+00> : vector<16xf32>
    %436 = vector.multi_reduction <add>, %433, %cst_140 [1] : vector<16x128xf32> to vector<16xf32>
    %437 = vector.shape_cast %436 : vector<16xf32> to vector<16x1xf32>
    %cst_141 = arith.constant 1.280000e+02 : f32
    %438 = vector.broadcast %cst_141 : f32 to vector<16x1xf32>
    %439 = arith.divf %437, %438 : vector<16x1xf32>
    %440 = vector.broadcast %439 : vector<16x1xf32> to vector<16x128xf32>
    %441 = arith.subf %433, %440 : vector<16x128xf32>
    %442 = arith.mulf %441, %441 : vector<16x128xf32>
    %cst_142 = arith.constant dense<0.000000e+00> : vector<16xf32>
    %443 = vector.multi_reduction <add>, %442, %cst_142 [1] : vector<16x128xf32> to vector<16xf32>
    %444 = vector.shape_cast %443 : vector<16xf32> to vector<16x1xf32>
    %cst_143 = arith.constant 1.280000e+02 : f32
    %445 = vector.broadcast %cst_143 : f32 to vector<16x1xf32>
    %446 = arith.divf %444, %445 : vector<16x1xf32>
    %447 = vector.broadcast %439 : vector<16x1xf32> to vector<16x128xf32>
    %448 = arith.subf %433, %447 : vector<16x128xf32>
    %cst_144 = arith.constant 9.99999974E-6 : f32
    %449 = vector.broadcast %cst_144 : f32 to vector<16x1xf32>
    %450 = arith.addf %446, %449 : vector<16x1xf32>
    %451 = math.rsqrt %450 : vector<16x1xf32>
    %452 = vector.broadcast %451 : vector<16x1xf32> to vector<16x128xf32>
    %453 = arith.mulf %448, %452 : vector<16x128xf32>
    %454 = vector.broadcast %434 : vector<1x128xf32> to vector<16x128xf32>
    %455 = arith.mulf %453, %454 : vector<16x128xf32>
    %456 = vector.broadcast %435 : vector<1x128xf32> to vector<16x128xf32>
    %457 = arith.addf %455, %456 : vector<16x128xf32>
    %c1_145 = arith.constant 1 : index
    %c0_146 = arith.constant 0 : index
    %c0_147 = arith.constant 0 : index
    %458 = vector.load %arg12[%c1_145, %c0_146, %c0_147] : memref<2x128x256xbf16, #tpu.memory_space<vmem>>, vector<1x128x256xbf16>
    %459 = vector.shape_cast %458 : vector<1x128x256xbf16> to vector<128x256xbf16>
    %460 = arith.truncf %457 : vector<16x128xf32> to vector<16x128xbf16>
    %cst_148 = arith.constant dense<0.000000e+00> : vector<16x256xf32>
    %461 = tpu.matmul %460, %459, %cst_148 {dimension_numbers = #tpu.dot_dimension_numbers<[1], [0], [0], [1], [0, 0, 1, 1], [], []>} : vector<16x128xbf16>, vector<128x256xbf16>, vector<16x256xf32> -> vector<16x256xf32>
    %c1_149 = arith.constant 1 : index
    %c0_150 = arith.constant 0 : index
    %c0_151 = arith.constant 0 : index
    %462 = vector.load %arg9[%c1_149, %c0_150, %c0_151] : memref<2x1x256xf32, #tpu.memory_space<vmem>>, vector<1x1x256xf32>
    %463 = vector.shape_cast %462 : vector<1x1x256xf32> to vector<1x256xf32>
    %464 = vector.broadcast %463 : vector<1x256xf32> to vector<16x256xf32>
    %465 = arith.addf %461, %464 : vector<16x256xf32>
    %cst_152 = arith.constant 0.000000e+00 : f32
    %466 = vector.broadcast %cst_152 : f32 to vector<16x256xf32>
    %467 = arith.maximumf %465, %466 : vector<16x256xf32>
    %c1_153 = arith.constant 1 : index
    %c0_154 = arith.constant 0 : index
    %c0_155 = arith.constant 0 : index
    %468 = vector.load %arg13[%c1_153, %c0_154, %c0_155] : memref<2x256x128xbf16, #tpu.memory_space<vmem>>, vector<1x256x128xbf16>
    %469 = vector.shape_cast %468 : vector<1x256x128xbf16> to vector<256x128xbf16>
    %470 = arith.truncf %467 : vector<16x256xf32> to vector<16x256xbf16>
    %cst_156 = arith.constant dense<0.000000e+00> : vector<16x128xf32>
    %471 = tpu.matmul %470, %469, %cst_156 {dimension_numbers = #tpu.dot_dimension_numbers<[1], [0], [0], [1], [0, 0, 1, 1], [], []>} : vector<16x256xbf16>, vector<256x128xbf16>, vector<16x128xf32> -> vector<16x128xf32>
    %472 = arith.addf %433, %471 : vector<16x128xf32>
    %473 = vector.extract_strided_slice %245 {offsets = [5, 0], sizes = [1, 128], strides = [1, 1]} : vector<8x128xf32> to vector<1x128xf32>
    %474 = vector.broadcast %473 : vector<1x128xf32> to vector<16x128xf32>
    %475 = arith.addf %472, %474 : vector<16x128xf32>
    %c0_157 = arith.constant 0 : index
    %c0_158 = arith.constant 0 : index
    %476 = vector.load %arg25[%c0_157, %c0_158] : memref<4x128xf32, #tpu.memory_space<vmem>>, vector<4x128xf32>
    %477 = vector.extract_strided_slice %476 {offsets = [0, 0], sizes = [1, 128], strides = [1, 1]} : vector<4x128xf32> to vector<1x128xf32>
    %478 = vector.extract_strided_slice %476 {offsets = [1, 0], sizes = [1, 128], strides = [1, 1]} : vector<4x128xf32> to vector<1x128xf32>
    %cst_159 = arith.constant dense<0.000000e+00> : vector<16xf32>
    %479 = vector.multi_reduction <add>, %475, %cst_159 [1] : vector<16x128xf32> to vector<16xf32>
    %480 = vector.shape_cast %479 : vector<16xf32> to vector<16x1xf32>
    %cst_160 = arith.constant 1.280000e+02 : f32
    %481 = vector.broadcast %cst_160 : f32 to vector<16x1xf32>
    %482 = arith.divf %480, %481 : vector<16x1xf32>
    %483 = vector.broadcast %482 : vector<16x1xf32> to vector<16x128xf32>
    %484 = arith.subf %475, %483 : vector<16x128xf32>
    %485 = arith.mulf %484, %484 : vector<16x128xf32>
    %cst_161 = arith.constant dense<0.000000e+00> : vector<16xf32>
    %486 = vector.multi_reduction <add>, %485, %cst_161 [1] : vector<16x128xf32> to vector<16xf32>
    %487 = vector.shape_cast %486 : vector<16xf32> to vector<16x1xf32>
    %cst_162 = arith.constant 1.280000e+02 : f32
    %488 = vector.broadcast %cst_162 : f32 to vector<16x1xf32>
    %489 = arith.divf %487, %488 : vector<16x1xf32>
    %490 = vector.broadcast %482 : vector<16x1xf32> to vector<16x128xf32>
    %491 = arith.subf %475, %490 : vector<16x128xf32>
    %cst_163 = arith.constant 9.99999974E-6 : f32
    %492 = vector.broadcast %cst_163 : f32 to vector<16x1xf32>
    %493 = arith.addf %489, %492 : vector<16x1xf32>
    %494 = math.rsqrt %493 : vector<16x1xf32>
    %495 = vector.broadcast %494 : vector<16x1xf32> to vector<16x128xf32>
    %496 = arith.mulf %491, %495 : vector<16x128xf32>
    %497 = vector.broadcast %477 : vector<1x128xf32> to vector<16x128xf32>
    %498 = arith.mulf %496, %497 : vector<16x128xf32>
    %499 = vector.broadcast %478 : vector<1x128xf32> to vector<16x128xf32>
    %500 = arith.addf %498, %499 : vector<16x128xf32>
    %501 = arith.truncf %500 : vector<16x128xf32> to vector<16x128xbf16>
    %c0_164 = arith.constant 0 : index
    %c0_165 = arith.constant 0 : index
    %502 = vector.load %arg2[%c0_164, %c0_165] : memref<16x1xi32, #tpu.memory_space<vmem>>, vector<16x1xi32>
    %c0_166 = arith.constant 0 : index
    %c0_167 = arith.constant 0 : index
    %503 = vector.load %arg6[%c0_166, %c0_167] : memref<10x128xf32, #tpu.memory_space<vmem>>, vector<10x128xf32>
    %504 = tpu.iota {dimensions = array<i32: 1>} : vector<16x10xi32>
    %505 = vector.broadcast %502 : vector<16x1xi32> to vector<16x10xi32>
    %506 = arith.cmpi eq, %504, %505 : vector<16x10xi32>
    %507 = arith.extui %506 : vector<16x10xi1> to vector<16x10xi32>
    %508 = arith.sitofp %507 : vector<16x10xi32> to vector<16x10xf32>
    %cst_168 = arith.constant dense<0.000000e+00> : vector<16x128xf32>
    %509 = tpu.matmul %508, %503, %cst_168 {dimension_numbers = #tpu.dot_dimension_numbers<[1], [0], [0], [1], [0, 0, 1, 1], [], []>} : vector<16x10xf32>, vector<10x128xf32>, vector<16x128xf32> -> vector<16x128xf32>
    %cst_169 = arith.constant 11.3137083 : f32
    %510 = vector.broadcast %cst_169 : f32 to vector<16x128xf32>
    %511 = arith.mulf %509, %510 : vector<16x128xf32>
    %c0_170 = arith.constant 0 : index
    %c0_171 = arith.constant 0 : index
    %512 = vector.load %arg4[%c0_170, %c0_171] : memref<16x128xf32, #tpu.memory_space<vmem>>, vector<16x128xf32>
    %513 = arith.addf %511, %512 : vector<16x128xf32>
    %c0_172 = arith.constant 0 : index
    %c0_173 = arith.constant 0 : index
    %c0_174 = arith.constant 0 : index
    %514 = vector.load %arg14[%c0_172, %c0_173, %c0_174] : memref<2x16x128xf32, #tpu.memory_space<vmem>>, vector<1x16x128xf32>
    %515 = vector.shape_cast %514 : vector<1x16x128xf32> to vector<16x128xf32>
    %516 = vector.extract_strided_slice %515 {offsets = [0, 0], sizes = [1, 128], strides = [1, 1]} : vector<16x128xf32> to vector<1x128xf32>
    %517 = vector.extract_strided_slice %515 {offsets = [1, 0], sizes = [1, 128], strides = [1, 1]} : vector<16x128xf32> to vector<1x128xf32>
    %cst_175 = arith.constant dense<0.000000e+00> : vector<16xf32>
    %518 = vector.multi_reduction <add>, %513, %cst_175 [1] : vector<16x128xf32> to vector<16xf32>
    %519 = vector.shape_cast %518 : vector<16xf32> to vector<16x1xf32>
    %cst_176 = arith.constant 1.280000e+02 : f32
    %520 = vector.broadcast %cst_176 : f32 to vector<16x1xf32>
    %521 = arith.divf %519, %520 : vector<16x1xf32>
    %522 = vector.broadcast %521 : vector<16x1xf32> to vector<16x128xf32>
    %523 = arith.subf %513, %522 : vector<16x128xf32>
    %524 = arith.mulf %523, %523 : vector<16x128xf32>
    %cst_177 = arith.constant dense<0.000000e+00> : vector<16xf32>
    %525 = vector.multi_reduction <add>, %524, %cst_177 [1] : vector<16x128xf32> to vector<16xf32>
    %526 = vector.shape_cast %525 : vector<16xf32> to vector<16x1xf32>
    %cst_178 = arith.constant 1.280000e+02 : f32
    %527 = vector.broadcast %cst_178 : f32 to vector<16x1xf32>
    %528 = arith.divf %526, %527 : vector<16x1xf32>
    %529 = vector.broadcast %521 : vector<16x1xf32> to vector<16x128xf32>
    %530 = arith.subf %513, %529 : vector<16x128xf32>
    %cst_179 = arith.constant 9.99999974E-6 : f32
    %531 = vector.broadcast %cst_179 : f32 to vector<16x1xf32>
    %532 = arith.addf %528, %531 : vector<16x1xf32>
    %533 = math.rsqrt %532 : vector<16x1xf32>
    %534 = vector.broadcast %533 : vector<16x1xf32> to vector<16x128xf32>
    %535 = arith.mulf %530, %534 : vector<16x128xf32>
    %536 = vector.broadcast %516 : vector<1x128xf32> to vector<16x128xf32>
    %537 = arith.mulf %535, %536 : vector<16x128xf32>
    %538 = vector.broadcast %517 : vector<1x128xf32> to vector<16x128xf32>
    %539 = arith.addf %537, %538 : vector<16x128xf32>
    %c0_180 = arith.constant 0 : index
    %c0_181 = arith.constant 0 : index
    %c0_182 = arith.constant 0 : index
    %540 = vector.load %arg18[%c0_180, %c0_181, %c0_182] : memref<2x128x384xbf16, #tpu.memory_space<vmem>>, vector<1x128x384xbf16>
    %541 = vector.shape_cast %540 : vector<1x128x384xbf16> to vector<128x384xbf16>
    %542 = arith.truncf %539 : vector<16x128xf32> to vector<16x128xbf16>
    %cst_183 = arith.constant dense<0.000000e+00> : vector<16x384xf32>
    %543 = tpu.matmul %542, %541, %cst_183 {dimension_numbers = #tpu.dot_dimension_numbers<[1], [0], [0], [1], [0, 0, 1, 1], [], []>} : vector<16x128xbf16>, vector<128x384xbf16>, vector<16x384xf32> -> vector<16x384xf32>
    %c0_184 = arith.constant 0 : index
    %c0_185 = arith.constant 0 : index
    %c0_186 = arith.constant 0 : index
    %544 = vector.load %arg15[%c0_184, %c0_185, %c0_186] : memref<2x1x384xf32, #tpu.memory_space<vmem>>, vector<1x1x384xf32>
    %545 = vector.shape_cast %544 : vector<1x1x384xf32> to vector<1x384xf32>
    %546 = vector.broadcast %545 : vector<1x384xf32> to vector<16x384xf32>
    %547 = arith.addf %543, %546 : vector<16x384xf32>
    %548 = vector.extract_strided_slice %547 {offsets = [0, 0], sizes = [16, 128], strides = [1, 1]} : vector<16x384xf32> to vector<16x128xf32>
    %549 = vector.extract_strided_slice %547 {offsets = [0, 128], sizes = [16, 128], strides = [1, 1]} : vector<16x384xf32> to vector<16x128xf32>
    %550 = vector.extract_strided_slice %547 {offsets = [0, 256], sizes = [16, 128], strides = [1, 1]} : vector<16x384xf32> to vector<16x128xf32>
    %551 = vector.extract_strided_slice %548 {offsets = [0, 0], sizes = [8, 128], strides = [1, 1]} : vector<16x128xf32> to vector<8x128xf32>
    %552 = vector.extract_strided_slice %549 {offsets = [0, 0], sizes = [8, 128], strides = [1, 1]} : vector<16x128xf32> to vector<8x128xf32>
    %553 = vector.extract_strided_slice %550 {offsets = [0, 0], sizes = [8, 128], strides = [1, 1]} : vector<16x128xf32> to vector<8x128xf32>
    %554 = vector.extract_strided_slice %551 {offsets = [0, 0], sizes = [8, 32], strides = [1, 1]} : vector<8x128xf32> to vector<8x32xf32>
    %555 = vector.extract_strided_slice %552 {offsets = [0, 0], sizes = [8, 32], strides = [1, 1]} : vector<8x128xf32> to vector<8x32xf32>
    %cst_187 = arith.constant dense<0.000000e+00> : vector<8x8xf32>
    %556 = tpu.matmul %554, %555, %cst_187 {dimension_numbers = #tpu.dot_dimension_numbers<[1], [1], [0], [0], [0, 0, 1, 0], [], []>} : vector<8x32xf32>, vector<8x32xf32>, vector<8x8xf32> -> vector<8x8xf32>
    %cst_188 = arith.constant 0.176776692 : f32
    %557 = vector.broadcast %cst_188 : f32 to vector<8x8xf32>
    %558 = arith.mulf %556, %557 : vector<8x8xf32>
    %cst_189 = arith.constant dense<0xFF800000> : vector<8xf32>
    %559 = vector.multi_reduction <maximumf>, %558, %cst_189 [1] : vector<8x8xf32> to vector<8xf32>
    %560 = vector.shape_cast %559 : vector<8xf32> to vector<8x1xf32>
    %561 = vector.broadcast %560 : vector<8x1xf32> to vector<8x8xf32>
    %562 = arith.subf %558, %561 : vector<8x8xf32>
    %563 = math.exp %562 : vector<8x8xf32>
    %cst_190 = arith.constant dense<0.000000e+00> : vector<8xf32>
    %564 = vector.multi_reduction <add>, %563, %cst_190 [1] : vector<8x8xf32> to vector<8xf32>
    %565 = vector.shape_cast %564 : vector<8xf32> to vector<8x1xf32>
    %566 = tpu.reciprocal %565 {approx = true} : vector<8x1xf32> -> vector<8x1xf32>
    %567 = vector.broadcast %566 : vector<8x1xf32> to vector<8x8xf32>
    %568 = arith.mulf %563, %567 : vector<8x8xf32>
    %569 = vector.extract_strided_slice %553 {offsets = [0, 0], sizes = [8, 32], strides = [1, 1]} : vector<8x128xf32> to vector<8x32xf32>
    %cst_191 = arith.constant dense<0.000000e+00> : vector<8x32xf32>
    %570 = tpu.matmul %568, %569, %cst_191 {dimension_numbers = #tpu.dot_dimension_numbers<[1], [0], [0], [1], [0, 0, 1, 1], [], []>} : vector<8x8xf32>, vector<8x32xf32>, vector<8x32xf32> -> vector<8x32xf32>
    %571 = vector.extract_strided_slice %551 {offsets = [0, 32], sizes = [8, 32], strides = [1, 1]} : vector<8x128xf32> to vector<8x32xf32>
    %572 = vector.extract_strided_slice %552 {offsets = [0, 32], sizes = [8, 32], strides = [1, 1]} : vector<8x128xf32> to vector<8x32xf32>
    %cst_192 = arith.constant dense<0.000000e+00> : vector<8x8xf32>
    %573 = tpu.matmul %571, %572, %cst_192 {dimension_numbers = #tpu.dot_dimension_numbers<[1], [1], [0], [0], [0, 0, 1, 0], [], []>} : vector<8x32xf32>, vector<8x32xf32>, vector<8x8xf32> -> vector<8x8xf32>
    %cst_193 = arith.constant 0.176776692 : f32
    %574 = vector.broadcast %cst_193 : f32 to vector<8x8xf32>
    %575 = arith.mulf %573, %574 : vector<8x8xf32>
    %cst_194 = arith.constant dense<0xFF800000> : vector<8xf32>
    %576 = vector.multi_reduction <maximumf>, %575, %cst_194 [1] : vector<8x8xf32> to vector<8xf32>
    %577 = vector.shape_cast %576 : vector<8xf32> to vector<8x1xf32>
    %578 = vector.broadcast %577 : vector<8x1xf32> to vector<8x8xf32>
    %579 = arith.subf %575, %578 : vector<8x8xf32>
    %580 = math.exp %579 : vector<8x8xf32>
    %cst_195 = arith.constant dense<0.000000e+00> : vector<8xf32>
    %581 = vector.multi_reduction <add>, %580, %cst_195 [1] : vector<8x8xf32> to vector<8xf32>
    %582 = vector.shape_cast %581 : vector<8xf32> to vector<8x1xf32>
    %583 = tpu.reciprocal %582 {approx = true} : vector<8x1xf32> -> vector<8x1xf32>
    %584 = vector.broadcast %583 : vector<8x1xf32> to vector<8x8xf32>
    %585 = arith.mulf %580, %584 : vector<8x8xf32>
    %586 = vector.extract_strided_slice %553 {offsets = [0, 32], sizes = [8, 32], strides = [1, 1]} : vector<8x128xf32> to vector<8x32xf32>
    %cst_196 = arith.constant dense<0.000000e+00> : vector<8x32xf32>
    %587 = tpu.matmul %585, %586, %cst_196 {dimension_numbers = #tpu.dot_dimension_numbers<[1], [0], [0], [1], [0, 0, 1, 1], [], []>} : vector<8x8xf32>, vector<8x32xf32>, vector<8x32xf32> -> vector<8x32xf32>
    %588 = vector.extract_strided_slice %551 {offsets = [0, 64], sizes = [8, 32], strides = [1, 1]} : vector<8x128xf32> to vector<8x32xf32>
    %589 = vector.extract_strided_slice %552 {offsets = [0, 64], sizes = [8, 32], strides = [1, 1]} : vector<8x128xf32> to vector<8x32xf32>
    %cst_197 = arith.constant dense<0.000000e+00> : vector<8x8xf32>
    %590 = tpu.matmul %588, %589, %cst_197 {dimension_numbers = #tpu.dot_dimension_numbers<[1], [1], [0], [0], [0, 0, 1, 0], [], []>} : vector<8x32xf32>, vector<8x32xf32>, vector<8x8xf32> -> vector<8x8xf32>
    %cst_198 = arith.constant 0.176776692 : f32
    %591 = vector.broadcast %cst_198 : f32 to vector<8x8xf32>
    %592 = arith.mulf %590, %591 : vector<8x8xf32>
    %cst_199 = arith.constant dense<0xFF800000> : vector<8xf32>
    %593 = vector.multi_reduction <maximumf>, %592, %cst_199 [1] : vector<8x8xf32> to vector<8xf32>
    %594 = vector.shape_cast %593 : vector<8xf32> to vector<8x1xf32>
    %595 = vector.broadcast %594 : vector<8x1xf32> to vector<8x8xf32>
    %596 = arith.subf %592, %595 : vector<8x8xf32>
    %597 = math.exp %596 : vector<8x8xf32>
    %cst_200 = arith.constant dense<0.000000e+00> : vector<8xf32>
    %598 = vector.multi_reduction <add>, %597, %cst_200 [1] : vector<8x8xf32> to vector<8xf32>
    %599 = vector.shape_cast %598 : vector<8xf32> to vector<8x1xf32>
    %600 = tpu.reciprocal %599 {approx = true} : vector<8x1xf32> -> vector<8x1xf32>
    %601 = vector.broadcast %600 : vector<8x1xf32> to vector<8x8xf32>
    %602 = arith.mulf %597, %601 : vector<8x8xf32>
    %603 = vector.extract_strided_slice %553 {offsets = [0, 64], sizes = [8, 32], strides = [1, 1]} : vector<8x128xf32> to vector<8x32xf32>
    %cst_201 = arith.constant dense<0.000000e+00> : vector<8x32xf32>
    %604 = tpu.matmul %602, %603, %cst_201 {dimension_numbers = #tpu.dot_dimension_numbers<[1], [0], [0], [1], [0, 0, 1, 1], [], []>} : vector<8x8xf32>, vector<8x32xf32>, vector<8x32xf32> -> vector<8x32xf32>
    %605 = vector.extract_strided_slice %551 {offsets = [0, 96], sizes = [8, 32], strides = [1, 1]} : vector<8x128xf32> to vector<8x32xf32>
    %606 = vector.extract_strided_slice %552 {offsets = [0, 96], sizes = [8, 32], strides = [1, 1]} : vector<8x128xf32> to vector<8x32xf32>
    %cst_202 = arith.constant dense<0.000000e+00> : vector<8x8xf32>
    %607 = tpu.matmul %605, %606, %cst_202 {dimension_numbers = #tpu.dot_dimension_numbers<[1], [1], [0], [0], [0, 0, 1, 0], [], []>} : vector<8x32xf32>, vector<8x32xf32>, vector<8x8xf32> -> vector<8x8xf32>
    %cst_203 = arith.constant 0.176776692 : f32
    %608 = vector.broadcast %cst_203 : f32 to vector<8x8xf32>
    %609 = arith.mulf %607, %608 : vector<8x8xf32>
    %cst_204 = arith.constant dense<0xFF800000> : vector<8xf32>
    %610 = vector.multi_reduction <maximumf>, %609, %cst_204 [1] : vector<8x8xf32> to vector<8xf32>
    %611 = vector.shape_cast %610 : vector<8xf32> to vector<8x1xf32>
    %612 = vector.broadcast %611 : vector<8x1xf32> to vector<8x8xf32>
    %613 = arith.subf %609, %612 : vector<8x8xf32>
    %614 = math.exp %613 : vector<8x8xf32>
    %cst_205 = arith.constant dense<0.000000e+00> : vector<8xf32>
    %615 = vector.multi_reduction <add>, %614, %cst_205 [1] : vector<8x8xf32> to vector<8xf32>
    %616 = vector.shape_cast %615 : vector<8xf32> to vector<8x1xf32>
    %617 = tpu.reciprocal %616 {approx = true} : vector<8x1xf32> -> vector<8x1xf32>
    %618 = vector.broadcast %617 : vector<8x1xf32> to vector<8x8xf32>
    %619 = arith.mulf %614, %618 : vector<8x8xf32>
    %620 = vector.extract_strided_slice %553 {offsets = [0, 96], sizes = [8, 32], strides = [1, 1]} : vector<8x128xf32> to vector<8x32xf32>
    %cst_206 = arith.constant dense<0.000000e+00> : vector<8x32xf32>
    %621 = tpu.matmul %619, %620, %cst_206 {dimension_numbers = #tpu.dot_dimension_numbers<[1], [0], [0], [1], [0, 0, 1, 1], [], []>} : vector<8x8xf32>, vector<8x32xf32>, vector<8x32xf32> -> vector<8x32xf32>
    %622 = tpu.concatenate %570, %587, %604, %621 in 1 : vector<8x32xf32>, vector<8x32xf32>, vector<8x32xf32>, vector<8x32xf32> -> vector<8x128xf32>
    %623 = vector.extract_strided_slice %548 {offsets = [8, 0], sizes = [8, 128], strides = [1, 1]} : vector<16x128xf32> to vector<8x128xf32>
    %624 = vector.extract_strided_slice %549 {offsets = [8, 0], sizes = [8, 128], strides = [1, 1]} : vector<16x128xf32> to vector<8x128xf32>
    %625 = vector.extract_strided_slice %550 {offsets = [8, 0], sizes = [8, 128], strides = [1, 1]} : vector<16x128xf32> to vector<8x128xf32>
    %626 = vector.extract_strided_slice %623 {offsets = [0, 0], sizes = [8, 32], strides = [1, 1]} : vector<8x128xf32> to vector<8x32xf32>
    %627 = vector.extract_strided_slice %624 {offsets = [0, 0], sizes = [8, 32], strides = [1, 1]} : vector<8x128xf32> to vector<8x32xf32>
    %cst_207 = arith.constant dense<0.000000e+00> : vector<8x8xf32>
    %628 = tpu.matmul %626, %627, %cst_207 {dimension_numbers = #tpu.dot_dimension_numbers<[1], [1], [0], [0], [0, 0, 1, 0], [], []>} : vector<8x32xf32>, vector<8x32xf32>, vector<8x8xf32> -> vector<8x8xf32>
    %cst_208 = arith.constant 0.176776692 : f32
    %629 = vector.broadcast %cst_208 : f32 to vector<8x8xf32>
    %630 = arith.mulf %628, %629 : vector<8x8xf32>
    %cst_209 = arith.constant dense<0xFF800000> : vector<8xf32>
    %631 = vector.multi_reduction <maximumf>, %630, %cst_209 [1] : vector<8x8xf32> to vector<8xf32>
    %632 = vector.shape_cast %631 : vector<8xf32> to vector<8x1xf32>
    %633 = vector.broadcast %632 : vector<8x1xf32> to vector<8x8xf32>
    %634 = arith.subf %630, %633 : vector<8x8xf32>
    %635 = math.exp %634 : vector<8x8xf32>
    %cst_210 = arith.constant dense<0.000000e+00> : vector<8xf32>
    %636 = vector.multi_reduction <add>, %635, %cst_210 [1] : vector<8x8xf32> to vector<8xf32>
    %637 = vector.shape_cast %636 : vector<8xf32> to vector<8x1xf32>
    %638 = tpu.reciprocal %637 {approx = true} : vector<8x1xf32> -> vector<8x1xf32>
    %639 = vector.broadcast %638 : vector<8x1xf32> to vector<8x8xf32>
    %640 = arith.mulf %635, %639 : vector<8x8xf32>
    %641 = vector.extract_strided_slice %625 {offsets = [0, 0], sizes = [8, 32], strides = [1, 1]} : vector<8x128xf32> to vector<8x32xf32>
    %cst_211 = arith.constant dense<0.000000e+00> : vector<8x32xf32>
    %642 = tpu.matmul %640, %641, %cst_211 {dimension_numbers = #tpu.dot_dimension_numbers<[1], [0], [0], [1], [0, 0, 1, 1], [], []>} : vector<8x8xf32>, vector<8x32xf32>, vector<8x32xf32> -> vector<8x32xf32>
    %643 = vector.extract_strided_slice %623 {offsets = [0, 32], sizes = [8, 32], strides = [1, 1]} : vector<8x128xf32> to vector<8x32xf32>
    %644 = vector.extract_strided_slice %624 {offsets = [0, 32], sizes = [8, 32], strides = [1, 1]} : vector<8x128xf32> to vector<8x32xf32>
    %cst_212 = arith.constant dense<0.000000e+00> : vector<8x8xf32>
    %645 = tpu.matmul %643, %644, %cst_212 {dimension_numbers = #tpu.dot_dimension_numbers<[1], [1], [0], [0], [0, 0, 1, 0], [], []>} : vector<8x32xf32>, vector<8x32xf32>, vector<8x8xf32> -> vector<8x8xf32>
    %cst_213 = arith.constant 0.176776692 : f32
    %646 = vector.broadcast %cst_213 : f32 to vector<8x8xf32>
    %647 = arith.mulf %645, %646 : vector<8x8xf32>
    %cst_214 = arith.constant dense<0xFF800000> : vector<8xf32>
    %648 = vector.multi_reduction <maximumf>, %647, %cst_214 [1] : vector<8x8xf32> to vector<8xf32>
    %649 = vector.shape_cast %648 : vector<8xf32> to vector<8x1xf32>
    %650 = vector.broadcast %649 : vector<8x1xf32> to vector<8x8xf32>
    %651 = arith.subf %647, %650 : vector<8x8xf32>
    %652 = math.exp %651 : vector<8x8xf32>
    %cst_215 = arith.constant dense<0.000000e+00> : vector<8xf32>
    %653 = vector.multi_reduction <add>, %652, %cst_215 [1] : vector<8x8xf32> to vector<8xf32>
    %654 = vector.shape_cast %653 : vector<8xf32> to vector<8x1xf32>
    %655 = tpu.reciprocal %654 {approx = true} : vector<8x1xf32> -> vector<8x1xf32>
    %656 = vector.broadcast %655 : vector<8x1xf32> to vector<8x8xf32>
    %657 = arith.mulf %652, %656 : vector<8x8xf32>
    %658 = vector.extract_strided_slice %625 {offsets = [0, 32], sizes = [8, 32], strides = [1, 1]} : vector<8x128xf32> to vector<8x32xf32>
    %cst_216 = arith.constant dense<0.000000e+00> : vector<8x32xf32>
    %659 = tpu.matmul %657, %658, %cst_216 {dimension_numbers = #tpu.dot_dimension_numbers<[1], [0], [0], [1], [0, 0, 1, 1], [], []>} : vector<8x8xf32>, vector<8x32xf32>, vector<8x32xf32> -> vector<8x32xf32>
    %660 = vector.extract_strided_slice %623 {offsets = [0, 64], sizes = [8, 32], strides = [1, 1]} : vector<8x128xf32> to vector<8x32xf32>
    %661 = vector.extract_strided_slice %624 {offsets = [0, 64], sizes = [8, 32], strides = [1, 1]} : vector<8x128xf32> to vector<8x32xf32>
    %cst_217 = arith.constant dense<0.000000e+00> : vector<8x8xf32>
    %662 = tpu.matmul %660, %661, %cst_217 {dimension_numbers = #tpu.dot_dimension_numbers<[1], [1], [0], [0], [0, 0, 1, 0], [], []>} : vector<8x32xf32>, vector<8x32xf32>, vector<8x8xf32> -> vector<8x8xf32>
    %cst_218 = arith.constant 0.176776692 : f32
    %663 = vector.broadcast %cst_218 : f32 to vector<8x8xf32>
    %664 = arith.mulf %662, %663 : vector<8x8xf32>
    %cst_219 = arith.constant dense<0xFF800000> : vector<8xf32>
    %665 = vector.multi_reduction <maximumf>, %664, %cst_219 [1] : vector<8x8xf32> to vector<8xf32>
    %666 = vector.shape_cast %665 : vector<8xf32> to vector<8x1xf32>
    %667 = vector.broadcast %666 : vector<8x1xf32> to vector<8x8xf32>
    %668 = arith.subf %664, %667 : vector<8x8xf32>
    %669 = math.exp %668 : vector<8x8xf32>
    %cst_220 = arith.constant dense<0.000000e+00> : vector<8xf32>
    %670 = vector.multi_reduction <add>, %669, %cst_220 [1] : vector<8x8xf32> to vector<8xf32>
    %671 = vector.shape_cast %670 : vector<8xf32> to vector<8x1xf32>
    %672 = tpu.reciprocal %671 {approx = true} : vector<8x1xf32> -> vector<8x1xf32>
    %673 = vector.broadcast %672 : vector<8x1xf32> to vector<8x8xf32>
    %674 = arith.mulf %669, %673 : vector<8x8xf32>
    %675 = vector.extract_strided_slice %625 {offsets = [0, 64], sizes = [8, 32], strides = [1, 1]} : vector<8x128xf32> to vector<8x32xf32>
    %cst_221 = arith.constant dense<0.000000e+00> : vector<8x32xf32>
    %676 = tpu.matmul %674, %675, %cst_221 {dimension_numbers = #tpu.dot_dimension_numbers<[1], [0], [0], [1], [0, 0, 1, 1], [], []>} : vector<8x8xf32>, vector<8x32xf32>, vector<8x32xf32> -> vector<8x32xf32>
    %677 = vector.extract_strided_slice %623 {offsets = [0, 96], sizes = [8, 32], strides = [1, 1]} : vector<8x128xf32> to vector<8x32xf32>
    %678 = vector.extract_strided_slice %624 {offsets = [0, 96], sizes = [8, 32], strides = [1, 1]} : vector<8x128xf32> to vector<8x32xf32>
    %cst_222 = arith.constant dense<0.000000e+00> : vector<8x8xf32>
    %679 = tpu.matmul %677, %678, %cst_222 {dimension_numbers = #tpu.dot_dimension_numbers<[1], [1], [0], [0], [0, 0, 1, 0], [], []>} : vector<8x32xf32>, vector<8x32xf32>, vector<8x8xf32> -> vector<8x8xf32>
    %cst_223 = arith.constant 0.176776692 : f32
    %680 = vector.broadcast %cst_223 : f32 to vector<8x8xf32>
    %681 = arith.mulf %679, %680 : vector<8x8xf32>
    %cst_224 = arith.constant dense<0xFF800000> : vector<8xf32>
    %682 = vector.multi_reduction <maximumf>, %681, %cst_224 [1] : vector<8x8xf32> to vector<8xf32>
    %683 = vector.shape_cast %682 : vector<8xf32> to vector<8x1xf32>
    %684 = vector.broadcast %683 : vector<8x1xf32> to vector<8x8xf32>
    %685 = arith.subf %681, %684 : vector<8x8xf32>
    %686 = math.exp %685 : vector<8x8xf32>
    %cst_225 = arith.constant dense<0.000000e+00> : vector<8xf32>
    %687 = vector.multi_reduction <add>, %686, %cst_225 [1] : vector<8x8xf32> to vector<8xf32>
    %688 = vector.shape_cast %687 : vector<8xf32> to vector<8x1xf32>
    %689 = tpu.reciprocal %688 {approx = true} : vector<8x1xf32> -> vector<8x1xf32>
    %690 = vector.broadcast %689 : vector<8x1xf32> to vector<8x8xf32>
    %691 = arith.mulf %686, %690 : vector<8x8xf32>
    %692 = vector.extract_strided_slice %625 {offsets = [0, 96], sizes = [8, 32], strides = [1, 1]} : vector<8x128xf32> to vector<8x32xf32>
    %cst_226 = arith.constant dense<0.000000e+00> : vector<8x32xf32>
    %693 = tpu.matmul %691, %692, %cst_226 {dimension_numbers = #tpu.dot_dimension_numbers<[1], [0], [0], [1], [0, 0, 1, 1], [], []>} : vector<8x8xf32>, vector<8x32xf32>, vector<8x32xf32> -> vector<8x32xf32>
    %694 = tpu.concatenate %642, %659, %676, %693 in 1 : vector<8x32xf32>, vector<8x32xf32>, vector<8x32xf32>, vector<8x32xf32> -> vector<8x128xf32>
    %695 = tpu.concatenate %622, %694 in 0 : vector<8x128xf32>, vector<8x128xf32> -> vector<16x128xf32>
    %c0_227 = arith.constant 0 : index
    %c0_228 = arith.constant 0 : index
    %c0_229 = arith.constant 0 : index
    %696 = vector.load %arg19[%c0_227, %c0_228, %c0_229] : memref<2x128x128xbf16, #tpu.memory_space<vmem>>, vector<1x128x128xbf16>
    %697 = vector.shape_cast %696 : vector<1x128x128xbf16> to vector<128x128xbf16>
    %698 = arith.truncf %695 : vector<16x128xf32> to vector<16x128xbf16>
    %cst_230 = arith.constant dense<0.000000e+00> : vector<16x128xf32>
    %699 = tpu.matmul %698, %697, %cst_230 {dimension_numbers = #tpu.dot_dimension_numbers<[1], [0], [0], [1], [0, 0, 1, 1], [], []>} : vector<16x128xbf16>, vector<128x128xbf16>, vector<16x128xf32> -> vector<16x128xf32>
    %700 = arith.addf %513, %699 : vector<16x128xf32>
    %701 = vector.extract_strided_slice %515 {offsets = [6, 0], sizes = [1, 128], strides = [1, 1]} : vector<16x128xf32> to vector<1x128xf32>
    %702 = vector.broadcast %701 : vector<1x128xf32> to vector<16x128xf32>
    %703 = arith.addf %700, %702 : vector<16x128xf32>
    %704 = vector.extract_strided_slice %515 {offsets = [2, 0], sizes = [1, 128], strides = [1, 1]} : vector<16x128xf32> to vector<1x128xf32>
    %705 = vector.extract_strided_slice %515 {offsets = [3, 0], sizes = [1, 128], strides = [1, 1]} : vector<16x128xf32> to vector<1x128xf32>
    %cst_231 = arith.constant dense<0.000000e+00> : vector<16xf32>
    %706 = vector.multi_reduction <add>, %703, %cst_231 [1] : vector<16x128xf32> to vector<16xf32>
    %707 = vector.shape_cast %706 : vector<16xf32> to vector<16x1xf32>
    %cst_232 = arith.constant 1.280000e+02 : f32
    %708 = vector.broadcast %cst_232 : f32 to vector<16x1xf32>
    %709 = arith.divf %707, %708 : vector<16x1xf32>
    %710 = vector.broadcast %709 : vector<16x1xf32> to vector<16x128xf32>
    %711 = arith.subf %703, %710 : vector<16x128xf32>
    %712 = arith.mulf %711, %711 : vector<16x128xf32>
    %cst_233 = arith.constant dense<0.000000e+00> : vector<16xf32>
    %713 = vector.multi_reduction <add>, %712, %cst_233 [1] : vector<16x128xf32> to vector<16xf32>
    %714 = vector.shape_cast %713 : vector<16xf32> to vector<16x1xf32>
    %cst_234 = arith.constant 1.280000e+02 : f32
    %715 = vector.broadcast %cst_234 : f32 to vector<16x1xf32>
    %716 = arith.divf %714, %715 : vector<16x1xf32>
    %717 = vector.broadcast %709 : vector<16x1xf32> to vector<16x128xf32>
    %718 = arith.subf %703, %717 : vector<16x128xf32>
    %cst_235 = arith.constant 9.99999974E-6 : f32
    %719 = vector.broadcast %cst_235 : f32 to vector<16x1xf32>
    %720 = arith.addf %716, %719 : vector<16x1xf32>
    %721 = math.rsqrt %720 : vector<16x1xf32>
    %722 = vector.broadcast %721 : vector<16x1xf32> to vector<16x128xf32>
    %723 = arith.mulf %718, %722 : vector<16x128xf32>
    %724 = vector.broadcast %704 : vector<1x128xf32> to vector<16x128xf32>
    %725 = arith.mulf %723, %724 : vector<16x128xf32>
    %726 = vector.broadcast %705 : vector<1x128xf32> to vector<16x128xf32>
    %727 = arith.addf %725, %726 : vector<16x128xf32>
    %c0_236 = arith.constant 0 : index
    %c0_237 = arith.constant 0 : index
    %c0_238 = arith.constant 0 : index
    %728 = vector.load %arg20[%c0_236, %c0_237, %c0_238] : memref<2x128x128xbf16, #tpu.memory_space<vmem>>, vector<1x128x128xbf16>
    %729 = vector.shape_cast %728 : vector<1x128x128xbf16> to vector<128x128xbf16>
    %730 = arith.truncf %727 : vector<16x128xf32> to vector<16x128xbf16>
    %cst_239 = arith.constant dense<0.000000e+00> : vector<16x128xf32>
    %731 = tpu.matmul %730, %729, %cst_239 {dimension_numbers = #tpu.dot_dimension_numbers<[1], [0], [0], [1], [0, 0, 1, 1], [], []>} : vector<16x128xbf16>, vector<128x128xbf16>, vector<16x128xf32> -> vector<16x128xf32>
    %732 = vector.extract_strided_slice %515 {offsets = [7, 0], sizes = [1, 128], strides = [1, 1]} : vector<16x128xf32> to vector<1x128xf32>
    %733 = vector.broadcast %732 : vector<1x128xf32> to vector<16x128xf32>
    %734 = arith.addf %731, %733 : vector<16x128xf32>
    %c0_240 = arith.constant 0 : index
    %c0_241 = arith.constant 0 : index
    %c0_242 = arith.constant 0 : index
    %735 = vector.load %arg21[%c0_240, %c0_241, %c0_242] : memref<2x128x256xbf16, #tpu.memory_space<vmem>>, vector<1x128x256xbf16>
    %736 = vector.shape_cast %735 : vector<1x128x256xbf16> to vector<128x256xbf16>
    %cst_243 = arith.constant dense<0.000000e+00> : vector<16x256xf32>
    %737 = tpu.matmul %501, %736, %cst_243 {dimension_numbers = #tpu.dot_dimension_numbers<[1], [0], [0], [1], [0, 0, 1, 1], [], []>} : vector<16x128xbf16>, vector<128x256xbf16>, vector<16x256xf32> -> vector<16x256xf32>
    %c0_244 = arith.constant 0 : index
    %c0_245 = arith.constant 0 : index
    %c0_246 = arith.constant 0 : index
    %738 = vector.load %arg16[%c0_244, %c0_245, %c0_246] : memref<2x1x256xf32, #tpu.memory_space<vmem>>, vector<1x1x256xf32>
    %739 = vector.shape_cast %738 : vector<1x1x256xf32> to vector<1x256xf32>
    %740 = vector.broadcast %739 : vector<1x256xf32> to vector<16x256xf32>
    %741 = arith.addf %737, %740 : vector<16x256xf32>
    %742 = vector.extract_strided_slice %741 {offsets = [0, 0], sizes = [16, 128], strides = [1, 1]} : vector<16x256xf32> to vector<16x128xf32>
    %743 = vector.extract_strided_slice %741 {offsets = [0, 128], sizes = [16, 128], strides = [1, 1]} : vector<16x256xf32> to vector<16x128xf32>
    %744 = vector.extract_strided_slice %734 {offsets = [0, 0], sizes = [8, 128], strides = [1, 1]} : vector<16x128xf32> to vector<8x128xf32>
    %745 = vector.extract_strided_slice %742 {offsets = [0, 0], sizes = [8, 128], strides = [1, 1]} : vector<16x128xf32> to vector<8x128xf32>
    %746 = vector.extract_strided_slice %743 {offsets = [0, 0], sizes = [8, 128], strides = [1, 1]} : vector<16x128xf32> to vector<8x128xf32>
    %747 = vector.extract_strided_slice %744 {offsets = [0, 0], sizes = [8, 32], strides = [1, 1]} : vector<8x128xf32> to vector<8x32xf32>
    %748 = vector.extract_strided_slice %745 {offsets = [0, 0], sizes = [8, 32], strides = [1, 1]} : vector<8x128xf32> to vector<8x32xf32>
    %cst_247 = arith.constant dense<0.000000e+00> : vector<8x8xf32>
    %749 = tpu.matmul %747, %748, %cst_247 {dimension_numbers = #tpu.dot_dimension_numbers<[1], [1], [0], [0], [0, 0, 1, 0], [], []>} : vector<8x32xf32>, vector<8x32xf32>, vector<8x8xf32> -> vector<8x8xf32>
    %cst_248 = arith.constant 0.176776692 : f32
    %750 = vector.broadcast %cst_248 : f32 to vector<8x8xf32>
    %751 = arith.mulf %749, %750 : vector<8x8xf32>
    %cst_249 = arith.constant dense<0xFF800000> : vector<8xf32>
    %752 = vector.multi_reduction <maximumf>, %751, %cst_249 [1] : vector<8x8xf32> to vector<8xf32>
    %753 = vector.shape_cast %752 : vector<8xf32> to vector<8x1xf32>
    %754 = vector.broadcast %753 : vector<8x1xf32> to vector<8x8xf32>
    %755 = arith.subf %751, %754 : vector<8x8xf32>
    %756 = math.exp %755 : vector<8x8xf32>
    %cst_250 = arith.constant dense<0.000000e+00> : vector<8xf32>
    %757 = vector.multi_reduction <add>, %756, %cst_250 [1] : vector<8x8xf32> to vector<8xf32>
    %758 = vector.shape_cast %757 : vector<8xf32> to vector<8x1xf32>
    %759 = tpu.reciprocal %758 {approx = true} : vector<8x1xf32> -> vector<8x1xf32>
    %760 = vector.broadcast %759 : vector<8x1xf32> to vector<8x8xf32>
    %761 = arith.mulf %756, %760 : vector<8x8xf32>
    %762 = vector.extract_strided_slice %746 {offsets = [0, 0], sizes = [8, 32], strides = [1, 1]} : vector<8x128xf32> to vector<8x32xf32>
    %cst_251 = arith.constant dense<0.000000e+00> : vector<8x32xf32>
    %763 = tpu.matmul %761, %762, %cst_251 {dimension_numbers = #tpu.dot_dimension_numbers<[1], [0], [0], [1], [0, 0, 1, 1], [], []>} : vector<8x8xf32>, vector<8x32xf32>, vector<8x32xf32> -> vector<8x32xf32>
    %764 = vector.extract_strided_slice %744 {offsets = [0, 32], sizes = [8, 32], strides = [1, 1]} : vector<8x128xf32> to vector<8x32xf32>
    %765 = vector.extract_strided_slice %745 {offsets = [0, 32], sizes = [8, 32], strides = [1, 1]} : vector<8x128xf32> to vector<8x32xf32>
    %cst_252 = arith.constant dense<0.000000e+00> : vector<8x8xf32>
    %766 = tpu.matmul %764, %765, %cst_252 {dimension_numbers = #tpu.dot_dimension_numbers<[1], [1], [0], [0], [0, 0, 1, 0], [], []>} : vector<8x32xf32>, vector<8x32xf32>, vector<8x8xf32> -> vector<8x8xf32>
    %cst_253 = arith.constant 0.176776692 : f32
    %767 = vector.broadcast %cst_253 : f32 to vector<8x8xf32>
    %768 = arith.mulf %766, %767 : vector<8x8xf32>
    %cst_254 = arith.constant dense<0xFF800000> : vector<8xf32>
    %769 = vector.multi_reduction <maximumf>, %768, %cst_254 [1] : vector<8x8xf32> to vector<8xf32>
    %770 = vector.shape_cast %769 : vector<8xf32> to vector<8x1xf32>
    %771 = vector.broadcast %770 : vector<8x1xf32> to vector<8x8xf32>
    %772 = arith.subf %768, %771 : vector<8x8xf32>
    %773 = math.exp %772 : vector<8x8xf32>
    %cst_255 = arith.constant dense<0.000000e+00> : vector<8xf32>
    %774 = vector.multi_reduction <add>, %773, %cst_255 [1] : vector<8x8xf32> to vector<8xf32>
    %775 = vector.shape_cast %774 : vector<8xf32> to vector<8x1xf32>
    %776 = tpu.reciprocal %775 {approx = true} : vector<8x1xf32> -> vector<8x1xf32>
    %777 = vector.broadcast %776 : vector<8x1xf32> to vector<8x8xf32>
    %778 = arith.mulf %773, %777 : vector<8x8xf32>
    %779 = vector.extract_strided_slice %746 {offsets = [0, 32], sizes = [8, 32], strides = [1, 1]} : vector<8x128xf32> to vector<8x32xf32>
    %cst_256 = arith.constant dense<0.000000e+00> : vector<8x32xf32>
    %780 = tpu.matmul %778, %779, %cst_256 {dimension_numbers = #tpu.dot_dimension_numbers<[1], [0], [0], [1], [0, 0, 1, 1], [], []>} : vector<8x8xf32>, vector<8x32xf32>, vector<8x32xf32> -> vector<8x32xf32>
    %781 = vector.extract_strided_slice %744 {offsets = [0, 64], sizes = [8, 32], strides = [1, 1]} : vector<8x128xf32> to vector<8x32xf32>
    %782 = vector.extract_strided_slice %745 {offsets = [0, 64], sizes = [8, 32], strides = [1, 1]} : vector<8x128xf32> to vector<8x32xf32>
    %cst_257 = arith.constant dense<0.000000e+00> : vector<8x8xf32>
    %783 = tpu.matmul %781, %782, %cst_257 {dimension_numbers = #tpu.dot_dimension_numbers<[1], [1], [0], [0], [0, 0, 1, 0], [], []>} : vector<8x32xf32>, vector<8x32xf32>, vector<8x8xf32> -> vector<8x8xf32>
    %cst_258 = arith.constant 0.176776692 : f32
    %784 = vector.broadcast %cst_258 : f32 to vector<8x8xf32>
    %785 = arith.mulf %783, %784 : vector<8x8xf32>
    %cst_259 = arith.constant dense<0xFF800000> : vector<8xf32>
    %786 = vector.multi_reduction <maximumf>, %785, %cst_259 [1] : vector<8x8xf32> to vector<8xf32>
    %787 = vector.shape_cast %786 : vector<8xf32> to vector<8x1xf32>
    %788 = vector.broadcast %787 : vector<8x1xf32> to vector<8x8xf32>
    %789 = arith.subf %785, %788 : vector<8x8xf32>
    %790 = math.exp %789 : vector<8x8xf32>
    %cst_260 = arith.constant dense<0.000000e+00> : vector<8xf32>
    %791 = vector.multi_reduction <add>, %790, %cst_260 [1] : vector<8x8xf32> to vector<8xf32>
    %792 = vector.shape_cast %791 : vector<8xf32> to vector<8x1xf32>
    %793 = tpu.reciprocal %792 {approx = true} : vector<8x1xf32> -> vector<8x1xf32>
    %794 = vector.broadcast %793 : vector<8x1xf32> to vector<8x8xf32>
    %795 = arith.mulf %790, %794 : vector<8x8xf32>
    %796 = vector.extract_strided_slice %746 {offsets = [0, 64], sizes = [8, 32], strides = [1, 1]} : vector<8x128xf32> to vector<8x32xf32>
    %cst_261 = arith.constant dense<0.000000e+00> : vector<8x32xf32>
    %797 = tpu.matmul %795, %796, %cst_261 {dimension_numbers = #tpu.dot_dimension_numbers<[1], [0], [0], [1], [0, 0, 1, 1], [], []>} : vector<8x8xf32>, vector<8x32xf32>, vector<8x32xf32> -> vector<8x32xf32>
    %798 = vector.extract_strided_slice %744 {offsets = [0, 96], sizes = [8, 32], strides = [1, 1]} : vector<8x128xf32> to vector<8x32xf32>
    %799 = vector.extract_strided_slice %745 {offsets = [0, 96], sizes = [8, 32], strides = [1, 1]} : vector<8x128xf32> to vector<8x32xf32>
    %cst_262 = arith.constant dense<0.000000e+00> : vector<8x8xf32>
    %800 = tpu.matmul %798, %799, %cst_262 {dimension_numbers = #tpu.dot_dimension_numbers<[1], [1], [0], [0], [0, 0, 1, 0], [], []>} : vector<8x32xf32>, vector<8x32xf32>, vector<8x8xf32> -> vector<8x8xf32>
    %cst_263 = arith.constant 0.176776692 : f32
    %801 = vector.broadcast %cst_263 : f32 to vector<8x8xf32>
    %802 = arith.mulf %800, %801 : vector<8x8xf32>
    %cst_264 = arith.constant dense<0xFF800000> : vector<8xf32>
    %803 = vector.multi_reduction <maximumf>, %802, %cst_264 [1] : vector<8x8xf32> to vector<8xf32>
    %804 = vector.shape_cast %803 : vector<8xf32> to vector<8x1xf32>
    %805 = vector.broadcast %804 : vector<8x1xf32> to vector<8x8xf32>
    %806 = arith.subf %802, %805 : vector<8x8xf32>
    %807 = math.exp %806 : vector<8x8xf32>
    %cst_265 = arith.constant dense<0.000000e+00> : vector<8xf32>
    %808 = vector.multi_reduction <add>, %807, %cst_265 [1] : vector<8x8xf32> to vector<8xf32>
    %809 = vector.shape_cast %808 : vector<8xf32> to vector<8x1xf32>
    %810 = tpu.reciprocal %809 {approx = true} : vector<8x1xf32> -> vector<8x1xf32>
    %811 = vector.broadcast %810 : vector<8x1xf32> to vector<8x8xf32>
    %812 = arith.mulf %807, %811 : vector<8x8xf32>
    %813 = vector.extract_strided_slice %746 {offsets = [0, 96], sizes = [8, 32], strides = [1, 1]} : vector<8x128xf32> to vector<8x32xf32>
    %cst_266 = arith.constant dense<0.000000e+00> : vector<8x32xf32>
    %814 = tpu.matmul %812, %813, %cst_266 {dimension_numbers = #tpu.dot_dimension_numbers<[1], [0], [0], [1], [0, 0, 1, 1], [], []>} : vector<8x8xf32>, vector<8x32xf32>, vector<8x32xf32> -> vector<8x32xf32>
    %815 = tpu.concatenate %763, %780, %797, %814 in 1 : vector<8x32xf32>, vector<8x32xf32>, vector<8x32xf32>, vector<8x32xf32> -> vector<8x128xf32>
    %816 = vector.extract_strided_slice %734 {offsets = [8, 0], sizes = [8, 128], strides = [1, 1]} : vector<16x128xf32> to vector<8x128xf32>
    %817 = vector.extract_strided_slice %742 {offsets = [8, 0], sizes = [8, 128], strides = [1, 1]} : vector<16x128xf32> to vector<8x128xf32>
    %818 = vector.extract_strided_slice %743 {offsets = [8, 0], sizes = [8, 128], strides = [1, 1]} : vector<16x128xf32> to vector<8x128xf32>
    %819 = vector.extract_strided_slice %816 {offsets = [0, 0], sizes = [8, 32], strides = [1, 1]} : vector<8x128xf32> to vector<8x32xf32>
    %820 = vector.extract_strided_slice %817 {offsets = [0, 0], sizes = [8, 32], strides = [1, 1]} : vector<8x128xf32> to vector<8x32xf32>
    %cst_267 = arith.constant dense<0.000000e+00> : vector<8x8xf32>
    %821 = tpu.matmul %819, %820, %cst_267 {dimension_numbers = #tpu.dot_dimension_numbers<[1], [1], [0], [0], [0, 0, 1, 0], [], []>} : vector<8x32xf32>, vector<8x32xf32>, vector<8x8xf32> -> vector<8x8xf32>
    %cst_268 = arith.constant 0.176776692 : f32
    %822 = vector.broadcast %cst_268 : f32 to vector<8x8xf32>
    %823 = arith.mulf %821, %822 : vector<8x8xf32>
    %cst_269 = arith.constant dense<0xFF800000> : vector<8xf32>
    %824 = vector.multi_reduction <maximumf>, %823, %cst_269 [1] : vector<8x8xf32> to vector<8xf32>
    %825 = vector.shape_cast %824 : vector<8xf32> to vector<8x1xf32>
    %826 = vector.broadcast %825 : vector<8x1xf32> to vector<8x8xf32>
    %827 = arith.subf %823, %826 : vector<8x8xf32>
    %828 = math.exp %827 : vector<8x8xf32>
    %cst_270 = arith.constant dense<0.000000e+00> : vector<8xf32>
    %829 = vector.multi_reduction <add>, %828, %cst_270 [1] : vector<8x8xf32> to vector<8xf32>
    %830 = vector.shape_cast %829 : vector<8xf32> to vector<8x1xf32>
    %831 = tpu.reciprocal %830 {approx = true} : vector<8x1xf32> -> vector<8x1xf32>
    %832 = vector.broadcast %831 : vector<8x1xf32> to vector<8x8xf32>
    %833 = arith.mulf %828, %832 : vector<8x8xf32>
    %834 = vector.extract_strided_slice %818 {offsets = [0, 0], sizes = [8, 32], strides = [1, 1]} : vector<8x128xf32> to vector<8x32xf32>
    %cst_271 = arith.constant dense<0.000000e+00> : vector<8x32xf32>
    %835 = tpu.matmul %833, %834, %cst_271 {dimension_numbers = #tpu.dot_dimension_numbers<[1], [0], [0], [1], [0, 0, 1, 1], [], []>} : vector<8x8xf32>, vector<8x32xf32>, vector<8x32xf32> -> vector<8x32xf32>
    %836 = vector.extract_strided_slice %816 {offsets = [0, 32], sizes = [8, 32], strides = [1, 1]} : vector<8x128xf32> to vector<8x32xf32>
    %837 = vector.extract_strided_slice %817 {offsets = [0, 32], sizes = [8, 32], strides = [1, 1]} : vector<8x128xf32> to vector<8x32xf32>
    %cst_272 = arith.constant dense<0.000000e+00> : vector<8x8xf32>
    %838 = tpu.matmul %836, %837, %cst_272 {dimension_numbers = #tpu.dot_dimension_numbers<[1], [1], [0], [0], [0, 0, 1, 0], [], []>} : vector<8x32xf32>, vector<8x32xf32>, vector<8x8xf32> -> vector<8x8xf32>
    %cst_273 = arith.constant 0.176776692 : f32
    %839 = vector.broadcast %cst_273 : f32 to vector<8x8xf32>
    %840 = arith.mulf %838, %839 : vector<8x8xf32>
    %cst_274 = arith.constant dense<0xFF800000> : vector<8xf32>
    %841 = vector.multi_reduction <maximumf>, %840, %cst_274 [1] : vector<8x8xf32> to vector<8xf32>
    %842 = vector.shape_cast %841 : vector<8xf32> to vector<8x1xf32>
    %843 = vector.broadcast %842 : vector<8x1xf32> to vector<8x8xf32>
    %844 = arith.subf %840, %843 : vector<8x8xf32>
    %845 = math.exp %844 : vector<8x8xf32>
    %cst_275 = arith.constant dense<0.000000e+00> : vector<8xf32>
    %846 = vector.multi_reduction <add>, %845, %cst_275 [1] : vector<8x8xf32> to vector<8xf32>
    %847 = vector.shape_cast %846 : vector<8xf32> to vector<8x1xf32>
    %848 = tpu.reciprocal %847 {approx = true} : vector<8x1xf32> -> vector<8x1xf32>
    %849 = vector.broadcast %848 : vector<8x1xf32> to vector<8x8xf32>
    %850 = arith.mulf %845, %849 : vector<8x8xf32>
    %851 = vector.extract_strided_slice %818 {offsets = [0, 32], sizes = [8, 32], strides = [1, 1]} : vector<8x128xf32> to vector<8x32xf32>
    %cst_276 = arith.constant dense<0.000000e+00> : vector<8x32xf32>
    %852 = tpu.matmul %850, %851, %cst_276 {dimension_numbers = #tpu.dot_dimension_numbers<[1], [0], [0], [1], [0, 0, 1, 1], [], []>} : vector<8x8xf32>, vector<8x32xf32>, vector<8x32xf32> -> vector<8x32xf32>
    %853 = vector.extract_strided_slice %816 {offsets = [0, 64], sizes = [8, 32], strides = [1, 1]} : vector<8x128xf32> to vector<8x32xf32>
    %854 = vector.extract_strided_slice %817 {offsets = [0, 64], sizes = [8, 32], strides = [1, 1]} : vector<8x128xf32> to vector<8x32xf32>
    %cst_277 = arith.constant dense<0.000000e+00> : vector<8x8xf32>
    %855 = tpu.matmul %853, %854, %cst_277 {dimension_numbers = #tpu.dot_dimension_numbers<[1], [1], [0], [0], [0, 0, 1, 0], [], []>} : vector<8x32xf32>, vector<8x32xf32>, vector<8x8xf32> -> vector<8x8xf32>
    %cst_278 = arith.constant 0.176776692 : f32
    %856 = vector.broadcast %cst_278 : f32 to vector<8x8xf32>
    %857 = arith.mulf %855, %856 : vector<8x8xf32>
    %cst_279 = arith.constant dense<0xFF800000> : vector<8xf32>
    %858 = vector.multi_reduction <maximumf>, %857, %cst_279 [1] : vector<8x8xf32> to vector<8xf32>
    %859 = vector.shape_cast %858 : vector<8xf32> to vector<8x1xf32>
    %860 = vector.broadcast %859 : vector<8x1xf32> to vector<8x8xf32>
    %861 = arith.subf %857, %860 : vector<8x8xf32>
    %862 = math.exp %861 : vector<8x8xf32>
    %cst_280 = arith.constant dense<0.000000e+00> : vector<8xf32>
    %863 = vector.multi_reduction <add>, %862, %cst_280 [1] : vector<8x8xf32> to vector<8xf32>
    %864 = vector.shape_cast %863 : vector<8xf32> to vector<8x1xf32>
    %865 = tpu.reciprocal %864 {approx = true} : vector<8x1xf32> -> vector<8x1xf32>
    %866 = vector.broadcast %865 : vector<8x1xf32> to vector<8x8xf32>
    %867 = arith.mulf %862, %866 : vector<8x8xf32>
    %868 = vector.extract_strided_slice %818 {offsets = [0, 64], sizes = [8, 32], strides = [1, 1]} : vector<8x128xf32> to vector<8x32xf32>
    %cst_281 = arith.constant dense<0.000000e+00> : vector<8x32xf32>
    %869 = tpu.matmul %867, %868, %cst_281 {dimension_numbers = #tpu.dot_dimension_numbers<[1], [0], [0], [1], [0, 0, 1, 1], [], []>} : vector<8x8xf32>, vector<8x32xf32>, vector<8x32xf32> -> vector<8x32xf32>
    %870 = vector.extract_strided_slice %816 {offsets = [0, 96], sizes = [8, 32], strides = [1, 1]} : vector<8x128xf32> to vector<8x32xf32>
    %871 = vector.extract_strided_slice %817 {offsets = [0, 96], sizes = [8, 32], strides = [1, 1]} : vector<8x128xf32> to vector<8x32xf32>
    %cst_282 = arith.constant dense<0.000000e+00> : vector<8x8xf32>
    %872 = tpu.matmul %870, %871, %cst_282 {dimension_numbers = #tpu.dot_dimension_numbers<[1], [1], [0], [0], [0, 0, 1, 0], [], []>} : vector<8x32xf32>, vector<8x32xf32>, vector<8x8xf32> -> vector<8x8xf32>
    %cst_283 = arith.constant 0.176776692 : f32
    %873 = vector.broadcast %cst_283 : f32 to vector<8x8xf32>
    %874 = arith.mulf %872, %873 : vector<8x8xf32>
    %cst_284 = arith.constant dense<0xFF800000> : vector<8xf32>
    %875 = vector.multi_reduction <maximumf>, %874, %cst_284 [1] : vector<8x8xf32> to vector<8xf32>
    %876 = vector.shape_cast %875 : vector<8xf32> to vector<8x1xf32>
    %877 = vector.broadcast %876 : vector<8x1xf32> to vector<8x8xf32>
    %878 = arith.subf %874, %877 : vector<8x8xf32>
    %879 = math.exp %878 : vector<8x8xf32>
    %cst_285 = arith.constant dense<0.000000e+00> : vector<8xf32>
    %880 = vector.multi_reduction <add>, %879, %cst_285 [1] : vector<8x8xf32> to vector<8xf32>
    %881 = vector.shape_cast %880 : vector<8xf32> to vector<8x1xf32>
    %882 = tpu.reciprocal %881 {approx = true} : vector<8x1xf32> -> vector<8x1xf32>
    %883 = vector.broadcast %882 : vector<8x1xf32> to vector<8x8xf32>
    %884 = arith.mulf %879, %883 : vector<8x8xf32>
    %885 = vector.extract_strided_slice %818 {offsets = [0, 96], sizes = [8, 32], strides = [1, 1]} : vector<8x128xf32> to vector<8x32xf32>
    %cst_286 = arith.constant dense<0.000000e+00> : vector<8x32xf32>
    %886 = tpu.matmul %884, %885, %cst_286 {dimension_numbers = #tpu.dot_dimension_numbers<[1], [0], [0], [1], [0, 0, 1, 1], [], []>} : vector<8x8xf32>, vector<8x32xf32>, vector<8x32xf32> -> vector<8x32xf32>
    %887 = tpu.concatenate %835, %852, %869, %886 in 1 : vector<8x32xf32>, vector<8x32xf32>, vector<8x32xf32>, vector<8x32xf32> -> vector<8x128xf32>
    %888 = tpu.concatenate %815, %887 in 0 : vector<8x128xf32>, vector<8x128xf32> -> vector<16x128xf32>
    %c0_287 = arith.constant 0 : index
    %c0_288 = arith.constant 0 : index
    %c0_289 = arith.constant 0 : index
    %889 = vector.load %arg22[%c0_287, %c0_288, %c0_289] : memref<2x128x128xbf16, #tpu.memory_space<vmem>>, vector<1x128x128xbf16>
    %890 = vector.shape_cast %889 : vector<1x128x128xbf16> to vector<128x128xbf16>
    %891 = arith.truncf %888 : vector<16x128xf32> to vector<16x128xbf16>
    %cst_290 = arith.constant dense<0.000000e+00> : vector<16x128xf32>
    %892 = tpu.matmul %891, %890, %cst_290 {dimension_numbers = #tpu.dot_dimension_numbers<[1], [0], [0], [1], [0, 0, 1, 1], [], []>} : vector<16x128xbf16>, vector<128x128xbf16>, vector<16x128xf32> -> vector<16x128xf32>
    %893 = arith.addf %703, %892 : vector<16x128xf32>
    %894 = vector.extract_strided_slice %515 {offsets = [8, 0], sizes = [1, 128], strides = [1, 1]} : vector<16x128xf32> to vector<1x128xf32>
    %895 = vector.broadcast %894 : vector<1x128xf32> to vector<16x128xf32>
    %896 = arith.addf %893, %895 : vector<16x128xf32>
    %897 = vector.extract_strided_slice %515 {offsets = [4, 0], sizes = [1, 128], strides = [1, 1]} : vector<16x128xf32> to vector<1x128xf32>
    %898 = vector.extract_strided_slice %515 {offsets = [5, 0], sizes = [1, 128], strides = [1, 1]} : vector<16x128xf32> to vector<1x128xf32>
    %cst_291 = arith.constant dense<0.000000e+00> : vector<16xf32>
    %899 = vector.multi_reduction <add>, %896, %cst_291 [1] : vector<16x128xf32> to vector<16xf32>
    %900 = vector.shape_cast %899 : vector<16xf32> to vector<16x1xf32>
    %cst_292 = arith.constant 1.280000e+02 : f32
    %901 = vector.broadcast %cst_292 : f32 to vector<16x1xf32>
    %902 = arith.divf %900, %901 : vector<16x1xf32>
    %903 = vector.broadcast %902 : vector<16x1xf32> to vector<16x128xf32>
    %904 = arith.subf %896, %903 : vector<16x128xf32>
    %905 = arith.mulf %904, %904 : vector<16x128xf32>
    %cst_293 = arith.constant dense<0.000000e+00> : vector<16xf32>
    %906 = vector.multi_reduction <add>, %905, %cst_293 [1] : vector<16x128xf32> to vector<16xf32>
    %907 = vector.shape_cast %906 : vector<16xf32> to vector<16x1xf32>
    %cst_294 = arith.constant 1.280000e+02 : f32
    %908 = vector.broadcast %cst_294 : f32 to vector<16x1xf32>
    %909 = arith.divf %907, %908 : vector<16x1xf32>
    %910 = vector.broadcast %902 : vector<16x1xf32> to vector<16x128xf32>
    %911 = arith.subf %896, %910 : vector<16x128xf32>
    %cst_295 = arith.constant 9.99999974E-6 : f32
    %912 = vector.broadcast %cst_295 : f32 to vector<16x1xf32>
    %913 = arith.addf %909, %912 : vector<16x1xf32>
    %914 = math.rsqrt %913 : vector<16x1xf32>
    %915 = vector.broadcast %914 : vector<16x1xf32> to vector<16x128xf32>
    %916 = arith.mulf %911, %915 : vector<16x128xf32>
    %917 = vector.broadcast %897 : vector<1x128xf32> to vector<16x128xf32>
    %918 = arith.mulf %916, %917 : vector<16x128xf32>
    %919 = vector.broadcast %898 : vector<1x128xf32> to vector<16x128xf32>
    %920 = arith.addf %918, %919 : vector<16x128xf32>
    %c0_296 = arith.constant 0 : index
    %c0_297 = arith.constant 0 : index
    %c0_298 = arith.constant 0 : index
    %921 = vector.load %arg23[%c0_296, %c0_297, %c0_298] : memref<2x128x256xbf16, #tpu.memory_space<vmem>>, vector<1x128x256xbf16>
    %922 = vector.shape_cast %921 : vector<1x128x256xbf16> to vector<128x256xbf16>
    %923 = arith.truncf %920 : vector<16x128xf32> to vector<16x128xbf16>
    %cst_299 = arith.constant dense<0.000000e+00> : vector<16x256xf32>
    %924 = tpu.matmul %923, %922, %cst_299 {dimension_numbers = #tpu.dot_dimension_numbers<[1], [0], [0], [1], [0, 0, 1, 1], [], []>} : vector<16x128xbf16>, vector<128x256xbf16>, vector<16x256xf32> -> vector<16x256xf32>
    %c0_300 = arith.constant 0 : index
    %c0_301 = arith.constant 0 : index
    %c0_302 = arith.constant 0 : index
    %925 = vector.load %arg17[%c0_300, %c0_301, %c0_302] : memref<2x1x256xf32, #tpu.memory_space<vmem>>, vector<1x1x256xf32>
    %926 = vector.shape_cast %925 : vector<1x1x256xf32> to vector<1x256xf32>
    %927 = vector.broadcast %926 : vector<1x256xf32> to vector<16x256xf32>
    %928 = arith.addf %924, %927 : vector<16x256xf32>
    %cst_303 = arith.constant 0.000000e+00 : f32
    %929 = vector.broadcast %cst_303 : f32 to vector<16x256xf32>
    %930 = arith.maximumf %928, %929 : vector<16x256xf32>
    %c0_304 = arith.constant 0 : index
    %c0_305 = arith.constant 0 : index
    %c0_306 = arith.constant 0 : index
    %931 = vector.load %arg24[%c0_304, %c0_305, %c0_306] : memref<2x256x128xbf16, #tpu.memory_space<vmem>>, vector<1x256x128xbf16>
    %932 = vector.shape_cast %931 : vector<1x256x128xbf16> to vector<256x128xbf16>
    %933 = arith.truncf %930 : vector<16x256xf32> to vector<16x256xbf16>
    %cst_307 = arith.constant dense<0.000000e+00> : vector<16x128xf32>
    %934 = tpu.matmul %933, %932, %cst_307 {dimension_numbers = #tpu.dot_dimension_numbers<[1], [0], [0], [1], [0, 0, 1, 1], [], []>} : vector<16x256xbf16>, vector<256x128xbf16>, vector<16x128xf32> -> vector<16x128xf32>
    %935 = arith.addf %896, %934 : vector<16x128xf32>
    %936 = vector.extract_strided_slice %515 {offsets = [9, 0], sizes = [1, 128], strides = [1, 1]} : vector<16x128xf32> to vector<1x128xf32>
    %937 = vector.broadcast %936 : vector<1x128xf32> to vector<16x128xf32>
    %938 = arith.addf %935, %937 : vector<16x128xf32>
    %c1_308 = arith.constant 1 : index
    %c0_309 = arith.constant 0 : index
    %c0_310 = arith.constant 0 : index
    %939 = vector.load %arg14[%c1_308, %c0_309, %c0_310] : memref<2x16x128xf32, #tpu.memory_space<vmem>>, vector<1x16x128xf32>
    %940 = vector.shape_cast %939 : vector<1x16x128xf32> to vector<16x128xf32>
    %941 = vector.extract_strided_slice %940 {offsets = [0, 0], sizes = [1, 128], strides = [1, 1]} : vector<16x128xf32> to vector<1x128xf32>
    %942 = vector.extract_strided_slice %940 {offsets = [1, 0], sizes = [1, 128], strides = [1, 1]} : vector<16x128xf32> to vector<1x128xf32>
    %cst_311 = arith.constant dense<0.000000e+00> : vector<16xf32>
    %943 = vector.multi_reduction <add>, %938, %cst_311 [1] : vector<16x128xf32> to vector<16xf32>
    %944 = vector.shape_cast %943 : vector<16xf32> to vector<16x1xf32>
    %cst_312 = arith.constant 1.280000e+02 : f32
    %945 = vector.broadcast %cst_312 : f32 to vector<16x1xf32>
    %946 = arith.divf %944, %945 : vector<16x1xf32>
    %947 = vector.broadcast %946 : vector<16x1xf32> to vector<16x128xf32>
    %948 = arith.subf %938, %947 : vector<16x128xf32>
    %949 = arith.mulf %948, %948 : vector<16x128xf32>
    %cst_313 = arith.constant dense<0.000000e+00> : vector<16xf32>
    %950 = vector.multi_reduction <add>, %949, %cst_313 [1] : vector<16x128xf32> to vector<16xf32>
    %951 = vector.shape_cast %950 : vector<16xf32> to vector<16x1xf32>
    %cst_314 = arith.constant 1.280000e+02 : f32
    %952 = vector.broadcast %cst_314 : f32 to vector<16x1xf32>
    %953 = arith.divf %951, %952 : vector<16x1xf32>
    %954 = vector.broadcast %946 : vector<16x1xf32> to vector<16x128xf32>
    %955 = arith.subf %938, %954 : vector<16x128xf32>
    %cst_315 = arith.constant 9.99999974E-6 : f32
    %956 = vector.broadcast %cst_315 : f32 to vector<16x1xf32>
    %957 = arith.addf %953, %956 : vector<16x1xf32>
    %958 = math.rsqrt %957 : vector<16x1xf32>
    %959 = vector.broadcast %958 : vector<16x1xf32> to vector<16x128xf32>
    %960 = arith.mulf %955, %959 : vector<16x128xf32>
    %961 = vector.broadcast %941 : vector<1x128xf32> to vector<16x128xf32>
    %962 = arith.mulf %960, %961 : vector<16x128xf32>
    %963 = vector.broadcast %942 : vector<1x128xf32> to vector<16x128xf32>
    %964 = arith.addf %962, %963 : vector<16x128xf32>
    %c1_316 = arith.constant 1 : index
    %c0_317 = arith.constant 0 : index
    %c0_318 = arith.constant 0 : index
    %965 = vector.load %arg18[%c1_316, %c0_317, %c0_318] : memref<2x128x384xbf16, #tpu.memory_space<vmem>>, vector<1x128x384xbf16>
    %966 = vector.shape_cast %965 : vector<1x128x384xbf16> to vector<128x384xbf16>
    %967 = arith.truncf %964 : vector<16x128xf32> to vector<16x128xbf16>
    %cst_319 = arith.constant dense<0.000000e+00> : vector<16x384xf32>
    %968 = tpu.matmul %967, %966, %cst_319 {dimension_numbers = #tpu.dot_dimension_numbers<[1], [0], [0], [1], [0, 0, 1, 1], [], []>} : vector<16x128xbf16>, vector<128x384xbf16>, vector<16x384xf32> -> vector<16x384xf32>
    %c1_320 = arith.constant 1 : index
    %c0_321 = arith.constant 0 : index
    %c0_322 = arith.constant 0 : index
    %969 = vector.load %arg15[%c1_320, %c0_321, %c0_322] : memref<2x1x384xf32, #tpu.memory_space<vmem>>, vector<1x1x384xf32>
    %970 = vector.shape_cast %969 : vector<1x1x384xf32> to vector<1x384xf32>
    %971 = vector.broadcast %970 : vector<1x384xf32> to vector<16x384xf32>
    %972 = arith.addf %968, %971 : vector<16x384xf32>
    %973 = vector.extract_strided_slice %972 {offsets = [0, 0], sizes = [16, 128], strides = [1, 1]} : vector<16x384xf32> to vector<16x128xf32>
    %974 = vector.extract_strided_slice %972 {offsets = [0, 128], sizes = [16, 128], strides = [1, 1]} : vector<16x384xf32> to vector<16x128xf32>
    %975 = vector.extract_strided_slice %972 {offsets = [0, 256], sizes = [16, 128], strides = [1, 1]} : vector<16x384xf32> to vector<16x128xf32>
    %976 = vector.extract_strided_slice %973 {offsets = [0, 0], sizes = [8, 128], strides = [1, 1]} : vector<16x128xf32> to vector<8x128xf32>
    %977 = vector.extract_strided_slice %974 {offsets = [0, 0], sizes = [8, 128], strides = [1, 1]} : vector<16x128xf32> to vector<8x128xf32>
    %978 = vector.extract_strided_slice %975 {offsets = [0, 0], sizes = [8, 128], strides = [1, 1]} : vector<16x128xf32> to vector<8x128xf32>
    %979 = vector.extract_strided_slice %976 {offsets = [0, 0], sizes = [8, 32], strides = [1, 1]} : vector<8x128xf32> to vector<8x32xf32>
    %980 = vector.extract_strided_slice %977 {offsets = [0, 0], sizes = [8, 32], strides = [1, 1]} : vector<8x128xf32> to vector<8x32xf32>
    %cst_323 = arith.constant dense<0.000000e+00> : vector<8x8xf32>
    %981 = tpu.matmul %979, %980, %cst_323 {dimension_numbers = #tpu.dot_dimension_numbers<[1], [1], [0], [0], [0, 0, 1, 0], [], []>} : vector<8x32xf32>, vector<8x32xf32>, vector<8x8xf32> -> vector<8x8xf32>
    %cst_324 = arith.constant 0.176776692 : f32
    %982 = vector.broadcast %cst_324 : f32 to vector<8x8xf32>
    %983 = arith.mulf %981, %982 : vector<8x8xf32>
    %cst_325 = arith.constant dense<0xFF800000> : vector<8xf32>
    %984 = vector.multi_reduction <maximumf>, %983, %cst_325 [1] : vector<8x8xf32> to vector<8xf32>
    %985 = vector.shape_cast %984 : vector<8xf32> to vector<8x1xf32>
    %986 = vector.broadcast %985 : vector<8x1xf32> to vector<8x8xf32>
    %987 = arith.subf %983, %986 : vector<8x8xf32>
    %988 = math.exp %987 : vector<8x8xf32>
    %cst_326 = arith.constant dense<0.000000e+00> : vector<8xf32>
    %989 = vector.multi_reduction <add>, %988, %cst_326 [1] : vector<8x8xf32> to vector<8xf32>
    %990 = vector.shape_cast %989 : vector<8xf32> to vector<8x1xf32>
    %991 = tpu.reciprocal %990 {approx = true} : vector<8x1xf32> -> vector<8x1xf32>
    %992 = vector.broadcast %991 : vector<8x1xf32> to vector<8x8xf32>
    %993 = arith.mulf %988, %992 : vector<8x8xf32>
    %994 = vector.extract_strided_slice %978 {offsets = [0, 0], sizes = [8, 32], strides = [1, 1]} : vector<8x128xf32> to vector<8x32xf32>
    %cst_327 = arith.constant dense<0.000000e+00> : vector<8x32xf32>
    %995 = tpu.matmul %993, %994, %cst_327 {dimension_numbers = #tpu.dot_dimension_numbers<[1], [0], [0], [1], [0, 0, 1, 1], [], []>} : vector<8x8xf32>, vector<8x32xf32>, vector<8x32xf32> -> vector<8x32xf32>
    %996 = vector.extract_strided_slice %976 {offsets = [0, 32], sizes = [8, 32], strides = [1, 1]} : vector<8x128xf32> to vector<8x32xf32>
    %997 = vector.extract_strided_slice %977 {offsets = [0, 32], sizes = [8, 32], strides = [1, 1]} : vector<8x128xf32> to vector<8x32xf32>
    %cst_328 = arith.constant dense<0.000000e+00> : vector<8x8xf32>
    %998 = tpu.matmul %996, %997, %cst_328 {dimension_numbers = #tpu.dot_dimension_numbers<[1], [1], [0], [0], [0, 0, 1, 0], [], []>} : vector<8x32xf32>, vector<8x32xf32>, vector<8x8xf32> -> vector<8x8xf32>
    %cst_329 = arith.constant 0.176776692 : f32
    %999 = vector.broadcast %cst_329 : f32 to vector<8x8xf32>
    %1000 = arith.mulf %998, %999 : vector<8x8xf32>
    %cst_330 = arith.constant dense<0xFF800000> : vector<8xf32>
    %1001 = vector.multi_reduction <maximumf>, %1000, %cst_330 [1] : vector<8x8xf32> to vector<8xf32>
    %1002 = vector.shape_cast %1001 : vector<8xf32> to vector<8x1xf32>
    %1003 = vector.broadcast %1002 : vector<8x1xf32> to vector<8x8xf32>
    %1004 = arith.subf %1000, %1003 : vector<8x8xf32>
    %1005 = math.exp %1004 : vector<8x8xf32>
    %cst_331 = arith.constant dense<0.000000e+00> : vector<8xf32>
    %1006 = vector.multi_reduction <add>, %1005, %cst_331 [1] : vector<8x8xf32> to vector<8xf32>
    %1007 = vector.shape_cast %1006 : vector<8xf32> to vector<8x1xf32>
    %1008 = tpu.reciprocal %1007 {approx = true} : vector<8x1xf32> -> vector<8x1xf32>
    %1009 = vector.broadcast %1008 : vector<8x1xf32> to vector<8x8xf32>
    %1010 = arith.mulf %1005, %1009 : vector<8x8xf32>
    %1011 = vector.extract_strided_slice %978 {offsets = [0, 32], sizes = [8, 32], strides = [1, 1]} : vector<8x128xf32> to vector<8x32xf32>
    %cst_332 = arith.constant dense<0.000000e+00> : vector<8x32xf32>
    %1012 = tpu.matmul %1010, %1011, %cst_332 {dimension_numbers = #tpu.dot_dimension_numbers<[1], [0], [0], [1], [0, 0, 1, 1], [], []>} : vector<8x8xf32>, vector<8x32xf32>, vector<8x32xf32> -> vector<8x32xf32>
    %1013 = vector.extract_strided_slice %976 {offsets = [0, 64], sizes = [8, 32], strides = [1, 1]} : vector<8x128xf32> to vector<8x32xf32>
    %1014 = vector.extract_strided_slice %977 {offsets = [0, 64], sizes = [8, 32], strides = [1, 1]} : vector<8x128xf32> to vector<8x32xf32>
    %cst_333 = arith.constant dense<0.000000e+00> : vector<8x8xf32>
    %1015 = tpu.matmul %1013, %1014, %cst_333 {dimension_numbers = #tpu.dot_dimension_numbers<[1], [1], [0], [0], [0, 0, 1, 0], [], []>} : vector<8x32xf32>, vector<8x32xf32>, vector<8x8xf32> -> vector<8x8xf32>
    %cst_334 = arith.constant 0.176776692 : f32
    %1016 = vector.broadcast %cst_334 : f32 to vector<8x8xf32>
    %1017 = arith.mulf %1015, %1016 : vector<8x8xf32>
    %cst_335 = arith.constant dense<0xFF800000> : vector<8xf32>
    %1018 = vector.multi_reduction <maximumf>, %1017, %cst_335 [1] : vector<8x8xf32> to vector<8xf32>
    %1019 = vector.shape_cast %1018 : vector<8xf32> to vector<8x1xf32>
    %1020 = vector.broadcast %1019 : vector<8x1xf32> to vector<8x8xf32>
    %1021 = arith.subf %1017, %1020 : vector<8x8xf32>
    %1022 = math.exp %1021 : vector<8x8xf32>
    %cst_336 = arith.constant dense<0.000000e+00> : vector<8xf32>
    %1023 = vector.multi_reduction <add>, %1022, %cst_336 [1] : vector<8x8xf32> to vector<8xf32>
    %1024 = vector.shape_cast %1023 : vector<8xf32> to vector<8x1xf32>
    %1025 = tpu.reciprocal %1024 {approx = true} : vector<8x1xf32> -> vector<8x1xf32>
    %1026 = vector.broadcast %1025 : vector<8x1xf32> to vector<8x8xf32>
    %1027 = arith.mulf %1022, %1026 : vector<8x8xf32>
    %1028 = vector.extract_strided_slice %978 {offsets = [0, 64], sizes = [8, 32], strides = [1, 1]} : vector<8x128xf32> to vector<8x32xf32>
    %cst_337 = arith.constant dense<0.000000e+00> : vector<8x32xf32>
    %1029 = tpu.matmul %1027, %1028, %cst_337 {dimension_numbers = #tpu.dot_dimension_numbers<[1], [0], [0], [1], [0, 0, 1, 1], [], []>} : vector<8x8xf32>, vector<8x32xf32>, vector<8x32xf32> -> vector<8x32xf32>
    %1030 = vector.extract_strided_slice %976 {offsets = [0, 96], sizes = [8, 32], strides = [1, 1]} : vector<8x128xf32> to vector<8x32xf32>
    %1031 = vector.extract_strided_slice %977 {offsets = [0, 96], sizes = [8, 32], strides = [1, 1]} : vector<8x128xf32> to vector<8x32xf32>
    %cst_338 = arith.constant dense<0.000000e+00> : vector<8x8xf32>
    %1032 = tpu.matmul %1030, %1031, %cst_338 {dimension_numbers = #tpu.dot_dimension_numbers<[1], [1], [0], [0], [0, 0, 1, 0], [], []>} : vector<8x32xf32>, vector<8x32xf32>, vector<8x8xf32> -> vector<8x8xf32>
    %cst_339 = arith.constant 0.176776692 : f32
    %1033 = vector.broadcast %cst_339 : f32 to vector<8x8xf32>
    %1034 = arith.mulf %1032, %1033 : vector<8x8xf32>
    %cst_340 = arith.constant dense<0xFF800000> : vector<8xf32>
    %1035 = vector.multi_reduction <maximumf>, %1034, %cst_340 [1] : vector<8x8xf32> to vector<8xf32>
    %1036 = vector.shape_cast %1035 : vector<8xf32> to vector<8x1xf32>
    %1037 = vector.broadcast %1036 : vector<8x1xf32> to vector<8x8xf32>
    %1038 = arith.subf %1034, %1037 : vector<8x8xf32>
    %1039 = math.exp %1038 : vector<8x8xf32>
    %cst_341 = arith.constant dense<0.000000e+00> : vector<8xf32>
    %1040 = vector.multi_reduction <add>, %1039, %cst_341 [1] : vector<8x8xf32> to vector<8xf32>
    %1041 = vector.shape_cast %1040 : vector<8xf32> to vector<8x1xf32>
    %1042 = tpu.reciprocal %1041 {approx = true} : vector<8x1xf32> -> vector<8x1xf32>
    %1043 = vector.broadcast %1042 : vector<8x1xf32> to vector<8x8xf32>
    %1044 = arith.mulf %1039, %1043 : vector<8x8xf32>
    %1045 = vector.extract_strided_slice %978 {offsets = [0, 96], sizes = [8, 32], strides = [1, 1]} : vector<8x128xf32> to vector<8x32xf32>
    %cst_342 = arith.constant dense<0.000000e+00> : vector<8x32xf32>
    %1046 = tpu.matmul %1044, %1045, %cst_342 {dimension_numbers = #tpu.dot_dimension_numbers<[1], [0], [0], [1], [0, 0, 1, 1], [], []>} : vector<8x8xf32>, vector<8x32xf32>, vector<8x32xf32> -> vector<8x32xf32>
    %1047 = tpu.concatenate %995, %1012, %1029, %1046 in 1 : vector<8x32xf32>, vector<8x32xf32>, vector<8x32xf32>, vector<8x32xf32> -> vector<8x128xf32>
    %1048 = vector.extract_strided_slice %973 {offsets = [8, 0], sizes = [8, 128], strides = [1, 1]} : vector<16x128xf32> to vector<8x128xf32>
    %1049 = vector.extract_strided_slice %974 {offsets = [8, 0], sizes = [8, 128], strides = [1, 1]} : vector<16x128xf32> to vector<8x128xf32>
    %1050 = vector.extract_strided_slice %975 {offsets = [8, 0], sizes = [8, 128], strides = [1, 1]} : vector<16x128xf32> to vector<8x128xf32>
    %1051 = vector.extract_strided_slice %1048 {offsets = [0, 0], sizes = [8, 32], strides = [1, 1]} : vector<8x128xf32> to vector<8x32xf32>
    %1052 = vector.extract_strided_slice %1049 {offsets = [0, 0], sizes = [8, 32], strides = [1, 1]} : vector<8x128xf32> to vector<8x32xf32>
    %cst_343 = arith.constant dense<0.000000e+00> : vector<8x8xf32>
    %1053 = tpu.matmul %1051, %1052, %cst_343 {dimension_numbers = #tpu.dot_dimension_numbers<[1], [1], [0], [0], [0, 0, 1, 0], [], []>} : vector<8x32xf32>, vector<8x32xf32>, vector<8x8xf32> -> vector<8x8xf32>
    %cst_344 = arith.constant 0.176776692 : f32
    %1054 = vector.broadcast %cst_344 : f32 to vector<8x8xf32>
    %1055 = arith.mulf %1053, %1054 : vector<8x8xf32>
    %cst_345 = arith.constant dense<0xFF800000> : vector<8xf32>
    %1056 = vector.multi_reduction <maximumf>, %1055, %cst_345 [1] : vector<8x8xf32> to vector<8xf32>
    %1057 = vector.shape_cast %1056 : vector<8xf32> to vector<8x1xf32>
    %1058 = vector.broadcast %1057 : vector<8x1xf32> to vector<8x8xf32>
    %1059 = arith.subf %1055, %1058 : vector<8x8xf32>
    %1060 = math.exp %1059 : vector<8x8xf32>
    %cst_346 = arith.constant dense<0.000000e+00> : vector<8xf32>
    %1061 = vector.multi_reduction <add>, %1060, %cst_346 [1] : vector<8x8xf32> to vector<8xf32>
    %1062 = vector.shape_cast %1061 : vector<8xf32> to vector<8x1xf32>
    %1063 = tpu.reciprocal %1062 {approx = true} : vector<8x1xf32> -> vector<8x1xf32>
    %1064 = vector.broadcast %1063 : vector<8x1xf32> to vector<8x8xf32>
    %1065 = arith.mulf %1060, %1064 : vector<8x8xf32>
    %1066 = vector.extract_strided_slice %1050 {offsets = [0, 0], sizes = [8, 32], strides = [1, 1]} : vector<8x128xf32> to vector<8x32xf32>
    %cst_347 = arith.constant dense<0.000000e+00> : vector<8x32xf32>
    %1067 = tpu.matmul %1065, %1066, %cst_347 {dimension_numbers = #tpu.dot_dimension_numbers<[1], [0], [0], [1], [0, 0, 1, 1], [], []>} : vector<8x8xf32>, vector<8x32xf32>, vector<8x32xf32> -> vector<8x32xf32>
    %1068 = vector.extract_strided_slice %1048 {offsets = [0, 32], sizes = [8, 32], strides = [1, 1]} : vector<8x128xf32> to vector<8x32xf32>
    %1069 = vector.extract_strided_slice %1049 {offsets = [0, 32], sizes = [8, 32], strides = [1, 1]} : vector<8x128xf32> to vector<8x32xf32>
    %cst_348 = arith.constant dense<0.000000e+00> : vector<8x8xf32>
    %1070 = tpu.matmul %1068, %1069, %cst_348 {dimension_numbers = #tpu.dot_dimension_numbers<[1], [1], [0], [0], [0, 0, 1, 0], [], []>} : vector<8x32xf32>, vector<8x32xf32>, vector<8x8xf32> -> vector<8x8xf32>
    %cst_349 = arith.constant 0.176776692 : f32
    %1071 = vector.broadcast %cst_349 : f32 to vector<8x8xf32>
    %1072 = arith.mulf %1070, %1071 : vector<8x8xf32>
    %cst_350 = arith.constant dense<0xFF800000> : vector<8xf32>
    %1073 = vector.multi_reduction <maximumf>, %1072, %cst_350 [1] : vector<8x8xf32> to vector<8xf32>
    %1074 = vector.shape_cast %1073 : vector<8xf32> to vector<8x1xf32>
    %1075 = vector.broadcast %1074 : vector<8x1xf32> to vector<8x8xf32>
    %1076 = arith.subf %1072, %1075 : vector<8x8xf32>
    %1077 = math.exp %1076 : vector<8x8xf32>
    %cst_351 = arith.constant dense<0.000000e+00> : vector<8xf32>
    %1078 = vector.multi_reduction <add>, %1077, %cst_351 [1] : vector<8x8xf32> to vector<8xf32>
    %1079 = vector.shape_cast %1078 : vector<8xf32> to vector<8x1xf32>
    %1080 = tpu.reciprocal %1079 {approx = true} : vector<8x1xf32> -> vector<8x1xf32>
    %1081 = vector.broadcast %1080 : vector<8x1xf32> to vector<8x8xf32>
    %1082 = arith.mulf %1077, %1081 : vector<8x8xf32>
    %1083 = vector.extract_strided_slice %1050 {offsets = [0, 32], sizes = [8, 32], strides = [1, 1]} : vector<8x128xf32> to vector<8x32xf32>
    %cst_352 = arith.constant dense<0.000000e+00> : vector<8x32xf32>
    %1084 = tpu.matmul %1082, %1083, %cst_352 {dimension_numbers = #tpu.dot_dimension_numbers<[1], [0], [0], [1], [0, 0, 1, 1], [], []>} : vector<8x8xf32>, vector<8x32xf32>, vector<8x32xf32> -> vector<8x32xf32>
    %1085 = vector.extract_strided_slice %1048 {offsets = [0, 64], sizes = [8, 32], strides = [1, 1]} : vector<8x128xf32> to vector<8x32xf32>
    %1086 = vector.extract_strided_slice %1049 {offsets = [0, 64], sizes = [8, 32], strides = [1, 1]} : vector<8x128xf32> to vector<8x32xf32>
    %cst_353 = arith.constant dense<0.000000e+00> : vector<8x8xf32>
    %1087 = tpu.matmul %1085, %1086, %cst_353 {dimension_numbers = #tpu.dot_dimension_numbers<[1], [1], [0], [0], [0, 0, 1, 0], [], []>} : vector<8x32xf32>, vector<8x32xf32>, vector<8x8xf32> -> vector<8x8xf32>
    %cst_354 = arith.constant 0.176776692 : f32
    %1088 = vector.broadcast %cst_354 : f32 to vector<8x8xf32>
    %1089 = arith.mulf %1087, %1088 : vector<8x8xf32>
    %cst_355 = arith.constant dense<0xFF800000> : vector<8xf32>
    %1090 = vector.multi_reduction <maximumf>, %1089, %cst_355 [1] : vector<8x8xf32> to vector<8xf32>
    %1091 = vector.shape_cast %1090 : vector<8xf32> to vector<8x1xf32>
    %1092 = vector.broadcast %1091 : vector<8x1xf32> to vector<8x8xf32>
    %1093 = arith.subf %1089, %1092 : vector<8x8xf32>
    %1094 = math.exp %1093 : vector<8x8xf32>
    %cst_356 = arith.constant dense<0.000000e+00> : vector<8xf32>
    %1095 = vector.multi_reduction <add>, %1094, %cst_356 [1] : vector<8x8xf32> to vector<8xf32>
    %1096 = vector.shape_cast %1095 : vector<8xf32> to vector<8x1xf32>
    %1097 = tpu.reciprocal %1096 {approx = true} : vector<8x1xf32> -> vector<8x1xf32>
    %1098 = vector.broadcast %1097 : vector<8x1xf32> to vector<8x8xf32>
    %1099 = arith.mulf %1094, %1098 : vector<8x8xf32>
    %1100 = vector.extract_strided_slice %1050 {offsets = [0, 64], sizes = [8, 32], strides = [1, 1]} : vector<8x128xf32> to vector<8x32xf32>
    %cst_357 = arith.constant dense<0.000000e+00> : vector<8x32xf32>
    %1101 = tpu.matmul %1099, %1100, %cst_357 {dimension_numbers = #tpu.dot_dimension_numbers<[1], [0], [0], [1], [0, 0, 1, 1], [], []>} : vector<8x8xf32>, vector<8x32xf32>, vector<8x32xf32> -> vector<8x32xf32>
    %1102 = vector.extract_strided_slice %1048 {offsets = [0, 96], sizes = [8, 32], strides = [1, 1]} : vector<8x128xf32> to vector<8x32xf32>
    %1103 = vector.extract_strided_slice %1049 {offsets = [0, 96], sizes = [8, 32], strides = [1, 1]} : vector<8x128xf32> to vector<8x32xf32>
    %cst_358 = arith.constant dense<0.000000e+00> : vector<8x8xf32>
    %1104 = tpu.matmul %1102, %1103, %cst_358 {dimension_numbers = #tpu.dot_dimension_numbers<[1], [1], [0], [0], [0, 0, 1, 0], [], []>} : vector<8x32xf32>, vector<8x32xf32>, vector<8x8xf32> -> vector<8x8xf32>
    %cst_359 = arith.constant 0.176776692 : f32
    %1105 = vector.broadcast %cst_359 : f32 to vector<8x8xf32>
    %1106 = arith.mulf %1104, %1105 : vector<8x8xf32>
    %cst_360 = arith.constant dense<0xFF800000> : vector<8xf32>
    %1107 = vector.multi_reduction <maximumf>, %1106, %cst_360 [1] : vector<8x8xf32> to vector<8xf32>
    %1108 = vector.shape_cast %1107 : vector<8xf32> to vector<8x1xf32>
    %1109 = vector.broadcast %1108 : vector<8x1xf32> to vector<8x8xf32>
    %1110 = arith.subf %1106, %1109 : vector<8x8xf32>
    %1111 = math.exp %1110 : vector<8x8xf32>
    %cst_361 = arith.constant dense<0.000000e+00> : vector<8xf32>
    %1112 = vector.multi_reduction <add>, %1111, %cst_361 [1] : vector<8x8xf32> to vector<8xf32>
    %1113 = vector.shape_cast %1112 : vector<8xf32> to vector<8x1xf32>
    %1114 = tpu.reciprocal %1113 {approx = true} : vector<8x1xf32> -> vector<8x1xf32>
    %1115 = vector.broadcast %1114 : vector<8x1xf32> to vector<8x8xf32>
    %1116 = arith.mulf %1111, %1115 : vector<8x8xf32>
    %1117 = vector.extract_strided_slice %1050 {offsets = [0, 96], sizes = [8, 32], strides = [1, 1]} : vector<8x128xf32> to vector<8x32xf32>
    %cst_362 = arith.constant dense<0.000000e+00> : vector<8x32xf32>
    %1118 = tpu.matmul %1116, %1117, %cst_362 {dimension_numbers = #tpu.dot_dimension_numbers<[1], [0], [0], [1], [0, 0, 1, 1], [], []>} : vector<8x8xf32>, vector<8x32xf32>, vector<8x32xf32> -> vector<8x32xf32>
    %1119 = tpu.concatenate %1067, %1084, %1101, %1118 in 1 : vector<8x32xf32>, vector<8x32xf32>, vector<8x32xf32>, vector<8x32xf32> -> vector<8x128xf32>
    %1120 = tpu.concatenate %1047, %1119 in 0 : vector<8x128xf32>, vector<8x128xf32> -> vector<16x128xf32>
    %c1_363 = arith.constant 1 : index
    %c0_364 = arith.constant 0 : index
    %c0_365 = arith.constant 0 : index
    %1121 = vector.load %arg19[%c1_363, %c0_364, %c0_365] : memref<2x128x128xbf16, #tpu.memory_space<vmem>>, vector<1x128x128xbf16>
    %1122 = vector.shape_cast %1121 : vector<1x128x128xbf16> to vector<128x128xbf16>
    %1123 = arith.truncf %1120 : vector<16x128xf32> to vector<16x128xbf16>
    %cst_366 = arith.constant dense<0.000000e+00> : vector<16x128xf32>
    %1124 = tpu.matmul %1123, %1122, %cst_366 {dimension_numbers = #tpu.dot_dimension_numbers<[1], [0], [0], [1], [0, 0, 1, 1], [], []>} : vector<16x128xbf16>, vector<128x128xbf16>, vector<16x128xf32> -> vector<16x128xf32>
    %1125 = arith.addf %938, %1124 : vector<16x128xf32>
    %1126 = vector.extract_strided_slice %940 {offsets = [6, 0], sizes = [1, 128], strides = [1, 1]} : vector<16x128xf32> to vector<1x128xf32>
    %1127 = vector.broadcast %1126 : vector<1x128xf32> to vector<16x128xf32>
    %1128 = arith.addf %1125, %1127 : vector<16x128xf32>
    %1129 = vector.extract_strided_slice %940 {offsets = [2, 0], sizes = [1, 128], strides = [1, 1]} : vector<16x128xf32> to vector<1x128xf32>
    %1130 = vector.extract_strided_slice %940 {offsets = [3, 0], sizes = [1, 128], strides = [1, 1]} : vector<16x128xf32> to vector<1x128xf32>
    %cst_367 = arith.constant dense<0.000000e+00> : vector<16xf32>
    %1131 = vector.multi_reduction <add>, %1128, %cst_367 [1] : vector<16x128xf32> to vector<16xf32>
    %1132 = vector.shape_cast %1131 : vector<16xf32> to vector<16x1xf32>
    %cst_368 = arith.constant 1.280000e+02 : f32
    %1133 = vector.broadcast %cst_368 : f32 to vector<16x1xf32>
    %1134 = arith.divf %1132, %1133 : vector<16x1xf32>
    %1135 = vector.broadcast %1134 : vector<16x1xf32> to vector<16x128xf32>
    %1136 = arith.subf %1128, %1135 : vector<16x128xf32>
    %1137 = arith.mulf %1136, %1136 : vector<16x128xf32>
    %cst_369 = arith.constant dense<0.000000e+00> : vector<16xf32>
    %1138 = vector.multi_reduction <add>, %1137, %cst_369 [1] : vector<16x128xf32> to vector<16xf32>
    %1139 = vector.shape_cast %1138 : vector<16xf32> to vector<16x1xf32>
    %cst_370 = arith.constant 1.280000e+02 : f32
    %1140 = vector.broadcast %cst_370 : f32 to vector<16x1xf32>
    %1141 = arith.divf %1139, %1140 : vector<16x1xf32>
    %1142 = vector.broadcast %1134 : vector<16x1xf32> to vector<16x128xf32>
    %1143 = arith.subf %1128, %1142 : vector<16x128xf32>
    %cst_371 = arith.constant 9.99999974E-6 : f32
    %1144 = vector.broadcast %cst_371 : f32 to vector<16x1xf32>
    %1145 = arith.addf %1141, %1144 : vector<16x1xf32>
    %1146 = math.rsqrt %1145 : vector<16x1xf32>
    %1147 = vector.broadcast %1146 : vector<16x1xf32> to vector<16x128xf32>
    %1148 = arith.mulf %1143, %1147 : vector<16x128xf32>
    %1149 = vector.broadcast %1129 : vector<1x128xf32> to vector<16x128xf32>
    %1150 = arith.mulf %1148, %1149 : vector<16x128xf32>
    %1151 = vector.broadcast %1130 : vector<1x128xf32> to vector<16x128xf32>
    %1152 = arith.addf %1150, %1151 : vector<16x128xf32>
    %c1_372 = arith.constant 1 : index
    %c0_373 = arith.constant 0 : index
    %c0_374 = arith.constant 0 : index
    %1153 = vector.load %arg20[%c1_372, %c0_373, %c0_374] : memref<2x128x128xbf16, #tpu.memory_space<vmem>>, vector<1x128x128xbf16>
    %1154 = vector.shape_cast %1153 : vector<1x128x128xbf16> to vector<128x128xbf16>
    %1155 = arith.truncf %1152 : vector<16x128xf32> to vector<16x128xbf16>
    %cst_375 = arith.constant dense<0.000000e+00> : vector<16x128xf32>
    %1156 = tpu.matmul %1155, %1154, %cst_375 {dimension_numbers = #tpu.dot_dimension_numbers<[1], [0], [0], [1], [0, 0, 1, 1], [], []>} : vector<16x128xbf16>, vector<128x128xbf16>, vector<16x128xf32> -> vector<16x128xf32>
    %1157 = vector.extract_strided_slice %940 {offsets = [7, 0], sizes = [1, 128], strides = [1, 1]} : vector<16x128xf32> to vector<1x128xf32>
    %1158 = vector.broadcast %1157 : vector<1x128xf32> to vector<16x128xf32>
    %1159 = arith.addf %1156, %1158 : vector<16x128xf32>
    %c1_376 = arith.constant 1 : index
    %c0_377 = arith.constant 0 : index
    %c0_378 = arith.constant 0 : index
    %1160 = vector.load %arg21[%c1_376, %c0_377, %c0_378] : memref<2x128x256xbf16, #tpu.memory_space<vmem>>, vector<1x128x256xbf16>
    %1161 = vector.shape_cast %1160 : vector<1x128x256xbf16> to vector<128x256xbf16>
    %cst_379 = arith.constant dense<0.000000e+00> : vector<16x256xf32>
    %1162 = tpu.matmul %501, %1161, %cst_379 {dimension_numbers = #tpu.dot_dimension_numbers<[1], [0], [0], [1], [0, 0, 1, 1], [], []>} : vector<16x128xbf16>, vector<128x256xbf16>, vector<16x256xf32> -> vector<16x256xf32>
    %c1_380 = arith.constant 1 : index
    %c0_381 = arith.constant 0 : index
    %c0_382 = arith.constant 0 : index
    %1163 = vector.load %arg16[%c1_380, %c0_381, %c0_382] : memref<2x1x256xf32, #tpu.memory_space<vmem>>, vector<1x1x256xf32>
    %1164 = vector.shape_cast %1163 : vector<1x1x256xf32> to vector<1x256xf32>
    %1165 = vector.broadcast %1164 : vector<1x256xf32> to vector<16x256xf32>
    %1166 = arith.addf %1162, %1165 : vector<16x256xf32>
    %1167 = vector.extract_strided_slice %1166 {offsets = [0, 0], sizes = [16, 128], strides = [1, 1]} : vector<16x256xf32> to vector<16x128xf32>
    %1168 = vector.extract_strided_slice %1166 {offsets = [0, 128], sizes = [16, 128], strides = [1, 1]} : vector<16x256xf32> to vector<16x128xf32>
    %1169 = vector.extract_strided_slice %1159 {offsets = [0, 0], sizes = [8, 128], strides = [1, 1]} : vector<16x128xf32> to vector<8x128xf32>
    %1170 = vector.extract_strided_slice %1167 {offsets = [0, 0], sizes = [8, 128], strides = [1, 1]} : vector<16x128xf32> to vector<8x128xf32>
    %1171 = vector.extract_strided_slice %1168 {offsets = [0, 0], sizes = [8, 128], strides = [1, 1]} : vector<16x128xf32> to vector<8x128xf32>
    %1172 = vector.extract_strided_slice %1169 {offsets = [0, 0], sizes = [8, 32], strides = [1, 1]} : vector<8x128xf32> to vector<8x32xf32>
    %1173 = vector.extract_strided_slice %1170 {offsets = [0, 0], sizes = [8, 32], strides = [1, 1]} : vector<8x128xf32> to vector<8x32xf32>
    %cst_383 = arith.constant dense<0.000000e+00> : vector<8x8xf32>
    %1174 = tpu.matmul %1172, %1173, %cst_383 {dimension_numbers = #tpu.dot_dimension_numbers<[1], [1], [0], [0], [0, 0, 1, 0], [], []>} : vector<8x32xf32>, vector<8x32xf32>, vector<8x8xf32> -> vector<8x8xf32>
    %cst_384 = arith.constant 0.176776692 : f32
    %1175 = vector.broadcast %cst_384 : f32 to vector<8x8xf32>
    %1176 = arith.mulf %1174, %1175 : vector<8x8xf32>
    %cst_385 = arith.constant dense<0xFF800000> : vector<8xf32>
    %1177 = vector.multi_reduction <maximumf>, %1176, %cst_385 [1] : vector<8x8xf32> to vector<8xf32>
    %1178 = vector.shape_cast %1177 : vector<8xf32> to vector<8x1xf32>
    %1179 = vector.broadcast %1178 : vector<8x1xf32> to vector<8x8xf32>
    %1180 = arith.subf %1176, %1179 : vector<8x8xf32>
    %1181 = math.exp %1180 : vector<8x8xf32>
    %cst_386 = arith.constant dense<0.000000e+00> : vector<8xf32>
    %1182 = vector.multi_reduction <add>, %1181, %cst_386 [1] : vector<8x8xf32> to vector<8xf32>
    %1183 = vector.shape_cast %1182 : vector<8xf32> to vector<8x1xf32>
    %1184 = tpu.reciprocal %1183 {approx = true} : vector<8x1xf32> -> vector<8x1xf32>
    %1185 = vector.broadcast %1184 : vector<8x1xf32> to vector<8x8xf32>
    %1186 = arith.mulf %1181, %1185 : vector<8x8xf32>
    %1187 = vector.extract_strided_slice %1171 {offsets = [0, 0], sizes = [8, 32], strides = [1, 1]} : vector<8x128xf32> to vector<8x32xf32>
    %cst_387 = arith.constant dense<0.000000e+00> : vector<8x32xf32>
    %1188 = tpu.matmul %1186, %1187, %cst_387 {dimension_numbers = #tpu.dot_dimension_numbers<[1], [0], [0], [1], [0, 0, 1, 1], [], []>} : vector<8x8xf32>, vector<8x32xf32>, vector<8x32xf32> -> vector<8x32xf32>
    %1189 = vector.extract_strided_slice %1169 {offsets = [0, 32], sizes = [8, 32], strides = [1, 1]} : vector<8x128xf32> to vector<8x32xf32>
    %1190 = vector.extract_strided_slice %1170 {offsets = [0, 32], sizes = [8, 32], strides = [1, 1]} : vector<8x128xf32> to vector<8x32xf32>
    %cst_388 = arith.constant dense<0.000000e+00> : vector<8x8xf32>
    %1191 = tpu.matmul %1189, %1190, %cst_388 {dimension_numbers = #tpu.dot_dimension_numbers<[1], [1], [0], [0], [0, 0, 1, 0], [], []>} : vector<8x32xf32>, vector<8x32xf32>, vector<8x8xf32> -> vector<8x8xf32>
    %cst_389 = arith.constant 0.176776692 : f32
    %1192 = vector.broadcast %cst_389 : f32 to vector<8x8xf32>
    %1193 = arith.mulf %1191, %1192 : vector<8x8xf32>
    %cst_390 = arith.constant dense<0xFF800000> : vector<8xf32>
    %1194 = vector.multi_reduction <maximumf>, %1193, %cst_390 [1] : vector<8x8xf32> to vector<8xf32>
    %1195 = vector.shape_cast %1194 : vector<8xf32> to vector<8x1xf32>
    %1196 = vector.broadcast %1195 : vector<8x1xf32> to vector<8x8xf32>
    %1197 = arith.subf %1193, %1196 : vector<8x8xf32>
    %1198 = math.exp %1197 : vector<8x8xf32>
    %cst_391 = arith.constant dense<0.000000e+00> : vector<8xf32>
    %1199 = vector.multi_reduction <add>, %1198, %cst_391 [1] : vector<8x8xf32> to vector<8xf32>
    %1200 = vector.shape_cast %1199 : vector<8xf32> to vector<8x1xf32>
    %1201 = tpu.reciprocal %1200 {approx = true} : vector<8x1xf32> -> vector<8x1xf32>
    %1202 = vector.broadcast %1201 : vector<8x1xf32> to vector<8x8xf32>
    %1203 = arith.mulf %1198, %1202 : vector<8x8xf32>
    %1204 = vector.extract_strided_slice %1171 {offsets = [0, 32], sizes = [8, 32], strides = [1, 1]} : vector<8x128xf32> to vector<8x32xf32>
    %cst_392 = arith.constant dense<0.000000e+00> : vector<8x32xf32>
    %1205 = tpu.matmul %1203, %1204, %cst_392 {dimension_numbers = #tpu.dot_dimension_numbers<[1], [0], [0], [1], [0, 0, 1, 1], [], []>} : vector<8x8xf32>, vector<8x32xf32>, vector<8x32xf32> -> vector<8x32xf32>
    %1206 = vector.extract_strided_slice %1169 {offsets = [0, 64], sizes = [8, 32], strides = [1, 1]} : vector<8x128xf32> to vector<8x32xf32>
    %1207 = vector.extract_strided_slice %1170 {offsets = [0, 64], sizes = [8, 32], strides = [1, 1]} : vector<8x128xf32> to vector<8x32xf32>
    %cst_393 = arith.constant dense<0.000000e+00> : vector<8x8xf32>
    %1208 = tpu.matmul %1206, %1207, %cst_393 {dimension_numbers = #tpu.dot_dimension_numbers<[1], [1], [0], [0], [0, 0, 1, 0], [], []>} : vector<8x32xf32>, vector<8x32xf32>, vector<8x8xf32> -> vector<8x8xf32>
    %cst_394 = arith.constant 0.176776692 : f32
    %1209 = vector.broadcast %cst_394 : f32 to vector<8x8xf32>
    %1210 = arith.mulf %1208, %1209 : vector<8x8xf32>
    %cst_395 = arith.constant dense<0xFF800000> : vector<8xf32>
    %1211 = vector.multi_reduction <maximumf>, %1210, %cst_395 [1] : vector<8x8xf32> to vector<8xf32>
    %1212 = vector.shape_cast %1211 : vector<8xf32> to vector<8x1xf32>
    %1213 = vector.broadcast %1212 : vector<8x1xf32> to vector<8x8xf32>
    %1214 = arith.subf %1210, %1213 : vector<8x8xf32>
    %1215 = math.exp %1214 : vector<8x8xf32>
    %cst_396 = arith.constant dense<0.000000e+00> : vector<8xf32>
    %1216 = vector.multi_reduction <add>, %1215, %cst_396 [1] : vector<8x8xf32> to vector<8xf32>
    %1217 = vector.shape_cast %1216 : vector<8xf32> to vector<8x1xf32>
    %1218 = tpu.reciprocal %1217 {approx = true} : vector<8x1xf32> -> vector<8x1xf32>
    %1219 = vector.broadcast %1218 : vector<8x1xf32> to vector<8x8xf32>
    %1220 = arith.mulf %1215, %1219 : vector<8x8xf32>
    %1221 = vector.extract_strided_slice %1171 {offsets = [0, 64], sizes = [8, 32], strides = [1, 1]} : vector<8x128xf32> to vector<8x32xf32>
    %cst_397 = arith.constant dense<0.000000e+00> : vector<8x32xf32>
    %1222 = tpu.matmul %1220, %1221, %cst_397 {dimension_numbers = #tpu.dot_dimension_numbers<[1], [0], [0], [1], [0, 0, 1, 1], [], []>} : vector<8x8xf32>, vector<8x32xf32>, vector<8x32xf32> -> vector<8x32xf32>
    %1223 = vector.extract_strided_slice %1169 {offsets = [0, 96], sizes = [8, 32], strides = [1, 1]} : vector<8x128xf32> to vector<8x32xf32>
    %1224 = vector.extract_strided_slice %1170 {offsets = [0, 96], sizes = [8, 32], strides = [1, 1]} : vector<8x128xf32> to vector<8x32xf32>
    %cst_398 = arith.constant dense<0.000000e+00> : vector<8x8xf32>
    %1225 = tpu.matmul %1223, %1224, %cst_398 {dimension_numbers = #tpu.dot_dimension_numbers<[1], [1], [0], [0], [0, 0, 1, 0], [], []>} : vector<8x32xf32>, vector<8x32xf32>, vector<8x8xf32> -> vector<8x8xf32>
    %cst_399 = arith.constant 0.176776692 : f32
    %1226 = vector.broadcast %cst_399 : f32 to vector<8x8xf32>
    %1227 = arith.mulf %1225, %1226 : vector<8x8xf32>
    %cst_400 = arith.constant dense<0xFF800000> : vector<8xf32>
    %1228 = vector.multi_reduction <maximumf>, %1227, %cst_400 [1] : vector<8x8xf32> to vector<8xf32>
    %1229 = vector.shape_cast %1228 : vector<8xf32> to vector<8x1xf32>
    %1230 = vector.broadcast %1229 : vector<8x1xf32> to vector<8x8xf32>
    %1231 = arith.subf %1227, %1230 : vector<8x8xf32>
    %1232 = math.exp %1231 : vector<8x8xf32>
    %cst_401 = arith.constant dense<0.000000e+00> : vector<8xf32>
    %1233 = vector.multi_reduction <add>, %1232, %cst_401 [1] : vector<8x8xf32> to vector<8xf32>
    %1234 = vector.shape_cast %1233 : vector<8xf32> to vector<8x1xf32>
    %1235 = tpu.reciprocal %1234 {approx = true} : vector<8x1xf32> -> vector<8x1xf32>
    %1236 = vector.broadcast %1235 : vector<8x1xf32> to vector<8x8xf32>
    %1237 = arith.mulf %1232, %1236 : vector<8x8xf32>
    %1238 = vector.extract_strided_slice %1171 {offsets = [0, 96], sizes = [8, 32], strides = [1, 1]} : vector<8x128xf32> to vector<8x32xf32>
    %cst_402 = arith.constant dense<0.000000e+00> : vector<8x32xf32>
    %1239 = tpu.matmul %1237, %1238, %cst_402 {dimension_numbers = #tpu.dot_dimension_numbers<[1], [0], [0], [1], [0, 0, 1, 1], [], []>} : vector<8x8xf32>, vector<8x32xf32>, vector<8x32xf32> -> vector<8x32xf32>
    %1240 = tpu.concatenate %1188, %1205, %1222, %1239 in 1 : vector<8x32xf32>, vector<8x32xf32>, vector<8x32xf32>, vector<8x32xf32> -> vector<8x128xf32>
    %1241 = vector.extract_strided_slice %1159 {offsets = [8, 0], sizes = [8, 128], strides = [1, 1]} : vector<16x128xf32> to vector<8x128xf32>
    %1242 = vector.extract_strided_slice %1167 {offsets = [8, 0], sizes = [8, 128], strides = [1, 1]} : vector<16x128xf32> to vector<8x128xf32>
    %1243 = vector.extract_strided_slice %1168 {offsets = [8, 0], sizes = [8, 128], strides = [1, 1]} : vector<16x128xf32> to vector<8x128xf32>
    %1244 = vector.extract_strided_slice %1241 {offsets = [0, 0], sizes = [8, 32], strides = [1, 1]} : vector<8x128xf32> to vector<8x32xf32>
    %1245 = vector.extract_strided_slice %1242 {offsets = [0, 0], sizes = [8, 32], strides = [1, 1]} : vector<8x128xf32> to vector<8x32xf32>
    %cst_403 = arith.constant dense<0.000000e+00> : vector<8x8xf32>
    %1246 = tpu.matmul %1244, %1245, %cst_403 {dimension_numbers = #tpu.dot_dimension_numbers<[1], [1], [0], [0], [0, 0, 1, 0], [], []>} : vector<8x32xf32>, vector<8x32xf32>, vector<8x8xf32> -> vector<8x8xf32>
    %cst_404 = arith.constant 0.176776692 : f32
    %1247 = vector.broadcast %cst_404 : f32 to vector<8x8xf32>
    %1248 = arith.mulf %1246, %1247 : vector<8x8xf32>
    %cst_405 = arith.constant dense<0xFF800000> : vector<8xf32>
    %1249 = vector.multi_reduction <maximumf>, %1248, %cst_405 [1] : vector<8x8xf32> to vector<8xf32>
    %1250 = vector.shape_cast %1249 : vector<8xf32> to vector<8x1xf32>
    %1251 = vector.broadcast %1250 : vector<8x1xf32> to vector<8x8xf32>
    %1252 = arith.subf %1248, %1251 : vector<8x8xf32>
    %1253 = math.exp %1252 : vector<8x8xf32>
    %cst_406 = arith.constant dense<0.000000e+00> : vector<8xf32>
    %1254 = vector.multi_reduction <add>, %1253, %cst_406 [1] : vector<8x8xf32> to vector<8xf32>
    %1255 = vector.shape_cast %1254 : vector<8xf32> to vector<8x1xf32>
    %1256 = tpu.reciprocal %1255 {approx = true} : vector<8x1xf32> -> vector<8x1xf32>
    %1257 = vector.broadcast %1256 : vector<8x1xf32> to vector<8x8xf32>
    %1258 = arith.mulf %1253, %1257 : vector<8x8xf32>
    %1259 = vector.extract_strided_slice %1243 {offsets = [0, 0], sizes = [8, 32], strides = [1, 1]} : vector<8x128xf32> to vector<8x32xf32>
    %cst_407 = arith.constant dense<0.000000e+00> : vector<8x32xf32>
    %1260 = tpu.matmul %1258, %1259, %cst_407 {dimension_numbers = #tpu.dot_dimension_numbers<[1], [0], [0], [1], [0, 0, 1, 1], [], []>} : vector<8x8xf32>, vector<8x32xf32>, vector<8x32xf32> -> vector<8x32xf32>
    %1261 = vector.extract_strided_slice %1241 {offsets = [0, 32], sizes = [8, 32], strides = [1, 1]} : vector<8x128xf32> to vector<8x32xf32>
    %1262 = vector.extract_strided_slice %1242 {offsets = [0, 32], sizes = [8, 32], strides = [1, 1]} : vector<8x128xf32> to vector<8x32xf32>
    %cst_408 = arith.constant dense<0.000000e+00> : vector<8x8xf32>
    %1263 = tpu.matmul %1261, %1262, %cst_408 {dimension_numbers = #tpu.dot_dimension_numbers<[1], [1], [0], [0], [0, 0, 1, 0], [], []>} : vector<8x32xf32>, vector<8x32xf32>, vector<8x8xf32> -> vector<8x8xf32>
    %cst_409 = arith.constant 0.176776692 : f32
    %1264 = vector.broadcast %cst_409 : f32 to vector<8x8xf32>
    %1265 = arith.mulf %1263, %1264 : vector<8x8xf32>
    %cst_410 = arith.constant dense<0xFF800000> : vector<8xf32>
    %1266 = vector.multi_reduction <maximumf>, %1265, %cst_410 [1] : vector<8x8xf32> to vector<8xf32>
    %1267 = vector.shape_cast %1266 : vector<8xf32> to vector<8x1xf32>
    %1268 = vector.broadcast %1267 : vector<8x1xf32> to vector<8x8xf32>
    %1269 = arith.subf %1265, %1268 : vector<8x8xf32>
    %1270 = math.exp %1269 : vector<8x8xf32>
    %cst_411 = arith.constant dense<0.000000e+00> : vector<8xf32>
    %1271 = vector.multi_reduction <add>, %1270, %cst_411 [1] : vector<8x8xf32> to vector<8xf32>
    %1272 = vector.shape_cast %1271 : vector<8xf32> to vector<8x1xf32>
    %1273 = tpu.reciprocal %1272 {approx = true} : vector<8x1xf32> -> vector<8x1xf32>
    %1274 = vector.broadcast %1273 : vector<8x1xf32> to vector<8x8xf32>
    %1275 = arith.mulf %1270, %1274 : vector<8x8xf32>
    %1276 = vector.extract_strided_slice %1243 {offsets = [0, 32], sizes = [8, 32], strides = [1, 1]} : vector<8x128xf32> to vector<8x32xf32>
    %cst_412 = arith.constant dense<0.000000e+00> : vector<8x32xf32>
    %1277 = tpu.matmul %1275, %1276, %cst_412 {dimension_numbers = #tpu.dot_dimension_numbers<[1], [0], [0], [1], [0, 0, 1, 1], [], []>} : vector<8x8xf32>, vector<8x32xf32>, vector<8x32xf32> -> vector<8x32xf32>
    %1278 = vector.extract_strided_slice %1241 {offsets = [0, 64], sizes = [8, 32], strides = [1, 1]} : vector<8x128xf32> to vector<8x32xf32>
    %1279 = vector.extract_strided_slice %1242 {offsets = [0, 64], sizes = [8, 32], strides = [1, 1]} : vector<8x128xf32> to vector<8x32xf32>
    %cst_413 = arith.constant dense<0.000000e+00> : vector<8x8xf32>
    %1280 = tpu.matmul %1278, %1279, %cst_413 {dimension_numbers = #tpu.dot_dimension_numbers<[1], [1], [0], [0], [0, 0, 1, 0], [], []>} : vector<8x32xf32>, vector<8x32xf32>, vector<8x8xf32> -> vector<8x8xf32>
    %cst_414 = arith.constant 0.176776692 : f32
    %1281 = vector.broadcast %cst_414 : f32 to vector<8x8xf32>
    %1282 = arith.mulf %1280, %1281 : vector<8x8xf32>
    %cst_415 = arith.constant dense<0xFF800000> : vector<8xf32>
    %1283 = vector.multi_reduction <maximumf>, %1282, %cst_415 [1] : vector<8x8xf32> to vector<8xf32>
    %1284 = vector.shape_cast %1283 : vector<8xf32> to vector<8x1xf32>
    %1285 = vector.broadcast %1284 : vector<8x1xf32> to vector<8x8xf32>
    %1286 = arith.subf %1282, %1285 : vector<8x8xf32>
    %1287 = math.exp %1286 : vector<8x8xf32>
    %cst_416 = arith.constant dense<0.000000e+00> : vector<8xf32>
    %1288 = vector.multi_reduction <add>, %1287, %cst_416 [1] : vector<8x8xf32> to vector<8xf32>
    %1289 = vector.shape_cast %1288 : vector<8xf32> to vector<8x1xf32>
    %1290 = tpu.reciprocal %1289 {approx = true} : vector<8x1xf32> -> vector<8x1xf32>
    %1291 = vector.broadcast %1290 : vector<8x1xf32> to vector<8x8xf32>
    %1292 = arith.mulf %1287, %1291 : vector<8x8xf32>
    %1293 = vector.extract_strided_slice %1243 {offsets = [0, 64], sizes = [8, 32], strides = [1, 1]} : vector<8x128xf32> to vector<8x32xf32>
    %cst_417 = arith.constant dense<0.000000e+00> : vector<8x32xf32>
    %1294 = tpu.matmul %1292, %1293, %cst_417 {dimension_numbers = #tpu.dot_dimension_numbers<[1], [0], [0], [1], [0, 0, 1, 1], [], []>} : vector<8x8xf32>, vector<8x32xf32>, vector<8x32xf32> -> vector<8x32xf32>
    %1295 = vector.extract_strided_slice %1241 {offsets = [0, 96], sizes = [8, 32], strides = [1, 1]} : vector<8x128xf32> to vector<8x32xf32>
    %1296 = vector.extract_strided_slice %1242 {offsets = [0, 96], sizes = [8, 32], strides = [1, 1]} : vector<8x128xf32> to vector<8x32xf32>
    %cst_418 = arith.constant dense<0.000000e+00> : vector<8x8xf32>
    %1297 = tpu.matmul %1295, %1296, %cst_418 {dimension_numbers = #tpu.dot_dimension_numbers<[1], [1], [0], [0], [0, 0, 1, 0], [], []>} : vector<8x32xf32>, vector<8x32xf32>, vector<8x8xf32> -> vector<8x8xf32>
    %cst_419 = arith.constant 0.176776692 : f32
    %1298 = vector.broadcast %cst_419 : f32 to vector<8x8xf32>
    %1299 = arith.mulf %1297, %1298 : vector<8x8xf32>
    %cst_420 = arith.constant dense<0xFF800000> : vector<8xf32>
    %1300 = vector.multi_reduction <maximumf>, %1299, %cst_420 [1] : vector<8x8xf32> to vector<8xf32>
    %1301 = vector.shape_cast %1300 : vector<8xf32> to vector<8x1xf32>
    %1302 = vector.broadcast %1301 : vector<8x1xf32> to vector<8x8xf32>
    %1303 = arith.subf %1299, %1302 : vector<8x8xf32>
    %1304 = math.exp %1303 : vector<8x8xf32>
    %cst_421 = arith.constant dense<0.000000e+00> : vector<8xf32>
    %1305 = vector.multi_reduction <add>, %1304, %cst_421 [1] : vector<8x8xf32> to vector<8xf32>
    %1306 = vector.shape_cast %1305 : vector<8xf32> to vector<8x1xf32>
    %1307 = tpu.reciprocal %1306 {approx = true} : vector<8x1xf32> -> vector<8x1xf32>
    %1308 = vector.broadcast %1307 : vector<8x1xf32> to vector<8x8xf32>
    %1309 = arith.mulf %1304, %1308 : vector<8x8xf32>
    %1310 = vector.extract_strided_slice %1243 {offsets = [0, 96], sizes = [8, 32], strides = [1, 1]} : vector<8x128xf32> to vector<8x32xf32>
    %cst_422 = arith.constant dense<0.000000e+00> : vector<8x32xf32>
    %1311 = tpu.matmul %1309, %1310, %cst_422 {dimension_numbers = #tpu.dot_dimension_numbers<[1], [0], [0], [1], [0, 0, 1, 1], [], []>} : vector<8x8xf32>, vector<8x32xf32>, vector<8x32xf32> -> vector<8x32xf32>
    %1312 = tpu.concatenate %1260, %1277, %1294, %1311 in 1 : vector<8x32xf32>, vector<8x32xf32>, vector<8x32xf32>, vector<8x32xf32> -> vector<8x128xf32>
    %1313 = tpu.concatenate %1240, %1312 in 0 : vector<8x128xf32>, vector<8x128xf32> -> vector<16x128xf32>
    %c1_423 = arith.constant 1 : index
    %c0_424 = arith.constant 0 : index
    %c0_425 = arith.constant 0 : index
    %1314 = vector.load %arg22[%c1_423, %c0_424, %c0_425] : memref<2x128x128xbf16, #tpu.memory_space<vmem>>, vector<1x128x128xbf16>
    %1315 = vector.shape_cast %1314 : vector<1x128x128xbf16> to vector<128x128xbf16>
    %1316 = arith.truncf %1313 : vector<16x128xf32> to vector<16x128xbf16>
    %cst_426 = arith.constant dense<0.000000e+00> : vector<16x128xf32>
    %1317 = tpu.matmul %1316, %1315, %cst_426 {dimension_numbers = #tpu.dot_dimension_numbers<[1], [0], [0], [1], [0, 0, 1, 1], [], []>} : vector<16x128xbf16>, vector<128x128xbf16>, vector<16x128xf32> -> vector<16x128xf32>
    %1318 = arith.addf %1128, %1317 : vector<16x128xf32>
    %1319 = vector.extract_strided_slice %940 {offsets = [8, 0], sizes = [1, 128], strides = [1, 1]} : vector<16x128xf32> to vector<1x128xf32>
    %1320 = vector.broadcast %1319 : vector<1x128xf32> to vector<16x128xf32>
    %1321 = arith.addf %1318, %1320 : vector<16x128xf32>
    %1322 = vector.extract_strided_slice %940 {offsets = [4, 0], sizes = [1, 128], strides = [1, 1]} : vector<16x128xf32> to vector<1x128xf32>
    %1323 = vector.extract_strided_slice %940 {offsets = [5, 0], sizes = [1, 128], strides = [1, 1]} : vector<16x128xf32> to vector<1x128xf32>
    %cst_427 = arith.constant dense<0.000000e+00> : vector<16xf32>
    %1324 = vector.multi_reduction <add>, %1321, %cst_427 [1] : vector<16x128xf32> to vector<16xf32>
    %1325 = vector.shape_cast %1324 : vector<16xf32> to vector<16x1xf32>
    %cst_428 = arith.constant 1.280000e+02 : f32
    %1326 = vector.broadcast %cst_428 : f32 to vector<16x1xf32>
    %1327 = arith.divf %1325, %1326 : vector<16x1xf32>
    %1328 = vector.broadcast %1327 : vector<16x1xf32> to vector<16x128xf32>
    %1329 = arith.subf %1321, %1328 : vector<16x128xf32>
    %1330 = arith.mulf %1329, %1329 : vector<16x128xf32>
    %cst_429 = arith.constant dense<0.000000e+00> : vector<16xf32>
    %1331 = vector.multi_reduction <add>, %1330, %cst_429 [1] : vector<16x128xf32> to vector<16xf32>
    %1332 = vector.shape_cast %1331 : vector<16xf32> to vector<16x1xf32>
    %cst_430 = arith.constant 1.280000e+02 : f32
    %1333 = vector.broadcast %cst_430 : f32 to vector<16x1xf32>
    %1334 = arith.divf %1332, %1333 : vector<16x1xf32>
    %1335 = vector.broadcast %1327 : vector<16x1xf32> to vector<16x128xf32>
    %1336 = arith.subf %1321, %1335 : vector<16x128xf32>
    %cst_431 = arith.constant 9.99999974E-6 : f32
    %1337 = vector.broadcast %cst_431 : f32 to vector<16x1xf32>
    %1338 = arith.addf %1334, %1337 : vector<16x1xf32>
    %1339 = math.rsqrt %1338 : vector<16x1xf32>
    %1340 = vector.broadcast %1339 : vector<16x1xf32> to vector<16x128xf32>
    %1341 = arith.mulf %1336, %1340 : vector<16x128xf32>
    %1342 = vector.broadcast %1322 : vector<1x128xf32> to vector<16x128xf32>
    %1343 = arith.mulf %1341, %1342 : vector<16x128xf32>
    %1344 = vector.broadcast %1323 : vector<1x128xf32> to vector<16x128xf32>
    %1345 = arith.addf %1343, %1344 : vector<16x128xf32>
    %c1_432 = arith.constant 1 : index
    %c0_433 = arith.constant 0 : index
    %c0_434 = arith.constant 0 : index
    %1346 = vector.load %arg23[%c1_432, %c0_433, %c0_434] : memref<2x128x256xbf16, #tpu.memory_space<vmem>>, vector<1x128x256xbf16>
    %1347 = vector.shape_cast %1346 : vector<1x128x256xbf16> to vector<128x256xbf16>
    %1348 = arith.truncf %1345 : vector<16x128xf32> to vector<16x128xbf16>
    %cst_435 = arith.constant dense<0.000000e+00> : vector<16x256xf32>
    %1349 = tpu.matmul %1348, %1347, %cst_435 {dimension_numbers = #tpu.dot_dimension_numbers<[1], [0], [0], [1], [0, 0, 1, 1], [], []>} : vector<16x128xbf16>, vector<128x256xbf16>, vector<16x256xf32> -> vector<16x256xf32>
    %c1_436 = arith.constant 1 : index
    %c0_437 = arith.constant 0 : index
    %c0_438 = arith.constant 0 : index
    %1350 = vector.load %arg17[%c1_436, %c0_437, %c0_438] : memref<2x1x256xf32, #tpu.memory_space<vmem>>, vector<1x1x256xf32>
    %1351 = vector.shape_cast %1350 : vector<1x1x256xf32> to vector<1x256xf32>
    %1352 = vector.broadcast %1351 : vector<1x256xf32> to vector<16x256xf32>
    %1353 = arith.addf %1349, %1352 : vector<16x256xf32>
    %cst_439 = arith.constant 0.000000e+00 : f32
    %1354 = vector.broadcast %cst_439 : f32 to vector<16x256xf32>
    %1355 = arith.maximumf %1353, %1354 : vector<16x256xf32>
    %c1_440 = arith.constant 1 : index
    %c0_441 = arith.constant 0 : index
    %c0_442 = arith.constant 0 : index
    %1356 = vector.load %arg24[%c1_440, %c0_441, %c0_442] : memref<2x256x128xbf16, #tpu.memory_space<vmem>>, vector<1x256x128xbf16>
    %1357 = vector.shape_cast %1356 : vector<1x256x128xbf16> to vector<256x128xbf16>
    %1358 = arith.truncf %1355 : vector<16x256xf32> to vector<16x256xbf16>
    %cst_443 = arith.constant dense<0.000000e+00> : vector<16x128xf32>
    %1359 = tpu.matmul %1358, %1357, %cst_443 {dimension_numbers = #tpu.dot_dimension_numbers<[1], [0], [0], [1], [0, 0, 1, 1], [], []>} : vector<16x256xbf16>, vector<256x128xbf16>, vector<16x128xf32> -> vector<16x128xf32>
    %1360 = arith.addf %1321, %1359 : vector<16x128xf32>
    %1361 = vector.extract_strided_slice %940 {offsets = [9, 0], sizes = [1, 128], strides = [1, 1]} : vector<16x128xf32> to vector<1x128xf32>
    %1362 = vector.broadcast %1361 : vector<1x128xf32> to vector<16x128xf32>
    %1363 = arith.addf %1360, %1362 : vector<16x128xf32>
    %1364 = vector.extract_strided_slice %476 {offsets = [2, 0], sizes = [1, 128], strides = [1, 1]} : vector<4x128xf32> to vector<1x128xf32>
    %1365 = vector.extract_strided_slice %476 {offsets = [3, 0], sizes = [1, 128], strides = [1, 1]} : vector<4x128xf32> to vector<1x128xf32>
    %cst_444 = arith.constant dense<0.000000e+00> : vector<16xf32>
    %1366 = vector.multi_reduction <add>, %1363, %cst_444 [1] : vector<16x128xf32> to vector<16xf32>
    %1367 = vector.shape_cast %1366 : vector<16xf32> to vector<16x1xf32>
    %cst_445 = arith.constant 1.280000e+02 : f32
    %1368 = vector.broadcast %cst_445 : f32 to vector<16x1xf32>
    %1369 = arith.divf %1367, %1368 : vector<16x1xf32>
    %1370 = vector.broadcast %1369 : vector<16x1xf32> to vector<16x128xf32>
    %1371 = arith.subf %1363, %1370 : vector<16x128xf32>
    %1372 = arith.mulf %1371, %1371 : vector<16x128xf32>
    %cst_446 = arith.constant dense<0.000000e+00> : vector<16xf32>
    %1373 = vector.multi_reduction <add>, %1372, %cst_446 [1] : vector<16x128xf32> to vector<16xf32>
    %1374 = vector.shape_cast %1373 : vector<16xf32> to vector<16x1xf32>
    %cst_447 = arith.constant 1.280000e+02 : f32
    %1375 = vector.broadcast %cst_447 : f32 to vector<16x1xf32>
    %1376 = arith.divf %1374, %1375 : vector<16x1xf32>
    %1377 = vector.broadcast %1369 : vector<16x1xf32> to vector<16x128xf32>
    %1378 = arith.subf %1363, %1377 : vector<16x128xf32>
    %cst_448 = arith.constant 9.99999974E-6 : f32
    %1379 = vector.broadcast %cst_448 : f32 to vector<16x1xf32>
    %1380 = arith.addf %1376, %1379 : vector<16x1xf32>
    %1381 = math.rsqrt %1380 : vector<16x1xf32>
    %1382 = vector.broadcast %1381 : vector<16x1xf32> to vector<16x128xf32>
    %1383 = arith.mulf %1378, %1382 : vector<16x128xf32>
    %1384 = vector.broadcast %1364 : vector<1x128xf32> to vector<16x128xf32>
    %1385 = arith.mulf %1383, %1384 : vector<16x128xf32>
    %1386 = vector.broadcast %1365 : vector<1x128xf32> to vector<16x128xf32>
    %1387 = arith.addf %1385, %1386 : vector<16x128xf32>
    %1388 = arith.truncf %1387 : vector<16x128xf32> to vector<16x128xbf16>
    %c0_449 = arith.constant 0 : index
    %c0_450 = arith.constant 0 : index
    %1389 = vector.load %arg26[%c0_449, %c0_450] : memref<128x128xbf16, #tpu.memory_space<vmem>>, vector<128x128xbf16>
    %cst_451 = arith.constant dense<0.000000e+00> : vector<16x128xf32>
    %1390 = tpu.matmul %1388, %1389, %cst_451 {dimension_numbers = #tpu.dot_dimension_numbers<[1], [0], [0], [1], [0, 0, 1, 1], [], []>} : vector<16x128xbf16>, vector<128x128xbf16>, vector<16x128xf32> -> vector<16x128xf32>
    %c0_452 = arith.constant 0 : index
    %c0_453 = arith.constant 0 : index
    %1391 = vector.load %arg27[%c0_452, %c0_453] : memref<1x128xf32, #tpu.memory_space<vmem>>, vector<1x128xf32>
    %1392 = vector.broadcast %1391 : vector<1x128xf32> to vector<16x128xf32>
    %1393 = arith.addf %1390, %1392 : vector<16x128xf32>
    %c0_454 = arith.constant 0 : index
    %c0_455 = arith.constant 0 : index
    %1394 = vector.load %arg28[%c0_454, %c0_455] : memref<16x128xf32, #tpu.memory_space<vmem>>, vector<16x128xf32>
    tpu.vector_store %arg28[%c0_454, %c0_455], %1393 {strides = array<i32>} : memref<16x128xf32, #tpu.memory_space<vmem>>, vector<16x128xf32>,
    return
  }
  func.func @transform_0(%arg0: i32) -> (i32, i32) {
    %c0_i32 = arith.constant 0 : i32
    %c0_i32_0 = arith.constant 0 : i32
    %c0_i32_1 = arith.constant 0 : i32
    return %c0_i32, %c0_i32_0 : i32, i32
  }
  func.func @transform_1(%arg0: i32) -> (i32, i32) {
    %c0_i32 = arith.constant 0 : i32
    %c0_i32_0 = arith.constant 0 : i32
    %c0_i32_1 = arith.constant 0 : i32
    return %c0_i32, %c0_i32_0 : i32, i32
  }
  func.func @transform_2(%arg0: i32) -> (i32, i32) {
    %c0_i32 = arith.constant 0 : i32
    %c0_i32_0 = arith.constant 0 : i32
    %c0_i32_1 = arith.constant 0 : i32
    return %c0_i32, %c0_i32_0 : i32, i32
  }
  func.func @transform_3(%arg0: i32) -> (i32, i32) {
    %c0_i32 = arith.constant 0 : i32
    %c0_i32_0 = arith.constant 0 : i32
    %c0_i32_1 = arith.constant 0 : i32
    return %c0_i32, %c0_i32_0 : i32, i32
  }
  func.func @transform_4(%arg0: i32) -> (i32, i32) {
    %c0_i32 = arith.constant 0 : i32
    %c0_i32_0 = arith.constant 0 : i32
    %c0_i32_1 = arith.constant 0 : i32
    return %c0_i32, %c0_i32_0 : i32, i32
  }
  func.func @transform_5(%arg0: i32) -> (i32, i32) {
    %c0_i32 = arith.constant 0 : i32
    %c0_i32_0 = arith.constant 0 : i32
    %c0_i32_1 = arith.constant 0 : i32
    return %c0_i32, %c0_i32_0 : i32, i32
  }
  func.func @transform_6(%arg0: i32) -> (i32, i32, i32) {
    %c0_i32 = arith.constant 0 : i32
    %c0_i32_0 = arith.constant 0 : i32
    %c0_i32_1 = arith.constant 0 : i32
    %c0_i32_2 = arith.constant 0 : i32
    return %c0_i32, %c0_i32_0, %c0_i32_1 : i32, i32, i32
  }
  func.func @transform_7(%arg0: i32) -> (i32, i32, i32) {
    %c0_i32 = arith.constant 0 : i32
    %c0_i32_0 = arith.constant 0 : i32
    %c0_i32_1 = arith.constant 0 : i32
    %c0_i32_2 = arith.constant 0 : i32
    return %c0_i32, %c0_i32_0, %c0_i32_1 : i32, i32, i32
  }
  func.func @transform_8(%arg0: i32) -> (i32, i32, i32) {
    %c0_i32 = arith.constant 0 : i32
    %c0_i32_0 = arith.constant 0 : i32
    %c0_i32_1 = arith.constant 0 : i32
    %c0_i32_2 = arith.constant 0 : i32
    return %c0_i32, %c0_i32_0, %c0_i32_1 : i32, i32, i32
  }
  func.func @transform_9(%arg0: i32) -> (i32, i32, i32) {
    %c0_i32 = arith.constant 0 : i32
    %c0_i32_0 = arith.constant 0 : i32
    %c0_i32_1 = arith.constant 0 : i32
    %c0_i32_2 = arith.constant 0 : i32
    return %c0_i32, %c0_i32_0, %c0_i32_1 : i32, i32, i32
  }
  func.func @transform_10(%arg0: i32) -> (i32, i32, i32) {
    %c0_i32 = arith.constant 0 : i32
    %c0_i32_0 = arith.constant 0 : i32
    %c0_i32_1 = arith.constant 0 : i32
    %c0_i32_2 = arith.constant 0 : i32
    return %c0_i32, %c0_i32_0, %c0_i32_1 : i32, i32, i32
  }
  func.func @transform_11(%arg0: i32) -> (i32, i32, i32) {
    %c0_i32 = arith.constant 0 : i32
    %c0_i32_0 = arith.constant 0 : i32
    %c0_i32_1 = arith.constant 0 : i32
    %c0_i32_2 = arith.constant 0 : i32
    return %c0_i32, %c0_i32_0, %c0_i32_1 : i32, i32, i32
  }
  func.func @transform_12(%arg0: i32) -> (i32, i32, i32) {
    %c0_i32 = arith.constant 0 : i32
    %c0_i32_0 = arith.constant 0 : i32
    %c0_i32_1 = arith.constant 0 : i32
    %c0_i32_2 = arith.constant 0 : i32
    return %c0_i32, %c0_i32_0, %c0_i32_1 : i32, i32, i32
  }
  func.func @transform_13(%arg0: i32) -> (i32, i32, i32) {
    %c0_i32 = arith.constant 0 : i32
    %c0_i32_0 = arith.constant 0 : i32
    %c0_i32_1 = arith.constant 0 : i32
    %c0_i32_2 = arith.constant 0 : i32
    return %c0_i32, %c0_i32_0, %c0_i32_1 : i32, i32, i32
  }
  func.func @transform_14(%arg0: i32) -> (i32, i32, i32) {
    %c0_i32 = arith.constant 0 : i32
    %c0_i32_0 = arith.constant 0 : i32
    %c0_i32_1 = arith.constant 0 : i32
    %c0_i32_2 = arith.constant 0 : i32
    return %c0_i32, %c0_i32_0, %c0_i32_1 : i32, i32, i32
  }
  func.func @transform_15(%arg0: i32) -> (i32, i32, i32) {
    %c0_i32 = arith.constant 0 : i32
    %c0_i32_0 = arith.constant 0 : i32
    %c0_i32_1 = arith.constant 0 : i32
    %c0_i32_2 = arith.constant 0 : i32
    return %c0_i32, %c0_i32_0, %c0_i32_1 : i32, i32, i32
  }
  func.func @transform_16(%arg0: i32) -> (i32, i32, i32) {
    %c0_i32 = arith.constant 0 : i32
    %c0_i32_0 = arith.constant 0 : i32
    %c0_i32_1 = arith.constant 0 : i32
    %c0_i32_2 = arith.constant 0 : i32
    return %c0_i32, %c0_i32_0, %c0_i32_1 : i32, i32, i32
  }
  func.func @transform_17(%arg0: i32) -> (i32, i32, i32) {
    %c0_i32 = arith.constant 0 : i32
    %c0_i32_0 = arith.constant 0 : i32
    %c0_i32_1 = arith.constant 0 : i32
    %c0_i32_2 = arith.constant 0 : i32
    return %c0_i32, %c0_i32_0, %c0_i32_1 : i32, i32, i32
  }
  func.func @transform_18(%arg0: i32) -> (i32, i32, i32) {
    %c0_i32 = arith.constant 0 : i32
    %c0_i32_0 = arith.constant 0 : i32
    %c0_i32_1 = arith.constant 0 : i32
    %c0_i32_2 = arith.constant 0 : i32
    return %c0_i32, %c0_i32_0, %c0_i32_1 : i32, i32, i32
  }
  func.func @transform_19(%arg0: i32) -> (i32, i32, i32) {
    %c0_i32 = arith.constant 0 : i32
    %c0_i32_0 = arith.constant 0 : i32
    %c0_i32_1 = arith.constant 0 : i32
    %c0_i32_2 = arith.constant 0 : i32
    return %c0_i32, %c0_i32_0, %c0_i32_1 : i32, i32, i32
  }
  func.func @transform_20(%arg0: i32) -> (i32, i32, i32) {
    %c0_i32 = arith.constant 0 : i32
    %c0_i32_0 = arith.constant 0 : i32
    %c0_i32_1 = arith.constant 0 : i32
    %c0_i32_2 = arith.constant 0 : i32
    return %c0_i32, %c0_i32_0, %c0_i32_1 : i32, i32, i32
  }
  func.func @transform_21(%arg0: i32) -> (i32, i32, i32) {
    %c0_i32 = arith.constant 0 : i32
    %c0_i32_0 = arith.constant 0 : i32
    %c0_i32_1 = arith.constant 0 : i32
    %c0_i32_2 = arith.constant 0 : i32
    return %c0_i32, %c0_i32_0, %c0_i32_1 : i32, i32, i32
  }
  func.func @transform_22(%arg0: i32) -> (i32, i32, i32) {
    %c0_i32 = arith.constant 0 : i32
    %c0_i32_0 = arith.constant 0 : i32
    %c0_i32_1 = arith.constant 0 : i32
    %c0_i32_2 = arith.constant 0 : i32
    return %c0_i32, %c0_i32_0, %c0_i32_1 : i32, i32, i32
  }
  func.func @transform_23(%arg0: i32) -> (i32, i32, i32) {
    %c0_i32 = arith.constant 0 : i32
    %c0_i32_0 = arith.constant 0 : i32
    %c0_i32_1 = arith.constant 0 : i32
    %c0_i32_2 = arith.constant 0 : i32
    return %c0_i32, %c0_i32_0, %c0_i32_1 : i32, i32, i32
  }
  func.func @transform_24(%arg0: i32) -> (i32, i32) {
    %c0_i32 = arith.constant 0 : i32
    %c0_i32_0 = arith.constant 0 : i32
    %c0_i32_1 = arith.constant 0 : i32
    return %c0_i32, %c0_i32_0 : i32, i32
  }
  func.func @transform_25(%arg0: i32) -> (i32, i32) {
    %c0_i32 = arith.constant 0 : i32
    %c0_i32_0 = arith.constant 0 : i32
    %c0_i32_1 = arith.constant 0 : i32
    return %c0_i32, %c0_i32_0 : i32, i32
  }
  func.func @transform_26(%arg0: i32) -> (i32, i32) {
    %c0_i32 = arith.constant 0 : i32
    %c0_i32_0 = arith.constant 0 : i32
    %c0_i32_1 = arith.constant 0 : i32
    return %c0_i32, %c0_i32_0 : i32, i32
  }
  func.func @transform_27(%arg0: i32) -> (i32, i32) {
    %c0_i32 = arith.constant 0 : i32
    %c0_i32_0 = arith.constant 0 : i32
    %c0_i32_1 = arith.constant 0 : i32
    return %c0_i32, %c0_i32_0 : i32, i32
  }
}

</mosaic_0001>

<bundles_post_ra>
// kernel: tpu_custom_call.1
= control target key start
LH: loop header
LB: loop body
LE: loop exit
PB: predicated region body
PF: predicated region fallthrough
CT: control target
= control target key end

     0   :  { %s17805_s0 = inlined_call_operand.vmem [shape: s32[16,1], index: 0, kind: input, shape index: {}]   ;;  %s17806_s1 = inlined_call_operand.vmem [shape: s32[16,1], index: 1, kind: input, shape index: {}]   ;;  %s17807_s2 = inlined_call_operand.vmem [shape: f32[16,128], index: 2, kind: input, shape index: {}]   ;;  %s17808_s3 = inlined_call_operand.vmem [shape: f32[16,128], index: 3, kind: input, shape index: {}]   ;;  %s17809_s4 = inlined_call_operand.hbm [shape: f32[50,128], index: 4, kind: input, shape index: {}]   ;;  %s17810_s5 = inlined_call_operand.hbm [shape: f32[10,128], index: 5, kind: input, shape index: {}]   ;;  %s17811_s6 = inlined_call_operand.hbm [shape: f32[2,8,128], index: 6, kind: input, shape index: {}]   ;;  %s17812_s7 = inlined_call_operand.hbm [shape: f32[2,1,384], index: 7, kind: input, shape index: {}]   ;;  %s17813_s8 = inlined_call_operand.hbm [shape: f32[2,1,256], index: 8, kind: input, shape index: {}]   ;;  %s17814_s9 = inlined_call_operand.hbm [shape: bf16[2,128,384], index: 9, kind: input, shape index: {}]   ;;  %s17815_s10 = inlined_call_operand.hbm [shape: bf16[2,128,128], index: 10, kind: input, shape index: {}]   ;;  %s17816_s11 = inlined_call_operand.hbm [shape: bf16[2,128,256], index: 11, kind: input, shape index: {}]   ;;  %s17817_s12 = inlined_call_operand.hbm [shape: bf16[2,256,128], index: 12, kind: input, shape index: {}]   ;;  %s17818_s13 = inlined_call_operand.vmem [shape: f32[2,16,128], index: 13, kind: input, shape index: {}]   ;;  %s17819_s14 = inlined_call_operand.hbm [shape: f32[2,1,384], index: 14, kind: input, shape index: {}]   ;;  %s17820_s15 = inlined_call_operand.hbm [shape: f32[2,1,256], index: 15, kind: input, shape index: {}]   ;;  %s17821_s16 = inlined_call_operand.hbm [shape: f32[2,1,256], index: 16, kind: input, shape index: {}]   ;;  %s17822_s17 = inlined_call_operand.hbm [shape: bf16[2,128,384], index: 17, kind: input, shape index: {}]   ;;  %s17823_s18 = inlined_call_operand.hbm [shape: bf16[2,128,128], index: 18, kind: input, shape index: {}]   ;;  %s17824_s19 = inlined_call_operand.hbm [shape: bf16[2,128,128], index: 19, kind: input, shape index: {}]   ;;  %s17825_s20 = inlined_call_operand.hbm [shape: bf16[2,128,256], index: 20, kind: input, shape index: {}]   ;;  %s17826_s21 = inlined_call_operand.hbm [shape: bf16[2,128,128], index: 21, kind: input, shape index: {}]   ;;  %s17827_s22 = inlined_call_operand.hbm [shape: bf16[2,128,256], index: 22, kind: input, shape index: {}]   ;;  %s17828_s23 = inlined_call_operand.hbm [shape: bf16[2,256,128], index: 23, kind: input, shape index: {}]   ;;  %s17829_s24 = inlined_call_operand.hbm [shape: f32[4,128], index: 24, kind: input, shape index: {}]   ;;  %s17830_s25 = inlined_call_operand.vmem [shape: bf16[128,128], index: 25, kind: input, shape index: {}]   ;;  %s17831_s26 = inlined_call_operand.vmem [shape: f32[1,128], index: 26, kind: input, shape index: {}]   ;;  %s17832_s27 = inlined_call_operand.hbm [shape: f32[16,128], index: 27, kind: output, shape index: {}]  }
   0x1   :  { %17854 = sst [smem:[#allocation47_spill]] %s17805_s0 }
   0x2   :  { %17855 = sst [smem:[#allocation48_spill]] %s17806_s1 }
   0x3   :  { %17856 = sst [smem:[#allocation49_spill]] %s17807_s2 }
   0x4   :  { %17857 = sst [smem:[#allocation50_spill]] %s17808_s3 }
   0x5   :  { %17858 = sst [smem:[#allocation51_spill]] %s17809_s4 }
   0x6   :  { %17859 = sst [smem:[#allocation52_spill]] %s17810_s5 }
   0x7   :  { %17860 = sst [smem:[#allocation53_spill]] %s17811_s6 }
   0x8   :  { %17861 = sst [smem:[#allocation54_spill]] %s17812_s7 }
   0x9   :  { %17862 = sst [smem:[#allocation55_spill]] %s17813_s8 }
   0xa   :  { %17863 = sst [smem:[#allocation56_spill]] %s17814_s9 }
   0xb   :  { %17864 = sst [smem:[#allocation57_spill]] %s17815_s10 }
   0xc   :  { %17865 = sst [smem:[#allocation58_spill]] %s17816_s11 }
   0xd   :  { %17866 = sst [smem:[#allocation59_spill]] %s17830_s25 }
   0xe   :  { %17867 = sst [smem:[#allocation60_spill]] %s17831_s26 }
   0xf   :  { %17868 = sst [smem:[#allocation61_spill]] %s17832_s27 }
  0x10   :  { %32 = vsyncpa [#allocation3], 0 }
  0x11   :  { %33 = vsyncpa [#allocation6], 0 }
  0x12   :  { %34 = vsyncpa [#allocation9], 0 }
  0x13   :  { %35 = vsyncpa [#allocation12], 0 }
  0x14   :  { %36 = vsyncpa [#allocation15], 0 }
  0x15   :  { %37 = vsyncpa [#allocation18], 0 }
  0x16   :  { %38 = vsyncpa [#allocation21], 0 }
  0x17   :  { %39 = vsyncpa [#allocation24], 0 }
  0x18   :  { %40 = vsyncpa [#allocation27], 0 }
  0x19   :  { %41 = vsyncpa [#allocation30], 0 }
  0x1a   :  { %42 = vsyncpa [#allocation33], 0 }
  0x1b   :  { %43 = vsyncpa [#allocation4], 0  ;;  %s15797_s7 = smov [#allocation5]   ;;  %s15798_s8 = smov [#allocation8]  }
  0x1c   :  { %s69_s4 = sshll.u32 %s15797_s7, 4  ;;  %s93_s30 = sshll.u32 %s15798_s8, 4  ;;  %s70_s4 = int_to_ptr.vmem [resolvable:$true] %s69_s4  ;;  %s15973_s30 = int_to_ptr.vmem [resolvable:$true] %s93_s30 }
  0x1d   :  { %s17869_s28 = sld [smem:[#allocation52_spill]] }
  0x23   :  { %s15311_s0 = scalar_lea.hbm %s17869_s28, 256 }
  0x24   :  { %p15312_p0 = scmp.ne.s32.totalorder %s17869_s28, %s15311_s0  ;;  %p15315_p1 = scmp.lt.u32.totalorder %s15311_s0, %s17869_s28 }
  0x26   :  { %p15317_p2 = pnand %p15315_p1, %p15312_p0 }
  0x28   :  { %15320 = shalt.err (!%p15317_p2)
}
  0x29   :  { %s15321_s11 = scalar_lea.vmem %s70_s4, 256  ;;  %p15326_p4 = scmp.lt.s32.totalorder %s70_s4, %s70_s4 }
  0x2a   :  { %p15322_p3 = scmp.ne.s32.totalorder %s70_s4, %s15321_s11  ;;  %p15327_p5 = scmp.lt.s32.totalorder %s15321_s11, %s15321_s11 }
  0x2c   :  { %p15328_p6 = por %p15327_p5, %p15326_p4 }
  0x2e   :  { %p15329_p7 = pnand %p15328_p6, %p15322_p3 }
  0x30   :  { %15332 = shalt.err (!%p15329_p7)
}
  0x31   :  { %s17846_s2 = smov 128   ;;  %s17848_s3 = smov 8  }
  0x32   :  { %75 = dma.hbm_to_vmem [thread:$0]  %s17869_s28, 256, %s70_s4, [#allocation6], %s17846_s2, %s17846_s2, %s17848_s3  }
  0x33   :  { %s17870_s0 = sld [smem:[#allocation54_spill]] }
  0x39   :  { %s15333_s10 = scalar_lea.hbm %s17870_s0, 96 }
  0x3a   :  { %p15334_p8 = scmp.ne.s32.totalorder %s17870_s0, %s15333_s10  ;;  %p15337_p9 = scmp.lt.u32.totalorder %s15333_s10, %s17870_s0 }
  0x3c   :  { %p15339_p10 = pnand %p15337_p9, %p15334_p8 }
  0x3e   :  { %15342 = shalt.err (!%p15339_p10)
}
  0x3f   :  { %s15343_s27 = scalar_lea.vmem %s15973_s30, 96  ;;  %p15348_p12 = scmp.lt.s32.totalorder %s15973_s30, %s15973_s30 }
  0x40   :  { %p15344_p11 = scmp.ne.s32.totalorder %s15973_s30, %s15343_s27  ;;  %p15349_p13 = scmp.lt.s32.totalorder %s15343_s27, %s15343_s27 }
  0x42   :  { %p15350_p0 = por %p15349_p13, %p15348_p12 }
  0x44   :  { %p15351_p1 = pnand %p15350_p0, %p15344_p11 }
  0x46   :  { %15354 = shalt.err (!%p15351_p1)
}
  0x47   :  { %s17850_s4 = smov 48   ;;  %s17851_s28 = smov 3  }
  0x48   :  { %99 = dma.hbm_to_vmem [thread:$0]  %s17870_s0, 96, %s15973_s30, [#allocation9], %s17850_s4, %s17850_s4, %s17851_s28  }
  0x49   :  { %s15803_s9 = smov [#allocation11]   ;;  %s17871_s1 = sld [smem:[#allocation56_spill]] }
  0x4a   :  { %s117_s5 = sshll.u32 %s15803_s9, 4  ;;  %s118_s5 = int_to_ptr.vmem [resolvable:$true] %s117_s5 }
  0x4f   :  { %s15355_s27 = scalar_lea.hbm %s17871_s1, 6144 }
  0x50   :  { %p15356_p2 = scmp.ne.s32.totalorder %s17871_s1, %s15355_s27  ;;  %p15359_p3 = scmp.lt.u32.totalorder %s15355_s27, %s17871_s1 }
  0x52   :  { %p15361_p4 = pnand %p15359_p3, %p15356_p2 }
  0x54   :  { %15364 = shalt.err (!%p15361_p4)
}
  0x55   :  { %s15365_s26 = scalar_lea.vmem %s118_s5, 6144  ;;  %p15370_p6 = scmp.lt.s32.totalorder %s118_s5, %s118_s5 }
  0x56   :  { %p15366_p5 = scmp.ne.s32.totalorder %s118_s5, %s15365_s26  ;;  %p15371_p7 = scmp.lt.s32.totalorder %s15365_s26, %s15365_s26 }
  0x58   :  { %p15372_p8 = por %p15371_p7, %p15370_p6 }
  0x5a   :  { %p15373_p9 = pnand %p15372_p8, %p15366_p5 }
  0x5c   :  { %15376 = shalt.err (!%p15373_p9)
}
  0x5d   :  { %s17853_s30 = smov 192   ;;  %s15805_s0 = smov 12  }
  0x5e   :  { %123 = dma.hbm_to_vmem [thread:$0]  %s17871_s1, 6144, %s118_s5, [#allocation12], %s17853_s30, %s17853_s30, %s15805_s0  }
  0x5f   :  { %s15806_s2 = smov [#allocation14]   ;;  %s15807_s9 = smov [#allocation17]  }
  0x60   :  { %s141_s3 = sshll.u32 %s15806_s2, 4  ;;  %s167_s10 = sshll.u32 %s15807_s9, 4  ;;  %s142_s3 = int_to_ptr.vmem [resolvable:$true] %s141_s3  ;;  %s168_s10 = int_to_ptr.vmem [resolvable:$true] %s167_s10 }
  0x61   :  { %s17872_s26 = sld [smem:[#allocation58_spill]] }
  0x67   :  { %s15377_s6 = scalar_lea.hbm %s17872_s26, 4096 }
  0x68   :  { %p15378_p10 = scmp.ne.s32.totalorder %s17872_s26, %s15377_s6  ;;  %p15381_p11 = scmp.lt.u32.totalorder %s15377_s6, %s17872_s26 }
  0x6a   :  { %p15383_p12 = pnand %p15381_p11, %p15378_p10 }
  0x6c   :  { %15386 = shalt.err (!%p15383_p12)
}
  0x6d   :  { %s15387_s5 = scalar_lea.vmem %s142_s3, 4096  ;;  %p15392_p0 = scmp.lt.s32.totalorder %s142_s3, %s142_s3 }
  0x6e   :  { %p15388_p13 = scmp.ne.s32.totalorder %s142_s3, %s15387_s5  ;;  %p15393_p1 = scmp.lt.s32.totalorder %s15387_s5, %s15387_s5 }
  0x70   :  { %p15394_p2 = por %p15393_p1, %p15392_p0 }
  0x72   :  { %p15395_p3 = pnand %p15394_p2, %p15388_p13 }
  0x74   :  { %15398 = shalt.err (!%p15395_p3)
}
  0x75   :  { %s17873_s1 = smov 8   ;;  %s17874_s7 = smov 128  }
  0x76   :  { %147 = dma.hbm_to_vmem [thread:$0]  %s17872_s26, 4096, %s142_s3, [#allocation15], %s17874_s7, %s17874_s7, %s17873_s1  }
  0x77   :  { %s15399_s28 = scalar_lea.hbm %s17819_s14, 96 }
  0x78   :  { %p15400_p4 = scmp.ne.s32.totalorder %s17819_s14, %s15399_s28  ;;  %p15403_p5 = scmp.lt.u32.totalorder %s15399_s28, %s17819_s14 }
  0x7a   :  { %p15405_p6 = pnand %p15403_p5, %p15400_p4 }
  0x7c   :  { %15408 = shalt.err (!%p15405_p6)
}
  0x7d   :  { %s15409_s11 = scalar_lea.vmem %s168_s10, 96  ;;  %p15414_p8 = scmp.lt.s32.totalorder %s168_s10, %s168_s10 }
  0x7e   :  { %p15410_p7 = scmp.ne.s32.totalorder %s168_s10, %s15409_s11  ;;  %p15415_p9 = scmp.lt.s32.totalorder %s15409_s11, %s15409_s11 }
  0x80   :  { %p15416_p10 = por %p15415_p9, %p15414_p8 }
  0x82   :  { %p15417_p11 = pnand %p15416_p10, %p15410_p7 }
  0x84   :  { %15420 = shalt.err (!%p15417_p11)
}
  0x85   :  { %s17875_s3 = smov 3   ;;  %s17876_s26 = smov 48  }
  0x86   :  { %173 = dma.hbm_to_vmem [thread:$0]  %s17819_s14, 96, %s168_s10, [#allocation18], %s17876_s26, %s17876_s26, %s17875_s3  }
  0x87   :  { %s15808_s2 = smov [#allocation20]   ;;  %s15421_s9 = scalar_lea.hbm %s17821_s16, 64 }
  0x88   :  { %s191_s4 = sshll.u32 %s15808_s2, 4  ;;  %p15422_p12 = scmp.ne.s32.totalorder %s17821_s16, %s15421_s9  ;;  %s192_s4 = int_to_ptr.vmem [resolvable:$true] %s191_s4 }
  0x89   :  { %p15425_p13 = scmp.lt.u32.totalorder %s15421_s9, %s17821_s16 }
  0x8b   :  { %p15427_p0 = pnand %p15425_p13, %p15422_p12 }
  0x8d   :  { %15430 = shalt.err (!%p15427_p0)
}
  0x8e   :  { %s15431_s30 = scalar_lea.vmem %s192_s4, 64  ;;  %p15436_p2 = scmp.lt.s32.totalorder %s192_s4, %s192_s4 }
  0x8f   :  { %p15432_p1 = scmp.ne.s32.totalorder %s192_s4, %s15431_s30  ;;  %p15437_p3 = scmp.lt.s32.totalorder %s15431_s30, %s15431_s30 }
  0x91   :  { %p15438_p4 = por %p15437_p3, %p15436_p2 }
  0x93   :  { %p15439_p5 = pnand %p15438_p4, %p15432_p1 }
  0x95   :  { %15442 = shalt.err (!%p15439_p5)
}
  0x96   :  { %s15809_s14 = smov 32   ;;  %s15810_s10 = smov 2  }
  0x97   :  { %197 = dma.hbm_to_vmem [thread:$0]  %s17821_s16, 64, %s192_s4, [#allocation21], %s15809_s14, %s15809_s14, %s15810_s10  }
  0x98   :  { %s15811_s5 = smov [#allocation23]   ;;  %s15812_s2 = smov [#allocation26]  }
  0x99   :  { %s215_s8 = sshll.u32 %s15811_s5, 4  ;;  %s239_s25 = sshll.u32 %s15812_s2, 4  ;;  %s216_s8 = int_to_ptr.vmem [resolvable:$true] %s215_s8  ;;  %s16070_s25 = int_to_ptr.vmem [resolvable:$true] %s239_s25 }
  0x9a   :  { %s15443_s9 = scalar_lea.hbm %s17823_s18, 2048 }
  0x9b   :  { %p15444_p6 = scmp.ne.s32.totalorder %s17823_s18, %s15443_s9  ;;  %p15447_p7 = scmp.lt.u32.totalorder %s15443_s9, %s17823_s18 }
  0x9d   :  { %p15449_p8 = pnand %p15447_p7, %p15444_p6 }
  0x9f   :  { %15452 = shalt.err (!%p15449_p8)
}
  0xa0   :  { %s15453_s16 = scalar_lea.vmem %s216_s8, 2048  ;;  %p15458_p10 = scmp.lt.s32.totalorder %s216_s8, %s216_s8 }
  0xa1   :  { %p15454_p9 = scmp.ne.s32.totalorder %s216_s8, %s15453_s16  ;;  %p15459_p11 = scmp.lt.s32.totalorder %s15453_s16, %s15453_s16 }
  0xa3   :  { %p15460_p12 = por %p15459_p11, %p15458_p10 }
  0xa5   :  { %p15461_p13 = pnand %p15460_p12, %p15454_p9 }
  0xa7   :  { %15464 = shalt.err (!%p15461_p13)
}
  0xa8   :  { %s15813_s4 = smov 64   ;;  %s15814_s3 = smov 4  }
  0xa9   :  { %221 = dma.hbm_to_vmem [thread:$0]  %s17823_s18, 2048, %s216_s8, [#allocation24], %s15813_s4, %s15813_s4, %s15814_s3  }
  0xaa   :  { %s15465_s28 = scalar_lea.hbm %s17825_s20, 4096 }
  0xab   :  { %p15466_p0 = scmp.ne.s32.totalorder %s17825_s20, %s15465_s28  ;;  %p15469_p1 = scmp.lt.u32.totalorder %s15465_s28, %s17825_s20 }
  0xad   :  { %p15471_p2 = pnand %p15469_p1, %p15466_p0 }
  0xaf   :  { %15474 = shalt.err (!%p15471_p2)
}
  0xb0   :  { %s15475_s11 = scalar_lea.vmem %s16070_s25, 4096  ;;  %p15480_p4 = scmp.lt.s32.totalorder %s16070_s25, %s16070_s25 }
  0xb1   :  { %p15476_p3 = scmp.ne.s32.totalorder %s16070_s25, %s15475_s11  ;;  %p15481_p5 = scmp.lt.s32.totalorder %s15475_s11, %s15475_s11 }
  0xb3   :  { %p15482_p6 = por %p15481_p5, %p15480_p4 }
  0xb5   :  { %p15483_p7 = pnand %p15482_p6, %p15476_p3 }
  0xb7   :  { %15486 = shalt.err (!%p15483_p7)
}
  0xb8   :  { %245 = dma.hbm_to_vmem [thread:$0]  %s17825_s20, 4096, %s16070_s25, [#allocation27], %s17874_s7, %s17874_s7, %s17873_s1  }
  0xb9   :  { %s15815_s16 = smov [#allocation29]   ;;  %s15816_s5 = smov [#allocation2]  }
  0xba   :  { %s263_s26 = sshll.u32 %s15815_s16, 4  ;;  %s57_s2 = sshll.u32 %s15816_s5, 4  ;;  %s264_s26 = int_to_ptr.vmem [resolvable:$true] %s263_s26  ;;  %s16107_s2 = int_to_ptr.vmem [resolvable:$true] %s57_s2 }
  0xbb   :  { %s15487_s9 = scalar_lea.hbm %s17827_s22, 4096 }
  0xbc   :  { %p15488_p8 = scmp.ne.s32.totalorder %s17827_s22, %s15487_s9  ;;  %p15491_p9 = scmp.lt.u32.totalorder %s15487_s9, %s17827_s22 }
  0xbe   :  { %p15493_p10 = pnand %p15491_p9, %p15488_p8 }
  0xc0   :  { %15496 = shalt.err (!%p15493_p10)
}
  0xc1   :  { %s15497_s20 = scalar_lea.vmem %s264_s26, 4096  ;;  %p15502_p12 = scmp.lt.s32.totalorder %s264_s26, %s264_s26 }
  0xc2   :  { %p15498_p11 = scmp.ne.s32.totalorder %s264_s26, %s15497_s20  ;;  %p15503_p13 = scmp.lt.s32.totalorder %s15497_s20, %s15497_s20 }
  0xc4   :  { %p15504_p0 = por %p15503_p13, %p15502_p12 }
  0xc6   :  { %p15505_p1 = pnand %p15504_p0, %p15498_p11 }
  0xc8   :  { %15508 = shalt.err (!%p15505_p1)
}
  0xc9   :  { %269 = dma.hbm_to_vmem [thread:$0]  %s17827_s22, 4096, %s264_s26, [#allocation30], %s17874_s7, %s17874_s7, %s17873_s1  }
  0xca   :  { %s17877_s5 = sld [smem:[#allocation51_spill]] }
  0xd0   :  { %s15509_s30 = scalar_lea.hbm %s17877_s5, 896 }
  0xd1   :  { %p15510_p2 = scmp.ne.s32.totalorder %s17877_s5, %s15509_s30  ;;  %p15513_p3 = scmp.lt.u32.totalorder %s15509_s30, %s17877_s5 }
  0xd3   :  { %p15515_p4 = pnand %p15513_p3, %p15510_p2 }
  0xd5   :  { %15518 = shalt.err (!%p15515_p4)
}
  0xd6   :  { %s15519_s6 = scalar_lea.vmem %s16107_s2, 896  ;;  %p15524_p6 = scmp.lt.s32.totalorder %s16107_s2, %s16107_s2 }
  0xd7   :  { %p15520_p5 = scmp.ne.s32.totalorder %s16107_s2, %s15519_s6  ;;  %p15525_p7 = scmp.lt.s32.totalorder %s15519_s6, %s15519_s6 }
  0xd9   :  { %p15526_p8 = por %p15525_p7, %p15524_p6 }
  0xdb   :  { %p15527_p9 = pnand %p15526_p8, %p15520_p5 }
  0xdd   :  { %15530 = shalt.err (!%p15527_p9)
}
  0xde   :  { %63 = dma.hbm_to_vmem [thread:$0]  %s17877_s5, 896, %s16107_s2, [#allocation3], %s17874_s7, %s17874_s7, %s17873_s1  }
  0xdf   :  { %s15817_s11 = smov [#allocation7]   ;;  %s15818_s25 = smov [#allocation10]  }
  0xe0   :  { %s81_s20 = sshll.u32 %s15817_s11, 4  ;;  %s105_s18 = sshll.u32 %s15818_s25, 4  ;;  %s82_s20 = int_to_ptr.vmem [resolvable:$true] %s81_s20  ;;  %s16144_s18 = int_to_ptr.vmem [resolvable:$true] %s105_s18 }
  0xe1   :  { %s17878_s30 = sld [smem:[#allocation53_spill]] }
  0xe7   :  { %s15531_s28 = scalar_lea.hbm %s17878_s30, 256 }
  0xe8   :  { %p15532_p10 = scmp.ne.s32.totalorder %s17878_s30, %s15531_s28  ;;  %p15535_p11 = scmp.lt.u32.totalorder %s15531_s28, %s17878_s30 }
  0xea   :  { %p15537_p12 = pnand %p15535_p11, %p15532_p10 }
  0xec   :  { %15540 = shalt.err (!%p15537_p12)
}
  0xed   :  { %s15541_s2 = scalar_lea.vmem %s82_s20, 256  ;;  %p15546_p0 = scmp.lt.s32.totalorder %s82_s20, %s82_s20 }
  0xee   :  { %p15542_p13 = scmp.ne.s32.totalorder %s82_s20, %s15541_s2  ;;  %p15547_p1 = scmp.lt.s32.totalorder %s15541_s2, %s15541_s2 }
  0xf0   :  { %p15548_p2 = por %p15547_p1, %p15546_p0 }
  0xf2   :  { %p15549_p3 = pnand %p15548_p2, %p15542_p13 }
  0xf4   :  { %15552 = shalt.err (!%p15549_p3)
}
  0xf5   :  { %87 = dma.hbm_to_vmem [thread:$0]  %s17878_s30, 256, %s82_s20, [#allocation6], %s17874_s7, %s17874_s7, %s17873_s1  }
  0xf6   :  { %s17879_s25 = sld [smem:[#allocation55_spill]] }
  0xfc   :  { %s15553_s8 = scalar_lea.hbm %s17879_s25, 64 }
  0xfd   :  { %p15554_p4 = scmp.ne.s32.totalorder %s17879_s25, %s15553_s8  ;;  %p15557_p5 = scmp.lt.u32.totalorder %s15553_s8, %s17879_s25 }
  0xff   :  { %p15559_p6 = pnand %p15557_p5, %p15554_p4 }
 0x101   :  { %15562 = shalt.err (!%p15559_p6)
}
 0x102   :  { %s15563_s27 = scalar_lea.vmem %s16144_s18, 64  ;;  %p15568_p8 = scmp.lt.s32.totalorder %s16144_s18, %s16144_s18 }
 0x103   :  { %p15564_p7 = scmp.ne.s32.totalorder %s16144_s18, %s15563_s27  ;;  %p15569_p9 = scmp.lt.s32.totalorder %s15563_s27, %s15563_s27 }
 0x105   :  { %p15570_p10 = por %p15569_p9, %p15568_p8 }
 0x107   :  { %p15571_p11 = pnand %p15570_p10, %p15564_p7 }
 0x109   :  { %15574 = shalt.err (!%p15571_p11)
}
 0x10a   :  { %111 = dma.hbm_to_vmem [thread:$0]  %s17879_s25, 64, %s16144_s18, [#allocation9], %s15809_s14, %s15809_s14, %s15810_s10  }
 0x10b   :  { %s15819_s6 = smov [#allocation13]   ;;  %s15820_s5 = smov [#allocation16]  }
 0x10c   :  { %s129_s2 = sshll.u32 %s15819_s6, 4  ;;  %s153_s22 = sshll.u32 %s15820_s5, 4  ;;  %s130_s2 = int_to_ptr.vmem [resolvable:$true] %s129_s2  ;;  %s16181_s22 = int_to_ptr.vmem [resolvable:$true] %s153_s22 }
 0x10d   :  { %s17880_s8 = sld [smem:[#allocation57_spill]] }
 0x113   :  { %s15575_s16 = scalar_lea.hbm %s17880_s8, 2048 }
 0x114   :  { %p15576_p12 = scmp.ne.s32.totalorder %s17880_s8, %s15575_s16  ;;  %p15579_p13 = scmp.lt.u32.totalorder %s15575_s16, %s17880_s8 }
 0x116   :  { %p15581_p0 = pnand %p15579_p13, %p15576_p12 }
 0x118   :  { %15584 = shalt.err (!%p15581_p0)
}
 0x119   :  { %s15585_s18 = scalar_lea.vmem %s130_s2, 2048  ;;  %p15590_p2 = scmp.lt.s32.totalorder %s130_s2, %s130_s2 }
 0x11a   :  { %p15586_p1 = scmp.ne.s32.totalorder %s130_s2, %s15585_s18  ;;  %p15591_p3 = scmp.lt.s32.totalorder %s15585_s18, %s15585_s18 }
 0x11c   :  { %p15592_p4 = por %p15591_p3, %p15590_p2 }
 0x11e   :  { %p15593_p5 = pnand %p15592_p4, %p15586_p1 }
 0x120   :  { %15596 = shalt.err (!%p15593_p5)
}
 0x121   :  { %135 = dma.hbm_to_vmem [thread:$0]  %s17880_s8, 2048, %s130_s2, [#allocation12], %s15813_s4, %s15813_s4, %s15814_s3  }
 0x122   :  { %s15597_s5 = scalar_lea.hbm %s17817_s12, 4096 }
 0x123   :  { %p15598_p6 = scmp.ne.s32.totalorder %s17817_s12, %s15597_s5  ;;  %p15601_p7 = scmp.lt.u32.totalorder %s15597_s5, %s17817_s12 }
 0x125   :  { %p15603_p8 = pnand %p15601_p7, %p15598_p6 }
 0x127   :  { %15606 = shalt.err (!%p15603_p8)
}
 0x128   :  { %s15607_s9 = scalar_lea.vmem %s16181_s22, 4096  ;;  %p15612_p10 = scmp.lt.s32.totalorder %s16181_s22, %s16181_s22 }
 0x129   :  { %p15608_p9 = scmp.ne.s32.totalorder %s16181_s22, %s15607_s9  ;;  %p15613_p11 = scmp.lt.s32.totalorder %s15607_s9, %s15607_s9 }
 0x12b   :  { %p15614_p12 = por %p15613_p11, %p15612_p10 }
 0x12d   :  { %p15615_p13 = pnand %p15614_p12, %p15608_p9 }
 0x12f   :  { %15618 = shalt.err (!%p15615_p13)
}
 0x130   :  { %159 = dma.hbm_to_vmem [thread:$0]  %s17817_s12, 4096, %s16181_s22, [#allocation15], %s15813_s4, %s15813_s4, %s15814_s3  }
 0x131   :  { %s15821_s29 = smov [#allocation19]   ;;  %s15822_s18 = smov [#allocation22]  }
 0x132   :  { %s179_s27 = sshll.u32 %s15821_s29, 4  ;;  %s203_s25 = sshll.u32 %s15822_s18, 4  ;;  %s180_s27 = int_to_ptr.vmem [resolvable:$true] %s179_s27  ;;  %s16218_s25 = int_to_ptr.vmem [resolvable:$true] %s203_s25 }
 0x133   :  { %s15619_s6 = scalar_lea.hbm %s17820_s15, 64 }
 0x134   :  { %p15620_p0 = scmp.ne.s32.totalorder %s17820_s15, %s15619_s6  ;;  %p15623_p1 = scmp.lt.u32.totalorder %s15619_s6, %s17820_s15 }
 0x136   :  { %p15625_p2 = pnand %p15623_p1, %p15620_p0 }
 0x138   :  { %15628 = shalt.err (!%p15625_p2)
}
 0x139   :  { %s15629_s12 = scalar_lea.vmem %s180_s27, 64  ;;  %p15634_p4 = scmp.lt.s32.totalorder %s180_s27, %s180_s27 }
 0x13a   :  { %p15630_p3 = scmp.ne.s32.totalorder %s180_s27, %s15629_s12  ;;  %p15635_p5 = scmp.lt.s32.totalorder %s15629_s12, %s15629_s12 }
 0x13c   :  { %p15636_p6 = por %p15635_p5, %p15634_p4 }
 0x13e   :  { %p15637_p7 = pnand %p15636_p6, %p15630_p3 }
 0x140   :  { %15640 = shalt.err (!%p15637_p7)
}
 0x141   :  { %185 = dma.hbm_to_vmem [thread:$0]  %s17820_s15, 64, %s180_s27, [#allocation18], %s15809_s14, %s15809_s14, %s15810_s10  }
 0x142   :  { %s15641_s8 = scalar_lea.hbm %s17822_s17, 6144 }
 0x143   :  { %p15642_p8 = scmp.ne.s32.totalorder %s17822_s17, %s15641_s8  ;;  %p15645_p9 = scmp.lt.u32.totalorder %s15641_s8, %s17822_s17 }
 0x145   :  { %p15647_p10 = pnand %p15645_p9, %p15642_p8 }
 0x147   :  { %15650 = shalt.err (!%p15647_p10)
}
 0x148   :  { %s15651_s6 = scalar_lea.vmem %s16218_s25, 6144  ;;  %p15656_p12 = scmp.lt.s32.totalorder %s16218_s25, %s16218_s25 }
 0x149   :  { %p15652_p11 = scmp.ne.s32.totalorder %s16218_s25, %s15651_s6  ;;  %p15657_p13 = scmp.lt.s32.totalorder %s15651_s6, %s15651_s6 }
 0x14b   :  { %p15658_p0 = por %p15657_p13, %p15656_p12 }
 0x14d   :  { %p15659_p1 = pnand %p15658_p0, %p15652_p11 }
 0x14f   :  { %15662 = shalt.err (!%p15659_p1)
}
 0x150   :  { %s17881_s15 = smov 192   ;;  %s15823_s5 = smov [#allocation25]  }
 0x151   :  { %209 = dma.hbm_to_vmem [thread:$0]  %s17822_s17, 6144, %s16218_s25, [#allocation21], %s17881_s15, %s17881_s15, %s15805_s0  }
 0x152   :  { %s227_s26 = sshll.u32 %s15823_s5, 4  ;;  %s15824_s11 = smov [#allocation28]   ;;  %s228_s26 = int_to_ptr.vmem [resolvable:$true] %s227_s26 }
 0x153   :  { %s251_s16 = sshll.u32 %s15824_s11, 4  ;;  %s15663_s28 = scalar_lea.hbm %s17824_s19, 2048  ;;  %s16255_s16 = int_to_ptr.vmem [resolvable:$true] %s251_s16 }
 0x154   :  { %p15664_p2 = scmp.ne.s32.totalorder %s17824_s19, %s15663_s28  ;;  %p15667_p3 = scmp.lt.u32.totalorder %s15663_s28, %s17824_s19 }
 0x156   :  { %p15669_p4 = pnand %p15667_p3, %p15664_p2 }
 0x158   :  { %15672 = shalt.err (!%p15669_p4)
}
 0x159   :  { %s15673_s17 = scalar_lea.vmem %s228_s26, 2048  ;;  %p15678_p6 = scmp.lt.s32.totalorder %s228_s26, %s228_s26 }
 0x15a   :  { %p15674_p5 = scmp.ne.s32.totalorder %s228_s26, %s15673_s17  ;;  %p15679_p7 = scmp.lt.s32.totalorder %s15673_s17, %s15673_s17 }
 0x15c   :  { %p15680_p8 = por %p15679_p7, %p15678_p6 }
 0x15e   :  { %p15681_p9 = pnand %p15680_p8, %p15674_p5 }
 0x160   :  { %15684 = shalt.err (!%p15681_p9)
}
 0x161   :  { %233 = dma.hbm_to_vmem [thread:$0]  %s17824_s19, 2048, %s228_s26, [#allocation24], %s15813_s4, %s15813_s4, %s15814_s3  }
 0x162   :  { %s15685_s30 = scalar_lea.hbm %s17826_s21, 2048 }
 0x163   :  { %p15686_p10 = scmp.ne.s32.totalorder %s17826_s21, %s15685_s30  ;;  %p15689_p11 = scmp.lt.u32.totalorder %s15685_s30, %s17826_s21 }
 0x165   :  { %p15691_p12 = pnand %p15689_p11, %p15686_p10 }
 0x167   :  { %15694 = shalt.err (!%p15691_p12)
}
 0x168   :  { %s15695_s5 = scalar_lea.vmem %s16255_s16, 2048  ;;  %p15700_p0 = scmp.lt.s32.totalorder %s16255_s16, %s16255_s16 }
 0x169   :  { %p15696_p13 = scmp.ne.s32.totalorder %s16255_s16, %s15695_s5  ;;  %p15701_p1 = scmp.lt.s32.totalorder %s15695_s5, %s15695_s5 }
 0x16b   :  { %p15702_p2 = por %p15701_p1, %p15700_p0 }
 0x16d   :  { %p15703_p3 = pnand %p15702_p2, %p15696_p13 }
 0x16f   :  { %15706 = shalt.err (!%p15703_p3)
}
 0x170   :  { %257 = dma.hbm_to_vmem [thread:$0]  %s17826_s21, 2048, %s16255_s16, [#allocation27], %s15813_s4, %s15813_s4, %s15814_s3  }
 0x171   :  { %s15825_s11 = smov [#allocation31]   ;;  %s15826_s22 = smov [#allocation32]  }
 0x172   :  { %s275_s12 = sshll.u32 %s15825_s11, 4  ;;  %s288_s28 = sshll.u32 %s15826_s22, 4  ;;  %s276_s12 = int_to_ptr.vmem [resolvable:$true] %s275_s12  ;;  %s289_s28 = int_to_ptr.vmem [resolvable:$true] %s288_s28 }
 0x173   :  { %s15707_s8 = scalar_lea.hbm %s17828_s23, 4096 }
 0x174   :  { %p15708_p4 = scmp.ne.s32.totalorder %s17828_s23, %s15707_s8  ;;  %p15711_p5 = scmp.lt.u32.totalorder %s15707_s8, %s17828_s23 }
 0x176   :  { %p15713_p6 = pnand %p15711_p5, %p15708_p4 }
 0x178   :  { %15716 = shalt.err (!%p15713_p6)
}
 0x179   :  { %s15717_s21 = scalar_lea.vmem %s276_s12, 4096  ;;  %p15722_p8 = scmp.lt.s32.totalorder %s276_s12, %s276_s12 }
 0x17a   :  { %p15718_p7 = scmp.ne.s32.totalorder %s276_s12, %s15717_s21  ;;  %p15723_p9 = scmp.lt.s32.totalorder %s15717_s21, %s15717_s21 }
 0x17c   :  { %p15724_p10 = por %p15723_p9, %p15722_p8 }
 0x17e   :  { %p15725_p11 = pnand %p15724_p10, %p15718_p7 }
 0x180   :  { %15728 = shalt.err (!%p15725_p11)
}
 0x181   :  { %281 = dma.hbm_to_vmem [thread:$0]  %s17828_s23, 4096, %s276_s12, [#allocation30], %s15813_s4, %s15813_s4, %s15814_s3  }
 0x182   :  { %s15729_s6 = scalar_lea.hbm %s17829_s24, 64 }
 0x183   :  { %p15730_p12 = scmp.ne.s32.totalorder %s17829_s24, %s15729_s6  ;;  %p15733_p13 = scmp.lt.u32.totalorder %s15729_s6, %s17829_s24 }
 0x185   :  { %p15735_p0 = pnand %p15733_p13, %p15730_p12 }
 0x187   :  { %15738 = shalt.err (!%p15735_p0)
}
 0x188   :  { %s15739_s19 = scalar_lea.vmem %s289_s28, 64  ;;  %p15744_p2 = scmp.lt.s32.totalorder %s289_s28, %s289_s28 }
 0x189   :  { %p15740_p1 = scmp.ne.s32.totalorder %s289_s28, %s15739_s19  ;;  %p15745_p3 = scmp.lt.s32.totalorder %s15739_s19, %s15739_s19 }
 0x18b   :  { %p15746_p4 = por %p15745_p3, %p15744_p2 }
 0x18d   :  { %p15747_p5 = pnand %p15746_p4, %p15740_p1 }
 0x18f   :  { %15750 = shalt.err (!%p15747_p5)
}
 0x190   :  { %291 = dma.hbm_to_vmem [thread:$0]  %s17829_s24, 64, %s289_s28, [#allocation33]  }
 0x191   :  { %15773 = dma.done.wait [#allocation3], 896  }
 0x192   :  { %15774 = vsyncadd [#allocation3], 4294966400 }
 0x193   :  { %15775 = dma.done.wait [#allocation6], 512  }
 0x194   :  { %15776 = vsyncadd [#allocation6], 4294966784 }
 0x195   :  { %15777 = dma.done.wait [#allocation9], 160  }
 0x196   :  { %15778 = vsyncadd [#allocation9], 4294967136 }
 0x197   :  { %15779 = dma.done.wait [#allocation12], 8192  }
 0x198   :  { %15780 = vsyncadd [#allocation12], 4294959104 }
 0x199   :  { %15781 = dma.done.wait [#allocation15], 8192  }
 0x19a   :  { %15782 = vsyncadd [#allocation15], 4294959104 }
 0x19b   :  { %15783 = dma.done.wait [#allocation18], 160  }
 0x19c   :  { %15784 = vsyncadd [#allocation18], 4294967136 }
 0x19d   :  { %15785 = dma.done.wait [#allocation21], 6208  }
 0x19e   :  { %15786 = vsyncadd [#allocation21], 4294961088 }
 0x19f   :  { %15787 = dma.done.wait [#allocation24], 4096  }
 0x1a0   :  { %15788 = vsyncadd [#allocation24], 4294963200 }
 0x1a1   :  { %15789 = dma.done.wait [#allocation27], 6144  }
 0x1a2   :  { %15790 = vsyncadd [#allocation27], 4294961152 }
 0x1a3   :  { %15791 = dma.done.wait [#allocation30], 8192  }
 0x1a4   :  { %15792 = vsyncadd [#allocation30], 4294959104 }
 0x1a5   :  { %15793 = dma.done.wait [#allocation33], 64  }
 0x1a6   :  { %15794 = vsyncadd [#allocation33], 4294967232  ;;  %v15827_v0 = vmov 0   ;;  %s17882_s11 = sld [smem:[#allocation47_spill]]  ;;  %v359_v3 = vld [vmem:[#allocation2] sm:$0xff]  ;;  %v360_v4 = vld [vmem:[#allocation2 + $0x8] sm:$0xff]  ;;  %v366_v14 = vlaneseq }
 0x1a7   :  { %14567 = vset.pattern.permute.xlu0 %v15827_v0  ;;  %718 = vmatprep.mubr.bf16.mxu1 %v15827_v0  ;;  %v361_v5 = vld [vmem:[#allocation2 + $0x10] sm:$0xff]  ;;  %v362_v6 = vld [vmem:[#allocation2 + $0x18] sm:$0xff]  ;;  %v14513_v7 = vpack.c.bf16 %v360_v4, %v359_v3  ;;  %v363_v9 = vld [vmem:[#allocation2 + $0x20] sm:$0xff]  ;;  %vm387_vm0 = vcmask 1041408   ;;  %v15828_v13 = vmov 0.0   ;;  %vm380_vm1 = vcmask 408576  }
 0x1a8   :  { %14598 = vset.pattern.permute.xlu1 %v15827_v0  ;;  %v14517_v8 = vpack.c.bf16 %v362_v6, %v361_v5  ;;  %v364_v10 = vld [vmem:[#allocation2 + $0x28] sm:$0xff]  ;;  %v365_v12 = vld [vmem:[#allocation2 + $0x30] sm:$0x3]  ;;  %v16332_v15 = vand.u32 127, %v366_v14  ;;  %s17883_s2 = sld [smem:[#allocation49_spill]]  ;;  %vm15829_vm4 = vmmov 0  }
 0x1a9   :  { %14514 = vmatprep.subr.bf16.mxu0 %v14513_v7  ;;  %v14521_v11 = vpack.c.bf16 %v364_v10, %v363_v9  ;;  %v14659_v28 = vld [vmem:[#allocation11 + $0x4] ss:$12 sps:$4 sm:$0xff]   ;;  %v14661_v29 = vld [vmem:[#allocation11] ss:$12 sps:$4 sm:$0xff]   ;;  %v14662_v30 = vld [vmem:[#allocation11 + $0x8] ss:$12 sps:$4 sm:$0xff]  }
 0x1aa   :  { %14516 = vmatpush3.bf16.msra.mxu0 %v14513_v7  ;;  %v14663_v31 = vld [vmem:[#allocation11 + $0x1c] ss:$12 sps:$4 sm:$0xff]   ;;  %686 = vmatprep.subr.bf16.mxu1 %v14659_v28  ;;  %v14665_v40 = vld [vmem:[#allocation11 + $0x18] ss:$12 sps:$4 sm:$0xff]   ;;  %v14666_v41 = vld [vmem:[#allocation11 + $0x20] ss:$12 sps:$4 sm:$0xff]  }
 0x1ab   :  { %14518 = vmatprep.subr.bf16.mxu0 %v14517_v8  ;;  %687 = vmatpush1.bf16.msra.mxu1 %v14661_v29  ;;  %v14667_v42 = vld [vmem:[#allocation11 + $0x34] ss:$12 sps:$4 sm:$0xff]   ;;  %v14669_v43 = vld [vmem:[#allocation11 + $0x30] ss:$12 sps:$4 sm:$0xff]   ;;  %v14670_v44 = vld [vmem:[#allocation11 + $0x38] ss:$12 sps:$4 sm:$0xff]  }
 0x1ac   :  { %v357_v1 = vld [vmem:[%s17882_s11] sm:$0xff]  ;;  %v358_v2 = vld [vmem:[%s17882_s11 + $0x8] sm:$0xff]  ;;  %688 = vmatprep.subr.bf16.mxu1 %v14663_v31  ;;  %v16372_v3 = vshrl.u32 %v366_v14, 7  ;;  %v16377_v5 = vld [vmem:[#allocation7] sm:$0xff]  ;;  %vm770_vm5 = vcmask 261120   ;;  %vm848_vm6 = vcmask 64512  }
 0x1ad   :  { %369 = vperm.xlu0 %14567, %v357_v1   ;;  %v14671_v45 = vld [vmem:[#allocation11 + $0x4c] ss:$12 sps:$4 sm:$0xff]   ;;  %v14673_v46 = vld [vmem:[#allocation11 + $0x48] ss:$12 sps:$4 sm:$0xff]   ;;  %v14674_v47 = vld [vmem:[#allocation11 + $0x50] ss:$12 sps:$4 sm:$0xff]  }
 0x1ae   :  { %14520 = vmatpush3.bf16.msra.mxu0 %v14517_v8  ;;  %v468_v22 = vld [vmem:[%s17883_s2] sm:$0xff]  ;;  %v469_v26 = vld [vmem:[%s17883_s2 + $0x8] sm:$0xff]  ;;  %v16375_v4 = vsub.s32 0, %v16372_v3  ;;  %v16380_v7 = vsub.s32 1, %v16372_v3  ;;  %s15830_s17 = smov 96   ;;  %vm1445_vm7 = vcmask 523264  }
 0x1af   :  { %14522 = vmatprep.subr.bf16.mxu0 %v14521_v11  ;;  %689 = vmatpush1.bf16.msra.mxu1 %v14665_v40  ;;  %v14675_v48 = vld [vmem:[#allocation11 + $0x64] ss:$12 sps:$4 sm:$0xff]   ;;  %v14677_v49 = vld [vmem:[#allocation11 + $0x60] ss:$12 sps:$4 sm:$0xff]   ;;  %v14678_v50 = vld [vmem:[#allocation11 + $0x68] ss:$12 sps:$4 sm:$0xff]  }
 0x1b0   :  { %690 = vmatprep.subr.bf16.mxu1 %v14667_v42  ;;  %v14679_v51 = vld [vmem:[#allocation11 + $0x7c] ss:$12 sps:$4 sm:$0xff]   ;;  %v14681_v52 = vld [vmem:[#allocation11 + $0x78] ss:$12 sps:$4 sm:$0xff]   ;;  %v14682_v53 = vld [vmem:[#allocation11 + $0x80] ss:$12 sps:$4 sm:$0xff]   ;;  %v499_v9 = vrot.slane %v16377_v5, %v16375_v4  ;;  %v505_v14 = vrot.slane %v16377_v5, %v16380_v7 }
 0x1b1   :  { %372 = vperm.xlu0 %14567, %v358_v2   ;;  %v14683_v54 = vld [vmem:[#allocation11 + $0x94] ss:$12 sps:$4 sm:$0xff]   ;;  %v14685_v55 = vld [vmem:[#allocation11 + $0x90] ss:$12 sps:$4 sm:$0xff]   ;;  %v14686_v56 = vld [vmem:[#allocation11 + $0x98] ss:$12 sps:$4 sm:$0xff]  }
 0x1b2   :  { %14524 = vmatpush3.bf16.msra.mxu0 %v14521_v11  ;;  %v14687_v57 = vld [vmem:[#allocation11 + $0xac] ss:$12 sps:$4 sm:$0xff]   ;;  %v14689_v58 = vld [vmem:[#allocation11 + $0xa8] ss:$12 sps:$4 sm:$0xff]   ;;  %v14690_v59 = vld [vmem:[#allocation11 + $0xb0] ss:$12 sps:$4 sm:$0xff]  }
 0x1b3   :  { %13761 = vmatprep.subr.msk.mxu0 %vm387_vm0, %v365_v12  ;;  %691 = vmatpush1.bf16.msra.mxu1 %v14669_v43  ;;  %vm1447_vm8 = vcmask 785408   ;;  %s17884_s21 = sld [smem:[#allocation48_spill]]  ;;  %vm15831_vm9 = vmmov 1   ;;  %vm4796_vm12 = vcmask 80896   ;;  %s17887_s6 = sld [smem:[#allocation50_spill]] }
 0x1b4   :  { %692 = vmatprep.subr.bf16.mxu1 %v14671_v45  ;;  %vm16813_vm10 = vmpackc.low %vm387_vm0, %vm15831_vm9  ;;  %s17888_s9 = sld [smem:[#allocation59_spill]]  ;;  %s17889_s19 = sld [smem:[#allocation60_spill]] }
 0x1b5   :  { %s15832_s23 = smov [#allocation34]  }
 0x1b6   :  { %13762 = vmatpush3.msk.msra.mxu0 %vm387_vm0, %v365_v12  ;;  %s12832_s3 = sshll.u32 %s15832_s23, 4  ;;  %s12833_s3 = int_to_ptr.vmem [resolvable:$true] %s12832_s3 }
 0x1b7   :  { %13766 = vmatprep.subr.bf16.mxu0 %v15828_v13  ;;  %693 = vmatpush1.bf16.msra.mxu1 %v14673_v46  ;;  %s15751_s24 = scalar_lea.vmem %s12833_s3, 256  ;;  %p15756_p7 = scmp.lt.s32.totalorder %s12833_s3, %s12833_s3 }
 0x1b8   :  { %694 = vmatprep.subr.bf16.mxu1 %v14675_v48  ;;  %p15752_p6 = scmp.ne.s32.totalorder %s12833_s3, %s15751_s24  ;;  %p15757_p8 = scmp.lt.s32.totalorder %s15751_s24, %s15751_s24 }
 0x1ba   :  { %p15758_p9 = por %p15757_p8, %p15756_p7 }
 0x1bb   :  { %695 = vmatpush1.bf16.msra.mxu1 %v14677_v49 }
 0x1bc   :  { %696 = vmatprep.subr.bf16.mxu1 %v14679_v51  ;;  %p15759_p10 = pnand %p15758_p9, %p15752_p6 }
 0x1bf   :  { %697 = vmatpush1.bf16.msra.mxu1 %v14681_v52 }
 0x1c0   :  { %698 = vmatprep.subr.bf16.mxu1 %v14683_v54 }
 0x1c3   :  { %699 = vmatpush1.bf16.msra.mxu1 %v14685_v55 }
 0x1c4   :  { %700 = vmatprep.subr.bf16.mxu1 %v14687_v57 }
 0x1c7   :  { %701 = vmatpush1.bf16.msra.mxu1 %v14689_v58 }
 0x1c8   :  { %13786 = vmatprep.subr.mxu1 %v15828_v13 }
 0x22c   :  { %v370_v16 = vpop.permute.xlu0 %369 }
 0x22d   :  { %vm374_vm2 = vcmp.eq.s32.totalorder %v16332_v15, %v370_v16 }
 0x22e   :  { %v12854_v17 = vsel %vm374_vm2, 1.0, %v15828_v13 }
 0x22f   :  { %13763 = vmatprep.mubr.msk.f32.mxu0 %vm380_vm1, %v12854_v17 }
 0x230   :  { %v373_v18 = vpop.permute.xlu0 %372 }
 0x231   :  { %vm375_vm3 = vcmp.eq.s32.totalorder %v16332_v15, %v373_v18 }
 0x232   :  { %v12855_v19 = vsel %vm375_vm3, 1.0, %v15828_v13 }
 0x233   :  { %13764 = vmatmul.mubr.msk.f32.vlgmr.msra.gmra.mrb[0].mxu0 %vm380_vm1, %v12855_v19 }
 0x234   :  { %13767 = vmatpush3.bf16.msra.mxu0 %v14662_v30  ;;  %13782 = vmatprep.mubr.msk.bf16.mxu0 %vm15829_vm4, %v15828_v13 }
 0x235   :  { %13768 = vmatprep.subr.bf16.mxu0 %v15828_v13 }
 0x238   :  { %13769 = vmatpush3.bf16.msra.mxu0 %v14666_v41 }
 0x239   :  { %13770 = vmatprep.subr.bf16.mxu0 %v15828_v13 }
 0x23c   :  { %13771 = vmatpush3.bf16.msra.mxu0 %v14670_v44 }
 0x23d   :  { %13772 = vmatprep.subr.bf16.mxu0 %v15828_v13 }
 0x240   :  { %13773 = vmatpush3.bf16.msra.mxu0 %v14674_v47 }
 0x241   :  { %13774 = vmatprep.subr.bf16.mxu0 %v15828_v13 }
 0x244   :  { %13775 = vmatpush3.bf16.msra.mxu0 %v14678_v50 }
 0x245   :  { %13776 = vmatprep.subr.bf16.mxu0 %v15828_v13 }
 0x248   :  { %13777 = vmatpush3.bf16.msra.mxu0 %v14682_v53 }
 0x249   :  { %13778 = vmatprep.subr.bf16.mxu0 %v15828_v13 }
 0x24c   :  { %13779 = vmatpush3.bf16.msra.mxu0 %v14686_v56 }
 0x24d   :  { %13780 = vmatprep.subr.bf16.mxu0 %v15828_v13 }
 0x250   :  { %13781 = vmatpush3.bf16.msra.mxu0 %v14690_v59 }
 0x251   :  { %13806 = vmatprep.subr.mxu0 %v15828_v13 }
 0x306   :  { %v13765_v20 = vpop.f32.mrb[0].mxu0 }
 0x307   :  { %v457_v21 = vpop.f32.mrb[1].mxu0  ;;  %v467_v24 = vmul.f32 11.313708, %v13765_v20  ;;  %v541_v20 = vld [vmem:[#allocation8] sm:$0x7] }
 0x308   :  { %v466_v23 = vmul.f32 11.313708, %v457_v21  ;;  %v16393_v21 = vsub.s32 2, %v16372_v3 }
 0x309   :  { %v16347_v27 = vadd.f32 %v469_v26, %v467_v24  ;;  %v546_v26 = vrot.slane %v541_v20, %v16375_v4 }
 0x30a   :  { %v16341_v25 = vadd.f32 %v468_v22, %v466_v23  ;;  %v550_v22 = vrot.slane %v541_v20, %v16380_v7  ;;  %v554_v28 = vrot.slane %v541_v20, %v16393_v21 }
 0x30c   :  { %473 = vadd.xlane.f32.xlu1 %v16341_v25 }
 0x310   :  { %475 = vadd.xlane.f32.xlu1 %v16347_v27 }
 0x399   :  { %v474_v32 = vpop.xlane.xlu1 %473 }
 0x39a   :  { %v478_v33 = vmul.f32 0.0078125, %v474_v32 }
 0x39c   :  { %v16352_v34 = vsub.f32 %v16341_v25, %v478_v33 }
 0x39d   :  { %v476_v35 = vpop.xlane.xlu1 %475 }
 0x39e   :  { %v479_v36 = vmul.f32 0.0078125, %v476_v35  ;;  %v482_v37 = vmul.f32 %v16352_v34, %v16352_v34 }
 0x3a0   :  { %484 = vadd.xlane.f32.xlu0 %v482_v37  ;;  %v16357_v38 = vsub.f32 %v16347_v27, %v479_v36 }
 0x3a2   :  { %v483_v39 = vmul.f32 %v16357_v38, %v16357_v38 }
 0x3a4   :  { %486 = vadd.xlane.f32.xlu1 %v483_v39 }
 0x42d   :  { %v485_v60 = vpop.xlane.xlu0 %484 }
 0x42e   :  { %v488_v61 = vmul.f32 0.0078125, %v485_v60 }
 0x430   :  { %v490_v62 = vadd.f32 1e-05, %v488_v61 }
 0x431   :  { %v487_v63 = vpop.xlane.xlu1 %486 }
 0x432   :  { %15067 = vrsqrt.f32 %v490_v62  ;;  %v489_v1 = vmul.f32 0.0078125, %v487_v63 }
 0x434   :  { %v491_v2 = vadd.f32 1e-05, %v489_v1 }
 0x436   :  { %15069 = vrsqrt.f32 %v491_v2 }
 0x43c   :  { %v15068_v6 = vpop.eup %15067 }
 0x43d   :  { %v494_v8 = vmul.f32 %v15068_v6, %v16352_v34 }
 0x43f   :  { %v500_v12 = vmul.f32 %v499_v9, %v494_v8 }
 0x440   :  { %v15070_v10 = vpop.eup %15069 }
 0x441   :  { %v495_v11 = vmul.f32 %v15070_v10, %v16357_v38  ;;  %v506_v17 = vadd.f32 %v505_v14, %v500_v12 }
 0x443   :  { %v501_v16 = vmul.f32 %v499_v9, %v495_v11 }
 0x445   :  { %v507_v18 = vadd.f32 %v505_v14, %v501_v16 }
 0x447   :  { %v540_v19 = vpack.c.bf16 %v507_v18, %v506_v17 }
 0x449   :  { %719 = vmatmul.mubr.bf16.vlgmr.msra.gmra.mrb[0].mxu1 %v540_v19  ;;  %13783 = vmatmul.mubr.bf16.vlgmr.msra.gmra.mrb[4].mxu0 %v540_v19 }
 0x44a   :  { %13788 = vmatprep.mubr.msk.f32.mxu1 %vm15829_vm4, %v15828_v13  ;;  %13808 = vmatprep.mubr.msk.f32.mxu0 %vm15829_vm4, %v15828_v13 }
 0x51c   :  { %v720_v23 = vpop.f32.mrb[0].mxu1  ;;  %v763_v24 = vpop.f32.mrb[4].mxu0 }
 0x51d   :  { %v722_v29 = vpop.f32.mrb[1].mxu1  ;;  %v13784_v30 = vpop.f32.mrb[5].mxu0  ;;  %v721_v38 = vadd.f32 %v720_v23, %v546_v26  ;;  %v16403_v39 = vadd.f32 %v763_v24, %v554_v28 }
 0x51e   :  { %v723_v31 = vadd.f32 %v722_v29, %v550_v22  ;;  %v724_v32 = vpop.f32.mrb[2].mxu1  ;;  %v766_v33 = vpop.f32.mrb[6].mxu0 }
 0x51f   :  { %v725_v34 = vadd.f32 %v724_v32, %v546_v26  ;;  %v16398_v35 = vadd.f32 %v766_v33, %v554_v28  ;;  %v726_v36 = vpop.f32.mrb[3].mxu1  ;;  %v13785_v37 = vpop.f32.mrb[7].mxu0 }
 0x520   :  { %1102 = vrot.lane.b32.xlu0 %v723_v31, %s15813_s4  ;;  %13787 = vmatpush3.xpose.msk.msra.mxu1 %vm770_vm5, %v723_v31  ;;  %v727_v40 = vadd.f32 %v726_v36, %v550_v22 }
 0x521   :  { %13791 = vmatprep.subr.mxu1 %v15828_v13 }
 0x523   :  { %13789 = vmatmul.mubr.msk.f32.vlgmr.msra.gmra.mrb[4].mxu1 %vm770_vm5, %v721_v38 }
 0x524   :  { %1779 = vrot.lane.b32.xlu0 %v727_v40, %s15813_s4  ;;  %13792 = vmatpush3.msra.mxu1 %v16403_v39 }
 0x525   :  { %13793 = vmatprep.mubr.msk.f32.mxu1 %vm15829_vm4, %v15828_v13  ;;  %13796 = vmatprep.subr.mxu1 %v15828_v13 }
 0x528   :  { %1945 = vrot.lane.b32.xlu0 %v727_v40, %s15809_s14 }
 0x592   :  { %v1103_v41 = vpop.permute.xlu0 %1102 }
 0x593   :  { %13807 = vmatpush3.xpose.msk.msra.mxu0 %vm770_vm5, %v1103_v41 }
 0x594   :  { %13816 = vmatprep.subr.mxu0 %v15828_v13 }
 0x596   :  { %v1780_v60 = vpop.permute.xlu0 %1779 }
 0x59a   :  { %v1946_v63 = vpop.permute.xlu0 %1945 }
 0x5f6   :  { %v843_v42 = vpop.f32.mrb[4].mxu1 }
 0x5f7   :  { %v847_v43 = vmul.f32 0.17677669, %v843_v42  ;;  %v13790_v44 = vpop.f32.mrb[5].mxu1 }
 0x5f9   :  { %v849_v45 = vsel %vm848_vm6, %v847_v43, -inf }
 0x5fa   :  { %850 = vmax.xlane.f32.xlu1 %v849_v45 }
 0x60b   :  { %935 = vrot.lane.b32.xlu1 %v723_v31, %s15830_s17 }
 0x60f   :  { %933 = vrot.lane.b32.xlu1 %v721_v38, %s15830_s17 }
 0x613   :  { %1100 = vrot.lane.b32.xlu1 %v721_v38, %s15813_s4 }
 0x687   :  { %v851_v46 = vpop.xlane.xlu1 %850 }
 0x688   :  { %v852_v47 = vsub.f32 %v847_v43, %v851_v46 }
 0x68a   :  { %v853_v48 = vmul.f32 1.442695, %v852_v47 }
 0x68b   :  { %v936_v49 = vpop.permute.xlu1 %935 }
 0x68c   :  { %15071 = vpow2.f32 %v853_v48 }
 0x68f   :  { %v934_v50 = vpop.permute.xlu1 %933 }
 0x693   :  { %v1101_v51 = vpop.permute.xlu1 %1100 }
 0x694   :  { %13809 = vmatmul.mubr.msk.f32.vlgmr.msra.gmra.mrb[2].mxu0 %vm770_vm5, %v1101_v51 }
 0x695   :  { %13818 = vmatprep.mubr.msk.f32.mxu0 %vm15829_vm4, %v15828_v13 }
 0x696   :  { %v15072_v52 = vpop.eup %15071 }
 0x697   :  { %v855_v53 = vsel %vm848_vm6, %v15072_v52, 0.0 }
 0x698   :  { %856 = vadd.xlane.f32.xlu1 %v855_v53 }
 0x6a9   :  { %1268 = vrot.lane.b32.xlu1 %v723_v31, %s15809_s14 }
 0x6ad   :  { %1266 = vrot.lane.b32.xlu1 %v721_v38, %s15809_s14 }
 0x6b1   :  { %1612 = vrot.lane.b32.xlu1 %v727_v40, %s15830_s17 }
 0x6b5   :  { %1610 = vrot.lane.b32.xlu1 %v725_v34, %s15830_s17 }
 0x6b9   :  { %1777 = vrot.lane.b32.xlu1 %v725_v34, %s15813_s4 }
 0x6bd   :  { %1943 = vrot.lane.b32.xlu1 %v725_v34, %s15809_s14 }
 0x725   :  { %v857_v54 = vpop.xlane.xlu1 %856 }
 0x726   :  { %15073 = vrcp.f32 %v857_v54 }
 0x729   :  { %v1269_v55 = vpop.permute.xlu1 %1268 }
 0x72a   :  { %13817 = vmatpush3.xpose.msk.msra.mxu0 %vm770_vm5, %v1269_v55 }
 0x72b   :  { %13826 = vmatprep.subr.mxu0 %v15828_v13 }
 0x72d   :  { %v1267_v56 = vpop.permute.xlu1 %1266 }
 0x72e   :  { %13819 = vmatmul.mubr.msk.f32.vlgmr.msra.gmra.mrb[8].mxu0 %vm770_vm5, %v1267_v56 }
 0x72f   :  { %13827 = vmatpush3.xpose.msk.msra.mxu0 %vm770_vm5, %v727_v40  ;;  %13828 = vmatprep.mubr.msk.f32.mxu0 %vm15829_vm4, %v15828_v13 }
 0x730   :  { %v15074_v57 = vpop.eup %15073  ;;  %13836 = vmatprep.subr.mxu0 %v15828_v13 }
 0x731   :  { %v1613_v58 = vpop.permute.xlu1 %1612  ;;  %v859_v59 = vmul.f32 %v15074_v57, %v15072_v52 }
 0x732   :  { %13829 = vmatmul.mubr.msk.f32.vlgmr.msra.gmra.mrb[10].mxu0 %vm770_vm5, %v725_v34 }
 0x733   :  { %13837 = vmatpush3.xpose.msk.msra.mxu0 %vm770_vm5, %v1613_v58  ;;  %13794 = vmatmul.mubr.msk.f32.vlgmr.msra.gmra.mrb[6].mxu1 %vm848_vm6, %v859_v59 }
 0x734   :  { %13797 = vmatpush3.xpose.msk.msra.mxu1 %vm770_vm5, %v936_v49  ;;  %13838 = vmatprep.mubr.msk.f32.mxu0 %vm15829_vm4, %v15828_v13 }
 0x735   :  { %13846 = vmatprep.subr.mxu0 %v15828_v13  ;;  %v1611_v61 = vpop.permute.xlu1 %1610  ;;  %13798 = vmatprep.mubr.msk.f32.mxu1 %vm15829_vm4, %v15828_v13 }
 0x736   :  { %13839 = vmatmul.mubr.msk.f32.vlgmr.msra.gmra.mrb[12].mxu0 %vm770_vm5, %v1611_v61  ;;  %13801 = vmatprep.subr.mxu1 %v15828_v13 }
 0x737   :  { %13847 = vmatpush3.xpose.msk.msra.mxu0 %vm770_vm5, %v1780_v60  ;;  %13799 = vmatmul.mubr.msk.f32.vlgmr.msra.gmra.mrb[8].mxu1 %vm770_vm5, %v934_v50 }
 0x738   :  { %13848 = vmatprep.mubr.msk.f32.mxu0 %vm15829_vm4, %v15828_v13  ;;  %13856 = vmatprep.subr.mxu0 %v15828_v13 }
 0x739   :  { %v1778_v62 = vpop.permute.xlu1 %1777  ;;  %13803 = vmatprep.mubr.msk.f32.mxu1 %vm15829_vm4, %v15828_v13 }
 0x73a   :  { %13849 = vmatmul.mubr.msk.f32.vlgmr.msra.gmra.mrb[14].mxu0 %vm770_vm5, %v1778_v62 }
 0x73b   :  { %13857 = vmatpush3.xpose.msk.msra.mxu0 %vm770_vm5, %v1946_v63  ;;  %13858 = vmatprep.mubr.msk.f32.mxu0 %vm15829_vm4, %v15828_v13 }
 0x73c   :  { %13866 = vmatprep.subr.bf16.mxu0 %v15828_v13 }
 0x73d   :  { %v1944_v1 = vpop.permute.xlu1 %1943 }
 0x73e   :  { %13859 = vmatmul.mubr.msk.f32.vlgmr.msra.gmra.mrb[16].mxu0 %vm770_vm5, %v1944_v1 }
 0x73f   :  { %13882 = vmatprep.mubr.msk.bf16.mxu0 %vm15829_vm4, %v15828_v13 }
 0x767   :  { %v1174_v2 = vpop.f32.mrb[2].mxu0 }
 0x768   :  { %v1178_v6 = vmul.f32 0.17677669, %v1174_v2  ;;  %v13810_v8 = vpop.f32.mrb[3].mxu0 }
 0x76a   :  { %v1179_v9 = vsel %vm848_vm6, %v1178_v6, -inf }
 0x76b   :  { %1180 = vmax.xlane.f32.xlu1 %v1179_v9 }
 0x7f8   :  { %v1181_v10 = vpop.xlane.xlu1 %1180 }
 0x7f9   :  { %v1182_v14 = vsub.f32 %v1178_v6, %v1181_v10 }
 0x7fb   :  { %v1183_v19 = vmul.f32 1.442695, %v1182_v14 }
 0x7fd   :  { %15075 = vpow2.f32 %v1183_v19 }
 0x801   :  { %v1340_v11 = vpop.f32.mrb[8].mxu0 }
 0x802   :  { %v13820_v12 = vpop.f32.mrb[9].mxu0  ;;  %v1344_v31 = vmul.f32 0.17677669, %v1340_v11 }
 0x804   :  { %v1345_v38 = vsel %vm848_vm6, %v1344_v31, -inf }
 0x805   :  { %v1521_v16 = vpop.f32.mrb[10].mxu0 }
 0x806   :  { %v16462_v17 = vpop.f32.mrb[6].mxu1  ;;  %v13830_v18 = vpop.f32.mrb[11].mxu0  ;;  %v1525_v36 = vmul.f32 0.17677669, %v1521_v16 }
 0x807   :  { %v13795_v20 = vpop.f32.mrb[7].mxu1  ;;  %v16468_v43 = vpop.eup %15075 }
 0x808   :  { %v1526_v45 = vsel %vm848_vm6, %v1525_v36, -inf  ;;  %v1185_v46 = vsel %vm848_vm6, %v16468_v43, 0.0 }
 0x809   :  { %v1684_v22 = vpop.f32.mrb[12].mxu0 }
 0x80a   :  { %v1688_v23 = vmul.f32 0.17677669, %v1684_v22  ;;  %v1007_v24 = vpop.f32.mrb[8].mxu1  ;;  %v13840_v26 = vpop.f32.mrb[13].mxu0 }
 0x80b   :  { %v1011_v28 = vmul.f32 0.17677669, %v1007_v24  ;;  %v13800_v29 = vpop.f32.mrb[9].mxu1 }
 0x80c   :  { %v1689_v30 = vsel %vm848_vm6, %v1688_v23, -inf }
 0x80d   :  { %1690 = vmax.xlane.f32.xlu1 %v1689_v30  ;;  %v1851_v32 = vpop.f32.mrb[14].mxu0  ;;  %v1012_v33 = vsel %vm848_vm6, %v1011_v28, -inf }
 0x80e   :  { %v13850_v34 = vpop.f32.mrb[15].mxu0  ;;  %1013 = vmax.xlane.f32.xlu0 %v1012_v33  ;;  %v1855_v44 = vmul.f32 0.17677669, %v1851_v32 }
 0x810   :  { %v1856_v47 = vsel %vm848_vm6, %v1855_v44, -inf }
 0x811   :  { %v2017_v37 = vpop.f32.mrb[16].mxu0 }
 0x812   :  { %v2021_v40 = vmul.f32 0.17677669, %v2017_v37  ;;  %v13860_v41 = vpop.f32.mrb[17].mxu0  ;;  %1346 = vmax.xlane.f32.xlu0 %v1345_v38 }
 0x814   :  { %v2022_v42 = vsel %vm848_vm6, %v2021_v40, -inf }
 0x815   :  { %2023 = vmax.xlane.f32.xlu1 %v2022_v42 }
 0x816   :  { %1527 = vmax.xlane.f32.xlu0 %v1526_v45 }
 0x819   :  { %1186 = vadd.xlane.f32.xlu1 %v1185_v46 }
 0x81a   :  { %1857 = vmax.xlane.f32.xlu0 %v1856_v47 }
 0x89a   :  { %v1691_v48 = vpop.xlane.xlu1 %1690 }
 0x89b   :  { %v1014_v49 = vpop.xlane.xlu0 %1013  ;;  %v1692_v50 = vsub.f32 %v1688_v23, %v1691_v48 }
 0x89c   :  { %v1015_v59 = vsub.f32 %v1011_v28, %v1014_v49 }
 0x89d   :  { %v1693_v53 = vmul.f32 1.442695, %v1692_v50 }
 0x89e   :  { %v1016_v1 = vmul.f32 1.442695, %v1015_v59 }
 0x89f   :  { %v1347_v51 = vpop.xlane.xlu0 %1346 }
 0x8a0   :  { %v1348_v52 = vsub.f32 %v1344_v31, %v1347_v51 }
 0x8a2   :  { %v1349_v54 = vmul.f32 1.442695, %v1348_v52  ;;  %v2024_v55 = vpop.xlane.xlu1 %2023  ;;  %v14691_v52 = vld [vmem:[#allocation13] sm:$0xff]  }
 0x8a3   :  { %v2025_v56 = vsub.f32 %v2021_v40, %v2024_v55  ;;  %v1528_v57 = vpop.xlane.xlu0 %1527  ;;  %13867 = vmatpush3.bf16.msra.mxu0 %v14691_v52  ;;  %v14694_v55 = vld [vmem:[#allocation13 + $0x18] sm:$0xff]  }
 0x8a4   :  { %15077 = vpow2.f32 %v1349_v54  ;;  %v1529_v58 = vsub.f32 %v1525_v36, %v1528_v57  ;;  %13868 = vmatprep.subr.bf16.mxu0 %v15828_v13  ;;  %v14693_v54 = vld [vmem:[#allocation13 + $0x10] sm:$0xff]  }
 0x8a5   :  { %15079 = vpow2.f32 %v1693_v53  ;;  %v2026_v60 = vmul.f32 1.442695, %v2025_v56  ;;  %v14692_v53 = vld [vmem:[#allocation13 + $0x8] sm:$0xff]   ;;  %v14695_v56 = vld [vmem:[#allocation13 + $0x20] sm:$0xff]   ;;  %v14702_v52 = vld [vmem:[#allocation14 + $0x10] ss:$8 sps:$4 sm:$0xff]  }
 0x8a6   :  { %v1530_v61 = vmul.f32 1.442695, %v1529_v58  ;;  %v1187_v23 = vpop.xlane.xlu1 %1186 }
 0x8a7   :  { %v1858_v62 = vpop.xlane.xlu0 %1857  ;;  %13869 = vmatpush3.bf16.msra.mxu0 %v14692_v53 }
 0x8a8   :  { %15081 = vpow2.f32 %v1530_v61  ;;  %v1859_v63 = vsub.f32 %v1855_v44, %v1858_v62  ;;  %13870 = vmatprep.subr.bf16.mxu0 %v15828_v13  ;;  %v14696_v62 = vld [vmem:[#allocation13 + $0x28] sm:$0xff]  }
 0x8a9   :  { %15083 = vpow2.f32 %v2026_v60 }
 0x8aa   :  { %v1860_v2 = vmul.f32 1.442695, %v1859_v63 }
 0x8ab   :  { %13871 = vmatpush3.bf16.msra.mxu0 %v14693_v54 }
 0x8ac   :  { %15085 = vpow2.f32 %v1860_v2  ;;  %13872 = vmatprep.subr.bf16.mxu0 %v15828_v13  ;;  %v14697_v2 = vld [vmem:[#allocation13 + $0x30] sm:$0xff]  }
 0x8ad   :  { %15087 = vpow2.f32 %v1016_v1 }
 0x8ae   :  { %v15078_v6 = vpop.eup %15077 }
 0x8af   :  { %v1351_v8 = vsel %vm848_vm6, %v15078_v6, 0.0  ;;  %v16475_v9 = vpop.eup %15079  ;;  %13873 = vmatpush3.bf16.msra.mxu0 %v14694_v55 }
 0x8b0   :  { %1352 = vadd.xlane.f32.xlu0 %v1351_v8  ;;  %v1695_v11 = vsel %vm848_vm6, %v16475_v9, 0.0  ;;  %13874 = vmatprep.subr.bf16.mxu0 %v15828_v13 }
 0x8b2   :  { %v15082_v10 = vpop.eup %15081 }
 0x8b3   :  { %v1532_v12 = vsel %vm848_vm6, %v15082_v10, 0.0  ;;  %v16480_v14 = vpop.eup %15083  ;;  %13875 = vmatpush3.bf16.msra.mxu0 %v14695_v56 }
 0x8b4   :  { %1696 = vadd.xlane.f32.xlu0 %v1695_v11  ;;  %1533 = vadd.xlane.f32.xlu1 %v1532_v12  ;;  %v2028_v18 = vsel %vm848_vm6, %v16480_v14, 0.0 }
 0x8b5   :  { %13876 = vmatprep.subr.bf16.mxu0 %v15828_v13 }
 0x8b6   :  { %v16482_v16 = vpop.eup %15085 }
 0x8b7   :  { %v1862_v19 = vsel %vm848_vm6, %v16482_v16, 0.0  ;;  %v15088_v20 = vpop.eup %15087  ;;  %13877 = vmatpush3.bf16.msra.mxu0 %v14696_v62  ;;  %v14708_v62 = vld [vmem:[#allocation14 + $0x30] ss:$8 sps:$4 sm:$0xff]  }
 0x8b8   :  { %2029 = vadd.xlane.f32.xlu0 %v2028_v18  ;;  %1863 = vadd.xlane.f32.xlu1 %v1862_v19  ;;  %v1018_v22 = vsel %vm848_vm6, %v15088_v20, 0.0 }
 0x8b9   :  { %13878 = vmatprep.subr.bf16.mxu0 %v15828_v13 }
 0x8bb   :  { %13879 = vmatpush3.bf16.msra.mxu0 %v14697_v2  ;;  %v14716_v2 = vld [vmem:[#allocation14 + $0x54] ss:$8 sps:$4 sm:$0xff]  }
 0x8bc   :  { %1019 = vadd.xlane.f32.xlu0 %v1018_v22  ;;  %13880 = vmatprep.subr.bf16.mxu0 %v15828_v13 }
 0x8c9   :  { %1024 = vrot.lane.b32.xlu1 %v16403_v39, %s15830_s17 }
 0x8cd   :  { %1356 = vrot.lane.b32.xlu1 %v16403_v39, %s15809_s14 }
 0x8d1   :  { %1701 = vrot.lane.b32.xlu1 %v16398_v35, %s15830_s17 }
 0x8d2   :  { %1190 = vrot.lane.b32.xlu0 %v16403_v39, %s15813_s4 }
 0x8d5   :  { %2033 = vrot.lane.b32.xlu1 %v16398_v35, %s15809_s14 }
 0x8d6   :  { %1867 = vrot.lane.b32.xlu0 %v16398_v35, %s15813_s4 }
 0x93d   :  { %v1353_v24 = vpop.xlane.xlu0 %1352 }
 0x941   :  { %v1534_v26 = vpop.xlane.xlu1 %1533  ;;  %v1697_v28 = vpop.xlane.xlu0 %1696 }
 0x945   :  { %v1864_v29 = vpop.xlane.xlu1 %1863  ;;  %v2030_v30 = vpop.xlane.xlu0 %2029 }
 0x949   :  { %v1025_v31 = vpop.permute.xlu1 %1024  ;;  %v1020_v32 = vpop.xlane.xlu0 %1019 }
 0x94a   :  { %15089 = vrcp.f32 %v1020_v32  ;;  %13802 = vmatpush3.msra.mxu1 %v1025_v31 }
 0x94b   :  { %13811 = vmatprep.subr.mxu1 %v15828_v13  ;;  %15091 = vrcp.f32 %v1187_v23 }
 0x94c   :  { %15093 = vrcp.f32 %v1353_v24 }
 0x94d   :  { %15095 = vrcp.f32 %v1534_v26  ;;  %v1191_v36 = vpop.permute.xlu0 %1190  ;;  %v1357_v40 = vpop.permute.xlu1 %1356 }
 0x94e   :  { %15097 = vrcp.f32 %v1697_v28 }
 0x94f   :  { %15099 = vrcp.f32 %v1864_v29 }
 0x950   :  { %15101 = vrcp.f32 %v2030_v30 }
 0x951   :  { %v1702_v45 = vpop.permute.xlu1 %1701 }
 0x954   :  { %v15090_v39 = vpop.eup %15089 }
 0x955   :  { %v1022_v33 = vmul.f32 %v15090_v39, %v15088_v20  ;;  %v15092_v34 = vpop.eup %15091  ;;  %v2034_v50 = vpop.permute.xlu1 %2033 }
 0x956   :  { %v1189_v37 = vmul.f32 %v15092_v34, %v16468_v43  ;;  %v15094_v38 = vpop.eup %15093 }
 0x957   :  { %13804 = vmatmul.mubr.msk.f32.vlgmr.msra.gmra.mrb[10].mxu1 %vm848_vm6, %v1022_v33  ;;  %v1355_v41 = vmul.f32 %v15094_v38, %v15078_v6  ;;  %v15096_v42 = vpop.eup %15095 }
 0x958   :  { %13812 = vmatpush3.msra.mxu1 %v1191_v36  ;;  %13813 = vmatprep.mubr.msk.f32.mxu1 %vm15829_vm4, %v15828_v13  ;;  %v1536_v43 = vmul.f32 %v15096_v42, %v15082_v10  ;;  %v15098_v44 = vpop.eup %15097 }
 0x959   :  { %13821 = vmatprep.subr.mxu1 %v15828_v13  ;;  %v1699_v46 = vmul.f32 %v15098_v44, %v16475_v9  ;;  %v15100_v47 = vpop.eup %15099  ;;  %v14698_v9 = vld [vmem:[#allocation13 + $0x38] sm:$0xff]  }
 0x95a   :  { %v1866_v48 = vmul.f32 %v15100_v47, %v16482_v16  ;;  %v15102_v49 = vpop.eup %15101  ;;  %13881 = vmatpush3.bf16.msra.mxu0 %v14698_v9  ;;  %v14717_v9 = vld [vmem:[#allocation14 + $0x60] ss:$8 sps:$4 sm:$0xff]  }
 0x95b   :  { %13814 = vmatmul.mubr.msk.f32.vlgmr.msra.gmra.mrb[12].mxu1 %vm848_vm6, %v1189_v37  ;;  %v2032_v51 = vmul.f32 %v15102_v49, %v16480_v14  ;;  %v14699_v49 = vld [vmem:[#allocation14] ss:$8 sps:$4 sm:$0xff]  }
 0x95c   :  { %13822 = vmatpush3.msra.mxu1 %v1357_v40  ;;  %13823 = vmatprep.mubr.msk.f32.mxu1 %vm15829_vm4, %v15828_v13 }
 0x95d   :  { %13831 = vmatprep.subr.mxu1 %v15828_v13 }
 0x95f   :  { %13824 = vmatmul.mubr.msk.f32.vlgmr.msra.gmra.mrb[14].mxu1 %vm848_vm6, %v1355_v41  ;;  %v16550_v41 = vsub.s32 4, %v16372_v3 }
 0x960   :  { %13832 = vmatpush3.msra.mxu1 %v16398_v35  ;;  %13833 = vmatprep.mubr.msk.f32.mxu1 %vm15829_vm4, %v15828_v13  ;;  %v1868_v35 = vpop.permute.xlu0 %1867 }
 0x961   :  { %13841 = vmatprep.subr.mxu1 %v15828_v13  ;;  %v2235_v42 = vrot.slane %v16377_v5, %v16550_v41 }
 0x963   :  { %13834 = vmatmul.mubr.msk.f32.vlgmr.msra.gmra.mrb[16].mxu1 %vm848_vm6, %v1536_v43 }
 0x964   :  { %13842 = vmatpush3.msra.mxu1 %v1702_v45  ;;  %13843 = vmatprep.mubr.msk.f32.mxu1 %vm15829_vm4, %v15828_v13 }
 0x965   :  { %13851 = vmatprep.subr.mxu1 %v15828_v13 }
 0x967   :  { %13844 = vmatmul.mubr.msk.f32.vlgmr.msra.gmra.mrb[18].mxu1 %vm848_vm6, %v1699_v46 }
 0x968   :  { %13852 = vmatpush3.msra.mxu1 %v1868_v35  ;;  %13853 = vmatprep.mubr.msk.f32.mxu1 %vm15829_vm4, %v15828_v13 }
 0x969   :  { %13861 = vmatprep.subr.mxu1 %v15828_v13 }
 0x96b   :  { %13854 = vmatmul.mubr.msk.f32.vlgmr.msra.gmra.mrb[20].mxu1 %vm848_vm6, %v1866_v48 }
 0x96c   :  { %13862 = vmatpush3.msra.mxu1 %v2034_v50  ;;  %13863 = vmatprep.mubr.msk.f32.mxu1 %vm15829_vm4, %v15828_v13  ;;  %v14701_v50 = vld [vmem:[#allocation14 + $0x4] ss:$8 sps:$4 sm:$0xff]  }
 0x96d   :  { %2381 = vmatprep.subr.bf16.mxu1 %v14701_v50  ;;  %v14735_v50 = vld [vmem:[#allocation16 + $0x70] sm:$0xff]  }
 0x96f   :  { %13864 = vmatmul.mubr.msk.f32.vlgmr.msra.gmra.mrb[22].mxu1 %vm848_vm6, %v2032_v51  ;;  %v14704_v51 = vld [vmem:[#allocation14 + $0x14] ss:$8 sps:$4 sm:$0xff]  }
 0x970   :  { %2413 = vmatprep.mubr.bf16.mxu1 %v15827_v0  ;;  %2382 = vmatpush1.bf16.msra.mxu1 %v14699_v49  ;;  %v14734_v49 = vld [vmem:[#allocation16 + $0x28] sm:$0xff]  }
 0x971   :  { %2383 = vmatprep.subr.bf16.mxu1 %v14704_v51  ;;  %v14736_v51 = vld [vmem:[#allocation16 + $0x30] sm:$0xff]  }
 0x974   :  { %2384 = vmatpush1.bf16.msra.mxu1 %v14702_v52  ;;  %v14737_v52 = vld [vmem:[#allocation16 + $0x78] sm:$0xff]  }
 0xa2a   :  { %v1096_v57 = vpop.f32.mrb[10].mxu1 }
 0xa2b   :  { %v13805_v58 = vpop.f32.mrb[11].mxu1 }
 0xa2e   :  { %v1262_v59 = vpop.f32.mrb[12].mxu1 }
 0xa2f   :  { %v13815_v60 = vpop.f32.mrb[13].mxu1 }
 0xa30   :  { %v14705_v60 = vld [vmem:[#allocation14 + $0x20] ss:$8 sps:$4 sm:$0xff]  }
 0xa32   :  { %v1428_v61 = vpop.f32.mrb[14].mxu1 }
 0xa33   :  { %v13825_v63 = vpop.f32.mrb[15].mxu1 }
 0xa34   :  { %v14713_v63 = vld [vmem:[#allocation14 + $0x44] ss:$8 sps:$4 sm:$0xff]  }
 0xa36   :  { %v1606_v1 = vpop.f32.mrb[16].mxu1 }
 0xa37   :  { %v13835_v6 = vpop.f32.mrb[17].mxu1 }
 0xa38   :  { %v14714_v6 = vld [vmem:[#allocation14 + $0x50] ss:$8 sps:$4 sm:$0xff]  }
 0xa3a   :  { %v1773_v8 = vpop.f32.mrb[18].mxu1 }
 0xa3b   :  { %v14568_v10 = vpack.i.bf16 %v1773_v8, %v1096_v57  ;;  %v13845_v11 = vpop.f32.mrb[19].mxu1  ;;  %v14719_v8 = vld [vmem:[#allocation14 + $0x64] ss:$8 sps:$4 sm:$0xff]  }
 0xa3c   :  { %v14720_v11 = vld [vmem:[#allocation14 + $0x70] ss:$8 sps:$4 sm:$0xff]  }
 0xa3d   :  { %14569 = vrot.lane.b32.xlu0 %v14568_v10, %s15809_s14  ;;  %v14722_v10 = vld [vmem:[#allocation14 + $0x74] ss:$8 sps:$4 sm:$0xff]  }
 0xa3e   :  { %v1939_v12 = vpop.f32.mrb[20].mxu1 }
 0xa3f   :  { %v14573_v14 = vpack.i.bf16 %v1939_v12, %v1262_v59  ;;  %v13855_v16 = vpop.f32.mrb[21].mxu1  ;;  %v14707_v59 = vld [vmem:[#allocation14 + $0x24] ss:$8 sps:$4 sm:$0xff]  }
 0xa40   :  { %2385 = vmatprep.subr.bf16.mxu1 %v14707_v59  ;;  %v14723_v12 = vld [vmem:[#allocation16 + $0x40] sm:$0xff]   ;;  %v14725_v16 = vld [vmem:[#allocation16 + $0x48] sm:$0xff]  }
 0xa41   :  { %14574 = vrot.lane.b32.xlu1 %v14573_v14, %s15813_s4  ;;  %2386 = vmatpush1.bf16.msra.mxu1 %v14705_v60  ;;  %v14724_v14 = vld [vmem:[#allocation16] sm:$0xff]  }
 0xa42   :  { %v2105_v18 = vpop.f32.mrb[22].mxu1  ;;  %13398 = vmatprep.subr.bf16.mxu0 %v14723_v12 }
 0xa43   :  { %v14578_v19 = vpack.i.bf16 %v2105_v18, %v1428_v61  ;;  %v13865_v20 = vpop.f32.mrb[23].mxu1  ;;  %v14710_v61 = vld [vmem:[#allocation14 + $0x34] ss:$8 sps:$4 sm:$0xff]   ;;  %v14726_v18 = vld [vmem:[#allocation16 + $0x8] sm:$0xff]  }
 0xa44   :  { %2387 = vmatprep.subr.bf16.mxu1 %v14710_v61  ;;  %v14728_v20 = vld [vmem:[#allocation16 + $0x10] sm:$0xff]  }
 0xa45   :  { %14579 = vrot.lane.b32.xlu0 %v14578_v19, %s15830_s17  ;;  %2388 = vmatpush1.bf16.msra.mxu1 %v14708_v62  ;;  %v14727_v19 = vld [vmem:[#allocation16 + $0x50] sm:$0xff]  }
 0xa46   :  { %2389 = vmatprep.subr.bf16.mxu1 %v14713_v63 }
 0xaaf   :  { %v14570_v22 = vpop.permute.xlu0 %14569 }
 0xab0   :  { %v14572_v24 = vunpack.i.h.bf16 %v14570_v22  ;;  %v14571_v26 = vunpack.i.l.bf16 %v14570_v22  ;;  %v14729_v22 = vld [vmem:[#allocation16 + $0x58] sm:$0xff]  }
 0xab2   :  { %v2121_v31 = vsel %vm770_vm5, %v1606_v1, %v14572_v24  ;;  %v1444_v32 = vsel %vm770_vm5, %v16462_v17, %v14571_v26  ;;  %v14711_v1 = vld [vmem:[#allocation14 + $0x40] ss:$8 sps:$4 sm:$0xff]  }
 0xab3   :  { %v14575_v23 = vpop.permute.xlu1 %14574  ;;  %2390 = vmatpush1.bf16.msra.mxu1 %v14711_v1  ;;  %v14731_v24 = vld [vmem:[#allocation16 + $0x60] sm:$0xff]  }
 0xab4   :  { %v14577_v28 = vunpack.i.h.bf16 %v14575_v23  ;;  %v14576_v29 = vunpack.i.l.bf16 %v14575_v23  ;;  %2391 = vmatprep.subr.bf16.mxu1 %v14716_v2  ;;  %v14730_v23 = vld [vmem:[#allocation16 + $0x18] sm:$0xff]   ;;  %v14732_v26 = vld [vmem:[#allocation16 + $0x20] sm:$0xff]  }
 0xab6   :  { %v2122_v34 = vsel %vm1445_vm7, %v2121_v31, %v14577_v28  ;;  %v1446_v36 = vsel %vm1445_vm7, %v1444_v32, %v14576_v29  ;;  %v14733_v28 = vld [vmem:[#allocation16 + $0x68] sm:$0xff]  }
 0xab7   :  { %v14580_v30 = vpop.permute.xlu0 %14579  ;;  %2392 = vmatpush1.bf16.msra.mxu1 %v14714_v6 }
 0xab8   :  { %v14582_v39 = vunpack.i.h.bf16 %v14580_v30  ;;  %v14581_v33 = vunpack.i.l.bf16 %v14580_v30  ;;  %2393 = vmatprep.subr.bf16.mxu1 %v14719_v8 }
 0xaba   :  { %v2123_v37 = vsel %vm1447_vm8, %v2122_v34, %v14582_v39  ;;  %v1448_v38 = vsel %vm1447_vm8, %v1446_v36, %v14581_v33  ;;  %v2263_v34 = vrot.slane %v16377_v5, %v16393_v21  ;;  %v16575_v36 = vsub.s32 3, %v16372_v3 }
 0xabb   :  { %v2140_v40 = vpack.c.bf16 %v2123_v37, %v1448_v38  ;;  %2394 = vmatpush1.bf16.msra.mxu1 %v14717_v9 }
 0xabc   :  { %2395 = vmatprep.subr.bf16.mxu1 %v14722_v10  ;;  %v16588_v10 = vsub.s32 5, %v16372_v3 }
 0xabd   :  { %13883 = vmatmul.mubr.bf16.vlgmr.msra.gmra.mrb[20].mxu0 %v2140_v40 }
 0xabe   :  { %13399 = vmatpush3.bf16.msra.mxu0 %v14724_v14 }
 0xabf   :  { %2396 = vmatpush1.bf16.msra.mxu1 %v14720_v11  ;;  %13400 = vmatprep.subr.bf16.mxu0 %v14725_v16 }
 0xac2   :  { %13401 = vmatpush3.bf16.msra.mxu0 %v14726_v18  ;;  %v2604_v18 = vrot.slane %v16377_v5, %v16588_v10 }
 0xac3   :  { %13402 = vmatprep.subr.bf16.mxu0 %v14727_v19 }
 0xac6   :  { %13403 = vmatpush3.bf16.msra.mxu0 %v14728_v20 }
 0xac7   :  { %13404 = vmatprep.subr.bf16.mxu0 %v14729_v22 }
 0xaca   :  { %13405 = vmatpush3.bf16.msra.mxu0 %v14730_v23 }
 0xacb   :  { %13406 = vmatprep.subr.bf16.mxu0 %v14731_v24 }
 0xace   :  { %13407 = vmatpush3.bf16.msra.mxu0 %v14732_v26 }
 0xacf   :  { %13408 = vmatprep.subr.bf16.mxu0 %v14733_v28  ;;  %v14739_v28 = vld [vmem:[#allocation11 + $0xc0] ss:$12 sps:$4 sm:$0xff]  }
 0xad2   :  { %13409 = vmatpush3.bf16.msra.mxu0 %v14734_v49  ;;  %v14755_v49 = vld [vmem:[#allocation11 + $0x120] ss:$12 sps:$4 sm:$0xff]  }
 0xad3   :  { %13410 = vmatprep.subr.bf16.mxu0 %v14735_v50  ;;  %v14758_v50 = vld [vmem:[#allocation11 + $0x128] ss:$12 sps:$4 sm:$0xff]  }
 0xad6   :  { %13411 = vmatpush3.bf16.msra.mxu0 %v14736_v51  ;;  %v14761_v51 = vld [vmem:[#allocation11 + $0x13c] ss:$12 sps:$4 sm:$0xff]  }
 0xad7   :  { %13412 = vmatprep.subr.bf16.mxu0 %v14737_v52  ;;  %v14759_v52 = vld [vmem:[#allocation11 + $0x138] ss:$12 sps:$4 sm:$0xff]  }
 0xb90   :  { %v2223_v43 = vpop.f32.mrb[20].mxu0 }
 0xb91   :  { %v2230_v17 = vadd.f32 %v2223_v43, %v16341_v25  ;;  %v13884_v44 = vpop.f32.mrb[21].mxu0 }
 0xb92   :  { %v2226_v45 = vpop.f32.mrb[22].mxu0 }
 0xb93   :  { %v16555_v46 = vadd.f32 %v2235_v42, %v2230_v17  ;;  %v2231_v47 = vadd.f32 %v2226_v45, %v16347_v27  ;;  %v13885_v35 = vpop.f32.mrb[23].mxu0  ;;  %v2269_v17 = vrot.slane %v16377_v5, %v16575_v36  ;;  %v14746_v5 = vld [vmem:[#allocation11 + $0xe0] ss:$12 sps:$4 sm:$0xff]  }
 0xb95   :  { %v16558_v48 = vadd.f32 %v2235_v42, %v2231_v47  ;;  %2238 = vadd.xlane.f32.xlu1 %v16555_v46 }
 0xb97   :  { %2240 = vadd.xlane.f32.xlu0 %v16558_v48 }
 0xc22   :  { %v2239_v25 = vpop.xlane.xlu1 %2238 }
 0xc23   :  { %v2242_v53 = vmul.f32 0.0078125, %v2239_v25  ;;  %v14738_v25 = vld [vmem:[#allocation16 + $0x38] sm:$0xff]  }
 0xc24   :  { %v2241_v54 = vpop.xlane.xlu0 %2240  ;;  %13413 = vmatpush3.bf16.msra.mxu0 %v14738_v25  ;;  %v14762_v25 = vld [vmem:[#allocation11 + $0x140] ss:$12 sps:$4 sm:$0xff]  }
 0xc25   :  { %v2243_v55 = vmul.f32 0.0078125, %v2241_v54  ;;  %v16563_v27 = vsub.f32 %v16555_v46, %v2242_v53  ;;  %13886 = vmatprep.subr.bf16.mxu0 %v15828_v13  ;;  %v2289_v53 = vld [vmem:[#allocation10] sm:$0x3] }
 0xc26   :  { %v2294_v54 = vrot.slane %v2289_v53, %v16375_v4 }
 0xc27   :  { %v2246_v56 = vmul.f32 %v16563_v27, %v16563_v27  ;;  %v16568_v57 = vsub.f32 %v16558_v48, %v2243_v55  ;;  %v2298_v55 = vrot.slane %v2289_v53, %v16380_v7  ;;  %v14765_v53 = vld [vmem:[#allocation11 + $0x154] ss:$12 sps:$4 sm:$0xff]  }
 0xc29   :  { %2248 = vadd.xlane.f32.xlu0 %v2246_v56  ;;  %v2247_v58 = vmul.f32 %v16568_v57, %v16568_v57 }
 0xc2b   :  { %2250 = vadd.xlane.f32.xlu1 %v2247_v58 }
 0xcb6   :  { %v2249_v29 = vpop.xlane.xlu0 %2248 }
 0xcb7   :  { %v2252_v30 = vmul.f32 0.0078125, %v2249_v29  ;;  %v14741_v29 = vld [vmem:[#allocation11 + $0xc4] ss:$12 sps:$4 sm:$0xff]  }
 0xcb8   :  { %v2251_v31 = vpop.xlane.xlu1 %2250  ;;  %2823 = vmatprep.subr.bf16.mxu1 %v14741_v29 }
 0xcb9   :  { %v2254_v32 = vadd.f32 1e-05, %v2252_v30  ;;  %v2253_v39 = vmul.f32 0.0078125, %v2251_v31  ;;  %v14742_v30 = vld [vmem:[#allocation11 + $0xc8] ss:$12 sps:$4 sm:$0xff]  }
 0xcba   :  { %v14745_v31 = vld [vmem:[#allocation11 + $0xdc] ss:$12 sps:$4 sm:$0xff]  }
 0xcbb   :  { %15103 = vrsqrt.f32 %v2254_v32  ;;  %v2255_v33 = vadd.f32 1e-05, %v2253_v39 }
 0xcbd   :  { %15105 = vrsqrt.f32 %v2255_v33 }
 0xcc5   :  { %v15104_v37 = vpop.eup %15103 }
 0xcc6   :  { %v2258_v38 = vmul.f32 %v15104_v37, %v16563_v27 }
 0xcc7   :  { %v15106_v40 = vpop.eup %15105 }
 0xcc8   :  { %v2259_v42 = vmul.f32 %v15106_v40, %v16568_v57  ;;  %v2264_v43 = vmul.f32 %v2263_v34, %v2258_v38 }
 0xcca   :  { %v2265_v44 = vmul.f32 %v2263_v34, %v2259_v42  ;;  %v2270_v45 = vadd.f32 %v2269_v17, %v2264_v43  ;;  %v14749_v42 = vld [vmem:[#allocation11 + $0xf4] ss:$12 sps:$4 sm:$0xff]   ;;  %v14747_v43 = vld [vmem:[#allocation11 + $0xf0] ss:$12 sps:$4 sm:$0xff]  }
 0xccc   :  { %v2271_v47 = vadd.f32 %v2269_v17, %v2265_v44  ;;  %v14750_v17 = vld [vmem:[#allocation11 + $0xf8] ss:$12 sps:$4 sm:$0xff]  }
 0xccd   :  { %v14753_v44 = vld [vmem:[#allocation11 + $0x10c] ss:$12 sps:$4 sm:$0xff]  }
 0xcce   :  { %v2288_v35 = vpack.c.bf16 %v2271_v47, %v2270_v45  ;;  %v14751_v45 = vld [vmem:[#allocation11 + $0x108] ss:$12 sps:$4 sm:$0xff]   ;;  %v14754_v47 = vld [vmem:[#allocation11 + $0x110] ss:$12 sps:$4 sm:$0xff]  }
 0xcd0   :  { %2414 = vmatmul.mubr.bf16.vlgmr.msra.gmra.mrb[24].mxu1 %v2288_v35  ;;  %v14757_v35 = vld [vmem:[#allocation11 + $0x124] ss:$12 sps:$4 sm:$0xff]  }
 0xcd1   :  { %2855 = vmatprep.mubr.bf16.mxu1 %v15827_v0  ;;  %2824 = vmatpush1.bf16.msra.mxu1 %v14739_v28 }
 0xcd2   :  { %2825 = vmatprep.subr.bf16.mxu1 %v14745_v31 }
 0xda3   :  { %v2415_v27 = vpop.f32.mrb[24].mxu1 }
 0xda4   :  { %v2416_v56 = vadd.f32 %v2415_v27, %v2294_v54  ;;  %v2417_v57 = vpop.f32.mrb[25].mxu1  ;;  %v14769_v27 = vld [vmem:[#allocation11 + $0x16c] ss:$12 sps:$4 sm:$0xff]  }
 0xda5   :  { %v2418_v58 = vadd.f32 %v2417_v57, %v2298_v55  ;;  %v2419_v59 = vpop.f32.mrb[26].mxu1  ;;  %v14770_v57 = vld [vmem:[#allocation11 + $0x170] ss:$12 sps:$4 sm:$0xff]  }
 0xda6   :  { %v2420_v60 = vadd.f32 %v2419_v59, %v2294_v54  ;;  %v2421_v61 = vpop.f32.mrb[27].mxu1  ;;  %v2424_v63 = vmax.f32 %v2416_v56, 0.0  ;;  %v14763_v54 = vld [vmem:[#allocation11 + $0x150] ss:$12 sps:$4 sm:$0xff]   ;;  %v14767_v56 = vld [vmem:[#allocation11 + $0x168] ss:$12 sps:$4 sm:$0xff]  }
 0xda7   :  { %v2422_v62 = vadd.f32 %v2421_v61, %v2298_v55  ;;  %v2425_v2 = vmax.f32 %v2418_v58, 0.0  ;;  %v14766_v55 = vld [vmem:[#allocation11 + $0x158] ss:$12 sps:$4 sm:$0xff]  }
 0xda8   :  { %v2426_v1 = vmax.f32 %v2420_v60, 0.0 }
 0xda9   :  { %v2427_v6 = vmax.f32 %v2422_v62, 0.0 }
 0xdaa   :  { %v2460_v8 = vpack.c.bf16 %v2426_v1, %v2424_v63  ;;  %v16611_v1 = vld [vmem:[#allocation7 + $0x8] sm:$0xff] }
 0xdab   :  { %v2461_v9 = vpack.c.bf16 %v2427_v6, %v2425_v2  ;;  %v2634_v2 = vrot.slane %v16611_v1, %v16375_v4 }
 0xdad   :  { %2590 = vmatprep.mubr.bf16.mxu0 %v2461_v9 }
 0xdae   :  { %2591 = vmatmul.mubr.bf16.vlgmr.msra.gmra.mrb[24].mxu0 %v2460_v8 }
 0xdaf   :  { %13902 = vmatprep.mubr.msk.bf16.mxu0 %vm15829_vm4, %v15828_v13  ;;  %13887 = vmatpush3.bf16.msra.mxu0 %v14742_v30 }
 0xdb0   :  { %13888 = vmatprep.subr.bf16.mxu0 %v15828_v13 }
 0xdb3   :  { %13889 = vmatpush3.bf16.msra.mxu0 %v14746_v5 }
 0xdb4   :  { %13890 = vmatprep.subr.bf16.mxu0 %v15828_v13 }
 0xdb7   :  { %13891 = vmatpush3.bf16.msra.mxu0 %v14750_v17 }
 0xdb8   :  { %13892 = vmatprep.subr.bf16.mxu0 %v15828_v13 }
 0xdbb   :  { %13893 = vmatpush3.bf16.msra.mxu0 %v14754_v47 }
 0xdbc   :  { %13894 = vmatprep.subr.bf16.mxu0 %v15828_v13 }
 0xdbf   :  { %13895 = vmatpush3.bf16.msra.mxu0 %v14758_v50 }
 0xdc0   :  { %13896 = vmatprep.subr.bf16.mxu0 %v15828_v13 }
 0xdc3   :  { %13897 = vmatpush3.bf16.msra.mxu0 %v14762_v25 }
 0xdc4   :  { %13898 = vmatprep.subr.bf16.mxu0 %v15828_v13 }
 0xdc7   :  { %13899 = vmatpush3.bf16.msra.mxu0 %v14766_v55 }
 0xdc8   :  { %13900 = vmatprep.subr.bf16.mxu0 %v15828_v13 }
 0xdcb   :  { %13901 = vmatpush3.bf16.msra.mxu0 %v14770_v57 }
 0xdcc   :  { %13946 = vmatprep.subr.mxu0 %v15828_v13 }
 0xe81   :  { %v13414_v11 = vpop.f32.mrb[24].mxu0 }
 0xe82   :  { %v13415_v12 = vpop.f32.mrb[25].mxu0 }
 0xe83   :  { %v13416_v14 = vadd.f32 %v13415_v12, %v13414_v11  ;;  %v13417_v16 = vpop.f32.mrb[26].mxu0 }
 0xe84   :  { %v13418_v19 = vpop.f32.mrb[27].mxu0 }
 0xe85   :  { %v2599_v20 = vadd.f32 %v13416_v14, %v16555_v46  ;;  %v13419_v22 = vadd.f32 %v13418_v19, %v13417_v16  ;;  %v14743_v46 = vld [vmem:[#allocation11 + $0xd8] ss:$12 sps:$4 sm:$0xff]   ;;  %v2640_v14 = vrot.slane %v16611_v1, %v16380_v7 }
 0xe86   :  { %2826 = vmatpush1.bf16.msra.mxu1 %v14743_v46 }
 0xe87   :  { %v2600_v23 = vadd.f32 %v13419_v22, %v16558_v48  ;;  %v16594_v24 = vadd.f32 %v2604_v18, %v2599_v20  ;;  %2827 = vmatprep.subr.bf16.mxu1 %v14749_v42  ;;  %v2678_v22 = vld [vmem:[#allocation8 + $0x3] sm:$0x7] }
 0xe88   :  { %v2683_v30 = vrot.slane %v2678_v22, %v16375_v4  ;;  %v2691_v31 = vrot.slane %v2678_v22, %v16393_v21 }
 0xe89   :  { %2609 = vadd.xlane.f32.xlu0 %v16594_v24  ;;  %v16597_v26 = vadd.f32 %v2604_v18, %v2600_v23  ;;  %v2687_v23 = vrot.slane %v2678_v22, %v16380_v7 }
 0xe8a   :  { %2828 = vmatpush1.bf16.msra.mxu1 %v14747_v43 }
 0xe8b   :  { %2611 = vadd.xlane.f32.xlu1 %v16597_v26  ;;  %2829 = vmatprep.subr.bf16.mxu1 %v14753_v44 }
 0xe8e   :  { %2830 = vmatpush1.bf16.msra.mxu1 %v14751_v45 }
 0xe8f   :  { %2831 = vmatprep.subr.bf16.mxu1 %v14757_v35 }
 0xe92   :  { %2832 = vmatpush1.bf16.msra.mxu1 %v14755_v49 }
 0xe93   :  { %2833 = vmatprep.subr.bf16.mxu1 %v14761_v51 }
 0xe96   :  { %2834 = vmatpush1.bf16.msra.mxu1 %v14759_v52 }
 0xe97   :  { %2835 = vmatprep.subr.bf16.mxu1 %v14765_v53 }
 0xe9a   :  { %2836 = vmatpush1.bf16.msra.mxu1 %v14763_v54 }
 0xe9b   :  { %2837 = vmatprep.subr.bf16.mxu1 %v14769_v27 }
 0xe9e   :  { %2838 = vmatpush1.bf16.msra.mxu1 %v14767_v56 }
 0xe9f   :  { %13906 = vmatprep.subr.mxu1 %v15828_v13 }
 0xf16   :  { %v2610_v48 = vpop.xlane.xlu0 %2609 }
 0xf17   :  { %v2613_v32 = vmul.f32 0.0078125, %v2610_v48 }
 0xf18   :  { %v2612_v39 = vpop.xlane.xlu1 %2611 }
 0xf19   :  { %v2614_v33 = vmul.f32 0.0078125, %v2612_v39  ;;  %v2615_v34 = vsub.f32 %v16594_v24, %v2613_v32 }
 0xf1b   :  { %v2617_v37 = vmul.f32 %v2615_v34, %v2615_v34  ;;  %v2616_v38 = vsub.f32 %v16597_v26, %v2614_v33 }
 0xf1d   :  { %2619 = vadd.xlane.f32.xlu0 %v2617_v37  ;;  %v2618_v40 = vmul.f32 %v2616_v38, %v2616_v38 }
 0xf1f   :  { %2621 = vadd.xlane.f32.xlu1 %v2618_v40 }
 0xfaa   :  { %v2620_v58 = vpop.xlane.xlu0 %2619 }
 0xfab   :  { %v2623_v59 = vmul.f32 0.0078125, %v2620_v58 }
 0xfac   :  { %v2622_v60 = vpop.xlane.xlu1 %2621 }
 0xfad   :  { %v2625_v61 = vadd.f32 1e-05, %v2623_v59  ;;  %v2624_v62 = vmul.f32 0.0078125, %v2622_v60 }
 0xfaf   :  { %15107 = vrsqrt.f32 %v2625_v61  ;;  %v2626_v63 = vadd.f32 1e-05, %v2624_v62 }
 0xfb1   :  { %15109 = vrsqrt.f32 %v2626_v63 }
 0xfb9   :  { %v15108_v6 = vpop.eup %15107 }
 0xfba   :  { %v2629_v8 = vmul.f32 %v15108_v6, %v2615_v34 }
 0xfbb   :  { %v15110_v9 = vpop.eup %15109 }
 0xfbc   :  { %v2630_v11 = vmul.f32 %v15110_v9, %v2616_v38  ;;  %v2635_v12 = vmul.f32 %v2634_v2, %v2629_v8 }
 0xfbe   :  { %v2636_v16 = vmul.f32 %v2634_v2, %v2630_v11  ;;  %v2641_v18 = vadd.f32 %v2640_v14, %v2635_v12 }
 0xfc0   :  { %v2642_v19 = vadd.f32 %v2640_v14, %v2636_v16 }
 0xfc2   :  { %v2676_v20 = vpack.c.bf16 %v2642_v19, %v2641_v18 }
 0xfc4   :  { %2856 = vmatmul.mubr.bf16.vlgmr.msra.gmra.mrb[28].mxu1 %v2676_v20  ;;  %13903 = vmatmul.mubr.bf16.vlgmr.msra.gmra.mrb[28].mxu0 %v2676_v20 }
 0xfc5   :  { %13908 = vmatprep.mubr.msk.f32.mxu1 %vm15829_vm4, %v15828_v13  ;;  %13948 = vmatprep.mubr.msk.f32.mxu0 %vm15829_vm4, %v15828_v13 }
0x1097   :  { %v2857_v28 = vpop.f32.mrb[28].mxu1  ;;  %v2900_v29 = vpop.f32.mrb[28].mxu0 }
0x1098   :  { %v2859_v5 = vpop.f32.mrb[29].mxu1  ;;  %v13904_v46 = vpop.f32.mrb[29].mxu0  ;;  %v16629_v40 = vadd.f32 %v2857_v28, %v2683_v30  ;;  %v16632_v42 = vadd.f32 %v2900_v29, %v2691_v31 }
0x1099   :  { %v2860_v48 = vadd.f32 %v2859_v5, %v2687_v23  ;;  %v2861_v32 = vpop.f32.mrb[30].mxu1  ;;  %v2903_v39 = vpop.f32.mrb[30].mxu0 }
0x109a   :  { %v16624_v33 = vadd.f32 %v2903_v39, %v2691_v31  ;;  %v2863_v34 = vpop.f32.mrb[31].mxu1  ;;  %v13905_v37 = vpop.f32.mrb[31].mxu0  ;;  %v16636_v43 = vadd.f32 %v2861_v32, %v2683_v30 }
0x109b   :  { %v16626_v38 = vadd.f32 %v2863_v34, %v2687_v23  ;;  %13907 = vmatpush3.xpose.msk.msra.mxu1 %vm770_vm5, %v2860_v48 }
0x109c   :  { %13911 = vmatprep.subr.mxu1 %v15828_v13 }
0x109d   :  { %13947 = vmatpush3.xpose.msk.msra.mxu0 %vm770_vm5, %v16626_v38 }
0x109e   :  { %13909 = vmatmul.mubr.msk.f32.vlgmr.msra.gmra.mrb[32].mxu1 %vm770_vm5, %v16629_v40  ;;  %13956 = vmatprep.subr.mxu0 %v15828_v13 }
0x109f   :  { %13912 = vmatpush3.msra.mxu1 %v16632_v42  ;;  %13913 = vmatprep.mubr.msk.f32.mxu1 %vm15829_vm4, %v15828_v13 }
0x10a0   :  { %13949 = vmatmul.mubr.msk.f32.vlgmr.msra.gmra.mrb[18].mxu0 %vm770_vm5, %v16636_v43  ;;  %13916 = vmatprep.subr.mxu1 %v15828_v13 }
0x10a1   :  { %13958 = vmatprep.mubr.msk.f32.mxu0 %vm15829_vm4, %v15828_v13 }
0x1171   :  { %v2979_v17 = vpop.f32.mrb[32].mxu1 }
0x1172   :  { %v2983_v44 = vmul.f32 0.17677669, %v2979_v17  ;;  %v13910_v45 = vpop.f32.mrb[33].mxu1 }
0x1173   :  { %v16649_v47 = vpop.f32.mrb[18].mxu0 }
0x1174   :  { %v13950_v35 = vpop.f32.mrb[19].mxu0  ;;  %v2984_v49 = vsel %vm848_vm6, %v2983_v44, -inf  ;;  %v3658_v5 = vmul.f32 0.17677669, %v16649_v47 }
0x1175   :  { %2985 = vmax.xlane.f32.xlu0 %v2984_v49 }
0x1176   :  { %v3659_v46 = vsel %vm848_vm6, %v3658_v5, -inf }
0x118b   :  { %3070 = vrot.lane.b32.xlu0 %v2860_v48, %s15830_s17 }
0x1202   :  { %v2986_v50 = vpop.xlane.xlu0 %2985 }
0x1203   :  { %v2987_v51 = vsub.f32 %v2983_v44, %v2986_v50 }
0x1205   :  { %v2988_v52 = vmul.f32 1.442695, %v2987_v51 }
0x1206   :  { %v3071_v56 = vpop.permute.xlu0 %3070 }
0x1207   :  { %15111 = vpow2.f32 %v2988_v52 }
0x1211   :  { %v15112_v25 = vpop.eup %15111 }
0x1212   :  { %v2990_v53 = vsel %vm848_vm6, %v15112_v25, 0.0 }
0x1213   :  { %2991 = vadd.xlane.f32.xlu1 %v2990_v53 }
0x1224   :  { %3068 = vrot.lane.b32.xlu1 %v16629_v40, %s15830_s17 }
0x12a0   :  { %v2992_v54 = vpop.xlane.xlu1 %2991 }
0x12a1   :  { %15113 = vrcp.f32 %v2992_v54 }
0x12a4   :  { %v3069_v57 = vpop.permute.xlu1 %3068 }
0x12ab   :  { %v15114_v55 = vpop.eup %15113 }
0x12ac   :  { %v2994_v27 = vmul.f32 %v15114_v55, %v15112_v25 }
0x12ae   :  { %13914 = vmatmul.mubr.msk.f32.vlgmr.msra.gmra.mrb[34].mxu1 %vm848_vm6, %v2994_v27 }
0x12af   :  { %13917 = vmatpush3.xpose.msk.msra.mxu1 %vm770_vm5, %v3071_v56  ;;  %13918 = vmatprep.mubr.msk.f32.mxu1 %vm15829_vm4, %v15828_v13 }
0x12b0   :  { %13921 = vmatprep.subr.mxu1 %v15828_v13 }
0x12b2   :  { %13919 = vmatmul.mubr.msk.f32.vlgmr.msra.gmra.mrb[36].mxu1 %vm770_vm5, %v3069_v57 }
0x12b3   :  { %13923 = vmatprep.mubr.msk.f32.mxu1 %vm15829_vm4, %v15828_v13 }
0x1381   :  { %v16664_v58 = vpop.f32.mrb[34].mxu1 }
0x1382   :  { %v13915_v59 = vpop.f32.mrb[35].mxu1 }
0x1385   :  { %v3142_v60 = vpop.f32.mrb[36].mxu1 }
0x1386   :  { %v3146_v61 = vmul.f32 0.17677669, %v3142_v60  ;;  %v13920_v62 = vpop.f32.mrb[37].mxu1 }
0x1388   :  { %v3147_v63 = vsel %vm848_vm6, %v3146_v61, -inf }
0x1389   :  { %3148 = vmax.xlane.f32.xlu1 %v3147_v63 }
0x139a   :  { %3237 = vrot.lane.b32.xlu1 %v2860_v48, %s15813_s4 }
0x139e   :  { %3235 = vrot.lane.b32.xlu1 %v16629_v40, %s15813_s4 }
0x13a2   :  { %3403 = vrot.lane.b32.xlu1 %v2860_v48, %s15809_s14 }
0x1416   :  { %v3149_v2 = vpop.xlane.xlu1 %3148 }
0x1417   :  { %v3150_v6 = vsub.f32 %v3146_v61, %v3149_v2 }
0x1419   :  { %v3151_v8 = vmul.f32 1.442695, %v3150_v6 }
0x141a   :  { %v3238_v18 = vpop.permute.xlu1 %3237 }
0x141b   :  { %15115 = vpow2.f32 %v3151_v8 }
0x141e   :  { %v3236_v20 = vpop.permute.xlu1 %3235 }
0x1425   :  { %v15116_v9 = vpop.eup %15115 }
0x1426   :  { %v3153_v11 = vsel %vm848_vm6, %v15116_v9, 0.0 }
0x1427   :  { %3154 = vadd.xlane.f32.xlu0 %v3153_v11 }
0x143d   :  { %3159 = vrot.lane.b32.xlu0 %v16632_v42, %s15830_s17 }
0x14b4   :  { %v3155_v12 = vpop.xlane.xlu0 %3154 }
0x14b5   :  { %15117 = vrcp.f32 %v3155_v12 }
0x14b8   :  { %v3160_v14 = vpop.permute.xlu0 %3159 }
0x14b9   :  { %13922 = vmatpush3.msra.mxu1 %v3160_v14 }
0x14ba   :  { %13926 = vmatprep.subr.mxu1 %v15828_v13 }
0x14bf   :  { %v15118_v16 = vpop.eup %15117 }
0x14c0   :  { %v3157_v19 = vmul.f32 %v15118_v16, %v15116_v9 }
0x14c2   :  { %13924 = vmatmul.mubr.msk.f32.vlgmr.msra.gmra.mrb[38].mxu1 %vm848_vm6, %v3157_v19 }
0x14c3   :  { %13927 = vmatpush3.xpose.msk.msra.mxu1 %vm770_vm5, %v3238_v18  ;;  %13928 = vmatprep.mubr.msk.f32.mxu1 %vm15829_vm4, %v15828_v13 }
0x14c4   :  { %13931 = vmatprep.subr.mxu1 %v15828_v13 }
0x14c6   :  { %13929 = vmatmul.mubr.msk.f32.vlgmr.msra.gmra.mrb[40].mxu1 %vm770_vm5, %v3236_v20 }
0x14c7   :  { %13933 = vmatprep.mubr.msk.f32.mxu1 %vm15829_vm4, %v15828_v13 }
0x1595   :  { %v16683_v22 = vpop.f32.mrb[38].mxu1 }
0x1596   :  { %v13925_v23 = vpop.f32.mrb[39].mxu1 }
0x1599   :  { %v3309_v28 = vpop.f32.mrb[40].mxu1 }
0x159a   :  { %v3313_v29 = vmul.f32 0.17677669, %v3309_v28  ;;  %v13930_v30 = vpop.f32.mrb[41].mxu1 }
0x159c   :  { %v3314_v31 = vsel %vm848_vm6, %v3313_v29, -inf }
0x159d   :  { %3315 = vmax.xlane.f32.xlu0 %v3314_v31 }
0x15b3   :  { %3325 = vrot.lane.b32.xlu0 %v16632_v42, %s15813_s4 }
0x15b7   :  { %3401 = vrot.lane.b32.xlu0 %v16629_v40, %s15809_s14 }
0x15bb   :  { %3743 = vrot.lane.b32.xlu0 %v16636_v43, %s15830_s17 }
0x15bf   :  { %3910 = vrot.lane.b32.xlu0 %v16636_v43, %s15813_s4 }
0x15c3   :  { %4076 = vrot.lane.b32.xlu0 %v16636_v43, %s15809_s14  ;;  %v3404_v43 = vpop.permute.xlu1 %3403 }
0x15e2   :  { %3660 = vmax.xlane.f32.xlu0 %v3659_v46 }
0x162a   :  { %v3316_v48 = vpop.xlane.xlu0 %3315 }
0x162b   :  { %v3317_v32 = vsub.f32 %v3313_v29, %v3316_v48 }
0x162d   :  { %v3318_v39 = vmul.f32 1.442695, %v3317_v32 }
0x162e   :  { %v3326_v34 = vpop.permute.xlu0 %3325 }
0x162f   :  { %15119 = vpow2.f32 %v3318_v39  ;;  %13932 = vmatpush3.msra.mxu1 %v3326_v34 }
0x1630   :  { %13936 = vmatprep.subr.mxu1 %v15828_v13 }
0x1632   :  { %v3402_v17 = vpop.permute.xlu0 %3401 }
0x1636   :  { %v3744_v45 = vpop.permute.xlu0 %3743 }
0x1639   :  { %v15120_v37 = vpop.eup %15119 }
0x163a   :  { %v3320_v40 = vsel %vm848_vm6, %v15120_v37, 0.0  ;;  %v3911_v49 = vpop.permute.xlu0 %3910 }
0x163b   :  { %3321 = vadd.xlane.f32.xlu1 %v3320_v40 }
0x163e   :  { %v4077_v52 = vpop.permute.xlu0 %4076 }
0x164c   :  { %3745 = vrot.lane.b32.xlu1 %v16626_v38, %s15830_s17 }
0x1650   :  { %3912 = vrot.lane.b32.xlu1 %v16626_v38, %s15813_s4 }
0x1654   :  { %4078 = vrot.lane.b32.xlu1 %v16626_v38, %s15809_s14 }
0x166f   :  { %v3661_v25 = vpop.xlane.xlu0 %3660 }
0x1670   :  { %v3662_v53 = vsub.f32 %v3658_v5, %v3661_v25 }
0x1672   :  { %v3663_v54 = vmul.f32 1.442695, %v3662_v53 }
0x16c8   :  { %v3322_v44 = vpop.xlane.xlu1 %3321 }
0x16c9   :  { %15121 = vrcp.f32 %v3322_v44 }
0x16ca   :  { %15123 = vpow2.f32 %v3663_v54 }
0x16cc   :  { %v3746_v47 = vpop.permute.xlu1 %3745 }
0x16cd   :  { %13957 = vmatpush3.xpose.msk.msra.mxu0 %vm770_vm5, %v3746_v47 }
0x16ce   :  { %13966 = vmatprep.subr.mxu0 %v15828_v13 }
0x16d0   :  { %v3913_v35 = vpop.permute.xlu1 %3912  ;;  %13959 = vmatmul.mubr.msk.f32.vlgmr.msra.gmra.mrb[32].mxu0 %vm770_vm5, %v3744_v45 }
0x16d1   :  { %13967 = vmatpush3.xpose.msk.msra.mxu0 %vm770_vm5, %v3913_v35  ;;  %13968 = vmatprep.mubr.msk.f32.mxu0 %vm15829_vm4, %v15828_v13 }
0x16d2   :  { %13976 = vmatprep.subr.mxu0 %v15828_v13 }
0x16d3   :  { %v15122_v38 = vpop.eup %15121 }
0x16d4   :  { %v4079_v50 = vpop.permute.xlu1 %4078  ;;  %13969 = vmatmul.mubr.msk.f32.vlgmr.msra.gmra.mrb[34].mxu0 %vm770_vm5, %v3911_v49  ;;  %v3324_v51 = vmul.f32 %v15122_v38, %v15120_v37  ;;  %v15124_v14 = vpop.eup %15123 }
0x16d5   :  { %13977 = vmatpush3.xpose.msk.msra.mxu0 %vm770_vm5, %v4079_v50  ;;  %13978 = vmatprep.mubr.msk.f32.mxu0 %vm15829_vm4, %v15828_v13  ;;  %v3665_v19 = vsel %vm848_vm6, %v15124_v14, 0.0 }
0x16d6   :  { %13934 = vmatmul.mubr.msk.f32.vlgmr.msra.gmra.mrb[42].mxu1 %vm848_vm6, %v3324_v51  ;;  %13986 = vmatprep.subr.bf16.mxu0 %v15828_v13 }
0x16d7   :  { %13937 = vmatpush3.xpose.msk.msra.mxu1 %vm770_vm5, %v3404_v43  ;;  %13938 = vmatprep.mubr.msk.f32.mxu1 %vm15829_vm4, %v15828_v13 }
0x16d8   :  { %13979 = vmatmul.mubr.msk.f32.vlgmr.msra.gmra.mrb[36].mxu0 %vm770_vm5, %v4077_v52  ;;  %13941 = vmatprep.subr.mxu1 %v15828_v13 }
0x16d9   :  { %14002 = vmatprep.mubr.msk.bf16.mxu0 %vm15829_vm4, %v15828_v13 }
0x16da   :  { %13939 = vmatmul.mubr.msk.f32.vlgmr.msra.gmra.mrb[44].mxu1 %vm770_vm5, %v3402_v17 }
0x16db   :  { %13943 = vmatprep.mubr.msk.f32.mxu1 %vm15829_vm4, %v15828_v13 }
0x17a3   :  { %v3817_v55 = vpop.f32.mrb[32].mxu0 }
0x17a4   :  { %v3821_v27 = vmul.f32 0.17677669, %v3817_v55  ;;  %v13960_v56 = vpop.f32.mrb[33].mxu0 }
0x17a6   :  { %v3822_v57 = vsel %vm848_vm6, %v3821_v27, -inf }
0x17a7   :  { %3823 = vmax.xlane.f32.xlu0 %v3822_v57  ;;  %v3984_v59 = vpop.f32.mrb[34].mxu0 }
0x17a8   :  { %v13970_v60 = vpop.f32.mrb[35].mxu0  ;;  %v3988_v16 = vmul.f32 0.17677669, %v3984_v59 }
0x17a9   :  { %v16730_v61 = vpop.f32.mrb[42].mxu1 }
0x17aa   :  { %v13935_v62 = vpop.f32.mrb[43].mxu1  ;;  %v3989_v20 = vsel %vm848_vm6, %v3988_v16, -inf }
0x17ab   :  { %v4150_v63 = vpop.f32.mrb[36].mxu0 }
0x17ac   :  { %v4154_v2 = vmul.f32 0.17677669, %v4150_v63  ;;  %v13980_v6 = vpop.f32.mrb[37].mxu0 }
0x17ad   :  { %v3475_v8 = vpop.f32.mrb[44].mxu1 }
0x17ae   :  { %v3479_v9 = vmul.f32 0.17677669, %v3475_v8  ;;  %v13940_v11 = vpop.f32.mrb[45].mxu1  ;;  %v4155_v12 = vsel %vm848_vm6, %v4154_v2, -inf  ;;  %v14771_v8 = vld [vmem:[#allocation13 + $0x40] sm:$0xff]  }
0x17af   :  { %4156 = vmax.xlane.f32.xlu0 %v4155_v12  ;;  %13987 = vmatpush3.bf16.msra.mxu0 %v14771_v8  ;;  %v14773_v11 = vld [vmem:[#allocation13 + $0x50] sm:$0xff]   ;;  %v14774_v12 = vld [vmem:[#allocation13 + $0x58] sm:$0xff]  }
0x17b0   :  { %v3480_v18 = vsel %vm848_vm6, %v3479_v9, -inf  ;;  %13988 = vmatprep.subr.bf16.mxu0 %v15828_v13 }
0x17b1   :  { %3481 = vmax.xlane.f32.xlu1 %v3480_v18  ;;  %v14776_v18 = vld [vmem:[#allocation13 + $0x68] sm:$0xff]  }
0x17b3   :  { %3666 = vadd.xlane.f32.xlu0 %v3665_v19 }
0x17b5   :  { %3990 = vmax.xlane.f32.xlu1 %v3989_v20 }
0x1834   :  { %v3824_v23 = vpop.xlane.xlu0 %3823 }
0x1835   :  { %v3825_v28 = vsub.f32 %v3821_v27, %v3824_v23  ;;  %v14777_v23 = vld [vmem:[#allocation13 + $0x70] sm:$0xff]  }
0x1837   :  { %v3826_v29 = vmul.f32 1.442695, %v3825_v28 }
0x1839   :  { %15125 = vpow2.f32 %v3826_v29 }
0x183c   :  { %v4157_v30 = vpop.xlane.xlu0 %4156 }
0x183d   :  { %v4158_v31 = vsub.f32 %v4154_v2, %v4157_v30  ;;  %v14778_v30 = vld [vmem:[#allocation13 + $0x78] sm:$0xff]  }
0x183e   :  { %v3482_v5 = vpop.xlane.xlu1 %3481 }
0x183f   :  { %v4159_v46 = vmul.f32 1.442695, %v4158_v31  ;;  %v3483_v48 = vsub.f32 %v3479_v9, %v3482_v5  ;;  %v14772_v9 = vld [vmem:[#allocation13 + $0x48] sm:$0xff]  }
0x1840   :  { %v3667_v51 = vpop.xlane.xlu0 %3666  ;;  %13989 = vmatpush3.bf16.msra.mxu0 %v14772_v9 }
0x1841   :  { %15127 = vpow2.f32 %v4159_v46  ;;  %v3484_v32 = vmul.f32 1.442695, %v3483_v48  ;;  %13990 = vmatprep.subr.bf16.mxu0 %v15828_v13 }
0x1842   :  { %v3991_v39 = vpop.xlane.xlu1 %3990 }
0x1843   :  { %v15126_v34 = vpop.eup %15125  ;;  %15129 = vpow2.f32 %v3484_v32  ;;  %v3992_v37 = vsub.f32 %v3988_v16, %v3991_v39 }
0x1844   :  { %v3828_v40 = vsel %vm848_vm6, %v15126_v34, 0.0  ;;  %13991 = vmatpush3.bf16.msra.mxu0 %v14773_v11 }
0x1845   :  { %v3993_v43 = vmul.f32 1.442695, %v3992_v37  ;;  %3829 = vadd.xlane.f32.xlu1 %v3828_v40  ;;  %13992 = vmatprep.subr.bf16.mxu0 %v15828_v13 }
0x1847   :  { %15131 = vpow2.f32 %v3993_v43 }
0x1848   :  { %13993 = vmatpush3.bf16.msra.mxu0 %v14774_v12 }
0x1849   :  { %13994 = vmatprep.subr.bf16.mxu0 %v15828_v13 }
0x184b   :  { %v15128_v17 = vpop.eup %15127 }
0x184c   :  { %v4161_v44 = vsel %vm848_vm6, %v15128_v17, 0.0 }
0x184d   :  { %v15130_v45 = vpop.eup %15129  ;;  %4162 = vadd.xlane.f32.xlu1 %v4161_v44 }
0x184e   :  { %v3486_v47 = vsel %vm848_vm6, %v15130_v45, 0.0 }
0x1851   :  { %v15132_v35 = vpop.eup %15131  ;;  %3487 = vadd.xlane.f32.xlu1 %v3486_v47 }
0x1852   :  { %v3995_v49 = vsel %vm848_vm6, %v15132_v35, 0.0 }
0x1853   :  { %3996 = vadd.xlane.f32.xlu0 %v3995_v49 }
0x1862   :  { %3834 = vrot.lane.b32.xlu1 %v16624_v33, %s15830_s17 }
0x1866   :  { %4000 = vrot.lane.b32.xlu1 %v16624_v33, %s15813_s4 }
0x1869   :  { %3491 = vrot.lane.b32.xlu0 %v16632_v42, %s15809_s14 }
0x186d   :  { %4166 = vrot.lane.b32.xlu0 %v16624_v33, %s15809_s14 }
0x18d2   :  { %v3830_v38 = vpop.xlane.xlu1 %3829 }
0x18da   :  { %v4163_v50 = vpop.xlane.xlu1 %4162 }
0x18de   :  { %v3488_v52 = vpop.xlane.xlu1 %3487 }
0x18df   :  { %15133 = vrcp.f32 %v3488_v52 }
0x18e0   :  { %v3997_v25 = vpop.xlane.xlu0 %3996  ;;  %15135 = vrcp.f32 %v3667_v51 }
0x18e1   :  { %15137 = vrcp.f32 %v3830_v38 }
0x18e2   :  { %15139 = vrcp.f32 %v3997_v25  ;;  %v3835_v42 = vpop.permute.xlu1 %3834 }
0x18e3   :  { %15141 = vrcp.f32 %v4163_v50 }
0x18e4   :  { %v3492_v53 = vpop.permute.xlu0 %3491 }
0x18e5   :  { %13942 = vmatpush3.msra.mxu1 %v3492_v53 }
0x18e6   :  { %13951 = vmatprep.subr.mxu1 %v15828_v13  ;;  %v4001_v62 = vpop.permute.xlu1 %4000 }
0x18e8   :  { %v4167_v2 = vpop.permute.xlu0 %4166 }
0x18e9   :  { %v15134_v54 = vpop.eup %15133 }
0x18ea   :  { %v3490_v55 = vmul.f32 %v15134_v54, %v15130_v45  ;;  %v15136_v27 = vpop.eup %15135  ;;  %v4369_v54 = vrot.slane %v16611_v1, %v16550_v41 }
0x18eb   :  { %v3669_v56 = vmul.f32 %v15136_v27, %v15124_v14  ;;  %v15138_v57 = vpop.eup %15137  ;;  %v14775_v14 = vld [vmem:[#allocation13 + $0x60] sm:$0xff]  }
0x18ec   :  { %13944 = vmatmul.mubr.msk.f32.vlgmr.msra.gmra.mrb[46].mxu1 %vm848_vm6, %v3490_v55  ;;  %v3832_v59 = vmul.f32 %v15138_v57, %v15126_v34  ;;  %v15140_v60 = vpop.eup %15139  ;;  %13995 = vmatpush3.bf16.msra.mxu0 %v14775_v14 }
0x18ed   :  { %13952 = vmatpush3.msra.mxu1 %v16624_v33  ;;  %13953 = vmatprep.mubr.msk.f32.mxu1 %vm15829_vm4, %v15828_v13  ;;  %v3999_v33 = vmul.f32 %v15140_v60, %v15132_v35  ;;  %v15142_v63 = vpop.eup %15141 }
0x18ee   :  { %13961 = vmatprep.subr.mxu1 %v15828_v13  ;;  %v4165_v6 = vmul.f32 %v15142_v63, %v15128_v17  ;;  %13996 = vmatprep.subr.bf16.mxu0 %v15828_v13  ;;  %v14781_v63 = vld [vmem:[#allocation14 + $0x84] ss:$8 sps:$4 sm:$0xff]  }
0x18f0   :  { %13954 = vmatmul.mubr.msk.f32.vlgmr.msra.gmra.mrb[48].mxu1 %vm848_vm6, %v3669_v56  ;;  %13997 = vmatpush3.bf16.msra.mxu0 %v14776_v18  ;;  %v14787_v18 = vld [vmem:[#allocation14 + $0xa4] ss:$8 sps:$4 sm:$0xff]  }
0x18f1   :  { %13962 = vmatpush3.msra.mxu1 %v3835_v42  ;;  %13963 = vmatprep.mubr.msk.f32.mxu1 %vm15829_vm4, %v15828_v13 }
0x18f2   :  { %13971 = vmatprep.subr.mxu1 %v15828_v13  ;;  %13998 = vmatprep.subr.bf16.mxu0 %v15828_v13 }
0x18f4   :  { %13964 = vmatmul.mubr.msk.f32.vlgmr.msra.gmra.mrb[50].mxu1 %vm848_vm6, %v3832_v59  ;;  %13999 = vmatpush3.bf16.msra.mxu0 %v14777_v23  ;;  %v14788_v23 = vld [vmem:[#allocation14 + $0xb0] ss:$8 sps:$4 sm:$0xff]  }
0x18f5   :  { %13972 = vmatpush3.msra.mxu1 %v4001_v62  ;;  %13973 = vmatprep.mubr.msk.f32.mxu1 %vm15829_vm4, %v15828_v13  ;;  %v4780_v62 = vld [vmem:[%s17884_s21] sm:$0xff] }
0x18f6   :  { %13981 = vmatprep.subr.mxu1 %v15828_v13  ;;  %14000 = vmatprep.subr.bf16.mxu0 %v15828_v13 }
0x18f8   :  { %13974 = vmatmul.mubr.msk.f32.vlgmr.msra.gmra.mrb[52].mxu1 %vm848_vm6, %v3999_v33  ;;  %14001 = vmatpush3.bf16.msra.mxu0 %v14778_v30  ;;  %v14779_v33 = vld [vmem:[#allocation14 + $0x80] ss:$8 sps:$4 sm:$0xff]  }
0x18f9   :  { %13982 = vmatpush3.msra.mxu1 %v4167_v2  ;;  %13983 = vmatprep.mubr.msk.f32.mxu1 %vm15829_vm4, %v15828_v13  ;;  %v14782_v2 = vld [vmem:[#allocation14 + $0x90] ss:$8 sps:$4 sm:$0xff]   ;;  %v14791_v30 = vld [vmem:[#allocation14 + $0xc0] ss:$8 sps:$4 sm:$0xff]  }
0x18fa   :  { %4517 = vmatprep.subr.bf16.mxu1 %v14781_v63  ;;  %v4403_v63 = vrot.slane %v16611_v1, %v16575_v36 }
0x18fc   :  { %13984 = vmatmul.mubr.msk.f32.vlgmr.msra.gmra.mrb[54].mxu1 %vm848_vm6, %v4165_v6 }
0x18fd   :  { %4549 = vmatprep.mubr.bf16.mxu1 %v15827_v0  ;;  %4518 = vmatpush1.bf16.msra.mxu1 %v14779_v33 }
0x19bf   :  { %v3563_v16 = vpop.f32.mrb[46].mxu1 }
0x19c0   :  { %v13945_v19 = vpop.f32.mrb[47].mxu1 }
0x19c1   :  { %v14785_v19 = vld [vmem:[#allocation14 + $0xa0] ss:$8 sps:$4 sm:$0xff]  }
0x19c3   :  { %v3739_v20 = vpop.f32.mrb[48].mxu1 }
0x19c4   :  { %v13955_v28 = vpop.f32.mrb[49].mxu1 }
0x19c5   :  { %v14793_v28 = vld [vmem:[#allocation14 + $0xc4] ss:$8 sps:$4 sm:$0xff]  }
0x19c7   :  { %v3906_v29 = vpop.f32.mrb[50].mxu1 }
0x19c8   :  { %v14583_v31 = vpack.i.bf16 %v3906_v29, %v16683_v22  ;;  %v13965_v5 = vpop.f32.mrb[51].mxu1  ;;  %v4781_v29 = vld [vmem:[%s17884_s21 + $0x8] sm:$0xff] }
0x19c9   :  { %v14794_v5 = vld [vmem:[#allocation14 + $0xd0] ss:$8 sps:$4 sm:$0xff]  }
0x19ca   :  { %14584 = vrot.lane.b32.xlu1 %v14583_v31, %s15809_s14  ;;  %v14796_v31 = vld [vmem:[#allocation14 + $0xd4] ss:$8 sps:$4 sm:$0xff]  }
0x19cb   :  { %v4072_v46 = vpop.f32.mrb[52].mxu1 }
0x19cc   :  { %v14588_v48 = vpack.i.bf16 %v4072_v46, %v16730_v61  ;;  %v13975_v32 = vpop.f32.mrb[53].mxu1  ;;  %v14799_v46 = vld [vmem:[#allocation14 + $0xe4] ss:$8 sps:$4 sm:$0xff]  }
0x19cd   :  { %v14802_v32 = vld [vmem:[#allocation14 + $0xf4] ss:$8 sps:$4 sm:$0xff]  }
0x19ce   :  { %14589 = vrot.lane.b32.xlu0 %v14588_v48, %s15813_s4  ;;  %v14797_v48 = vld [vmem:[#allocation14 + $0xe0] ss:$8 sps:$4 sm:$0xff]  }
0x19cf   :  { %v4238_v39 = vpop.f32.mrb[54].mxu1 }
0x19d0   :  { %v14593_v34 = vpack.i.bf16 %v4238_v39, %v3563_v16  ;;  %v13985_v37 = vpop.f32.mrb[55].mxu1  ;;  %v14800_v39 = vld [vmem:[#allocation14 + $0xf0] ss:$8 sps:$4 sm:$0xff]  }
0x19d1   :  { %v4783_v37 = vld [vmem:[#allocation5 + $0x8] sm:$0x3] }
0x19d2   :  { %14594 = vrot.lane.b32.xlu1 %v14593_v34, %s15830_s17  ;;  %v4782_v34 = vld [vmem:[#allocation5] sm:$0xff] }
0x1a3c   :  { %v14585_v40 = vpop.permute.xlu1 %14584 }
0x1a3d   :  { %v14587_v17 = vunpack.i.h.bf16 %v14585_v40  ;;  %v14586_v44 = vunpack.i.l.bf16 %v14585_v40  ;;  %v14525_v40 = vpack.c.bf16 %v4783_v37, %v4782_v34 }
0x1a3f   :  { %v4254_v35 = vsel %vm770_vm5, %v3739_v20, %v14587_v17  ;;  %v3579_v61 = vsel %vm770_vm5, %v16664_v58, %v14586_v44  ;;  %v14790_v20 = vld [vmem:[#allocation14 + $0xb4] ss:$8 sps:$4 sm:$0xff]   ;;  %v14803_v17 = vld [vmem:[#allocation16 + $0xc0] sm:$0xff]  }
0x1a40   :  { %v14590_v43 = vpop.permute.xlu0 %14589  ;;  %v14804_v44 = vld [vmem:[#allocation16 + $0x80] sm:$0xff]   ;;  %13470 = vmatprep.subr.bf16.mxu0 %v14803_v17 }
0x1a41   :  { %v14592_v22 = vunpack.i.h.bf16 %v14590_v43  ;;  %v14591_v45 = vunpack.i.l.bf16 %v14590_v43 }
0x1a43   :  { %v4255_v50 = vsel %vm1445_vm7, %v4254_v35, %v14592_v22  ;;  %v3580_v51 = vsel %vm1445_vm7, %v3579_v61, %v14591_v45  ;;  %v14805_v22 = vld [vmem:[#allocation16 + $0xc8] sm:$0xff]   ;;  %v14808_v35 = vld [vmem:[#allocation16 + $0x90] sm:$0xff]   ;;  %v14809_v61 = vld [vmem:[#allocation16 + $0xd8] sm:$0xff]  }
0x1a44   :  { %v14595_v47 = vpop.permute.xlu1 %14594  ;;  %v14806_v45 = vld [vmem:[#allocation16 + $0x88] sm:$0xff]  }
0x1a45   :  { %v14597_v49 = vunpack.i.h.bf16 %v14595_v47  ;;  %v14596_v38 = vunpack.i.l.bf16 %v14595_v47  ;;  %v14807_v47 = vld [vmem:[#allocation16 + $0xd0] sm:$0xff]  }
0x1a47   :  { %v4256_v52 = vsel %vm1447_vm8, %v4255_v50, %v14597_v49  ;;  %v3581_v25 = vsel %vm1447_vm8, %v3580_v51, %v14596_v38  ;;  %v14810_v49 = vld [vmem:[#allocation16 + $0x98] sm:$0xff]   ;;  %v14811_v38 = vld [vmem:[#allocation16 + $0xe0] sm:$0xff]   ;;  %v14813_v51 = vld [vmem:[#allocation16 + $0xe8] sm:$0xff]  }
0x1a48   :  { %v4274_v53 = vpack.c.bf16 %v4256_v52, %v3581_v25  ;;  %v14812_v50 = vld [vmem:[#allocation16 + $0xa0] sm:$0xff]  }
0x1a4a   :  { %14003 = vmatmul.mubr.bf16.vlgmr.msra.gmra.mrb[40].mxu0 %v4274_v53 }
0x1a4b   :  { %13471 = vmatpush3.bf16.msra.mxu0 %v14804_v44 }
0x1a4c   :  { %13472 = vmatprep.subr.bf16.mxu0 %v14805_v22  ;;  %v4884_v22 = vld [vmem:[%s17887_s6 + $0x8] sm:$0xff] }
0x1a4f   :  { %13473 = vmatpush3.bf16.msra.mxu0 %v14806_v45 }
0x1a50   :  { %13474 = vmatprep.subr.bf16.mxu0 %v14807_v47 }
0x1a53   :  { %13475 = vmatpush3.bf16.msra.mxu0 %v14808_v35  ;;  %v4883_v35 = vld [vmem:[%s17887_s6] sm:$0xff] }
0x1a54   :  { %13476 = vmatprep.subr.bf16.mxu0 %v14809_v61 }
0x1a57   :  { %13477 = vmatpush3.bf16.msra.mxu0 %v14810_v49 }
0x1a58   :  { %13478 = vmatprep.subr.bf16.mxu0 %v14811_v38 }
0x1a5b   :  { %13479 = vmatpush3.bf16.msra.mxu0 %v14812_v50  ;;  %v14819_v50 = vld [vmem:[#allocation22] ss:$12 sps:$4 sm:$0xff]  }
0x1a5c   :  { %13480 = vmatprep.subr.bf16.mxu0 %v14813_v51  ;;  %v14821_v51 = vld [vmem:[#allocation22 + $0x4] ss:$12 sps:$4 sm:$0xff]  }
0x1b1d   :  { %v4357_v55 = vpop.f32.mrb[40].mxu0 }
0x1b1e   :  { %v4364_v27 = vadd.f32 %v4357_v55, %v16594_v24  ;;  %v14004_v42 = vpop.f32.mrb[41].mxu0  ;;  %v14784_v24 = vld [vmem:[#allocation14 + $0x94] ss:$8 sps:$4 sm:$0xff]  }
0x1b1f   :  { %v4360_v58 = vpop.f32.mrb[42].mxu0  ;;  %4519 = vmatprep.subr.bf16.mxu1 %v14784_v24 }
0x1b20   :  { %v16789_v56 = vadd.f32 %v4369_v54, %v4364_v27  ;;  %v4365_v57 = vadd.f32 %v4360_v58, %v16597_v26  ;;  %v14005_v59 = vpop.f32.mrb[43].mxu0  ;;  %4520 = vmatpush1.bf16.msra.mxu1 %v14782_v2 }
0x1b21   :  { %4521 = vmatprep.subr.bf16.mxu1 %v14787_v18  ;;  %v14817_v18 = vld [vmem:[#allocation16 + $0xf8] sm:$0xff]  }
0x1b22   :  { %v16792_v60 = vadd.f32 %v4369_v54, %v4365_v57  ;;  %4372 = vadd.xlane.f32.xlu0 %v16789_v56  ;;  %v4397_v57 = vrot.slane %v16611_v1, %v16393_v21 }
0x1b24   :  { %4374 = vadd.xlane.f32.xlu1 %v16792_v60  ;;  %4522 = vmatpush1.bf16.msra.mxu1 %v14785_v19  ;;  %v14818_v19 = vld [vmem:[#allocation16 + $0xb8] sm:$0xff]  }
0x1b25   :  { %4523 = vmatprep.subr.bf16.mxu1 %v14790_v20  ;;  %v4425_v20 = vld [vmem:[#allocation10 + $0x2] sm:$0x3] }
0x1b28   :  { %4524 = vmatpush1.bf16.msra.mxu1 %v14788_v23  ;;  %v4434_v23 = vrot.slane %v4425_v20, %v16380_v7 }
0x1b29   :  { %4525 = vmatprep.subr.bf16.mxu1 %v14793_v28 }
0x1b2c   :  { %4526 = vmatpush1.bf16.msra.mxu1 %v14791_v30 }
0x1b2d   :  { %4527 = vmatprep.subr.bf16.mxu1 %v14796_v31 }
0x1b30   :  { %4528 = vmatpush1.bf16.msra.mxu1 %v14794_v5 }
0x1b31   :  { %4529 = vmatprep.subr.bf16.mxu1 %v14799_v46 }
0x1b34   :  { %4530 = vmatpush1.bf16.msra.mxu1 %v14797_v48 }
0x1b35   :  { %4785 = vperm.xlu1 %14598, %v4780_v62   ;;  %4531 = vmatprep.subr.bf16.mxu1 %v14802_v32 }
0x1b38   :  { %4532 = vmatpush1.bf16.msra.mxu1 %v14800_v39 }
0x1b39   :  { %14527 = vmatprep.subr.msk.bf16.mxu1 %vm16813_vm10, %v14525_v40 }
0x1baf   :  { %v4373_v26 = vpop.xlane.xlu0 %4372 }
0x1bb0   :  { %v4376_v6 = vmul.f32 0.0078125, %v4373_v26 }
0x1bb1   :  { %v4375_v8 = vpop.xlane.xlu1 %4374 }
0x1bb2   :  { %v4377_v9 = vmul.f32 0.0078125, %v4375_v8  ;;  %v16800_v11 = vsub.f32 %v16789_v56, %v4376_v6 }
0x1bb4   :  { %v4380_v12 = vmul.f32 %v16800_v11, %v16800_v11  ;;  %v16805_v14 = vsub.f32 %v16792_v60, %v4377_v9 }
0x1bb5   :  { %v4786_v24 = vpop.permute.xlu1 %4785 }
0x1bb6   :  { %4382 = vadd.xlane.f32.xlu0 %v4380_v12  ;;  %v4381_v16 = vmul.f32 %v16805_v14, %v16805_v14  ;;  %vm4790_vm11 = vcmp.eq.s32.totalorder %v16332_v15, %v4786_v24  ;;  %v14814_v12 = vld [vmem:[#allocation16 + $0xa8] sm:$0xff]  }
0x1bb7   :  { %v13035_v9 = vsel %vm4790_vm11, 1.0, %v15828_v13  ;;  %13481 = vmatpush3.bf16.msra.mxu0 %v14814_v12  ;;  %v14827_v24 = vld [vmem:[#allocation22 + $0x30] ss:$12 sps:$4 sm:$0xff]  }
0x1bb8   :  { %v14841_v12 = vld [vmem:[#allocation22 + $0x7c] ss:$12 sps:$4 sm:$0xff]  }
0x1bba   :  { %4384 = vadd.xlane.f32.xlu0 %v4381_v16  ;;  %v14816_v16 = vld [vmem:[#allocation16 + $0xb0] sm:$0xff]  }
0x1bd0   :  { %4788 = vperm.xlu0 %14567, %v4781_v29  }
0x1c43   :  { %v4383_v52 = vpop.xlane.xlu0 %4382 }
0x1c44   :  { %v4386_v25 = vmul.f32 0.0078125, %v4383_v52  ;;  %v14822_v52 = vld [vmem:[#allocation22 + $0x8] ss:$12 sps:$4 sm:$0xff]  }
0x1c46   :  { %v4388_v53 = vadd.f32 1e-05, %v4386_v25  ;;  %v14825_v25 = vld [vmem:[#allocation22 + $0x1c] ss:$12 sps:$4 sm:$0xff]  }
0x1c47   :  { %v4385_v54 = vpop.xlane.xlu0 %4384 }
0x1c48   :  { %15143 = vrsqrt.f32 %v4388_v53  ;;  %v4387_v55 = vmul.f32 0.0078125, %v4385_v54  ;;  %v14826_v53 = vld [vmem:[#allocation22 + $0x20] ss:$12 sps:$4 sm:$0xff]   ;;  %v14823_v54 = vld [vmem:[#allocation22 + $0x18] ss:$12 sps:$4 sm:$0xff]  }
0x1c4a   :  { %v4389_v27 = vadd.f32 1e-05, %v4387_v55 }
0x1c4c   :  { %15145 = vrsqrt.f32 %v4389_v27 }
0x1c52   :  { %v15144_v42 = vpop.eup %15143 }
0x1c53   :  { %v4392_v58 = vmul.f32 %v15144_v42, %v16800_v11  ;;  %v4789_v11 = vpop.permute.xlu0 %4788 }
0x1c54   :  { %vm4791_vm13 = vcmp.eq.s32.totalorder %v16332_v15, %v4789_v11  ;;  %v4430_v15 = vrot.slane %v4425_v20, %v16375_v4  ;;  %v14835_v11 = vld [vmem:[#allocation22 + $0x60] ss:$12 sps:$4 sm:$0xff]   ;;  %v14846_v20 = vld [vmem:[#allocation22 + $0x98] ss:$12 sps:$4 sm:$0xff]  }
0x1c55   :  { %v4398_v33 = vmul.f32 %v4397_v57, %v4392_v58  ;;  %v13036_v1 = vsel %vm4791_vm13, 1.0, %v15828_v13 }
0x1c56   :  { %v15146_v59 = vpop.eup %15145 }
0x1c57   :  { %v4393_v62 = vmul.f32 %v15146_v59, %v16805_v14  ;;  %v4404_v26 = vadd.f32 %v4403_v63, %v4398_v33  ;;  %v14815_v14 = vld [vmem:[#allocation16 + $0xf0] sm:$0xff]  }
0x1c58   :  { %13482 = vmatprep.subr.bf16.mxu0 %v14815_v14  ;;  %v14839_v14 = vld [vmem:[#allocation22 + $0x78] ss:$12 sps:$4 sm:$0xff]  }
0x1c59   :  { %v4399_v2 = vmul.f32 %v4397_v57, %v4393_v62  ;;  %13483 = vmatpush3.bf16.msra.mxu0 %v14816_v16  ;;  %v14842_v16 = vld [vmem:[#allocation22 + $0x80] ss:$12 sps:$4 sm:$0xff]  }
0x1c5a   :  { %13484 = vmatprep.subr.bf16.mxu0 %v14817_v18  ;;  %v14845_v18 = vld [vmem:[#allocation22 + $0x94] ss:$12 sps:$4 sm:$0xff]  }
0x1c5b   :  { %v4405_v6 = vadd.f32 %v4403_v63, %v4399_v2  ;;  %v14829_v63 = vld [vmem:[#allocation22 + $0x34] ss:$12 sps:$4 sm:$0xff]   ;;  %v14830_v2 = vld [vmem:[#allocation22 + $0x38] ss:$12 sps:$4 sm:$0xff]  }
0x1c5d   :  { %v4423_v8 = vpack.c.bf16 %v4405_v6, %v4404_v26  ;;  %13485 = vmatpush3.bf16.msra.mxu0 %v14818_v19  ;;  %v14833_v26 = vld [vmem:[#allocation22 + $0x4c] ss:$12 sps:$4 sm:$0xff]   ;;  %v14831_v6 = vld [vmem:[#allocation22 + $0x48] ss:$12 sps:$4 sm:$0xff]   ;;  %v14843_v19 = vld [vmem:[#allocation22 + $0x90] ss:$12 sps:$4 sm:$0xff]  }
0x1c5e   :  { %14013 = vmatprep.subr.bf16.mxu0 %v15828_v13 }
0x1c5f   :  { %4550 = vmatmul.mubr.bf16.vlgmr.msra.gmra.mrb[56].mxu1 %v4423_v8  ;;  %v14834_v8 = vld [vmem:[#allocation22 + $0x50] ss:$12 sps:$4 sm:$0xff]  }
0x1c60   :  { %14530 = vmatpush3.bf16.msk.msra.mxu1 %vm16813_vm10, %v14525_v40  ;;  %14010 = vmatprep.mubr.msk.f32.mxu1 %vm4796_vm12, %v13035_v9  ;;  %v14837_v9 = vld [vmem:[#allocation22 + $0x64] ss:$12 sps:$4 sm:$0xff]  }
0x1c61   :  { %5101 = vmatprep.subr.bf16.mxu1 %v14821_v51 }
0x1c67   :  { %14011 = vmatmul.mubr.msk.f32.vlgmr.msra.gmra.mrb[60].mxu1 %vm4796_vm12, %v13036_v1  ;;  %v14838_v1 = vld [vmem:[#allocation22 + $0x68] ss:$12 sps:$4 sm:$0xff]  }
0x1c68   :  { %5133 = vmatprep.mubr.bf16.mxu1 %v15827_v0  ;;  %5102 = vmatpush1.bf16.msra.mxu1 %v14819_v50 }
0x1c69   :  { %5103 = vmatprep.subr.bf16.mxu1 %v14825_v25 }
0x1c6c   :  { %5104 = vmatpush1.bf16.msra.mxu1 %v14823_v54  ;;  %v4956_v54 = vld [vmem:[#allocation17] sm:$0x7] }
0x1c6d   :  { %5105 = vmatprep.subr.bf16.mxu1 %v14829_v63 }
0x1c70   :  { %5106 = vmatpush1.bf16.msra.mxu1 %v14827_v24 }
0x1c71   :  { %5107 = vmatprep.subr.bf16.mxu1 %v14833_v26 }
0x1c74   :  { %5108 = vmatpush1.bf16.msra.mxu1 %v14831_v6 }
0x1c75   :  { %5109 = vmatprep.subr.bf16.mxu1 %v14837_v9 }
0x1c78   :  { %5110 = vmatpush1.bf16.msra.mxu1 %v14835_v11 }
0x1c79   :  { %5111 = vmatprep.subr.bf16.mxu1 %v14841_v12 }
0x1c7c   :  { %5112 = vmatpush1.bf16.msra.mxu1 %v14839_v14 }
0x1c7d   :  { %5113 = vmatprep.subr.bf16.mxu1 %v14845_v18 }
0x1c80   :  { %5114 = vmatpush1.bf16.msra.mxu1 %v14843_v19 }
0x1d32   :  { %v4551_v28 = vpop.f32.mrb[56].mxu1 }
0x1d33   :  { %v4552_v29 = vadd.f32 %v4551_v28, %v4430_v15  ;;  %v4553_v30 = vpop.f32.mrb[57].mxu1  ;;  %v14850_v28 = vld [vmem:[#allocation22 + $0xb0] ss:$12 sps:$4 sm:$0xff]  }
0x1d34   :  { %v4554_v31 = vadd.f32 %v4553_v30, %v4434_v23  ;;  %v4555_v5 = vpop.f32.mrb[58].mxu1 }
0x1d35   :  { %v4556_v46 = vadd.f32 %v4555_v5, %v4430_v15  ;;  %v4557_v48 = vpop.f32.mrb[59].mxu1  ;;  %v4560_v39 = vmax.f32 %v4552_v29, 0.0  ;;  %v14849_v15 = vld [vmem:[#allocation22 + $0xac] ss:$12 sps:$4 sm:$0xff]  }
0x1d36   :  { %v4558_v32 = vadd.f32 %v4557_v48, %v4434_v23  ;;  %v4561_v37 = vmax.f32 %v4554_v31, 0.0  ;;  %v14847_v23 = vld [vmem:[#allocation22 + $0xa8] ss:$12 sps:$4 sm:$0xff]   ;;  %5115 = vmatprep.subr.bf16.mxu1 %v14849_v15 }
0x1d37   :  { %v4562_v34 = vmax.f32 %v4556_v46, 0.0  ;;  %5116 = vmatpush1.bf16.msra.mxu1 %v14847_v23 }
0x1d38   :  { %v4563_v40 = vmax.f32 %v4558_v32, 0.0  ;;  %14033 = vmatprep.subr.mxu1 %v15828_v13 }
0x1d39   :  { %v4597_v43 = vpack.c.bf16 %v4562_v34, %v4560_v39 }
0x1d3a   :  { %v4598_v17 = vpack.c.bf16 %v4563_v40, %v4561_v37  ;;  %v14012_v44 = vpop.f32.mrb[60].mxu1 }
0x1d3b   :  { %v4882_v45 = vmul.f32 11.313708, %v14012_v44  ;;  %v4872_v47 = vpop.f32.mrb[61].mxu1 }
0x1d3c   :  { %v4881_v61 = vmul.f32 11.313708, %v4872_v47  ;;  %4727 = vmatprep.mubr.bf16.mxu0 %v4598_v17  ;;  %v16875_v17 = vld [vmem:[%s17818_s13] sm:$0xff] }
0x1d3d   :  { %v16841_v49 = vadd.f32 %v4884_v22, %v4882_v45  ;;  %4728 = vmatmul.mubr.bf16.vlgmr.msra.gmra.mrb[44].mxu0 %v4597_v43  ;;  %v4914_v44 = vrot.slane %v16875_v17, %v16375_v4 }
0x1d3e   :  { %v16843_v38 = vadd.f32 %v4883_v35, %v4881_v61  ;;  %14029 = vmatprep.mubr.msk.bf16.mxu0 %vm15829_vm4, %v15828_v13  ;;  %14014 = vmatpush3.bf16.msra.mxu0 %v14822_v52  ;;  %v4920_v35 = vrot.slane %v16875_v17, %v16380_v7 }
0x1d3f   :  { %4891 = vadd.xlane.f32.xlu0 %v16841_v49  ;;  %14015 = vmatprep.subr.bf16.mxu0 %v15828_v13 }
0x1d40   :  { %4889 = vadd.xlane.f32.xlu1 %v16843_v38 }
0x1d42   :  { %14016 = vmatpush3.bf16.msra.mxu0 %v14826_v53 }
0x1d43   :  { %14017 = vmatprep.subr.bf16.mxu0 %v15828_v13 }
0x1d46   :  { %14018 = vmatpush3.bf16.msra.mxu0 %v14830_v2 }
0x1d47   :  { %14019 = vmatprep.subr.bf16.mxu0 %v15828_v13 }
0x1d4a   :  { %14020 = vmatpush3.bf16.msra.mxu0 %v14834_v8 }
0x1d4b   :  { %14021 = vmatprep.subr.bf16.mxu0 %v15828_v13 }
0x1d4e   :  { %14022 = vmatpush3.bf16.msra.mxu0 %v14838_v1 }
0x1d4f   :  { %14023 = vmatprep.subr.bf16.mxu0 %v15828_v13 }
0x1d52   :  { %14024 = vmatpush3.bf16.msra.mxu0 %v14842_v16 }
0x1d53   :  { %14025 = vmatprep.subr.bf16.mxu0 %v15828_v13 }
0x1d56   :  { %14026 = vmatpush3.bf16.msra.mxu0 %v14846_v20 }
0x1d57   :  { %14027 = vmatprep.subr.bf16.mxu0 %v15828_v13 }
0x1d5a   :  { %14028 = vmatpush3.bf16.msra.mxu0 %v14850_v28 }
0x1d5b   :  { %14063 = vmatprep.subr.mxu0 %v15828_v13 }
0x1dcc   :  { %v4892_v55 = vpop.xlane.xlu0 %4891 }
0x1dcd   :  { %v4894_v27 = vmul.f32 0.0078125, %v4892_v55  ;;  %v4890_v42 = vpop.xlane.xlu1 %4889  ;;  %v4965_v55 = vrot.slane %v4956_v54, %v16380_v7 }
0x1dce   :  { %v4893_v58 = vmul.f32 0.0078125, %v4890_v42 }
0x1dcf   :  { %v16852_v57 = vsub.f32 %v16841_v49, %v4894_v27 }
0x1dd0   :  { %v16855_v59 = vsub.f32 %v16843_v38, %v4893_v58  ;;  %v4961_v58 = vrot.slane %v4956_v54, %v16375_v4 }
0x1dd1   :  { %v4898_v62 = vmul.f32 %v16852_v57, %v16852_v57 }
0x1dd2   :  { %v4897_v33 = vmul.f32 %v16855_v59, %v16855_v59 }
0x1dd3   :  { %4901 = vadd.xlane.f32.xlu0 %v4898_v62 }
0x1dd4   :  { %4899 = vadd.xlane.f32.xlu1 %v4897_v33 }
0x1e10   :  { %v13486_v29 = vpop.f32.mrb[44].mxu0 }
0x1e11   :  { %v13487_v30 = vpop.f32.mrb[45].mxu0 }
0x1e12   :  { %v16868_v31 = vadd.f32 %v13487_v30, %v13486_v29  ;;  %v13489_v5 = vpop.f32.mrb[46].mxu0 }
0x1e13   :  { %v13490_v46 = vpop.f32.mrb[47].mxu0 }
0x1e14   :  { %v16870_v48 = vadd.f32 %v13490_v46, %v13489_v5 }
0x1e60   :  { %v4902_v32 = vpop.xlane.xlu0 %4901 }
0x1e61   :  { %v4904_v39 = vmul.f32 0.0078125, %v4902_v32  ;;  %v4900_v34 = vpop.xlane.xlu1 %4899 }
0x1e62   :  { %v4903_v37 = vmul.f32 0.0078125, %v4900_v34 }
0x1e63   :  { %v4906_v40 = vadd.f32 1e-05, %v4904_v39 }
0x1e64   :  { %v4905_v43 = vadd.f32 1e-05, %v4903_v37 }
0x1e65   :  { %15147 = vrsqrt.f32 %v4906_v40 }
0x1e66   :  { %15149 = vrsqrt.f32 %v4905_v43 }
0x1e6f   :  { %v15148_v22 = vpop.eup %15147 }
0x1e70   :  { %v15150_v45 = vpop.eup %15149  ;;  %v4910_v47 = vmul.f32 %v15148_v22, %v16852_v57  ;;  %v4969_v57 = vrot.slane %v4956_v54, %v16393_v21 }
0x1e71   :  { %v4909_v61 = vmul.f32 %v15150_v45, %v16855_v59 }
0x1e72   :  { %v4916_v50 = vmul.f32 %v4914_v44, %v4910_v47 }
0x1e73   :  { %v4915_v51 = vmul.f32 %v4914_v44, %v4909_v61 }
0x1e74   :  { %v4922_v52 = vadd.f32 %v4920_v35, %v4916_v50 }
0x1e75   :  { %v4921_v25 = vadd.f32 %v4920_v35, %v4915_v51 }
0x1e77   :  { %v4955_v53 = vpack.c.bf16 %v4922_v52, %v4921_v25 }
0x1e79   :  { %5134 = vmatmul.mubr.bf16.vlgmr.msra.gmra.mrb[64].mxu1 %v4955_v53  ;;  %14030 = vmatmul.mubr.bf16.vlgmr.msra.gmra.mrb[48].mxu0 %v4955_v53 }
0x1e7a   :  { %14035 = vmatprep.mubr.msk.f32.mxu1 %vm15829_vm4, %v15828_v13  ;;  %14065 = vmatprep.mubr.msk.f32.mxu0 %vm15829_vm4, %v15828_v13 }
0x1f4c   :  { %v5135_v27 = vpop.f32.mrb[64].mxu1  ;;  %v5178_v42 = vpop.f32.mrb[48].mxu0 }
0x1f4d   :  { %v5137_v59 = vpop.f32.mrb[65].mxu1  ;;  %v14031_v62 = vpop.f32.mrb[49].mxu0  ;;  %v5136_v11 = vadd.f32 %v5135_v27, %v4961_v58  ;;  %v16901_v1 = vadd.f32 %v5178_v42, %v4969_v57 }
0x1f4e   :  { %v16890_v33 = vadd.f32 %v5137_v59, %v4965_v55  ;;  %v5139_v63 = vpop.f32.mrb[66].mxu1  ;;  %v5181_v24 = vpop.f32.mrb[50].mxu0 }
0x1f4f   :  { %v16892_v2 = vadd.f32 %v5139_v63, %v4961_v58  ;;  %v16894_v26 = vadd.f32 %v5181_v24, %v4969_v57  ;;  %v5141_v6 = vpop.f32.mrb[67].mxu1  ;;  %v14032_v8 = vpop.f32.mrb[51].mxu0 }
0x1f50   :  { %v16896_v9 = vadd.f32 %v5141_v6, %v4965_v55  ;;  %14034 = vmatpush3.xpose.msk.msra.mxu1 %vm770_vm5, %v16890_v33 }
0x1f51   :  { %14038 = vmatprep.subr.mxu1 %v15828_v13 }
0x1f53   :  { %14036 = vmatmul.mubr.msk.f32.vlgmr.msra.gmra.mrb[62].mxu1 %vm770_vm5, %v5136_v11 }
0x1f54   :  { %14039 = vmatpush3.msra.mxu1 %v16901_v1  ;;  %14040 = vmatprep.mubr.msk.f32.mxu1 %vm15829_vm4, %v15828_v13 }
0x1f55   :  { %14043 = vmatprep.subr.mxu1 %v15828_v13 }
0x2026   :  { %v5257_v12 = vpop.f32.mrb[62].mxu1 }
0x2027   :  { %v5261_v14 = vmul.f32 0.17677669, %v5257_v12  ;;  %v14037_v16 = vpop.f32.mrb[63].mxu1 }
0x2029   :  { %v5262_v18 = vsel %vm848_vm6, %v5261_v14, -inf }
0x202a   :  { %5263 = vmax.xlane.f32.xlu1 %v5262_v18 }
0x203b   :  { %5348 = vrot.lane.b32.xlu1 %v16890_v33, %s15830_s17 }
0x20b7   :  { %v5264_v19 = vpop.xlane.xlu1 %5263 }
0x20b8   :  { %v5265_v20 = vsub.f32 %v5261_v14, %v5264_v19 }
0x20ba   :  { %v5266_v15 = vmul.f32 1.442695, %v5265_v20 }
0x20bb   :  { %v5349_v46 = vpop.permute.xlu1 %5348 }
0x20bc   :  { %15151 = vpow2.f32 %v5266_v15 }
0x20c6   :  { %v15152_v23 = vpop.eup %15151 }
0x20c7   :  { %v5268_v28 = vsel %vm848_vm6, %v15152_v23, 0.0 }
0x20c8   :  { %5269 = vadd.xlane.f32.xlu0 %v5268_v28 }
0x20de   :  { %5346 = vrot.lane.b32.xlu0 %v5136_v11, %s15830_s17 }
0x2155   :  { %v5270_v29 = vpop.xlane.xlu0 %5269 }
0x2156   :  { %15153 = vrcp.f32 %v5270_v29 }
0x2159   :  { %v5347_v32 = vpop.permute.xlu0 %5346 }
0x2160   :  { %v15154_v30 = vpop.eup %15153 }
0x2161   :  { %v5272_v5 = vmul.f32 %v15154_v30, %v15152_v23 }
0x2163   :  { %14041 = vmatmul.mubr.msk.f32.vlgmr.msra.gmra.mrb[68].mxu1 %vm848_vm6, %v5272_v5 }
0x2164   :  { %14044 = vmatpush3.xpose.msk.msra.mxu1 %vm770_vm5, %v5349_v46  ;;  %14045 = vmatprep.mubr.msk.f32.mxu1 %vm15829_vm4, %v15828_v13 }
0x2165   :  { %14048 = vmatprep.subr.mxu1 %v15828_v13 }
0x2167   :  { %14046 = vmatmul.mubr.msk.f32.vlgmr.msra.gmra.mrb[70].mxu1 %vm770_vm5, %v5347_v32 }
0x2168   :  { %14050 = vmatprep.mubr.msk.f32.mxu1 %vm15829_vm4, %v15828_v13 }
0x2236   :  { %v16921_v39 = vpop.f32.mrb[68].mxu1 }
0x2237   :  { %v14042_v34 = vpop.f32.mrb[69].mxu1 }
0x223a   :  { %v5420_v37 = vpop.f32.mrb[70].mxu1 }
0x223b   :  { %v5424_v40 = vmul.f32 0.17677669, %v5420_v37  ;;  %v14047_v43 = vpop.f32.mrb[71].mxu1 }
0x223d   :  { %v5425_v44 = vsel %vm848_vm6, %v5424_v40, -inf }
0x223e   :  { %5426 = vmax.xlane.f32.xlu1 %v5425_v44 }
0x224f   :  { %5437 = vrot.lane.b32.xlu1 %v16901_v1, %s15830_s17 }
0x2253   :  { %5513 = vrot.lane.b32.xlu1 %v5136_v11, %s15813_s4 }
0x2257   :  { %5681 = vrot.lane.b32.xlu1 %v16890_v33, %s15809_s14 }
0x225b   :  { %6023 = vrot.lane.b32.xlu1 %v16896_v9, %s15830_s17 }
0x225f   :  { %6190 = vrot.lane.b32.xlu1 %v16896_v9, %s15813_s4 }
0x2263   :  { %6356 = vrot.lane.b32.xlu1 %v16896_v9, %s15809_s14 }
0x22cb   :  { %v5427_v22 = vpop.xlane.xlu1 %5426 }
0x22cc   :  { %v5428_v45 = vsub.f32 %v5424_v40, %v5427_v22 }
0x22ce   :  { %v5429_v47 = vmul.f32 1.442695, %v5428_v45 }
0x22cf   :  { %v5438_v35 = vpop.permute.xlu1 %5437 }
0x22d0   :  { %15155 = vpow2.f32 %v5429_v47  ;;  %14049 = vmatpush3.msra.mxu1 %v5438_v35 }
0x22d1   :  { %14053 = vmatprep.subr.mxu1 %v15828_v13 }
0x22d3   :  { %v5514_v61 = vpop.permute.xlu1 %5513 }
0x22d7   :  { %v5682_v50 = vpop.permute.xlu1 %5681 }
0x22d8   :  { %14064 = vmatpush3.xpose.msk.msra.mxu0 %vm770_vm5, %v5682_v50 }
0x22d9   :  { %14073 = vmatprep.subr.mxu0 %v15828_v13 }
0x22da   :  { %v15156_v51 = vpop.eup %15155 }
0x22db   :  { %v5431_v52 = vsel %vm848_vm6, %v15156_v51, 0.0  ;;  %v6024_v55 = vpop.permute.xlu1 %6023 }
0x22dc   :  { %5432 = vadd.xlane.f32.xlu0 %v5431_v52 }
0x22df   :  { %v6191_v57 = vpop.permute.xlu1 %6190 }
0x22e3   :  { %v6357_v62 = vpop.permute.xlu1 %6356 }
0x22f2   :  { %5515 = vrot.lane.b32.xlu0 %v16890_v33, %s15813_s4 }
0x22f6   :  { %5679 = vrot.lane.b32.xlu0 %v5136_v11, %s15809_s14 }
0x22fa   :  { %6021 = vrot.lane.b32.xlu0 %v16892_v2, %s15830_s17 }
0x22fe   :  { %6188 = vrot.lane.b32.xlu0 %v16892_v2, %s15813_s4 }
0x2302   :  { %6354 = vrot.lane.b32.xlu0 %v16892_v2, %s15809_s14 }
0x2369   :  { %v5433_v25 = vpop.xlane.xlu0 %5432 }
0x236a   :  { %15157 = vrcp.f32 %v5433_v25 }
0x236d   :  { %v5516_v53 = vpop.permute.xlu0 %5515 }
0x2371   :  { %v5680_v54 = vpop.permute.xlu0 %5679 }
0x2372   :  { %14066 = vmatmul.mubr.msk.f32.vlgmr.msra.gmra.mrb[38].mxu0 %vm770_vm5, %v5680_v54 }
0x2373   :  { %14074 = vmatpush3.xpose.msk.msra.mxu0 %vm770_vm5, %v16896_v9  ;;  %14075 = vmatprep.mubr.msk.f32.mxu0 %vm15829_vm4, %v15828_v13 }
0x2374   :  { %v15158_v27 = vpop.eup %15157  ;;  %14083 = vmatprep.subr.mxu0 %v15828_v13 }
0x2375   :  { %v6022_v42 = vpop.permute.xlu0 %6021  ;;  %v5435_v58 = vmul.f32 %v15158_v27, %v15156_v51 }
0x2376   :  { %14076 = vmatmul.mubr.msk.f32.vlgmr.msra.gmra.mrb[52].mxu0 %vm770_vm5, %v16892_v2 }
0x2377   :  { %14084 = vmatpush3.xpose.msk.msra.mxu0 %vm770_vm5, %v6024_v55  ;;  %14051 = vmatmul.mubr.msk.f32.vlgmr.msra.gmra.mrb[72].mxu1 %vm848_vm6, %v5435_v58 }
0x2378   :  { %14054 = vmatpush3.xpose.msk.msra.mxu1 %vm770_vm5, %v5516_v53  ;;  %14085 = vmatprep.mubr.msk.f32.mxu0 %vm15829_vm4, %v15828_v13 }
0x2379   :  { %14093 = vmatprep.subr.mxu0 %v15828_v13  ;;  %14055 = vmatprep.mubr.msk.f32.mxu1 %vm15829_vm4, %v15828_v13  ;;  %v6189_v59 = vpop.permute.xlu0 %6188 }
0x237a   :  { %14086 = vmatmul.mubr.msk.f32.vlgmr.msra.gmra.mrb[54].mxu0 %vm770_vm5, %v6022_v42  ;;  %14058 = vmatprep.subr.mxu1 %v15828_v13 }
0x237b   :  { %14094 = vmatpush3.xpose.msk.msra.mxu0 %vm770_vm5, %v6191_v57  ;;  %14056 = vmatmul.mubr.msk.f32.vlgmr.msra.gmra.mrb[74].mxu1 %vm770_vm5, %v5514_v61 }
0x237c   :  { %14095 = vmatprep.mubr.msk.f32.mxu0 %vm15829_vm4, %v15828_v13  ;;  %14103 = vmatprep.subr.mxu0 %v15828_v13 }
0x237d   :  { %14060 = vmatprep.mubr.msk.f32.mxu1 %vm15829_vm4, %v15828_v13  ;;  %v6355_v33 = vpop.permute.xlu0 %6354 }
0x237e   :  { %14096 = vmatmul.mubr.msk.f32.vlgmr.msra.gmra.mrb[56].mxu0 %vm770_vm5, %v6189_v59 }
0x237f   :  { %14104 = vmatpush3.xpose.msk.msra.mxu0 %vm770_vm5, %v6357_v62  ;;  %14105 = vmatprep.mubr.msk.f32.mxu0 %vm15829_vm4, %v15828_v13 }
0x2380   :  { %14113 = vmatprep.subr.bf16.mxu0 %v15828_v13 }
0x2382   :  { %14106 = vmatmul.mubr.msk.f32.vlgmr.msra.gmra.mrb[58].mxu0 %vm770_vm5, %v6355_v33 }
0x2383   :  { %14129 = vmatprep.mubr.msk.bf16.mxu0 %vm15829_vm4, %v15828_v13 }
0x2445   :  { %v5753_v63 = vpop.f32.mrb[38].mxu0 }
0x2446   :  { %v5757_v24 = vmul.f32 0.17677669, %v5753_v63  ;;  %v14067_v2 = vpop.f32.mrb[39].mxu0 }
0x2448   :  { %v5758_v6 = vsel %vm848_vm6, %v5757_v24, -inf }
0x2449   :  { %5759 = vmax.xlane.f32.xlu0 %v5758_v6  ;;  %v5932_v8 = vpop.f32.mrb[52].mxu0 }
0x244a   :  { %v5936_v9 = vmul.f32 0.17677669, %v5932_v8  ;;  %v16982_v11 = vpop.f32.mrb[72].mxu1  ;;  %v14077_v12 = vpop.f32.mrb[53].mxu0 }
0x244b   :  { %v14052_v14 = vpop.f32.mrb[73].mxu1 }
0x244c   :  { %v5937_v16 = vsel %vm848_vm6, %v5936_v9, -inf }
0x244d   :  { %5938 = vmax.xlane.f32.xlu0 %v5937_v16  ;;  %v6095_v18 = vpop.f32.mrb[54].mxu0 }
0x244e   :  { %v5587_v19 = vpop.f32.mrb[74].mxu1  ;;  %v14087_v20 = vpop.f32.mrb[55].mxu0  ;;  %v6099_v28 = vmul.f32 0.17677669, %v6095_v18 }
0x244f   :  { %v5591_v15 = vmul.f32 0.17677669, %v5587_v19  ;;  %v14057_v23 = vpop.f32.mrb[75].mxu1 }
0x2450   :  { %v6100_v37 = vsel %vm848_vm6, %v6099_v28, -inf }
0x2451   :  { %v6262_v29 = vpop.f32.mrb[56].mxu0  ;;  %v5592_v30 = vsel %vm848_vm6, %v5591_v15, -inf }
0x2452   :  { %v6266_v5 = vmul.f32 0.17677669, %v6262_v29  ;;  %5593 = vmax.xlane.f32.xlu1 %v5592_v30  ;;  %v14097_v46 = vpop.f32.mrb[57].mxu0 }
0x2454   :  { %v6267_v32 = vsel %vm848_vm6, %v6266_v5, -inf }
0x2455   :  { %6268 = vmax.xlane.f32.xlu0 %v6267_v32  ;;  %v6428_v34 = vpop.f32.mrb[58].mxu0 }
0x2456   :  { %v6432_v40 = vmul.f32 0.17677669, %v6428_v34  ;;  %6101 = vmax.xlane.f32.xlu1 %v6100_v37  ;;  %v14107_v43 = vpop.f32.mrb[59].mxu0 }
0x2458   :  { %v6433_v44 = vsel %vm848_vm6, %v6432_v40, -inf }
0x245a   :  { %6434 = vmax.xlane.f32.xlu1 %v6433_v44 }
0x24d6   :  { %v5760_v22 = vpop.xlane.xlu0 %5759 }
0x24d7   :  { %v5761_v45 = vsub.f32 %v5757_v24, %v5760_v22 }
0x24d9   :  { %v5762_v47 = vmul.f32 1.442695, %v5761_v45 }
0x24da   :  { %v5939_v35 = vpop.xlane.xlu0 %5938 }
0x24db   :  { %15159 = vpow2.f32 %v5762_v47  ;;  %v5940_v61 = vsub.f32 %v5936_v9, %v5939_v35 }
0x24dd   :  { %v5941_v50 = vmul.f32 1.442695, %v5940_v61 }
0x24df   :  { %15161 = vpow2.f32 %v5941_v50  ;;  %v5594_v51 = vpop.xlane.xlu1 %5593 }
0x24e0   :  { %v5595_v52 = vsub.f32 %v5591_v15, %v5594_v51 }
0x24e2   :  { %v6269_v25 = vpop.xlane.xlu0 %6268  ;;  %v5596_v42 = vmul.f32 1.442695, %v5595_v52  ;;  %v14851_v52 = vld [vmem:[#allocation23] sm:$0xff]  }
0x24e3   :  { %v6270_v53 = vsub.f32 %v6266_v5, %v6269_v25  ;;  %v6102_v54 = vpop.xlane.xlu1 %6101  ;;  %14114 = vmatpush3.bf16.msra.mxu0 %v14851_v52  ;;  %v14852_v25 = vld [vmem:[#allocation23 + $0x8] sm:$0xff]  }
0x24e4   :  { %v6103_v55 = vsub.f32 %v6099_v28, %v6102_v54  ;;  %14115 = vmatprep.subr.bf16.mxu0 %v15828_v13  ;;  %v14854_v54 = vld [vmem:[#allocation23 + $0x18] sm:$0xff]  }
0x24e5   :  { %v15160_v27 = vpop.eup %15159  ;;  %v6271_v58 = vmul.f32 1.442695, %v6270_v53  ;;  %v14853_v53 = vld [vmem:[#allocation23 + $0x10] sm:$0xff]  }
0x24e6   :  { %v6104_v57 = vmul.f32 1.442695, %v6103_v55  ;;  %v5764_v59 = vsel %vm848_vm6, %v15160_v27, 0.0  ;;  %v14855_v55 = vld [vmem:[#allocation23 + $0x20] sm:$0xff]  }
0x24e7   :  { %15163 = vpow2.f32 %v6271_v58  ;;  %5765 = vadd.xlane.f32.xlu1 %v5764_v59  ;;  %v6435_v62 = vpop.xlane.xlu1 %6434  ;;  %14116 = vmatpush3.bf16.msra.mxu0 %v14852_v25 }
0x24e8   :  { %15165 = vpow2.f32 %v6104_v57  ;;  %v6436_v33 = vsub.f32 %v6432_v40, %v6435_v62  ;;  %14117 = vmatprep.subr.bf16.mxu0 %v15828_v13  ;;  %v14856_v57 = vld [vmem:[#allocation23 + $0x28] sm:$0xff]  }
0x24e9   :  { %v15162_v63 = vpop.eup %15161  ;;  %15167 = vpow2.f32 %v5596_v42 }
0x24ea   :  { %v6437_v24 = vmul.f32 1.442695, %v6436_v33  ;;  %v5943_v2 = vsel %vm848_vm6, %v15162_v63, 0.0  ;;  %v14857_v33 = vld [vmem:[#allocation23 + $0x30] sm:$0xff]  }
0x24eb   :  { %5944 = vadd.xlane.f32.xlu0 %v5943_v2  ;;  %14118 = vmatpush3.bf16.msra.mxu0 %v14853_v53  ;;  %v14858_v2 = vld [vmem:[#allocation23 + $0x38] sm:$0xff]  }
0x24ec   :  { %15169 = vpow2.f32 %v6437_v24  ;;  %14119 = vmatprep.subr.bf16.mxu0 %v15828_v13 }
0x24ef   :  { %14120 = vmatpush3.bf16.msra.mxu0 %v14854_v54 }
0x24f0   :  { %14121 = vmatprep.subr.bf16.mxu0 %v15828_v13 }
0x24f1   :  { %v15164_v6 = vpop.eup %15163 }
0x24f2   :  { %v15166_v8 = vpop.eup %15165  ;;  %v6273_v9 = vsel %vm848_vm6, %v15164_v6, 0.0 }
0x24f3   :  { %v15168_v12 = vpop.eup %15167  ;;  %6274 = vadd.xlane.f32.xlu0 %v6273_v9  ;;  %v6106_v14 = vsel %vm848_vm6, %v15166_v8, 0.0  ;;  %14122 = vmatpush3.bf16.msra.mxu0 %v14855_v55 }
0x24f4   :  { %6107 = vadd.xlane.f32.xlu1 %v6106_v14  ;;  %v5598_v18 = vsel %vm848_vm6, %v15168_v12, 0.0  ;;  %14123 = vmatprep.subr.bf16.mxu0 %v15828_v13 }
0x24f6   :  { %v15170_v16 = vpop.eup %15169 }
0x24f7   :  { %5599 = vadd.xlane.f32.xlu0 %v5598_v18  ;;  %v6439_v19 = vsel %vm848_vm6, %v15170_v16, 0.0  ;;  %14124 = vmatpush3.bf16.msra.mxu0 %v14856_v57 }
0x24f8   :  { %6440 = vadd.xlane.f32.xlu1 %v6439_v19  ;;  %14125 = vmatprep.subr.bf16.mxu0 %v15828_v13 }
0x24fb   :  { %14126 = vmatpush3.bf16.msra.mxu0 %v14857_v33 }
0x24fc   :  { %14127 = vmatprep.subr.bf16.mxu0 %v15828_v13 }
0x24ff   :  { %14128 = vmatpush3.bf16.msra.mxu0 %v14858_v2  ;;  %v14865_v2 = vld [vmem:[#allocation26 + $0x20] ss:$8 sps:$4 sm:$0xff]  }
0x2509   :  { %5769 = vrot.lane.b32.xlu1 %v16901_v1, %s15809_s14 }
0x250d   :  { %5603 = vrot.lane.b32.xlu0 %v16901_v1, %s15813_s4  ;;  %6112 = vrot.lane.b32.xlu1 %v16894_v26, %s15830_s17 }
0x2511   :  { %6278 = vrot.lane.b32.xlu0 %v16894_v26, %s15813_s4  ;;  %6444 = vrot.lane.b32.xlu1 %v16894_v26, %s15809_s14 }
0x2574   :  { %v5766_v23 = vpop.xlane.xlu1 %5765 }
0x2578   :  { %v5945_v20 = vpop.xlane.xlu0 %5944 }
0x2580   :  { %v6275_v15 = vpop.xlane.xlu0 %6274 }
0x2581   :  { %v6108_v29 = vpop.xlane.xlu1 %6107 }
0x2584   :  { %v5600_v28 = vpop.xlane.xlu0 %5599 }
0x2585   :  { %15171 = vrcp.f32 %v5600_v28  ;;  %v6441_v1 = vpop.xlane.xlu1 %6440 }
0x2586   :  { %15173 = vrcp.f32 %v5766_v23 }
0x2587   :  { %15175 = vrcp.f32 %v5945_v20  ;;  %v4737_v20 = vadd.f32 %v16870_v48, %v16792_v60 }
0x2588   :  { %v5604_v30 = vpop.permute.xlu0 %5603  ;;  %15177 = vrcp.f32 %v6108_v29 }
0x2589   :  { %14059 = vmatpush3.msra.mxu1 %v5604_v30  ;;  %v5770_v34 = vpop.permute.xlu1 %5769  ;;  %15179 = vrcp.f32 %v6275_v15  ;;  %v15307_v15 = vld [vmem:[#allocation7 + $0x8] sm:$0xff] }
0x258a   :  { %14068 = vmatprep.subr.mxu1 %v15828_v13  ;;  %15181 = vrcp.f32 %v6441_v1  ;;  %v4741_v23 = vrot.slane %v15307_v15, %v16588_v10  ;;  %v14883_v15 = vld [vmem:[#allocation25] sm:$0xff]  }
0x258c   :  { %v6279_v35 = vpop.permute.xlu0 %6278  ;;  %v4743_v28 = vadd.f32 %v4741_v23, %v4737_v20  ;;  %v14882_v20 = vld [vmem:[#allocation26 + $0x74] ss:$8 sps:$4 sm:$0xff]  }
0x258d   :  { %v6113_v22 = vpop.permute.xlu1 %6112 }
0x258f   :  { %v15172_v5 = vpop.eup %15171 }
0x2590   :  { %v5602_v46 = vmul.f32 %v15172_v5, %v15168_v12  ;;  %v15174_v32 = vpop.eup %15173 }
0x2591   :  { %v5768_v37 = vmul.f32 %v15174_v32, %v15160_v27  ;;  %v15176_v40 = vpop.eup %15175  ;;  %v6445_v50 = vpop.permute.xlu1 %6444 }
0x2592   :  { %14061 = vmatmul.mubr.msk.f32.vlgmr.msra.gmra.mrb[76].mxu1 %vm848_vm6, %v5602_v46  ;;  %v5947_v43 = vmul.f32 %v15176_v40, %v15162_v63  ;;  %v15178_v44 = vpop.eup %15177 }
0x2593   :  { %14069 = vmatpush3.msra.mxu1 %v5770_v34  ;;  %14070 = vmatprep.mubr.msk.f32.mxu1 %vm15829_vm4, %v15828_v13  ;;  %v6110_v45 = vmul.f32 %v15178_v44, %v15166_v8  ;;  %v15180_v47 = vpop.eup %15179 }
0x2594   :  { %14078 = vmatprep.subr.mxu1 %v15828_v13  ;;  %v15182_v61 = vpop.eup %15181 }
0x2595   :  { %v6443_v51 = vmul.f32 %v15182_v61, %v15170_v16 }
0x2596   :  { %14071 = vmatmul.mubr.msk.f32.vlgmr.msra.gmra.mrb[78].mxu1 %vm848_vm6, %v5768_v37 }
0x2597   :  { %14079 = vmatpush3.msra.mxu1 %v16894_v26  ;;  %14080 = vmatprep.mubr.msk.f32.mxu1 %vm15829_vm4, %v15828_v13  ;;  %v6277_v26 = vmul.f32 %v15180_v47, %v15164_v6  ;;  %v14859_v47 = vld [vmem:[#allocation26] ss:$8 sps:$4 sm:$0xff]  }
0x2598   :  { %14088 = vmatprep.subr.mxu1 %v15828_v13 }
0x259a   :  { %14081 = vmatmul.mubr.msk.f32.vlgmr.msra.gmra.mrb[80].mxu1 %vm848_vm6, %v5947_v43 }
0x259b   :  { %14089 = vmatpush3.msra.mxu1 %v6113_v22  ;;  %14090 = vmatprep.mubr.msk.f32.mxu1 %vm15829_vm4, %v15828_v13 }
0x259c   :  { %14098 = vmatprep.subr.mxu1 %v15828_v13 }
0x259e   :  { %14091 = vmatmul.mubr.msk.f32.vlgmr.msra.gmra.mrb[82].mxu1 %vm848_vm6, %v6110_v45 }
0x259f   :  { %14099 = vmatpush3.msra.mxu1 %v6279_v35  ;;  %14100 = vmatprep.mubr.msk.f32.mxu1 %vm15829_vm4, %v15828_v13  ;;  %v14861_v35 = vld [vmem:[#allocation26 + $0x4] ss:$8 sps:$4 sm:$0xff]  }
0x25a0   :  { %14108 = vmatprep.subr.mxu1 %v15828_v13  ;;  %6901 = vmatprep.subr.bf16.mxu0 %v14861_v35 }
0x25a2   :  { %14101 = vmatmul.mubr.msk.f32.vlgmr.msra.gmra.mrb[84].mxu1 %vm848_vm6, %v6277_v26 }
0x25a3   :  { %14109 = vmatpush3.msra.mxu1 %v6445_v50  ;;  %14110 = vmatprep.mubr.msk.f32.mxu1 %vm15829_vm4, %v15828_v13 }
0x25a4   :  { %14133 = vmatprep.subr.bf16.mxu1 %v15828_v13 }
0x25a6   :  { %14111 = vmatmul.mubr.msk.f32.vlgmr.msra.gmra.mrb[86].mxu1 %vm848_vm6, %v6443_v51 }
0x25a7   :  { %14149 = vmatprep.mubr.msk.bf16.mxu1 %vm15829_vm4, %v15828_v13  ;;  %14134 = vmatpush3.bf16.msra.mxu1 %v14883_v15  ;;  %v6809_v15 = vld [vmem:[#allocation19] sm:$0x3] }
0x25a8   :  { %14135 = vmatprep.subr.bf16.mxu1 %v15828_v13 }
0x2665   :  { %v5675_v27 = vpop.f32.mrb[76].mxu1 }
0x2666   :  { %v14062_v42 = vpop.f32.mrb[77].mxu1 }
0x2669   :  { %v5841_v58 = vpop.f32.mrb[78].mxu1 }
0x266a   :  { %v14072_v59 = vpop.f32.mrb[79].mxu1 }
0x266d   :  { %v6017_v62 = vpop.f32.mrb[80].mxu1 }
0x266e   :  { %v14082_v63 = vpop.f32.mrb[81].mxu1 }
0x266f   :  { %v14864_v63 = vld [vmem:[#allocation26 + $0x14] ss:$8 sps:$4 sm:$0xff]  }
0x2671   :  { %v6184_v24 = vpop.f32.mrb[82].mxu1 }
0x2672   :  { %v14599_v6 = vpack.i.bf16 %v6184_v24, %v16982_v11  ;;  %v14092_v8 = vpop.f32.mrb[83].mxu1  ;;  %v4736_v11 = vadd.f32 %v16868_v31, %v16789_v56  ;;  %v14862_v24 = vld [vmem:[#allocation26 + $0x10] ss:$8 sps:$4 sm:$0xff]  }
0x2673   :  { %v14868_v8 = vld [vmem:[#allocation26 + $0x30] ss:$8 sps:$4 sm:$0xff]  }
0x2674   :  { %14600 = vrot.lane.b32.xlu0 %v14599_v6, %s15809_s14  ;;  %v4742_v29 = vadd.f32 %v4741_v23, %v4736_v11  ;;  %v14870_v6 = vld [vmem:[#allocation26 + $0x34] ss:$8 sps:$4 sm:$0xff]   ;;  %v14880_v11 = vld [vmem:[#allocation26 + $0x70] ss:$8 sps:$4 sm:$0xff]   ;;  %v14884_v23 = vld [vmem:[#allocation25 + $0x8] sm:$0xff]  }
0x2675   :  { %v6350_v9 = vpop.f32.mrb[84].mxu1  ;;  %14136 = vmatpush3.bf16.msra.mxu1 %v14884_v23  ;;  %v6814_v23 = vrot.slane %v6809_v15, %v16375_v4 }
0x2676   :  { %v14604_v12 = vpack.i.bf16 %v6350_v9, %v5675_v27  ;;  %v14102_v14 = vpop.f32.mrb[85].mxu1  ;;  %v14873_v9 = vld [vmem:[#allocation26 + $0x44] ss:$8 sps:$4 sm:$0xff]   ;;  %14137 = vmatprep.subr.bf16.mxu1 %v15828_v13 }
0x2677   :  { %v14876_v14 = vld [vmem:[#allocation26 + $0x54] ss:$8 sps:$4 sm:$0xff]  }
0x2678   :  { %14605 = vrot.lane.b32.xlu1 %v14604_v12, %s15813_s4  ;;  %v14871_v12 = vld [vmem:[#allocation26 + $0x40] ss:$8 sps:$4 sm:$0xff]  }
0x2679   :  { %v6516_v16 = vpop.f32.mrb[86].mxu1 }
0x267a   :  { %v14609_v18 = vpack.i.bf16 %v6516_v16, %v5841_v58  ;;  %v14112_v19 = vpop.f32.mrb[87].mxu1  ;;  %v14874_v16 = vld [vmem:[#allocation26 + $0x50] ss:$8 sps:$4 sm:$0xff]  }
0x267b   :  { %v14877_v19 = vld [vmem:[#allocation26 + $0x60] ss:$8 sps:$4 sm:$0xff]  }
0x267c   :  { %14610 = vrot.lane.b32.xlu0 %v14609_v18, %s15830_s17  ;;  %v14879_v18 = vld [vmem:[#allocation26 + $0x64] ss:$8 sps:$4 sm:$0xff]  }
0x269b   :  { %4747 = vadd.xlane.f32.xlu0 %v4743_v28 }
0x269c   :  { %4745 = vadd.xlane.f32.xlu1 %v4742_v29 }
0x26e6   :  { %v14601_v30 = vpop.permute.xlu0 %14600 }
0x26e7   :  { %v14603_v5 = vunpack.i.h.bf16 %v14601_v30  ;;  %v14602_v46 = vunpack.i.l.bf16 %v14601_v30 }
0x26e9   :  { %v6532_v40 = vsel %vm770_vm5, %v6017_v62, %v14603_v5  ;;  %v5857_v60 = vsel %vm770_vm5, %v16921_v39, %v14602_v46  ;;  %v6645_v39 = vsub.s32 6, %v16372_v3 }
0x26ea   :  { %v14606_v1 = vpop.permute.xlu1 %14605 }
0x26eb   :  { %v14608_v32 = vunpack.i.h.bf16 %v14606_v1  ;;  %v14607_v34 = vunpack.i.l.bf16 %v14606_v1  ;;  %v6646_v51 = vrot.slane %v16875_v17, %v6645_v39 }
0x26ed   :  { %v6533_v48 = vsel %vm1445_vm7, %v6532_v40, %v14608_v32  ;;  %v5858_v43 = vsel %vm1445_vm7, %v5857_v60, %v14607_v34 }
0x26ee   :  { %v14611_v37 = vpop.permute.xlu0 %14610 }
0x26ef   :  { %v14613_v56 = vunpack.i.h.bf16 %v14611_v37  ;;  %v14612_v31 = vunpack.i.l.bf16 %v14611_v37 }
0x26f1   :  { %v5859_v44 = vsel %vm1447_vm8, %v5858_v43, %v14612_v31  ;;  %v6534_v22 = vsel %vm1447_vm8, %v6533_v48, %v14613_v56  ;;  %v4744_v43 = vld [vmem:[#allocation32] sm:$0xf] }
0x26f2   :  { %v6551_v45 = vpack.c.bf16 %v6534_v22, %v5859_v44  ;;  %v4770_v44 = vrot.slane %v4744_v43, %v16375_v4 }
0x26f4   :  { %14130 = vmatmul.mubr.bf16.vlgmr.msra.gmra.mrb[60].mxu0 %v6551_v45 }
0x26f5   :  { %6933 = vmatprep.mubr.bf16.mxu0 %v15827_v0  ;;  %6902 = vmatpush1.bf16.msra.mxu0 %v14859_v47 }
0x26f6   :  { %6903 = vmatprep.subr.bf16.mxu0 %v14864_v63 }
0x26f9   :  { %6904 = vmatpush1.bf16.msra.mxu0 %v14862_v24 }
0x2728   :  { %v4748_v61 = vpop.xlane.xlu0 %4747 }
0x2729   :  { %v4746_v26 = vpop.xlane.xlu1 %4745  ;;  %v4750_v25 = vmul.f32 0.0078125, %v4748_v61  ;;  %v4776_v61 = vrot.slane %v4744_v43, %v16380_v7 }
0x272a   :  { %v4749_v50 = vmul.f32 0.0078125, %v4746_v26 }
0x272b   :  { %v17064_v59 = vsub.f32 %v4743_v28, %v4750_v25 }
0x272c   :  { %v17059_v27 = vsub.f32 %v4742_v29, %v4749_v50  ;;  %v14885_v50 = vld [vmem:[#allocation25 + $0x10] sm:$0xff]  }
0x272d   :  { %v4754_v33 = vmul.f32 %v17064_v59, %v17064_v59  ;;  %14138 = vmatpush3.bf16.msra.mxu1 %v14885_v50 }
0x272e   :  { %14139 = vmatprep.subr.bf16.mxu1 %v15828_v13 }
0x27c7   :  { %v6634_v52 = vpop.f32.mrb[60].mxu0 }
0x27c8   :  { %v6641_v53 = vadd.f32 %v6634_v52, %v16843_v38  ;;  %v14131_v54 = vpop.f32.mrb[61].mxu0  ;;  %v4753_v38 = vmul.f32 %v17059_v27, %v17059_v27 }
0x27c9   :  { %v6637_v55 = vpop.f32.mrb[62].mxu0 }
0x27ca   :  { %v17061_v42 = vadd.f32 %v6646_v51, %v6641_v53  ;;  %v6642_v58 = vadd.f32 %v6637_v55, %v16841_v49  ;;  %v14132_v57 = vpop.f32.mrb[63].mxu0  ;;  %v14867_v49 = vld [vmem:[#allocation26 + $0x24] ss:$8 sps:$4 sm:$0xff]   ;;  %v14886_v53 = vld [vmem:[#allocation25 + $0x18] sm:$0xff]  }
0x27cb   :  { %6905 = vmatprep.subr.bf16.mxu0 %v14867_v49  ;;  %14140 = vmatpush3.bf16.msra.mxu1 %v14886_v53  ;;  %v14887_v55 = vld [vmem:[#allocation25 + $0x20] sm:$0xff]   ;;  %v14890_v57 = vld [vmem:[#allocation25 + $0x38] sm:$0xff]  }
0x27cc   :  { %v17066_v62 = vadd.f32 %v6646_v51, %v6642_v58  ;;  %6649 = vadd.xlane.f32.xlu0 %v17061_v42  ;;  %6906 = vmatpush1.bf16.msra.mxu0 %v14865_v2  ;;  %v14889_v58 = vld [vmem:[#allocation25 + $0x30] sm:$0xff]   ;;  %v6674_v2 = vrot.slane %v16875_v17, %v16393_v21 }
0x27cd   :  { %6907 = vmatprep.subr.bf16.mxu0 %v14870_v6  ;;  %14141 = vmatprep.subr.bf16.mxu1 %v15828_v13 }
0x27ce   :  { %6651 = vadd.xlane.f32.xlu1 %v17066_v62 }
0x27cf   :  { %14142 = vmatpush3.bf16.msra.mxu1 %v14887_v55 }
0x27d0   :  { %4755 = vadd.xlane.f32.xlu0 %v4753_v38  ;;  %6908 = vmatpush1.bf16.msra.mxu0 %v14868_v8 }
0x27d1   :  { %6909 = vmatprep.subr.bf16.mxu0 %v14873_v9  ;;  %14143 = vmatprep.subr.bf16.mxu1 %v15828_v13 }
0x27d2   :  { %4757 = vadd.xlane.f32.xlu1 %v4754_v33 }
0x27d4   :  { %6910 = vmatpush1.bf16.msra.mxu0 %v14871_v12 }
0x27d5   :  { %6911 = vmatprep.subr.bf16.mxu0 %v14876_v14 }
0x27d8   :  { %6912 = vmatpush1.bf16.msra.mxu0 %v14874_v16  ;;  %v6680_v16 = vrot.slane %v16875_v17, %v16575_v36 }
0x27d9   :  { %6913 = vmatprep.subr.bf16.mxu0 %v14879_v18 }
0x27dc   :  { %6914 = vmatpush1.bf16.msra.mxu0 %v14877_v19 }
0x27dd   :  { %6915 = vmatprep.subr.bf16.mxu0 %v14882_v20 }
0x27e0   :  { %6916 = vmatpush1.bf16.msra.mxu0 %v14880_v11 }
0x27e1   :  { %14193 = vmatprep.subr.mxu0 %v15828_v13 }
0x2859   :  { %v6650_v28 = vpop.xlane.xlu0 %6649 }
0x285a   :  { %v6653_v29 = vmul.f32 0.0078125, %v6650_v28 }
0x285b   :  { %v6652_v30 = vpop.xlane.xlu1 %6651 }
0x285c   :  { %v6655_v1 = vsub.f32 %v17061_v42, %v6653_v29  ;;  %v6654_v5 = vmul.f32 0.0078125, %v6652_v30 }
0x285d   :  { %v4756_v46 = vpop.xlane.xlu0 %4755 }
0x285e   :  { %v6656_v32 = vsub.f32 %v17066_v62, %v6654_v5  ;;  %v4759_v34 = vmul.f32 0.0078125, %v4756_v46  ;;  %v6657_v37 = vmul.f32 %v6655_v1, %v6655_v1 }
0x285f   :  { %v4758_v40 = vpop.xlane.xlu1 %4757 }
0x2860   :  { %v4761_v60 = vadd.f32 1e-05, %v4759_v34  ;;  %v4760_v56 = vmul.f32 0.0078125, %v4758_v40  ;;  %6659 = vadd.xlane.f32.xlu0 %v6657_v37  ;;  %v6658_v31 = vmul.f32 %v6656_v32, %v6656_v32  ;;  %v6702_v37 = vsub.s32 7, %v16372_v3 }
0x2862   :  { %15183 = vrsqrt.f32 %v4761_v60  ;;  %v4762_v48 = vadd.f32 1e-05, %v4760_v56  ;;  %6661 = vadd.xlane.f32.xlu1 %v6658_v31  ;;  %v6703_v40 = vrot.slane %v16875_v17, %v6702_v37 }
0x2864   :  { %15185 = vrsqrt.f32 %v4762_v48 }
0x286c   :  { %v15184_v22 = vpop.eup %15183 }
0x286d   :  { %v4765_v45 = vmul.f32 %v15184_v22, %v17059_v27  ;;  %v14888_v27 = vld [vmem:[#allocation25 + $0x28] sm:$0xff]  }
0x286e   :  { %v15186_v47 = vpop.eup %15185  ;;  %14144 = vmatpush3.bf16.msra.mxu1 %v14888_v27 }
0x286f   :  { %v4766_v35 = vmul.f32 %v15186_v47, %v17064_v59  ;;  %v4771_v26 = vmul.f32 %v4770_v44, %v4765_v45  ;;  %14145 = vmatprep.subr.bf16.mxu1 %v15828_v13 }
0x2871   :  { %v4772_v51 = vmul.f32 %v4770_v44, %v4766_v35  ;;  %v4777_v52 = vadd.f32 %v4776_v61, %v4771_v26 }
0x2872   :  { %14146 = vmatpush3.bf16.msra.mxu1 %v14889_v58 }
0x2873   :  { %v4778_v25 = vadd.f32 %v4776_v61, %v4772_v51  ;;  %14147 = vmatprep.subr.bf16.mxu1 %v15828_v13 }
0x2875   :  { %v17084_v54 = vpack.c.bf16 %v4778_v25, %v4777_v52 }
0x2876   :  { %14148 = vmatpush3.bf16.msra.mxu1 %v14890_v57 }
0x2877   :  { %6934 = vmatmul.mubr.bf16.vlgmr.msra.gmra.mrb[64].mxu0 %v17084_v54  ;;  %14153 = vmatprep.subr.mxu1 %v15828_v13 }
0x2878   :  { %14195 = vmatprep.mubr.msk.f32.mxu0 %vm15829_vm4, %v15828_v13 }
0x28ed   :  { %v6660_v59 = vpop.xlane.xlu0 %6659 }
0x28ee   :  { %v6663_v38 = vmul.f32 0.0078125, %v6660_v59 }
0x28ef   :  { %v6662_v33 = vpop.xlane.xlu1 %6661 }
0x28f0   :  { %v6665_v63 = vadd.f32 1e-05, %v6663_v38  ;;  %v6664_v24 = vmul.f32 0.0078125, %v6662_v33 }
0x28f2   :  { %15187 = vrsqrt.f32 %v6665_v63  ;;  %v6666_v49 = vadd.f32 1e-05, %v6664_v24 }
0x28f4   :  { %15189 = vrsqrt.f32 %v6666_v49 }
0x28fc   :  { %v15188_v6 = vpop.eup %15187 }
0x28fd   :  { %v6669_v8 = vmul.f32 %v15188_v6, %v6655_v1  ;;  %v6818_v1 = vrot.slane %v6809_v15, %v16380_v7 }
0x28fe   :  { %v15190_v9 = vpop.eup %15189 }
0x28ff   :  { %v6670_v12 = vmul.f32 %v15190_v9, %v6656_v32  ;;  %v6675_v14 = vmul.f32 %v6674_v2, %v6669_v8 }
0x2901   :  { %v6676_v18 = vmul.f32 %v6674_v2, %v6670_v12  ;;  %v6681_v19 = vadd.f32 %v6680_v16, %v6675_v14 }
0x2903   :  { %v6682_v20 = vadd.f32 %v6680_v16, %v6676_v18 }
0x2905   :  { %v6699_v11 = vpack.c.bf16 %v6682_v20, %v6681_v19 }
0x2907   :  { %14150 = vmatmul.mubr.bf16.vlgmr.msra.gmra.mrb[88].mxu1 %v6699_v11 }
0x2908   :  { %14155 = vmatprep.mubr.msk.f32.mxu1 %vm15829_vm4, %v15828_v13 }
0x294a   :  { %v6935_v28 = vpop.f32.mrb[64].mxu0 }
0x294b   :  { %v6936_v29 = vadd.f32 %v6935_v28, %v6814_v23  ;;  %v6937_v30 = vpop.f32.mrb[65].mxu0 }
0x294c   :  { %v6939_v5 = vpop.f32.mrb[66].mxu0  ;;  %v17117_v48 = vadd.f32 %v6937_v30, %v6818_v1 }
0x294d   :  { %v17102_v46 = vadd.f32 %v6939_v5, %v6814_v23  ;;  %v6941_v32 = vpop.f32.mrb[67].mxu0  ;;  %14154 = vmatpush3.xpose.msk.msra.mxu1 %vm770_vm5, %v6936_v29 }
0x294e   :  { %v17105_v34 = vadd.f32 %v6941_v32, %v6818_v1  ;;  %14158 = vmatprep.subr.mxu1 %v15828_v13 }
0x294f   :  { %14194 = vmatpush3.xpose.msk.msra.mxu0 %vm770_vm5, %v17102_v46 }
0x2950   :  { %14203 = vmatprep.subr.mxu0 %v15828_v13 }
0x29da   :  { %v6786_v60 = vpop.f32.mrb[88].mxu1 }
0x29db   :  { %v17115_v56 = vadd.f32 %v6786_v60, %v6703_v40  ;;  %v14151_v31 = vpop.f32.mrb[89].mxu1 }
0x29dc   :  { %v6789_v43 = vpop.f32.mrb[90].mxu1 }
0x29dd   :  { %v17119_v44 = vadd.f32 %v6789_v43, %v6703_v40  ;;  %v14152_v22 = vpop.f32.mrb[91].mxu1  ;;  %14156 = vmatmul.mubr.msk.f32.vlgmr.msra.gmra.mrb[92].mxu1 %vm770_vm5, %v17115_v56 }
0x29de   :  { %14159 = vmatpush3.msra.mxu1 %v17117_v48  ;;  %14160 = vmatprep.mubr.msk.f32.mxu1 %vm15829_vm4, %v15828_v13 }
0x29df   :  { %14196 = vmatmul.mubr.msk.f32.vlgmr.msra.gmra.mrb[68].mxu0 %vm770_vm5, %v17119_v44  ;;  %14163 = vmatprep.subr.mxu1 %v15828_v13 }
0x29e0   :  { %14205 = vmatprep.mubr.msk.f32.mxu0 %vm15829_vm4, %v15828_v13 }
0x2ab0   :  { %v7016_v17 = vpop.f32.mrb[92].mxu1 }
0x2ab1   :  { %v7020_v45 = vmul.f32 0.17677669, %v7016_v17  ;;  %v14157_v47 = vpop.f32.mrb[93].mxu1 }
0x2ab2   :  { %v17131_v35 = vpop.f32.mrb[68].mxu0 }
0x2ab3   :  { %v14197_v26 = vpop.f32.mrb[69].mxu0  ;;  %v7021_v61 = vsel %vm848_vm6, %v7020_v45, -inf  ;;  %v7695_v32 = vmul.f32 0.17677669, %v17131_v35 }
0x2ab4   :  { %7022 = vmax.xlane.f32.xlu0 %v7021_v61 }
0x2ab5   :  { %v7696_v40 = vsel %vm848_vm6, %v7695_v32, -inf }
0x2aca   :  { %7107 = vrot.lane.b32.xlu0 %v6936_v29, %s15830_s17 }
0x2b41   :  { %v7023_v50 = vpop.xlane.xlu0 %7022 }
0x2b42   :  { %v7024_v51 = vsub.f32 %v7020_v45, %v7023_v50 }
0x2b44   :  { %v7025_v52 = vmul.f32 1.442695, %v7024_v51 }
0x2b45   :  { %v7108_v57 = vpop.permute.xlu0 %7107 }
0x2b46   :  { %15191 = vpow2.f32 %v7025_v52 }
0x2b50   :  { %v15192_v25 = vpop.eup %15191 }
0x2b51   :  { %v7027_v53 = vsel %vm848_vm6, %v15192_v25, 0.0 }
0x2b52   :  { %7028 = vadd.xlane.f32.xlu1 %v7027_v53 }
0x2b63   :  { %7105 = vrot.lane.b32.xlu1 %v17115_v56, %s15830_s17 }
0x2bdf   :  { %v7029_v55 = vpop.xlane.xlu1 %7028 }
0x2be0   :  { %15193 = vrcp.f32 %v7029_v55 }
0x2be3   :  { %v7106_v59 = vpop.permute.xlu1 %7105 }
0x2bea   :  { %v15194_v27 = vpop.eup %15193 }
0x2beb   :  { %v7031_v58 = vmul.f32 %v15194_v27, %v15192_v25 }
0x2bed   :  { %14161 = vmatmul.mubr.msk.f32.vlgmr.msra.gmra.mrb[94].mxu1 %vm848_vm6, %v7031_v58 }
0x2bee   :  { %14164 = vmatpush3.xpose.msk.msra.mxu1 %vm770_vm5, %v7108_v57  ;;  %14165 = vmatprep.mubr.msk.f32.mxu1 %vm15829_vm4, %v15828_v13 }
0x2bef   :  { %14168 = vmatprep.subr.mxu1 %v15828_v13 }
0x2bf1   :  { %14166 = vmatmul.mubr.msk.f32.vlgmr.msra.gmra.mrb[96].mxu1 %vm770_vm5, %v7106_v59 }
0x2bf2   :  { %14170 = vmatprep.mubr.msk.f32.mxu1 %vm15829_vm4, %v15828_v13 }
0x2cc0   :  { %v17146_v38 = vpop.f32.mrb[94].mxu1 }
0x2cc1   :  { %v14162_v33 = vpop.f32.mrb[95].mxu1 }
0x2cc4   :  { %v7179_v63 = vpop.f32.mrb[96].mxu1 }
0x2cc5   :  { %v7183_v24 = vmul.f32 0.17677669, %v7179_v63  ;;  %v14167_v49 = vpop.f32.mrb[97].mxu1 }
0x2cc7   :  { %v7184_v2 = vsel %vm848_vm6, %v7183_v24, -inf }
0x2cc8   :  { %7185 = vmax.xlane.f32.xlu1 %v7184_v2 }
0x2cd9   :  { %7274 = vrot.lane.b32.xlu1 %v6936_v29, %s15813_s4 }
0x2cdd   :  { %7272 = vrot.lane.b32.xlu1 %v17115_v56, %s15813_s4 }
0x2ce1   :  { %7440 = vrot.lane.b32.xlu1 %v6936_v29, %s15809_s14 }
0x2d55   :  { %v7186_v6 = vpop.xlane.xlu1 %7185 }
0x2d56   :  { %v7187_v8 = vsub.f32 %v7183_v24, %v7186_v6 }
0x2d58   :  { %v7188_v9 = vmul.f32 1.442695, %v7187_v8 }
0x2d59   :  { %v7275_v20 = vpop.permute.xlu1 %7274 }
0x2d5a   :  { %15195 = vpow2.f32 %v7188_v9 }
0x2d5d   :  { %v7273_v15 = vpop.permute.xlu1 %7272 }
0x2d64   :  { %v15196_v12 = vpop.eup %15195 }
0x2d65   :  { %v7190_v14 = vsel %vm848_vm6, %v15196_v12, 0.0 }
0x2d66   :  { %7191 = vadd.xlane.f32.xlu0 %v7190_v14 }
0x2d7c   :  { %7196 = vrot.lane.b32.xlu0 %v17117_v48, %s15830_s17 }
0x2df3   :  { %v7192_v16 = vpop.xlane.xlu0 %7191 }
0x2df4   :  { %15197 = vrcp.f32 %v7192_v16 }
0x2df7   :  { %v7197_v18 = vpop.permute.xlu0 %7196 }
0x2df8   :  { %14169 = vmatpush3.msra.mxu1 %v7197_v18 }
0x2df9   :  { %14173 = vmatprep.subr.mxu1 %v15828_v13 }
0x2dfe   :  { %v15198_v19 = vpop.eup %15197 }
0x2dff   :  { %v7194_v11 = vmul.f32 %v15198_v19, %v15196_v12 }
0x2e01   :  { %14171 = vmatmul.mubr.msk.f32.vlgmr.msra.gmra.mrb[98].mxu1 %vm848_vm6, %v7194_v11 }
0x2e02   :  { %14174 = vmatpush3.xpose.msk.msra.mxu1 %vm770_vm5, %v7275_v20  ;;  %14175 = vmatprep.mubr.msk.f32.mxu1 %vm15829_vm4, %v15828_v13 }
0x2e03   :  { %14178 = vmatprep.subr.mxu1 %v15828_v13 }
0x2e05   :  { %14176 = vmatmul.mubr.msk.f32.vlgmr.msra.gmra.mrb[100].mxu1 %vm770_vm5, %v7273_v15 }
0x2e06   :  { %14180 = vmatprep.mubr.msk.f32.mxu1 %vm15829_vm4, %v15828_v13 }
0x2ed4   :  { %v17165_v23 = vpop.f32.mrb[98].mxu1 }
0x2ed5   :  { %v14172_v28 = vpop.f32.mrb[99].mxu1 }
0x2ed8   :  { %v7346_v29 = vpop.f32.mrb[100].mxu1 }
0x2ed9   :  { %v7350_v30 = vmul.f32 0.17677669, %v7346_v29  ;;  %v14177_v1 = vpop.f32.mrb[101].mxu1 }
0x2edb   :  { %v7351_v5 = vsel %vm848_vm6, %v7350_v30, -inf }
0x2edc   :  { %7352 = vmax.xlane.f32.xlu0 %v7351_v5 }
0x2ef2   :  { %7362 = vrot.lane.b32.xlu0 %v17117_v48, %s15813_s4 }
0x2ef6   :  { %7438 = vrot.lane.b32.xlu0 %v17115_v56, %s15809_s14 }
0x2efa   :  { %7780 = vrot.lane.b32.xlu0 %v17119_v44, %s15830_s17 }
0x2efe   :  { %7947 = vrot.lane.b32.xlu0 %v17119_v44, %s15813_s4 }
0x2f02   :  { %8113 = vrot.lane.b32.xlu0 %v17119_v44, %s15809_s14  ;;  %v7441_v44 = vpop.permute.xlu1 %7440 }
0x2f21   :  { %7697 = vmax.xlane.f32.xlu0 %v7696_v40 }
0x2f69   :  { %v7353_v60 = vpop.xlane.xlu0 %7352 }
0x2f6a   :  { %v7354_v31 = vsub.f32 %v7350_v30, %v7353_v60 }
0x2f6c   :  { %v7355_v43 = vmul.f32 1.442695, %v7354_v31 }
0x2f6d   :  { %v7363_v22 = vpop.permute.xlu0 %7362 }
0x2f6e   :  { %15199 = vpow2.f32 %v7355_v43  ;;  %14179 = vmatpush3.msra.mxu1 %v7363_v22 }
0x2f6f   :  { %14183 = vmatprep.subr.mxu1 %v15828_v13 }
0x2f71   :  { %v7439_v45 = vpop.permute.xlu0 %7438 }
0x2f75   :  { %v7781_v35 = vpop.permute.xlu0 %7780 }
0x2f78   :  { %v15200_v56 = vpop.eup %15199 }
0x2f79   :  { %v7357_v17 = vsel %vm848_vm6, %v15200_v56, 0.0  ;;  %v7948_v50 = vpop.permute.xlu0 %7947 }
0x2f7a   :  { %7358 = vadd.xlane.f32.xlu1 %v7357_v17 }
0x2f7d   :  { %v8114_v25 = vpop.permute.xlu0 %8113 }
0x2f8b   :  { %7782 = vrot.lane.b32.xlu1 %v17102_v46, %s15830_s17 }
0x2f8f   :  { %7949 = vrot.lane.b32.xlu1 %v17102_v46, %s15813_s4 }
0x2f93   :  { %8115 = vrot.lane.b32.xlu1 %v17102_v46, %s15809_s14 }
0x2fae   :  { %v7698_v53 = vpop.xlane.xlu0 %7697 }
0x2faf   :  { %v7699_v55 = vsub.f32 %v7695_v32, %v7698_v53 }
0x2fb1   :  { %v7700_v27 = vmul.f32 1.442695, %v7699_v55 }
0x3007   :  { %v7359_v47 = vpop.xlane.xlu1 %7358 }
0x3008   :  { %15201 = vrcp.f32 %v7359_v47 }
0x3009   :  { %15203 = vpow2.f32 %v7700_v27 }
0x300b   :  { %v7783_v26 = vpop.permute.xlu1 %7782 }
0x300c   :  { %14204 = vmatpush3.xpose.msk.msra.mxu0 %vm770_vm5, %v7783_v26 }
0x300d   :  { %14213 = vmatprep.subr.mxu0 %v15828_v13 }
0x300f   :  { %v7950_v61 = vpop.permute.xlu1 %7949  ;;  %14206 = vmatmul.mubr.msk.f32.vlgmr.msra.gmra.mrb[70].mxu0 %vm770_vm5, %v7781_v35 }
0x3010   :  { %14214 = vmatpush3.xpose.msk.msra.mxu0 %vm770_vm5, %v7950_v61  ;;  %14215 = vmatprep.mubr.msk.f32.mxu0 %vm15829_vm4, %v15828_v13 }
0x3011   :  { %14223 = vmatprep.subr.mxu0 %v15828_v13 }
0x3012   :  { %v15202_v46 = vpop.eup %15201 }
0x3013   :  { %v8116_v51 = vpop.permute.xlu1 %8115  ;;  %14216 = vmatmul.mubr.msk.f32.vlgmr.msra.gmra.mrb[72].mxu0 %vm770_vm5, %v7948_v50  ;;  %v7361_v52 = vmul.f32 %v15202_v46, %v15200_v56  ;;  %v15204_v19 = vpop.eup %15203 }
0x3014   :  { %14224 = vmatpush3.xpose.msk.msra.mxu0 %vm770_vm5, %v8116_v51  ;;  %14225 = vmatprep.mubr.msk.f32.mxu0 %vm15829_vm4, %v15828_v13  ;;  %v7702_v15 = vsel %vm848_vm6, %v15204_v19, 0.0 }
0x3015   :  { %14181 = vmatmul.mubr.msk.f32.vlgmr.msra.gmra.mrb[102].mxu1 %vm848_vm6, %v7361_v52  ;;  %14233 = vmatprep.subr.bf16.mxu0 %v15828_v13 }
0x3016   :  { %14184 = vmatpush3.xpose.msk.msra.mxu1 %vm770_vm5, %v7441_v44  ;;  %14185 = vmatprep.mubr.msk.f32.mxu1 %vm15829_vm4, %v15828_v13 }
0x3017   :  { %14226 = vmatmul.mubr.msk.f32.vlgmr.msra.gmra.mrb[74].mxu0 %vm770_vm5, %v8114_v25  ;;  %14188 = vmatprep.subr.mxu1 %v15828_v13 }
0x3018   :  { %14249 = vmatprep.mubr.msk.bf16.mxu0 %vm15829_vm4, %v15828_v13 }
0x3019   :  { %14186 = vmatmul.mubr.msk.f32.vlgmr.msra.gmra.mrb[104].mxu1 %vm770_vm5, %v7439_v45 }
0x301a   :  { %14190 = vmatprep.mubr.msk.f32.mxu1 %vm15829_vm4, %v15828_v13 }
0x30e2   :  { %v7854_v58 = vpop.f32.mrb[70].mxu0 }
0x30e3   :  { %v7858_v57 = vmul.f32 0.17677669, %v7854_v58  ;;  %v14207_v59 = vpop.f32.mrb[71].mxu0 }
0x30e5   :  { %v7859_v33 = vsel %vm848_vm6, %v7858_v57, -inf }
0x30e6   :  { %7860 = vmax.xlane.f32.xlu0 %v7859_v33  ;;  %v8021_v63 = vpop.f32.mrb[72].mxu0 }
0x30e7   :  { %v14217_v24 = vpop.f32.mrb[73].mxu0  ;;  %v8025_v20 = vmul.f32 0.17677669, %v8021_v63 }
0x30e8   :  { %v17212_v49 = vpop.f32.mrb[102].mxu1 }
0x30e9   :  { %v14182_v2 = vpop.f32.mrb[103].mxu1  ;;  %v8026_v28 = vsel %vm848_vm6, %v8025_v20, -inf }
0x30ea   :  { %v8187_v6 = vpop.f32.mrb[74].mxu0 }
0x30eb   :  { %v8191_v8 = vmul.f32 0.17677669, %v8187_v6  ;;  %v14227_v9 = vpop.f32.mrb[75].mxu0 }
0x30ec   :  { %v7512_v12 = vpop.f32.mrb[104].mxu1 }
0x30ed   :  { %v7516_v14 = vmul.f32 0.17677669, %v7512_v12  ;;  %v14187_v16 = vpop.f32.mrb[105].mxu1  ;;  %v8192_v18 = vsel %vm848_vm6, %v8191_v8, -inf }
0x30ee   :  { %8193 = vmax.xlane.f32.xlu0 %v8192_v18  ;;  %v14892_v16 = vld [vmem:[#allocation28 + $0x8] sm:$0xff]   ;;  %v14893_v18 = vld [vmem:[#allocation28 + $0x10] sm:$0xff]  }
0x30ef   :  { %v7517_v11 = vsel %vm848_vm6, %v7516_v14, -inf }
0x30f0   :  { %7518 = vmax.xlane.f32.xlu1 %v7517_v11 }
0x30f2   :  { %7703 = vadd.xlane.f32.xlu0 %v7702_v15  ;;  %v14896_v15 = vld [vmem:[#allocation28 + $0x28] sm:$0xff]  }
0x30f4   :  { %8027 = vmax.xlane.f32.xlu1 %v8026_v28 }
0x3173   :  { %v7861_v29 = vpop.xlane.xlu0 %7860 }
0x3174   :  { %v7862_v30 = vsub.f32 %v7858_v57, %v7861_v29 }
0x3176   :  { %v7863_v1 = vmul.f32 1.442695, %v7862_v30  ;;  %v14897_v30 = vld [vmem:[#allocation28 + $0x30] sm:$0xff]  }
0x3178   :  { %15205 = vpow2.f32 %v7863_v1 }
0x317b   :  { %v8194_v5 = vpop.xlane.xlu0 %8193 }
0x317c   :  { %v8195_v32 = vsub.f32 %v8191_v8, %v8194_v5 }
0x317d   :  { %v7519_v40 = vpop.xlane.xlu1 %7518 }
0x317e   :  { %v8196_v60 = vmul.f32 1.442695, %v8195_v32  ;;  %v7520_v31 = vsub.f32 %v7516_v14, %v7519_v40  ;;  %v14891_v14 = vld [vmem:[#allocation28] sm:$0xff]   ;;  %v14898_v32 = vld [vmem:[#allocation28 + $0x38] sm:$0xff]  }
0x317f   :  { %v7704_v25 = vpop.xlane.xlu0 %7703  ;;  %14234 = vmatpush3.bf16.msra.mxu0 %v14891_v14  ;;  %v14902_v14 = vld [vmem:[#allocation29 + $0x10] ss:$8 sps:$4 sm:$0xff]  }
0x3180   :  { %15207 = vpow2.f32 %v8196_v60  ;;  %v7521_v43 = vmul.f32 1.442695, %v7520_v31  ;;  %14235 = vmatprep.subr.bf16.mxu0 %v15828_v13 }
0x3181   :  { %v8028_v22 = vpop.xlane.xlu1 %8027 }
0x3182   :  { %v15206_v56 = vpop.eup %15205  ;;  %15209 = vpow2.f32 %v7521_v43  ;;  %v8029_v17 = vsub.f32 %v8025_v20, %v8028_v22  ;;  %v14895_v20 = vld [vmem:[#allocation28 + $0x20] sm:$0xff]  }
0x3183   :  { %v7865_v44 = vsel %vm848_vm6, %v15206_v56, 0.0  ;;  %14236 = vmatpush3.bf16.msra.mxu0 %v14892_v16 }
0x3184   :  { %v8030_v45 = vmul.f32 1.442695, %v8029_v17  ;;  %7866 = vadd.xlane.f32.xlu1 %v7865_v44  ;;  %14237 = vmatprep.subr.bf16.mxu0 %v15828_v13 }
0x3186   :  { %15211 = vpow2.f32 %v8030_v45 }
0x3187   :  { %14238 = vmatpush3.bf16.msra.mxu0 %v14893_v18 }
0x3188   :  { %14239 = vmatprep.subr.bf16.mxu0 %v15828_v13 }
0x318a   :  { %v15208_v47 = vpop.eup %15207 }
0x318b   :  { %v8198_v35 = vsel %vm848_vm6, %v15208_v47, 0.0 }
0x318c   :  { %v15210_v26 = vpop.eup %15209  ;;  %8199 = vadd.xlane.f32.xlu1 %v8198_v35 }
0x318d   :  { %v7523_v61 = vsel %vm848_vm6, %v15210_v26, 0.0 }
0x3190   :  { %v15212_v50 = vpop.eup %15211  ;;  %7524 = vadd.xlane.f32.xlu1 %v7523_v61 }
0x3191   :  { %v8032_v46 = vsel %vm848_vm6, %v15212_v50, 0.0 }
0x3192   :  { %8033 = vadd.xlane.f32.xlu0 %v8032_v46 }
0x31a1   :  { %7871 = vrot.lane.b32.xlu1 %v17105_v34, %s15830_s17 }
0x31a5   :  { %8037 = vrot.lane.b32.xlu1 %v17105_v34, %s15813_s4 }
0x31a8   :  { %7528 = vrot.lane.b32.xlu0 %v17117_v48, %s15809_s14 }
0x31ac   :  { %8203 = vrot.lane.b32.xlu0 %v17105_v34, %s15809_s14 }
0x3211   :  { %v7867_v51 = vpop.xlane.xlu1 %7866 }
0x3219   :  { %v8200_v52 = vpop.xlane.xlu1 %8199 }
0x321d   :  { %v7525_v53 = vpop.xlane.xlu1 %7524 }
0x321e   :  { %15213 = vrcp.f32 %v7525_v53 }
0x321f   :  { %v8034_v55 = vpop.xlane.xlu0 %8033  ;;  %15215 = vrcp.f32 %v7704_v25 }
0x3220   :  { %15217 = vrcp.f32 %v7867_v51 }
0x3221   :  { %15219 = vrcp.f32 %v8034_v55  ;;  %v7872_v48 = vpop.permute.xlu1 %7871 }
0x3222   :  { %15221 = vrcp.f32 %v8200_v52 }
0x3223   :  { %v7529_v27 = vpop.permute.xlu0 %7528 }
0x3224   :  { %14189 = vmatpush3.msra.mxu1 %v7529_v27 }
0x3225   :  { %14198 = vmatprep.subr.mxu1 %v15828_v13  ;;  %v8038_v6 = vpop.permute.xlu1 %8037 }
0x3227   :  { %v8204_v9 = vpop.permute.xlu0 %8203 }
0x3228   :  { %v15214_v58 = vpop.eup %15213 }
0x3229   :  { %v7527_v57 = vmul.f32 %v15214_v58, %v15210_v26  ;;  %v15216_v59 = vpop.eup %15215 }
0x322a   :  { %v7706_v33 = vmul.f32 %v15216_v59, %v15204_v19  ;;  %v15218_v63 = vpop.eup %15217  ;;  %v14894_v19 = vld [vmem:[#allocation28 + $0x18] sm:$0xff]  }
0x322b   :  { %14191 = vmatmul.mubr.msk.f32.vlgmr.msra.gmra.mrb[106].mxu1 %vm848_vm6, %v7527_v57  ;;  %v7869_v24 = vmul.f32 %v15218_v63, %v15206_v56  ;;  %v15220_v2 = vpop.eup %15219  ;;  %14240 = vmatpush3.bf16.msra.mxu0 %v14894_v19  ;;  %v17271_v57 = vld [vmem:[%s17818_s13 + $0x8] sm:$0xff] }
0x322c   :  { %14199 = vmatpush3.msra.mxu1 %v17105_v34  ;;  %14200 = vmatprep.mubr.msk.f32.mxu1 %vm15829_vm4, %v15828_v13  ;;  %v8036_v34 = vmul.f32 %v15220_v2, %v15212_v50  ;;  %v15222_v8 = vpop.eup %15221 }
0x322d   :  { %14208 = vmatprep.subr.mxu1 %v15828_v13  ;;  %v8202_v12 = vmul.f32 %v15222_v8, %v15208_v47  ;;  %14241 = vmatprep.subr.bf16.mxu0 %v15828_v13  ;;  %v14899_v8 = vld [vmem:[#allocation29] ss:$8 sps:$4 sm:$0xff]  }
0x322f   :  { %14201 = vmatmul.mubr.msk.f32.vlgmr.msra.gmra.mrb[108].mxu1 %vm848_vm6, %v7706_v33  ;;  %14242 = vmatpush3.bf16.msra.mxu0 %v14895_v20 }
0x3230   :  { %14209 = vmatpush3.msra.mxu1 %v7872_v48  ;;  %14210 = vmatprep.mubr.msk.f32.mxu1 %vm15829_vm4, %v15828_v13 }
0x3231   :  { %14218 = vmatprep.subr.mxu1 %v15828_v13  ;;  %14243 = vmatprep.subr.bf16.mxu0 %v15828_v13 }
0x3233   :  { %14211 = vmatmul.mubr.msk.f32.vlgmr.msra.gmra.mrb[110].mxu1 %vm848_vm6, %v7869_v24  ;;  %14244 = vmatpush3.bf16.msra.mxu0 %v14896_v15 }
0x3234   :  { %14219 = vmatpush3.msra.mxu1 %v8038_v6  ;;  %14220 = vmatprep.mubr.msk.f32.mxu1 %vm15829_vm4, %v15828_v13 }
0x3235   :  { %14228 = vmatprep.subr.mxu1 %v15828_v13  ;;  %14245 = vmatprep.subr.bf16.mxu0 %v15828_v13 }
0x3237   :  { %14221 = vmatmul.mubr.msk.f32.vlgmr.msra.gmra.mrb[112].mxu1 %vm848_vm6, %v8036_v34  ;;  %14246 = vmatpush3.bf16.msra.mxu0 %v14897_v30  ;;  %v14910_v30 = vld [vmem:[#allocation29 + $0x34] ss:$8 sps:$4 sm:$0xff]  }
0x3238   :  { %14229 = vmatpush3.msra.mxu1 %v8204_v9  ;;  %14230 = vmatprep.mubr.msk.f32.mxu1 %vm15829_vm4, %v15828_v13  ;;  %v14901_v9 = vld [vmem:[#allocation29 + $0x4] ss:$8 sps:$4 sm:$0xff]  }
0x3239   :  { %14247 = vmatprep.subr.bf16.mxu0 %v15828_v13  ;;  %8551 = vmatprep.subr.bf16.mxu1 %v14901_v9 }
0x323b   :  { %14231 = vmatmul.mubr.msk.f32.vlgmr.msra.gmra.mrb[114].mxu1 %vm848_vm6, %v8202_v12  ;;  %14248 = vmatpush3.bf16.msra.mxu0 %v14898_v32  ;;  %v14904_v12 = vld [vmem:[#allocation29 + $0x14] ss:$8 sps:$4 sm:$0xff]   ;;  %v14911_v32 = vld [vmem:[#allocation29 + $0x40] ss:$8 sps:$4 sm:$0xff]  }
0x323c   :  { %8583 = vmatprep.mubr.bf16.mxu1 %v15827_v0  ;;  %8552 = vmatpush1.bf16.msra.mxu1 %v14899_v8 }
0x323d   :  { %8553 = vmatprep.subr.bf16.mxu1 %v14904_v12 }
0x3240   :  { %8554 = vmatpush1.bf16.msra.mxu1 %v14902_v14 }
0x32fe   :  { %v7600_v11 = vpop.f32.mrb[106].mxu1 }
0x32ff   :  { %v14192_v28 = vpop.f32.mrb[107].mxu1 }
0x3300   :  { %v14907_v28 = vld [vmem:[#allocation29 + $0x24] ss:$8 sps:$4 sm:$0xff]  }
0x3301   :  { %8555 = vmatprep.subr.bf16.mxu1 %v14907_v28 }
0x3302   :  { %v7776_v29 = vpop.f32.mrb[108].mxu1 }
0x3303   :  { %v14202_v1 = vpop.f32.mrb[109].mxu1 }
0x3304   :  { %v14908_v1 = vld [vmem:[#allocation29 + $0x30] ss:$8 sps:$4 sm:$0xff]  }
0x3306   :  { %v7943_v5 = vpop.f32.mrb[110].mxu1 }
0x3307   :  { %v14614_v40 = vpack.i.bf16 %v7943_v5, %v17165_v23  ;;  %v14212_v60 = vpop.f32.mrb[111].mxu1  ;;  %v14913_v5 = vld [vmem:[#allocation29 + $0x44] ss:$8 sps:$4 sm:$0xff]  }
0x3308   :  { %v14914_v60 = vld [vmem:[#allocation29 + $0x50] ss:$8 sps:$4 sm:$0xff]  }
0x3309   :  { %14615 = vrot.lane.b32.xlu1 %v14614_v40, %s15809_s14  ;;  %v14916_v40 = vld [vmem:[#allocation29 + $0x54] ss:$8 sps:$4 sm:$0xff]  }
0x330a   :  { %v8109_v31 = vpop.f32.mrb[112].mxu1 }
0x330b   :  { %v14619_v43 = vpack.i.bf16 %v8109_v31, %v17212_v49  ;;  %v14222_v22 = vpop.f32.mrb[113].mxu1  ;;  %v14917_v31 = vld [vmem:[#allocation29 + $0x60] ss:$8 sps:$4 sm:$0xff]  }
0x330c   :  { %v14922_v22 = vld [vmem:[#allocation29 + $0x74] ss:$8 sps:$4 sm:$0xff]  }
0x330d   :  { %14620 = vrot.lane.b32.xlu0 %v14619_v43, %s15813_s4  ;;  %v14919_v43 = vld [vmem:[#allocation29 + $0x64] ss:$8 sps:$4 sm:$0xff]  }
0x330e   :  { %v8275_v56 = vpop.f32.mrb[114].mxu1 }
0x330f   :  { %v14624_v17 = vpack.i.bf16 %v8275_v56, %v7600_v11  ;;  %v14232_v44 = vpop.f32.mrb[115].mxu1  ;;  %v14920_v56 = vld [vmem:[#allocation29 + $0x70] ss:$8 sps:$4 sm:$0xff]  }
0x3310   :  { %v14924_v44 = vld [vmem:[#allocation31] sm:$0xff]  }
0x3311   :  { %14625 = vrot.lane.b32.xlu1 %v14624_v17, %s15830_s17  ;;  %v14923_v17 = vld [vmem:[#allocation31 + $0x40] sm:$0xff]  }
0x3312   :  { %13596 = vmatprep.subr.bf16.mxu0 %v14923_v17 }
0x337b   :  { %v14616_v45 = vpop.permute.xlu1 %14615 }
0x337c   :  { %v14618_v35 = vunpack.i.h.bf16 %v14616_v45  ;;  %v14617_v26 = vunpack.i.l.bf16 %v14616_v45  ;;  %v14925_v45 = vld [vmem:[#allocation31 + $0x48] sm:$0xff]  }
0x337e   :  { %v8291_v46 = vsel %vm770_vm5, %v7776_v29, %v14618_v35  ;;  %v7616_v49 = vsel %vm770_vm5, %v17146_v38, %v14617_v26  ;;  %v8405_v38 = vrot.slane %v17271_v57, %v16375_v4  ;;  %v14905_v29 = vld [vmem:[#allocation29 + $0x20] ss:$8 sps:$4 sm:$0xff]   ;;  %v14927_v35 = vld [vmem:[#allocation31 + $0x50] sm:$0xff]  }
0x337f   :  { %v14621_v47 = vpop.permute.xlu0 %14620  ;;  %8556 = vmatpush1.bf16.msra.mxu1 %v14905_v29  ;;  %v14928_v26 = vld [vmem:[#allocation31 + $0x10] sm:$0xff]  }
0x3380   :  { %v14623_v23 = vunpack.i.h.bf16 %v14621_v47  ;;  %v14622_v61 = vunpack.i.l.bf16 %v14621_v47  ;;  %8557 = vmatprep.subr.bf16.mxu1 %v14910_v30  ;;  %v14926_v47 = vld [vmem:[#allocation31 + $0x8] sm:$0xff]  }
0x3382   :  { %v8292_v25 = vsel %vm1445_vm7, %v8291_v46, %v14623_v23  ;;  %v7617_v53 = vsel %vm1445_vm7, %v7616_v49, %v14622_v61  ;;  %v14929_v23 = vld [vmem:[#allocation31 + $0x58] sm:$0xff]   ;;  %v14932_v46 = vld [vmem:[#allocation31 + $0x20] sm:$0xff]   ;;  %v14933_v49 = vld [vmem:[#allocation31 + $0x68] sm:$0xff]  }
0x3383   :  { %v14626_v50 = vpop.permute.xlu1 %14625  ;;  %8558 = vmatpush1.bf16.msra.mxu1 %v14908_v1  ;;  %v14930_v61 = vld [vmem:[#allocation31 + $0x18] sm:$0xff]  }
0x3384   :  { %v14628_v51 = vunpack.i.h.bf16 %v14626_v50  ;;  %v14627_v52 = vunpack.i.l.bf16 %v14626_v50  ;;  %8559 = vmatprep.subr.bf16.mxu1 %v14913_v5  ;;  %v14931_v50 = vld [vmem:[#allocation31 + $0x60] sm:$0xff]  }
0x3386   :  { %v8293_v55 = vsel %vm1447_vm8, %v8292_v25, %v14628_v51  ;;  %v7618_v27 = vsel %vm1447_vm8, %v7617_v53, %v14627_v52 }
0x3387   :  { %v8310_v58 = vpack.c.bf16 %v8293_v55, %v7618_v27  ;;  %8560 = vmatpush1.bf16.msra.mxu1 %v14911_v32 }
0x3388   :  { %8561 = vmatprep.subr.bf16.mxu1 %v14916_v40 }
0x3389   :  { %14250 = vmatmul.mubr.bf16.vlgmr.msra.gmra.mrb[76].mxu0 %v8310_v58 }
0x338a   :  { %13597 = vmatpush3.bf16.msra.mxu0 %v14924_v44 }
0x338b   :  { %8562 = vmatpush1.bf16.msra.mxu1 %v14914_v60  ;;  %13598 = vmatprep.subr.bf16.mxu0 %v14925_v45 }
0x338c   :  { %8563 = vmatprep.subr.bf16.mxu1 %v14919_v43 }
0x338e   :  { %13599 = vmatpush3.bf16.msra.mxu0 %v14926_v47 }
0x338f   :  { %8564 = vmatpush1.bf16.msra.mxu1 %v14917_v31  ;;  %13600 = vmatprep.subr.bf16.mxu0 %v14927_v35 }
0x3390   :  { %8565 = vmatprep.subr.bf16.mxu1 %v14922_v22 }
0x3392   :  { %13601 = vmatpush3.bf16.msra.mxu0 %v14928_v26 }
0x3393   :  { %8566 = vmatpush1.bf16.msra.mxu1 %v14920_v56  ;;  %13602 = vmatprep.subr.bf16.mxu0 %v14929_v23  ;;  %v8774_v23 = vrot.slane %v17271_v57, %v16380_v7  ;;  %v14946_v57 = vld [vmem:[#allocation22 + $0xe0] ss:$12 sps:$4 sm:$0xff]  }
0x3396   :  { %13603 = vmatpush3.bf16.msra.mxu0 %v14930_v61 }
0x3397   :  { %13604 = vmatprep.subr.bf16.mxu0 %v14931_v50 }
0x339a   :  { %13605 = vmatpush3.bf16.msra.mxu0 %v14932_v46 }
0x339b   :  { %13606 = vmatprep.subr.bf16.mxu0 %v14933_v49 }
0x345c   :  { %v8393_v59 = vpop.f32.mrb[76].mxu0 }
0x345d   :  { %v8400_v48 = vadd.f32 %v8393_v59, %v17061_v42  ;;  %v14251_v33 = vpop.f32.mrb[77].mxu0  ;;  %v15308_v59 = vld [vmem:[%s17818_s13] sm:$0xff] }
0x345e   :  { %v8396_v63 = vpop.f32.mrb[78].mxu0 }
0x345f   :  { %v17276_v24 = vadd.f32 %v8405_v38, %v8400_v48  ;;  %v8401_v2 = vadd.f32 %v8396_v63, %v17066_v62  ;;  %v14252_v6 = vpop.f32.mrb[79].mxu0  ;;  %v8433_v48 = vrot.slane %v15308_v59, %v16550_v41 }
0x3460   :  { %v8439_v6 = vrot.slane %v15308_v59, %v16588_v10 }
0x3461   :  { %v17279_v34 = vadd.f32 %v8405_v38, %v8401_v2  ;;  %8408 = vadd.xlane.f32.xlu0 %v17276_v24 }
0x3463   :  { %8410 = vadd.xlane.f32.xlu1 %v17279_v34 }
0x34ee   :  { %v8409_v42 = vpop.xlane.xlu0 %8408 }
0x34ef   :  { %v8412_v16 = vmul.f32 0.0078125, %v8409_v42  ;;  %v14934_v42 = vld [vmem:[#allocation31 + $0x28] sm:$0xff]  }
0x34f0   :  { %v8411_v18 = vpop.xlane.xlu1 %8410  ;;  %13607 = vmatpush3.bf16.msra.mxu0 %v14934_v42  ;;  %v14954_v42 = vld [vmem:[#allocation22 + $0x110] ss:$12 sps:$4 sm:$0xff]  }
0x34f1   :  { %v8414_v62 = vsub.f32 %v17276_v24, %v8412_v16  ;;  %v8413_v19 = vmul.f32 0.0078125, %v8411_v18  ;;  %v14935_v16 = vld [vmem:[#allocation31 + $0x70] sm:$0xff]  }
0x34f2   :  { %v14936_v18 = vld [vmem:[#allocation31 + $0x30] sm:$0xff]   ;;  %13608 = vmatprep.subr.bf16.mxu0 %v14935_v16 }
0x34f3   :  { %v17285_v20 = vsub.f32 %v17279_v34, %v8413_v19  ;;  %v8416_v11 = vmul.f32 %v8414_v62, %v8414_v62  ;;  %v14938_v19 = vld [vmem:[#allocation31 + $0x38] sm:$0xff]   ;;  %v14957_v16 = vld [vmem:[#allocation22 + $0x124] ss:$12 sps:$4 sm:$0xff]  }
0x34f4   :  { %13609 = vmatpush3.bf16.msra.mxu0 %v14936_v18  ;;  %v14955_v18 = vld [vmem:[#allocation22 + $0x120] ss:$12 sps:$4 sm:$0xff]  }
0x34f5   :  { %8418 = vadd.xlane.f32.xlu0 %v8416_v11  ;;  %v8417_v15 = vmul.f32 %v17285_v20, %v17285_v20 }
0x34f9   :  { %8420 = vadd.xlane.f32.xlu0 %v8417_v15 }
0x3582   :  { %v8419_v51 = vpop.xlane.xlu0 %8418 }
0x3583   :  { %v8422_v52 = vmul.f32 0.0078125, %v8419_v51 }
0x3585   :  { %v8424_v25 = vadd.f32 1e-05, %v8422_v52 }
0x3586   :  { %v8421_v53 = vpop.xlane.xlu0 %8420 }
0x3587   :  { %15223 = vrsqrt.f32 %v8424_v25  ;;  %v8423_v55 = vmul.f32 0.0078125, %v8421_v53  ;;  %v14939_v25 = vld [vmem:[#allocation22 + $0xc0] ss:$12 sps:$4 sm:$0xff]   ;;  %v14941_v53 = vld [vmem:[#allocation22 + $0xc4] ss:$12 sps:$4 sm:$0xff]  }
0x3588   :  { %8994 = vmatprep.subr.bf16.mxu1 %v14941_v53 }
0x3589   :  { %v8425_v27 = vadd.f32 1e-05, %v8423_v55  ;;  %v14942_v55 = vld [vmem:[#allocation22 + $0xc8] ss:$12 sps:$4 sm:$0xff]  }
0x358b   :  { %15225 = vrsqrt.f32 %v8425_v27  ;;  %v14945_v27 = vld [vmem:[#allocation22 + $0xdc] ss:$12 sps:$4 sm:$0xff]  }
0x3591   :  { %v15224_v58 = vpop.eup %15223 }
0x3592   :  { %v8428_v38 = vmul.f32 %v15224_v58, %v8414_v62  ;;  %v14937_v62 = vld [vmem:[#allocation31 + $0x78] sm:$0xff]  }
0x3593   :  { %13610 = vmatprep.subr.bf16.mxu0 %v14937_v62  ;;  %v14958_v62 = vld [vmem:[#allocation22 + $0x128] ss:$12 sps:$4 sm:$0xff]  }
0x3594   :  { %v8434_v2 = vmul.f32 %v8433_v48, %v8428_v38  ;;  %13611 = vmatpush3.bf16.msra.mxu0 %v14938_v19  ;;  %v14961_v19 = vld [vmem:[#allocation22 + $0x13c] ss:$12 sps:$4 sm:$0xff]  }
0x3595   :  { %v15226_v33 = vpop.eup %15225  ;;  %14253 = vmatprep.subr.bf16.mxu0 %v15828_v13 }
0x3596   :  { %v8429_v63 = vmul.f32 %v15226_v33, %v17285_v20  ;;  %v8440_v9 = vadd.f32 %v8439_v6, %v8434_v2  ;;  %v8459_v20 = vld [vmem:[#allocation20] sm:$0x3] }
0x3597   :  { %v8464_v11 = vrot.slane %v8459_v20, %v16375_v4  ;;  %v8468_v15 = vrot.slane %v8459_v20, %v16380_v7  ;;  %v14959_v20 = vld [vmem:[#allocation22 + $0x138] ss:$12 sps:$4 sm:$0xff]  }
0x3598   :  { %v8435_v8 = vmul.f32 %v8433_v48, %v8429_v63 }
0x359a   :  { %v8441_v12 = vadd.f32 %v8439_v6, %v8435_v8  ;;  %v14949_v6 = vld [vmem:[#allocation22 + $0xf4] ss:$12 sps:$4 sm:$0xff]   ;;  %v14947_v8 = vld [vmem:[#allocation22 + $0xf0] ss:$12 sps:$4 sm:$0xff]  }
0x359c   :  { %v8458_v14 = vpack.c.bf16 %v8441_v12, %v8440_v9  ;;  %v14950_v9 = vld [vmem:[#allocation22 + $0xf8] ss:$12 sps:$4 sm:$0xff]  }
0x359d   :  { %v14953_v12 = vld [vmem:[#allocation22 + $0x10c] ss:$12 sps:$4 sm:$0xff]  }
0x359e   :  { %8584 = vmatmul.mubr.bf16.vlgmr.msra.gmra.mrb[116].mxu1 %v8458_v14  ;;  %v14951_v14 = vld [vmem:[#allocation22 + $0x108] ss:$12 sps:$4 sm:$0xff]  }
0x359f   :  { %9026 = vmatprep.mubr.bf16.mxu1 %v15827_v0  ;;  %8995 = vmatpush1.bf16.msra.mxu1 %v14939_v25  ;;  %v8849_v25 = vld [vmem:[#allocation17 + $0x3] sm:$0x7] }
0x35a0   :  { %8996 = vmatprep.subr.bf16.mxu1 %v14945_v27  ;;  %v8858_v53 = vrot.slane %v8849_v25, %v16380_v7 }
0x3671   :  { %v8585_v28 = vpop.f32.mrb[116].mxu1 }
0x3672   :  { %v8586_v29 = vadd.f32 %v8585_v28, %v8464_v11  ;;  %v8587_v30 = vpop.f32.mrb[117].mxu1  ;;  %v14965_v28 = vld [vmem:[#allocation22 + $0x154] ss:$12 sps:$4 sm:$0xff]  }
0x3673   :  { %v8588_v1 = vadd.f32 %v8587_v30, %v8468_v15  ;;  %v8589_v5 = vpop.f32.mrb[118].mxu1  ;;  %v14969_v30 = vld [vmem:[#allocation22 + $0x16c] ss:$12 sps:$4 sm:$0xff]  }
0x3674   :  { %v8590_v32 = vadd.f32 %v8589_v5, %v8464_v11  ;;  %v8591_v40 = vpop.f32.mrb[119].mxu1  ;;  %v8594_v31 = vmax.f32 %v8586_v29, 0.0  ;;  %v14962_v11 = vld [vmem:[#allocation22 + $0x140] ss:$12 sps:$4 sm:$0xff]   ;;  %v14966_v29 = vld [vmem:[#allocation22 + $0x158] ss:$12 sps:$4 sm:$0xff]  }
0x3675   :  { %v8592_v60 = vadd.f32 %v8591_v40, %v8468_v15  ;;  %v8595_v22 = vmax.f32 %v8588_v1, 0.0  ;;  %v14963_v15 = vld [vmem:[#allocation22 + $0x150] ss:$12 sps:$4 sm:$0xff]   ;;  %v14967_v1 = vld [vmem:[#allocation22 + $0x168] ss:$12 sps:$4 sm:$0xff]  }
0x3676   :  { %v8596_v43 = vmax.f32 %v8590_v32, 0.0  ;;  %v14970_v5 = vld [vmem:[#allocation22 + $0x170] ss:$12 sps:$4 sm:$0xff]  }
0x3677   :  { %v8597_v56 = vmax.f32 %v8592_v60, 0.0 }
0x3678   :  { %v8630_v17 = vpack.c.bf16 %v8596_v43, %v8594_v31 }
0x3679   :  { %v8631_v44 = vpack.c.bf16 %v8597_v56, %v8595_v22  ;;  %v17325_v56 = vld [vmem:[%s17818_s13 + $0x10] sm:$0xff] }
0x367b   :  { %8760 = vmatprep.mubr.bf16.mxu0 %v8631_v44 }
0x367c   :  { %8761 = vmatmul.mubr.bf16.vlgmr.msra.gmra.mrb[80].mxu0 %v8630_v17  ;;  %v8805_v17 = vrot.slane %v17325_v56, %v16375_v4 }
0x367d   :  { %14269 = vmatprep.mubr.msk.bf16.mxu0 %vm15829_vm4, %v15828_v13  ;;  %14254 = vmatpush3.bf16.msra.mxu0 %v14942_v55 }
0x367e   :  { %14255 = vmatprep.subr.bf16.mxu0 %v15828_v13 }
0x3681   :  { %14256 = vmatpush3.bf16.msra.mxu0 %v14946_v57  ;;  %v8854_v57 = vrot.slane %v8849_v25, %v16375_v4 }
0x3682   :  { %14257 = vmatprep.subr.bf16.mxu0 %v15828_v13 }
0x3685   :  { %14258 = vmatpush3.bf16.msra.mxu0 %v14950_v9 }
0x3686   :  { %14259 = vmatprep.subr.bf16.mxu0 %v15828_v13 }
0x3689   :  { %14260 = vmatpush3.bf16.msra.mxu0 %v14954_v42 }
0x368a   :  { %14261 = vmatprep.subr.bf16.mxu0 %v15828_v13 }
0x368d   :  { %14262 = vmatpush3.bf16.msra.mxu0 %v14958_v62 }
0x368e   :  { %14263 = vmatprep.subr.bf16.mxu0 %v15828_v13 }
0x3691   :  { %14264 = vmatpush3.bf16.msra.mxu0 %v14962_v11 }
0x3692   :  { %14265 = vmatprep.subr.bf16.mxu0 %v15828_v13 }
0x3695   :  { %14266 = vmatpush3.bf16.msra.mxu0 %v14966_v29 }
0x3696   :  { %14267 = vmatprep.subr.bf16.mxu0 %v15828_v13 }
0x3699   :  { %14268 = vmatpush3.bf16.msra.mxu0 %v14970_v5 }
0x369a   :  { %14313 = vmatprep.subr.mxu0 %v15828_v13 }
0x374f   :  { %v13612_v45 = vpop.f32.mrb[80].mxu0 }
0x3750   :  { %v13613_v47 = vpop.f32.mrb[81].mxu0 }
0x3751   :  { %v13614_v35 = vadd.f32 %v13613_v47, %v13612_v45  ;;  %v13615_v26 = vpop.f32.mrb[82].mxu0 }
0x3752   :  { %v13616_v61 = vpop.f32.mrb[83].mxu0 }
0x3753   :  { %v8769_v50 = vadd.f32 %v13614_v35, %v17276_v24  ;;  %v13617_v46 = vadd.f32 %v13616_v61, %v13615_v26  ;;  %v14943_v24 = vld [vmem:[#allocation22 + $0xd8] ss:$12 sps:$4 sm:$0xff]  }
0x3754   :  { %8997 = vmatpush1.bf16.msra.mxu1 %v14943_v24  ;;  %v8862_v24 = vrot.slane %v8849_v25, %v16393_v21 }
0x3755   :  { %v8770_v49 = vadd.f32 %v13617_v46, %v17279_v34  ;;  %v17305_v51 = vadd.f32 %v8774_v23, %v8769_v50  ;;  %8998 = vmatprep.subr.bf16.mxu1 %v14949_v6 }
0x3757   :  { %8780 = vadd.xlane.f32.xlu1 %v17305_v51  ;;  %v17308_v52 = vadd.f32 %v8774_v23, %v8770_v49  ;;  %v8811_v23 = vrot.slane %v17325_v56, %v16380_v7 }
0x3758   :  { %8999 = vmatpush1.bf16.msra.mxu1 %v14947_v8 }
0x3759   :  { %8782 = vadd.xlane.f32.xlu0 %v17308_v52  ;;  %9000 = vmatprep.subr.bf16.mxu1 %v14953_v12 }
0x375c   :  { %9001 = vmatpush1.bf16.msra.mxu1 %v14951_v14 }
0x375d   :  { %9002 = vmatprep.subr.bf16.mxu1 %v14957_v16 }
0x3760   :  { %9003 = vmatpush1.bf16.msra.mxu1 %v14955_v18 }
0x3761   :  { %9004 = vmatprep.subr.bf16.mxu1 %v14961_v19 }
0x3764   :  { %9005 = vmatpush1.bf16.msra.mxu1 %v14959_v20 }
0x3765   :  { %9006 = vmatprep.subr.bf16.mxu1 %v14965_v28 }
0x3768   :  { %9007 = vmatpush1.bf16.msra.mxu1 %v14963_v15 }
0x3769   :  { %9008 = vmatprep.subr.bf16.mxu1 %v14969_v30 }
0x376c   :  { %9009 = vmatpush1.bf16.msra.mxu1 %v14967_v1 }
0x376d   :  { %14273 = vmatprep.subr.mxu1 %v15828_v13 }
0x37e4   :  { %v8781_v34 = vpop.xlane.xlu1 %8780 }
0x37e5   :  { %v8784_v58 = vmul.f32 0.0078125, %v8781_v34 }
0x37e6   :  { %v8783_v38 = vpop.xlane.xlu0 %8782 }
0x37e7   :  { %v8786_v59 = vsub.f32 %v17305_v51, %v8784_v58  ;;  %v8785_v48 = vmul.f32 0.0078125, %v8783_v38 }
0x37e9   :  { %v8787_v33 = vsub.f32 %v17308_v52, %v8785_v48  ;;  %v8788_v63 = vmul.f32 %v8786_v59, %v8786_v59 }
0x37eb   :  { %8790 = vadd.xlane.f32.xlu1 %v8788_v63  ;;  %v8789_v2 = vmul.f32 %v8787_v33, %v8787_v33 }
0x37ed   :  { %8792 = vadd.xlane.f32.xlu0 %v8789_v2 }
0x3878   :  { %v8791_v32 = vpop.xlane.xlu1 %8790 }
0x3879   :  { %v8794_v40 = vmul.f32 0.0078125, %v8791_v32 }
0x387a   :  { %v8793_v60 = vpop.xlane.xlu0 %8792 }
0x387b   :  { %v8796_v31 = vadd.f32 1e-05, %v8794_v40  ;;  %v8795_v43 = vmul.f32 0.0078125, %v8793_v60 }
0x387d   :  { %15227 = vrsqrt.f32 %v8796_v31  ;;  %v8797_v22 = vadd.f32 1e-05, %v8795_v43 }
0x387f   :  { %15229 = vrsqrt.f32 %v8797_v22 }
0x3887   :  { %v15228_v44 = vpop.eup %15227 }
0x3888   :  { %v8800_v45 = vmul.f32 %v15228_v44, %v8786_v59 }
0x3889   :  { %v15230_v47 = vpop.eup %15229 }
0x388a   :  { %v8801_v35 = vmul.f32 %v15230_v47, %v8787_v33  ;;  %v8806_v26 = vmul.f32 %v8805_v17, %v8800_v45 }
0x388c   :  { %v8807_v61 = vmul.f32 %v8805_v17, %v8801_v35  ;;  %v8812_v50 = vadd.f32 %v8811_v23, %v8806_v26 }
0x388e   :  { %v8813_v46 = vadd.f32 %v8811_v23, %v8807_v61 }
0x3890   :  { %v8847_v49 = vpack.c.bf16 %v8813_v46, %v8812_v50 }
0x3892   :  { %9027 = vmatmul.mubr.bf16.vlgmr.msra.gmra.mrb[120].mxu1 %v8847_v49  ;;  %14270 = vmatmul.mubr.bf16.vlgmr.msra.gmra.mrb[84].mxu0 %v8847_v49 }
0x3893   :  { %14275 = vmatprep.mubr.msk.f32.mxu1 %vm15829_vm4, %v15828_v13  ;;  %14315 = vmatprep.mubr.msk.f32.mxu0 %vm15829_vm4, %v15828_v13 }
0x3965   :  { %v9028_v55 = vpop.f32.mrb[120].mxu1  ;;  %v9071_v27 = vpop.f32.mrb[84].mxu0 }
0x3966   :  { %v9030_v34 = vpop.f32.mrb[121].mxu1  ;;  %v14271_v58 = vpop.f32.mrb[85].mxu0  ;;  %v17346_v8 = vadd.f32 %v9028_v55, %v8854_v57  ;;  %v17349_v9 = vadd.f32 %v9071_v27, %v8862_v24 }
0x3967   :  { %v17338_v38 = vadd.f32 %v9030_v34, %v8858_v53  ;;  %v9032_v59 = vpop.f32.mrb[122].mxu1  ;;  %v9074_v48 = vpop.f32.mrb[86].mxu0 }
0x3968   :  { %v17340_v33 = vadd.f32 %v9074_v48, %v8862_v24  ;;  %v9034_v63 = vpop.f32.mrb[123].mxu1  ;;  %v14272_v2 = vpop.f32.mrb[87].mxu0  ;;  %v17353_v12 = vadd.f32 %v9032_v59, %v8854_v57 }
0x3969   :  { %v17342_v6 = vadd.f32 %v9034_v63, %v8858_v53  ;;  %14274 = vmatpush3.xpose.msk.msra.mxu1 %vm770_vm5, %v17338_v38 }
0x396a   :  { %14278 = vmatprep.subr.mxu1 %v15828_v13 }
0x396b   :  { %14314 = vmatpush3.xpose.msk.msra.mxu0 %vm770_vm5, %v17342_v6 }
0x396c   :  { %14276 = vmatmul.mubr.msk.f32.vlgmr.msra.gmra.mrb[124].mxu1 %vm770_vm5, %v17346_v8  ;;  %14323 = vmatprep.subr.mxu0 %v15828_v13 }
0x396d   :  { %14279 = vmatpush3.msra.mxu1 %v17349_v9  ;;  %14280 = vmatprep.mubr.msk.f32.mxu1 %vm15829_vm4, %v15828_v13 }
0x396e   :  { %14316 = vmatmul.mubr.msk.f32.vlgmr.msra.gmra.mrb[88].mxu0 %vm770_vm5, %v17353_v12  ;;  %14283 = vmatprep.subr.mxu1 %v15828_v13 }
0x396f   :  { %14325 = vmatprep.mubr.msk.f32.mxu0 %vm15829_vm4, %v15828_v13 }
0x3a3f   :  { %v9150_v14 = vpop.f32.mrb[124].mxu1 }
0x3a40   :  { %v9154_v42 = vmul.f32 0.17677669, %v9150_v14  ;;  %v14277_v16 = vpop.f32.mrb[125].mxu1 }
0x3a41   :  { %v17366_v18 = vpop.f32.mrb[88].mxu0 }
0x3a42   :  { %v14317_v62 = vpop.f32.mrb[89].mxu0  ;;  %v9155_v19 = vsel %vm848_vm6, %v9154_v42, -inf  ;;  %v9829_v59 = vmul.f32 0.17677669, %v17366_v18 }
0x3a43   :  { %9156 = vmax.xlane.f32.xlu1 %v9155_v19 }
0x3a44   :  { %v9830_v48 = vsel %vm848_vm6, %v9829_v59, -inf }
0x3a54   :  { %9241 = vrot.lane.b32.xlu1 %v17338_v38, %s15830_s17 }
0x3ad0   :  { %v9157_v20 = vpop.xlane.xlu1 %9156 }
0x3ad1   :  { %v9158_v11 = vsub.f32 %v9154_v42, %v9157_v20 }
0x3ad3   :  { %v9159_v15 = vmul.f32 1.442695, %v9158_v11 }
0x3ad4   :  { %v9242_v32 = vpop.permute.xlu1 %9241 }
0x3ad5   :  { %15231 = vpow2.f32 %v9159_v15 }
0x3adf   :  { %v15232_v28 = vpop.eup %15231 }
0x3ae0   :  { %v9161_v29 = vsel %vm848_vm6, %v15232_v28, 0.0 }
0x3ae1   :  { %9162 = vadd.xlane.f32.xlu0 %v9161_v29 }
0x3af7   :  { %9239 = vrot.lane.b32.xlu0 %v17346_v8, %s15830_s17 }
0x3b6e   :  { %v9163_v30 = vpop.xlane.xlu0 %9162 }
0x3b6f   :  { %15233 = vrcp.f32 %v9163_v30 }
0x3b72   :  { %v9240_v40 = vpop.permute.xlu0 %9239 }
0x3b79   :  { %v15234_v1 = vpop.eup %15233 }
0x3b7a   :  { %v9165_v5 = vmul.f32 %v15234_v1, %v15232_v28 }
0x3b7c   :  { %14281 = vmatmul.mubr.msk.f32.vlgmr.msra.gmra.mrb[126].mxu1 %vm848_vm6, %v9165_v5 }
0x3b7d   :  { %14284 = vmatpush3.xpose.msk.msra.mxu1 %vm770_vm5, %v9242_v32  ;;  %14285 = vmatprep.mubr.msk.f32.mxu1 %vm15829_vm4, %v15828_v13 }
0x3b7e   :  { %14288 = vmatprep.subr.mxu1 %v15828_v13 }
0x3b80   :  { %14286 = vmatmul.mubr.msk.f32.vlgmr.msra.gmra.mrb[128].mxu1 %vm770_vm5, %v9240_v40 }
0x3b81   :  { %14290 = vmatprep.mubr.msk.f32.mxu1 %vm15829_vm4, %v15828_v13 }
0x3c4f   :  { %v17382_v60 = vpop.f32.mrb[126].mxu1 }
0x3c50   :  { %v14282_v31 = vpop.f32.mrb[127].mxu1 }
0x3c53   :  { %v9313_v43 = vpop.f32.mrb[128].mxu1 }
0x3c54   :  { %v9317_v22 = vmul.f32 0.17677669, %v9313_v43  ;;  %v14287_v17 = vpop.f32.mrb[129].mxu1 }
0x3c56   :  { %v9318_v44 = vsel %vm848_vm6, %v9317_v22, -inf }
0x3c57   :  { %9319 = vmax.xlane.f32.xlu1 %v9318_v44 }
0x3c68   :  { %9330 = vrot.lane.b32.xlu1 %v17349_v9, %s15830_s17 }
0x3c6c   :  { %9406 = vrot.lane.b32.xlu1 %v17346_v8, %s15813_s4 }
0x3ce4   :  { %v9320_v45 = vpop.xlane.xlu1 %9319 }
0x3ce5   :  { %v9321_v47 = vsub.f32 %v9317_v22, %v9320_v45 }
0x3ce7   :  { %v9322_v35 = vmul.f32 1.442695, %v9321_v47 }
0x3ce8   :  { %v9331_v26 = vpop.permute.xlu1 %9330 }
0x3ce9   :  { %15235 = vpow2.f32 %v9322_v35  ;;  %14289 = vmatpush3.msra.mxu1 %v9331_v26 }
0x3cea   :  { %14293 = vmatprep.subr.mxu1 %v15828_v13 }
0x3cec   :  { %v9407_v53 = vpop.permute.xlu1 %9406 }
0x3cf3   :  { %v15236_v23 = vpop.eup %15235 }
0x3cf4   :  { %v9324_v61 = vsel %vm848_vm6, %v15236_v23, 0.0 }
0x3cf5   :  { %9325 = vadd.xlane.f32.xlu0 %v9324_v61 }
0x3d0b   :  { %9408 = vrot.lane.b32.xlu0 %v17338_v38, %s15813_s4 }
0x3d82   :  { %v9326_v50 = vpop.xlane.xlu0 %9325 }
0x3d83   :  { %15237 = vrcp.f32 %v9326_v50 }
0x3d86   :  { %v9409_v25 = vpop.permute.xlu0 %9408 }
0x3d8d   :  { %v15238_v46 = vpop.eup %15237 }
0x3d8e   :  { %v9328_v49 = vmul.f32 %v15238_v46, %v15236_v23 }
0x3d90   :  { %14291 = vmatmul.mubr.msk.f32.vlgmr.msra.gmra.mrb[130].mxu1 %vm848_vm6, %v9328_v49 }
0x3d91   :  { %14294 = vmatpush3.xpose.msk.msra.mxu1 %vm770_vm5, %v9409_v25  ;;  %14295 = vmatprep.mubr.msk.f32.mxu1 %vm15829_vm4, %v15828_v13 }
0x3d92   :  { %14298 = vmatprep.subr.mxu1 %v15828_v13 }
0x3d94   :  { %14296 = vmatmul.mubr.msk.f32.vlgmr.msra.gmra.mrb[132].mxu1 %vm770_vm5, %v9407_v53 }
0x3d95   :  { %14300 = vmatprep.mubr.msk.f32.mxu1 %vm15829_vm4, %v15828_v13 }
0x3e63   :  { %v17401_v55 = vpop.f32.mrb[130].mxu1 }
0x3e64   :  { %v14292_v27 = vpop.f32.mrb[131].mxu1 }
0x3e67   :  { %v9480_v57 = vpop.f32.mrb[132].mxu1 }
0x3e68   :  { %v9484_v24 = vmul.f32 0.17677669, %v9480_v57  ;;  %v14297_v34 = vpop.f32.mrb[133].mxu1 }
0x3e6a   :  { %v9485_v58 = vsel %vm848_vm6, %v9484_v24, -inf }
0x3e6b   :  { %9486 = vmax.xlane.f32.xlu1 %v9485_v58 }
0x3e7c   :  { %9574 = vrot.lane.b32.xlu1 %v17338_v38, %s15809_s14 }
0x3e80   :  { %9572 = vrot.lane.b32.xlu1 %v17346_v8, %s15809_s14 }
0x3e84   :  { %9914 = vrot.lane.b32.xlu1 %v17353_v12, %s15830_s17 }
0x3e88   :  { %10081 = vrot.lane.b32.xlu1 %v17353_v12, %s15813_s4 }
0x3e8c   :  { %10247 = vrot.lane.b32.xlu1 %v17353_v12, %s15809_s14 }
0x3eb0   :  { %9831 = vmax.xlane.f32.xlu1 %v9830_v48 }
0x3ef8   :  { %v9487_v63 = vpop.xlane.xlu1 %9486 }
0x3ef9   :  { %v9488_v2 = vsub.f32 %v9484_v24, %v9487_v63 }
0x3efb   :  { %v9489_v38 = vmul.f32 1.442695, %v9488_v2 }
0x3efc   :  { %v9575_v12 = vpop.permute.xlu1 %9574 }
0x3efd   :  { %15239 = vpow2.f32 %v9489_v38 }
0x3f00   :  { %v9573_v16 = vpop.permute.xlu1 %9572 }
0x3f04   :  { %v9915_v62 = vpop.permute.xlu1 %9914 }
0x3f07   :  { %v15240_v14 = vpop.eup %15239 }
0x3f08   :  { %v9491_v8 = vsel %vm848_vm6, %v15240_v14, 0.0 }
0x3f09   :  { %9492 = vadd.xlane.f32.xlu0 %v9491_v8 }
0x3f1f   :  { %9496 = vrot.lane.b32.xlu0 %v17349_v9, %s15813_s4 }
0x3f23   :  { %9916 = vrot.lane.b32.xlu0 %v17342_v6, %s15830_s17 }
0x3f27   :  { %10083 = vrot.lane.b32.xlu0 %v17342_v6, %s15813_s4 }
0x3f2b   :  { %10249 = vrot.lane.b32.xlu0 %v17342_v6, %s15809_s14  ;;  %v10082_v6 = vpop.permute.xlu1 %10081 }
0x3f2f   :  { %v10248_v29 = vpop.permute.xlu1 %10247 }
0x3f3d   :  { %v9832_v30 = vpop.xlane.xlu1 %9831 }
0x3f3e   :  { %v9833_v1 = vsub.f32 %v9829_v59, %v9832_v30 }
0x3f40   :  { %v9834_v5 = vmul.f32 1.442695, %v9833_v1 }
0x3f96   :  { %v9493_v42 = vpop.xlane.xlu0 %9492 }
0x3f97   :  { %15241 = vrcp.f32 %v9493_v42 }
0x3f98   :  { %15243 = vpow2.f32 %v9834_v5 }
0x3f9a   :  { %v9497_v18 = vpop.permute.xlu0 %9496 }
0x3f9b   :  { %14299 = vmatpush3.msra.mxu1 %v9497_v18 }
0x3f9c   :  { %14303 = vmatprep.subr.mxu1 %v15828_v13 }
0x3f9e   :  { %v9917_v19 = vpop.permute.xlu0 %9916 }
0x3f9f   :  { %14324 = vmatpush3.xpose.msk.msra.mxu0 %vm770_vm5, %v9917_v19 }
0x3fa0   :  { %14333 = vmatprep.subr.mxu0 %v15828_v13 }
0x3fa1   :  { %v15242_v20 = vpop.eup %15241 }
0x3fa2   :  { %v9495_v11 = vmul.f32 %v15242_v20, %v15240_v14  ;;  %v10084_v15 = vpop.permute.xlu0 %10083  ;;  %14326 = vmatmul.mubr.msk.f32.vlgmr.msra.gmra.mrb[90].mxu0 %vm770_vm5, %v9915_v62  ;;  %v15244_v49 = vpop.eup %15243 }
0x3fa3   :  { %14334 = vmatpush3.xpose.msk.msra.mxu0 %vm770_vm5, %v10084_v15  ;;  %14335 = vmatprep.mubr.msk.f32.mxu0 %vm15829_vm4, %v15828_v13  ;;  %v9836_v27 = vsel %vm848_vm6, %v15244_v49, 0.0 }
0x3fa4   :  { %14301 = vmatmul.mubr.msk.f32.vlgmr.msra.gmra.mrb[134].mxu1 %vm848_vm6, %v9495_v11  ;;  %14343 = vmatprep.subr.mxu0 %v15828_v13 }
0x3fa5   :  { %14304 = vmatpush3.xpose.msk.msra.mxu1 %vm770_vm5, %v9575_v12  ;;  %14305 = vmatprep.mubr.msk.f32.mxu1 %vm15829_vm4, %v15828_v13 }
0x3fa6   :  { %v10250_v28 = vpop.permute.xlu0 %10249  ;;  %14336 = vmatmul.mubr.msk.f32.vlgmr.msra.gmra.mrb[92].mxu0 %vm770_vm5, %v10082_v6  ;;  %14308 = vmatprep.subr.mxu1 %v15828_v13 }
0x3fa7   :  { %14344 = vmatpush3.xpose.msk.msra.mxu0 %vm770_vm5, %v10250_v28  ;;  %14345 = vmatprep.mubr.msk.f32.mxu0 %vm15829_vm4, %v15828_v13 }
0x3fa8   :  { %14306 = vmatmul.mubr.msk.f32.vlgmr.msra.gmra.mrb[136].mxu1 %vm770_vm5, %v9573_v16  ;;  %14353 = vmatprep.subr.bf16.mxu0 %v15828_v13 }
0x3fa9   :  { %14310 = vmatprep.mubr.msk.f32.mxu1 %vm15829_vm4, %v15828_v13 }
0x3faa   :  { %14346 = vmatmul.mubr.msk.f32.vlgmr.msra.gmra.mrb[94].mxu0 %vm770_vm5, %v10248_v29 }
0x3fab   :  { %14369 = vmatprep.mubr.msk.bf16.mxu0 %vm15829_vm4, %v15828_v13 }
0x4075   :  { %v9988_v32 = vpop.f32.mrb[90].mxu0 }
0x4076   :  { %v14327_v40 = vpop.f32.mrb[91].mxu0  ;;  %v9992_v26 = vmul.f32 0.17677669, %v9988_v32 }
0x4077   :  { %v17449_v31 = vpop.f32.mrb[134].mxu1 }
0x4078   :  { %v14302_v43 = vpop.f32.mrb[135].mxu1  ;;  %v9993_v53 = vsel %vm848_vm6, %v9992_v26, -inf }
0x4079   :  { %v10155_v22 = vpop.f32.mrb[92].mxu0 }
0x407a   :  { %v14337_v17 = vpop.f32.mrb[93].mxu0  ;;  %v10159_v25 = vmul.f32 0.17677669, %v10155_v22 }
0x407b   :  { %v9646_v44 = vpop.f32.mrb[136].mxu1 }
0x407c   :  { %v9650_v45 = vmul.f32 0.17677669, %v9646_v44  ;;  %v14307_v47 = vpop.f32.mrb[137].mxu1  ;;  %v10160_v57 = vsel %vm848_vm6, %v10159_v25, -inf }
0x407d   :  { %v10321_v35 = vpop.f32.mrb[94].mxu0 }
0x407e   :  { %v10325_v23 = vmul.f32 0.17677669, %v10321_v35  ;;  %v14347_v61 = vpop.f32.mrb[95].mxu0  ;;  %v9651_v50 = vsel %vm848_vm6, %v9650_v45, -inf }
0x407f   :  { %9652 = vmax.xlane.f32.xlu0 %v9651_v50  ;;  %v14971_v50 = vld [vmem:[#allocation23 + $0x40] sm:$0xff]  }
0x4080   :  { %v10326_v46 = vsel %vm848_vm6, %v10325_v23, -inf  ;;  %14354 = vmatpush3.bf16.msra.mxu0 %v14971_v50  ;;  %v14999_v50 = vld [vmem:[#allocation26 + $0xe4] ss:$8 sps:$4 sm:$0xff]  }
0x4081   :  { %10327 = vmax.xlane.f32.xlu1 %v10326_v46  ;;  %v14972_v46 = vld [vmem:[#allocation23 + $0x48] sm:$0xff]   ;;  %14355 = vmatprep.subr.bf16.mxu0 %v15828_v13 }
0x4083   :  { %9994 = vmax.xlane.f32.xlu0 %v9993_v53  ;;  %v14975_v53 = vld [vmem:[#allocation23 + $0x60] sm:$0xff]  }
0x4084   :  { %14356 = vmatpush3.bf16.msra.mxu0 %v14972_v46  ;;  %v14997_v46 = vld [vmem:[#allocation26 + $0xe0] ss:$8 sps:$4 sm:$0xff]  }
0x4085   :  { %9837 = vadd.xlane.f32.xlu1 %v9836_v27  ;;  %14357 = vmatprep.subr.bf16.mxu0 %v15828_v13  ;;  %v14976_v27 = vld [vmem:[#allocation23 + $0x68] sm:$0xff]  }
0x4087   :  { %10161 = vmax.xlane.f32.xlu0 %v10160_v57 }
0x410c   :  { %v9653_v24 = vpop.xlane.xlu0 %9652 }
0x410d   :  { %v9654_v34 = vsub.f32 %v9650_v45, %v9653_v24 }
0x410e   :  { %v10328_v58 = vpop.xlane.xlu1 %10327 }
0x410f   :  { %v9655_v63 = vmul.f32 1.442695, %v9654_v34  ;;  %v10329_v2 = vsub.f32 %v10325_v23, %v10328_v58  ;;  %v14977_v34 = vld [vmem:[#allocation23 + $0x70] sm:$0xff]  }
0x4110   :  { %v9995_v59 = vpop.xlane.xlu0 %9994 }
0x4111   :  { %v9996_v48 = vsub.f32 %v9992_v26, %v9995_v59  ;;  %v10330_v12 = vmul.f32 1.442695, %v10329_v2 }
0x4112   :  { %v9838_v28 = vpop.xlane.xlu1 %9837 }
0x4113   :  { %v9997_v38 = vmul.f32 1.442695, %v9996_v48  ;;  %v14978_v48 = vld [vmem:[#allocation23 + $0x78] sm:$0xff]  }
0x4114   :  { %v10162_v14 = vpop.xlane.xlu0 %10161 }
0x4115   :  { %15245 = vpow2.f32 %v9997_v38  ;;  %v10163_v8 = vsub.f32 %v10159_v25, %v10162_v14  ;;  %v14974_v25 = vld [vmem:[#allocation23 + $0x58] sm:$0xff]   ;;  %v14981_v14 = vld [vmem:[#allocation26 + $0x84] ss:$8 sps:$4 sm:$0xff]  }
0x4116   :  { %15247 = vpow2.f32 %v9655_v63 }
0x4117   :  { %v10164_v42 = vmul.f32 1.442695, %v10163_v8 }
0x4119   :  { %15249 = vpow2.f32 %v10164_v42 }
0x411a   :  { %15251 = vpow2.f32 %v10330_v12 }
0x411f   :  { %v15246_v16 = vpop.eup %15245 }
0x4120   :  { %v9999_v18 = vsel %vm848_vm6, %v15246_v16, 0.0  ;;  %v15248_v62 = vpop.eup %15247 }
0x4121   :  { %10000 = vadd.xlane.f32.xlu0 %v9999_v18  ;;  %v9657_v20 = vsel %vm848_vm6, %v15248_v62, 0.0 }
0x4123   :  { %v15250_v19 = vpop.eup %15249 }
0x4124   :  { %v10166_v11 = vsel %vm848_vm6, %v15250_v19, 0.0  ;;  %v15252_v15 = vpop.eup %15251 }
0x4125   :  { %9658 = vadd.xlane.f32.xlu0 %v9657_v20  ;;  %10167 = vadd.xlane.f32.xlu1 %v10166_v11  ;;  %v10332_v6 = vsel %vm848_vm6, %v15252_v15, 0.0 }
0x4129   :  { %10333 = vadd.xlane.f32.xlu0 %v10332_v6 }
0x4136   :  { %9662 = vrot.lane.b32.xlu1 %v17349_v9, %s15809_s14 }
0x413a   :  { %10171 = vrot.lane.b32.xlu1 %v17340_v33, %s15813_s4 }
0x413e   :  { %10337 = vrot.lane.b32.xlu1 %v17340_v33, %s15809_s14 }
0x413f   :  { %10005 = vrot.lane.b32.xlu0 %v17340_v33, %s15830_s17 }
0x41ae   :  { %v10001_v29 = vpop.xlane.xlu0 %10000 }
0x41b2   :  { %v10168_v30 = vpop.xlane.xlu1 %10167  ;;  %v9659_v1 = vpop.xlane.xlu0 %9658 }
0x41b3   :  { %15253 = vrcp.f32 %v9659_v1 }
0x41b4   :  { %15255 = vrcp.f32 %v9838_v28 }
0x41b5   :  { %15257 = vrcp.f32 %v10001_v29 }
0x41b6   :  { %v9663_v5 = vpop.permute.xlu1 %9662  ;;  %15259 = vrcp.f32 %v10168_v30  ;;  %v10334_v40 = vpop.xlane.xlu0 %10333 }
0x41b7   :  { %14309 = vmatpush3.msra.mxu1 %v9663_v5  ;;  %15261 = vrcp.f32 %v10334_v40 }
0x41b8   :  { %14318 = vmatprep.subr.mxu1 %v15828_v13 }
0x41ba   :  { %v10006_v44 = vpop.permute.xlu0 %10005  ;;  %v10172_v47 = vpop.permute.xlu1 %10171 }
0x41bd   :  { %v15254_v9 = vpop.eup %15253 }
0x41be   :  { %v9661_v32 = vmul.f32 %v15254_v9, %v15248_v62  ;;  %v15256_v43 = vpop.eup %15255  ;;  %v10338_v23 = vpop.permute.xlu1 %10337 }
0x41bf   :  { %v9840_v22 = vmul.f32 %v15256_v43, %v15244_v49  ;;  %v15258_v17 = vpop.eup %15257  ;;  %v14973_v49 = vld [vmem:[#allocation23 + $0x50] sm:$0xff]   ;;  %v14979_v43 = vld [vmem:[#allocation26 + $0x80] ss:$8 sps:$4 sm:$0xff]  }
0x41c0   :  { %14311 = vmatmul.mubr.msk.f32.vlgmr.msra.gmra.mrb[138].mxu1 %vm848_vm6, %v9661_v32  ;;  %v10003_v45 = vmul.f32 %v15258_v17, %v15246_v16  ;;  %v15260_v35 = vpop.eup %15259  ;;  %14358 = vmatpush3.bf16.msra.mxu0 %v14973_v49  ;;  %v14984_v17 = vld [vmem:[#allocation26 + $0x94] ss:$8 sps:$4 sm:$0xff]  }
0x41c1   :  { %14319 = vmatpush3.msra.mxu1 %v17340_v33  ;;  %14320 = vmatprep.mubr.msk.f32.mxu1 %vm15829_vm4, %v15828_v13  ;;  %v10170_v33 = vmul.f32 %v15260_v35, %v15250_v19  ;;  %v15262_v26 = vpop.eup %15261  ;;  %v14988_v35 = vld [vmem:[#allocation26 + $0xb0] ss:$8 sps:$4 sm:$0xff]   ;;  %v15002_v49 = vld [vmem:[#allocation26 + $0xf4] ss:$8 sps:$4 sm:$0xff]  }
0x41c2   :  { %14328 = vmatprep.subr.mxu1 %v15828_v13  ;;  %v10336_v61 = vmul.f32 %v15262_v26, %v15252_v15  ;;  %14359 = vmatprep.subr.bf16.mxu0 %v15828_v13  ;;  %v14991_v26 = vld [vmem:[#allocation26 + $0xc0] ss:$8 sps:$4 sm:$0xff]  }
0x41c4   :  { %14321 = vmatmul.mubr.msk.f32.vlgmr.msra.gmra.mrb[140].mxu1 %vm848_vm6, %v9840_v22  ;;  %14360 = vmatpush3.bf16.msra.mxu0 %v14974_v25  ;;  %v15000_v25 = vld [vmem:[#allocation26 + $0xf0] ss:$8 sps:$4 sm:$0xff]  }
0x41c5   :  { %14329 = vmatpush3.msra.mxu1 %v10006_v44  ;;  %14330 = vmatprep.mubr.msk.f32.mxu1 %vm15829_vm4, %v15828_v13  ;;  %v14982_v44 = vld [vmem:[#allocation26 + $0x90] ss:$8 sps:$4 sm:$0xff]  }
0x41c6   :  { %14338 = vmatprep.subr.mxu1 %v15828_v13  ;;  %14361 = vmatprep.subr.bf16.mxu0 %v15828_v13 }
0x41c8   :  { %14331 = vmatmul.mubr.msk.f32.vlgmr.msra.gmra.mrb[142].mxu1 %vm848_vm6, %v10003_v45  ;;  %14362 = vmatpush3.bf16.msra.mxu0 %v14975_v53  ;;  %v14985_v45 = vld [vmem:[#allocation26 + $0xa0] ss:$8 sps:$4 sm:$0xff]   ;;  %v10540_v53 = vrot.slane %v17325_v56, %v6645_v39 }
0x41c9   :  { %14339 = vmatpush3.msra.mxu1 %v10172_v47  ;;  %14340 = vmatprep.mubr.msk.f32.mxu1 %vm15829_vm4, %v15828_v13  ;;  %v14990_v47 = vld [vmem:[#allocation26 + $0xb4] ss:$8 sps:$4 sm:$0xff]  }
0x41ca   :  { %14348 = vmatprep.subr.mxu1 %v15828_v13  ;;  %14363 = vmatprep.subr.bf16.mxu0 %v15828_v13 }
0x41cc   :  { %14341 = vmatmul.mubr.msk.f32.vlgmr.msra.gmra.mrb[144].mxu1 %vm848_vm6, %v10170_v33  ;;  %14364 = vmatpush3.bf16.msra.mxu0 %v14976_v27  ;;  %v14993_v33 = vld [vmem:[#allocation26 + $0xc4] ss:$8 sps:$4 sm:$0xff]  }
0x41cd   :  { %14349 = vmatpush3.msra.mxu1 %v10338_v23  ;;  %14350 = vmatprep.mubr.msk.f32.mxu1 %vm15829_vm4, %v15828_v13  ;;  %v14996_v23 = vld [vmem:[#allocation26 + $0xd4] ss:$8 sps:$4 sm:$0xff]  }
0x41ce   :  { %14373 = vmatprep.subr.bf16.mxu1 %v15828_v13  ;;  %14365 = vmatprep.subr.bf16.mxu0 %v15828_v13 }
0x41d0   :  { %14351 = vmatmul.mubr.msk.f32.vlgmr.msra.gmra.mrb[146].mxu1 %vm848_vm6, %v10336_v61  ;;  %14366 = vmatpush3.bf16.msra.mxu0 %v14977_v34  ;;  %v14994_v61 = vld [vmem:[#allocation26 + $0xd0] ss:$8 sps:$4 sm:$0xff]  }
0x41d1   :  { %14389 = vmatprep.mubr.msk.bf16.mxu1 %vm15829_vm4, %v15828_v13  ;;  %14367 = vmatprep.subr.bf16.mxu0 %v15828_v13 }
0x41d4   :  { %14368 = vmatpush3.bf16.msra.mxu0 %v14978_v48 }
0x41d5   :  { %10798 = vmatprep.subr.bf16.mxu0 %v14981_v14 }
0x4293   :  { %v9734_v57 = vpop.f32.mrb[138].mxu1 }
0x4294   :  { %v14312_v24 = vpop.f32.mrb[139].mxu1 }
0x4297   :  { %v9910_v58 = vpop.f32.mrb[140].mxu1 }
0x4298   :  { %v14322_v59 = vpop.f32.mrb[141].mxu1 }
0x429b   :  { %v10077_v63 = vpop.f32.mrb[142].mxu1 }
0x429c   :  { %v14629_v2 = vpack.i.bf16 %v10077_v63, %v17401_v55  ;;  %v14332_v38 = vpop.f32.mrb[143].mxu1 }
0x429d   :  { %v15004_v38 = vld [vmem:[#allocation25 + $0x48] sm:$0xff]  }
0x429e   :  { %14630 = vrot.lane.b32.xlu0 %v14629_v2, %s15809_s14  ;;  %v15003_v2 = vld [vmem:[#allocation25 + $0x40] sm:$0xff]  }
0x429f   :  { %v10243_v8 = vpop.f32.mrb[144].mxu1  ;;  %14374 = vmatpush3.bf16.msra.mxu1 %v15003_v2 }
0x42a0   :  { %v14634_v12 = vpack.i.bf16 %v10243_v8, %v17449_v31  ;;  %v14342_v42 = vpop.f32.mrb[145].mxu1  ;;  %14375 = vmatprep.subr.bf16.mxu1 %v15828_v13 }
0x42a2   :  { %14635 = vrot.lane.b32.xlu1 %v14634_v12, %s15813_s4  ;;  %v15005_v12 = vld [vmem:[#allocation25 + $0x50] sm:$0xff]  }
0x42a3   :  { %v10409_v16 = vpop.f32.mrb[146].mxu1  ;;  %14376 = vmatpush3.bf16.msra.mxu1 %v15004_v38 }
0x42a4   :  { %v14639_v18 = vpack.i.bf16 %v10409_v16, %v9734_v57  ;;  %v14352_v62 = vpop.f32.mrb[147].mxu1  ;;  %14377 = vmatprep.subr.bf16.mxu1 %v15828_v13 }
0x42a6   :  { %14640 = vrot.lane.b32.xlu0 %v14639_v18, %s15830_s17 }
0x42a7   :  { %14378 = vmatpush3.bf16.msra.mxu1 %v15005_v12 }
0x42a8   :  { %14379 = vmatprep.subr.bf16.mxu1 %v15828_v13 }
0x4310   :  { %v14631_v19 = vpop.permute.xlu0 %14630 }
0x4311   :  { %v14633_v11 = vunpack.i.h.bf16 %v14631_v19  ;;  %v14632_v55 = vunpack.i.l.bf16 %v14631_v19 }
0x4313   :  { %v10425_v29 = vsel %vm770_vm5, %v9910_v58, %v14633_v11  ;;  %v9750_v31 = vsel %vm770_vm5, %v17382_v60, %v14632_v55  ;;  %v14987_v60 = vld [vmem:[#allocation26 + $0xa4] ss:$8 sps:$4 sm:$0xff]  }
0x4314   :  { %v14636_v20 = vpop.permute.xlu1 %14635 }
0x4315   :  { %v14638_v15 = vunpack.i.h.bf16 %v14636_v20  ;;  %v14637_v6 = vunpack.i.l.bf16 %v14636_v20 }
0x4317   :  { %v10426_v5 = vsel %vm1445_vm7, %v10425_v29, %v14638_v15  ;;  %v9751_v9 = vsel %vm1445_vm7, %v9750_v31, %v14637_v6 }
0x4318   :  { %v14641_v28 = vpop.permute.xlu0 %14640 }
0x4319   :  { %v14643_v30 = vunpack.i.h.bf16 %v14641_v28  ;;  %v14642_v1 = vunpack.i.l.bf16 %v14641_v28 }
0x431b   :  { %v10427_v32 = vsel %vm1447_vm8, %v10426_v5, %v14643_v30  ;;  %v9752_v40 = vsel %vm1447_vm8, %v9751_v9, %v14642_v1  ;;  %v15006_v30 = vld [vmem:[#allocation25 + $0x58] sm:$0xff]   ;;  %v15007_v1 = vld [vmem:[#allocation25 + $0x60] sm:$0xff]   ;;  %v15008_v5 = vld [vmem:[#allocation25 + $0x68] sm:$0xff]  }
0x431c   :  { %v10445_v22 = vpack.c.bf16 %v10427_v32, %v9752_v40  ;;  %14380 = vmatpush3.bf16.msra.mxu1 %v15006_v30  ;;  %v15009_v9 = vld [vmem:[#allocation25 + $0x70] sm:$0xff]   ;;  %v15010_v32 = vld [vmem:[#allocation25 + $0x78] sm:$0xff]  }
0x431d   :  { %14381 = vmatprep.subr.bf16.mxu1 %v15828_v13 }
0x431e   :  { %14370 = vmatmul.mubr.bf16.vlgmr.msra.gmra.mrb[96].mxu0 %v10445_v22 }
0x431f   :  { %10799 = vmatpush1.bf16.msra.mxu0 %v14979_v43  ;;  %10830 = vmatprep.mubr.bf16.mxu0 %v15827_v0 }
0x4320   :  { %10800 = vmatprep.subr.bf16.mxu0 %v14984_v17  ;;  %14382 = vmatpush3.bf16.msra.mxu1 %v15007_v1 }
0x4321   :  { %14383 = vmatprep.subr.bf16.mxu1 %v15828_v13 }
0x4323   :  { %10801 = vmatpush1.bf16.msra.mxu0 %v14982_v44 }
0x4324   :  { %10802 = vmatprep.subr.bf16.mxu0 %v14987_v60  ;;  %14384 = vmatpush3.bf16.msra.mxu1 %v15008_v5 }
0x4325   :  { %14385 = vmatprep.subr.bf16.mxu1 %v15828_v13 }
0x4327   :  { %10803 = vmatpush1.bf16.msra.mxu0 %v14985_v45  ;;  %v10568_v45 = vrot.slane %v17325_v56, %v16393_v21 }
0x4328   :  { %10804 = vmatprep.subr.bf16.mxu0 %v14990_v47  ;;  %14386 = vmatpush3.bf16.msra.mxu1 %v15009_v9 }
0x4329   :  { %14387 = vmatprep.subr.bf16.mxu1 %v15828_v13 }
0x432b   :  { %10805 = vmatpush1.bf16.msra.mxu0 %v14988_v35 }
0x432c   :  { %10806 = vmatprep.subr.bf16.mxu0 %v14993_v33  ;;  %14388 = vmatpush3.bf16.msra.mxu1 %v15010_v32 }
0x432d   :  { %14393 = vmatprep.subr.mxu1 %v15828_v13 }
0x432f   :  { %10807 = vmatpush1.bf16.msra.mxu0 %v14991_v26 }
0x4330   :  { %10808 = vmatprep.subr.bf16.mxu0 %v14996_v23 }
0x4333   :  { %10809 = vmatpush1.bf16.msra.mxu0 %v14994_v61  ;;  %v10574_v61 = vrot.slane %v17325_v56, %v16575_v36 }
0x4334   :  { %10810 = vmatprep.subr.bf16.mxu0 %v14999_v50 }
0x4337   :  { %10811 = vmatpush1.bf16.msra.mxu0 %v14997_v46 }
0x4338   :  { %10812 = vmatprep.subr.bf16.mxu0 %v15002_v49 }
0x433b   :  { %10813 = vmatpush1.bf16.msra.mxu0 %v15000_v25 }
0x433c   :  { %14433 = vmatprep.subr.mxu0 %v15828_v13 }
0x433e   :  { %10831 = vmatmul.mubr.bf16.vlgmr.msra.gmra.mrb[100].mxu0 %v17084_v54  ;;  %v10706_v54 = vld [vmem:[#allocation19 + $0x2] sm:$0x3] }
0x433f   :  { %14435 = vmatprep.mubr.msk.f32.mxu0 %vm15829_vm4, %v15828_v13  ;;  %v10711_v39 = vrot.slane %v10706_v54, %v16375_v4 }
0x43f1   :  { %v10528_v27 = vpop.f32.mrb[96].mxu0 }
0x43f2   :  { %v10535_v57 = vadd.f32 %v10528_v27, %v17305_v51  ;;  %v14371_v24 = vpop.f32.mrb[97].mxu0  ;;  %v10715_v51 = vrot.slane %v10706_v54, %v16380_v7 }
0x43f3   :  { %v10531_v34 = vpop.f32.mrb[98].mxu0 }
0x43f4   :  { %v17517_v58 = vadd.f32 %v10540_v53, %v10535_v57  ;;  %v10536_v59 = vadd.f32 %v10531_v34, %v17308_v52  ;;  %v14372_v48 = vpop.f32.mrb[99].mxu0 }
0x43f6   :  { %v17520_v63 = vadd.f32 %v10540_v53, %v10536_v59  ;;  %10543 = vadd.xlane.f32.xlu1 %v17517_v58  ;;  %v10598_v53 = vrot.slane %v17325_v56, %v6702_v37 }
0x43f8   :  { %10545 = vadd.xlane.f32.xlu0 %v17520_v63 }
0x4411   :  { %v10832_v14 = vpop.f32.mrb[100].mxu0 }
0x4412   :  { %v17527_v8 = vadd.f32 %v10832_v14, %v10711_v39  ;;  %v10834_v52 = vpop.f32.mrb[101].mxu0 }
0x4413   :  { %v17529_v42 = vadd.f32 %v10834_v52, %v10715_v51  ;;  %v10836_v16 = vpop.f32.mrb[102].mxu0 }
0x4414   :  { %v17532_v18 = vadd.f32 %v10836_v16, %v10711_v39  ;;  %v10838_v62 = vpop.f32.mrb[103].mxu0 }
0x4415   :  { %v17534_v19 = vadd.f32 %v10838_v62, %v10715_v51 }
0x4416   :  { %14434 = vmatpush3.xpose.msk.msra.mxu0 %vm770_vm5, %v17532_v18 }
0x4417   :  { %14443 = vmatprep.subr.mxu0 %v15828_v13 }
0x4483   :  { %v10544_v20 = vpop.xlane.xlu1 %10543 }
0x4484   :  { %v10547_v11 = vmul.f32 0.0078125, %v10544_v20 }
0x4485   :  { %v10546_v55 = vpop.xlane.xlu0 %10545 }
0x4486   :  { %v10549_v15 = vsub.f32 %v17517_v58, %v10547_v11  ;;  %v10548_v6 = vmul.f32 0.0078125, %v10546_v55 }
0x4488   :  { %v10550_v28 = vsub.f32 %v17520_v63, %v10548_v6  ;;  %v10551_v29 = vmul.f32 %v10549_v15, %v10549_v15 }
0x448a   :  { %10553 = vadd.xlane.f32.xlu0 %v10551_v29  ;;  %v10552_v31 = vmul.f32 %v10550_v28, %v10550_v28 }
0x448c   :  { %10555 = vadd.xlane.f32.xlu1 %v10552_v31 }
0x4517   :  { %v10554_v40 = vpop.xlane.xlu0 %10553 }
0x4518   :  { %v10557_v43 = vmul.f32 0.0078125, %v10554_v40 }
0x4519   :  { %v10556_v22 = vpop.xlane.xlu1 %10555 }
0x451a   :  { %v10559_v17 = vadd.f32 1e-05, %v10557_v43  ;;  %v10558_v44 = vmul.f32 0.0078125, %v10556_v22 }
0x451c   :  { %15263 = vrsqrt.f32 %v10559_v17  ;;  %v10560_v60 = vadd.f32 1e-05, %v10558_v44 }
0x451e   :  { %15265 = vrsqrt.f32 %v10560_v60 }
0x4526   :  { %v15264_v47 = vpop.eup %15263 }
0x4527   :  { %v10563_v35 = vmul.f32 %v15264_v47, %v10549_v15 }
0x4528   :  { %v15266_v33 = vpop.eup %15265 }
0x4529   :  { %v10564_v26 = vmul.f32 %v15266_v33, %v10550_v28  ;;  %v10569_v23 = vmul.f32 %v10568_v45, %v10563_v35 }
0x452b   :  { %v10570_v50 = vmul.f32 %v10568_v45, %v10564_v26  ;;  %v10575_v46 = vadd.f32 %v10574_v61, %v10569_v23 }
0x452d   :  { %v10576_v49 = vadd.f32 %v10574_v61, %v10570_v50 }
0x452f   :  { %v10594_v25 = vpack.c.bf16 %v10576_v49, %v10575_v46 }
0x4531   :  { %14390 = vmatmul.mubr.bf16.vlgmr.msra.gmra.mrb[148].mxu1 %v10594_v25 }
0x4532   :  { %14394 = vmatpush3.xpose.msk.msra.mxu1 %vm770_vm5, %v17527_v8  ;;  %14395 = vmatprep.mubr.msk.f32.mxu1 %vm15829_vm4, %v15828_v13 }
0x4533   :  { %14398 = vmatprep.subr.mxu1 %v15828_v13 }
0x4604   :  { %v10681_v27 = vpop.f32.mrb[148].mxu1 }
0x4605   :  { %v17559_v57 = vadd.f32 %v10681_v27, %v10598_v53  ;;  %v14391_v24 = vpop.f32.mrb[149].mxu1 }
0x4606   :  { %v10684_v34 = vpop.f32.mrb[150].mxu1 }
0x4607   :  { %v17561_v59 = vadd.f32 %v10684_v34, %v10598_v53  ;;  %v14392_v48 = vpop.f32.mrb[151].mxu1  ;;  %14396 = vmatmul.mubr.msk.f32.vlgmr.msra.gmra.mrb[152].mxu1 %vm770_vm5, %v17559_v57 }
0x4608   :  { %14399 = vmatpush3.msra.mxu1 %v17529_v42  ;;  %14400 = vmatprep.mubr.msk.f32.mxu1 %vm15829_vm4, %v15828_v13 }
0x4609   :  { %14436 = vmatmul.mubr.msk.f32.vlgmr.msra.gmra.mrb[104].mxu0 %vm770_vm5, %v17561_v59  ;;  %14403 = vmatprep.subr.mxu1 %v15828_v13 }
0x460a   :  { %14445 = vmatprep.mubr.msk.f32.mxu0 %vm15829_vm4, %v15828_v13 }
0x46da   :  { %v10913_v3 = vpop.f32.mrb[152].mxu1 }
0x46db   :  { %v10917_v37 = vmul.f32 0.17677669, %v10913_v3  ;;  %v14397_v56 = vpop.f32.mrb[153].mxu1 }
0x46dc   :  { %v17573_v54 = vpop.f32.mrb[104].mxu0 }
0x46dd   :  { %v14437_v2 = vpop.f32.mrb[105].mxu0  ;;  %v10918_v39 = vsel %vm848_vm6, %v10917_v37, -inf  ;;  %v11592_v61 = vmul.f32 0.17677669, %v17573_v54 }
0x46de   :  { %10919 = vmax.xlane.f32.xlu0 %v10918_v39 }
0x46df   :  { %v11593_v50 = vsel %vm848_vm6, %v11592_v61, -inf }
0x46f4   :  { %11004 = vrot.lane.b32.xlu0 %v17527_v8, %s15830_s17 }
0x476b   :  { %v10920_v38 = vpop.xlane.xlu0 %10919 }
0x476c   :  { %v10921_v51 = vsub.f32 %v10917_v37, %v10920_v38 }
0x476e   :  { %v10922_v14 = vmul.f32 1.442695, %v10921_v51 }
0x476f   :  { %v11005_v11 = vpop.permute.xlu0 %11004 }
0x4770   :  { %15267 = vpow2.f32 %v10922_v14 }
0x477a   :  { %v15268_v52 = vpop.eup %15267 }
0x477b   :  { %v10924_v12 = vsel %vm848_vm6, %v15268_v52, 0.0 }
0x477c   :  { %10925 = vadd.xlane.f32.xlu1 %v10924_v12 }
0x478d   :  { %11002 = vrot.lane.b32.xlu1 %v17559_v57, %s15830_s17 }
0x4809   :  { %v10926_v16 = vpop.xlane.xlu1 %10925 }
0x480a   :  { %15269 = vrcp.f32 %v10926_v16 }
0x480d   :  { %v11003_v55 = vpop.permute.xlu1 %11002 }
0x4814   :  { %v15270_v62 = vpop.eup %15269 }
0x4815   :  { %v10928_v20 = vmul.f32 %v15270_v62, %v15268_v52 }
0x4817   :  { %14401 = vmatmul.mubr.msk.f32.vlgmr.msra.gmra.mrb[154].mxu1 %vm848_vm6, %v10928_v20 }
0x4818   :  { %14404 = vmatpush3.xpose.msk.msra.mxu1 %vm770_vm5, %v11005_v11  ;;  %14405 = vmatprep.mubr.msk.f32.mxu1 %vm15829_vm4, %v15828_v13 }
0x4819   :  { %14408 = vmatprep.subr.mxu1 %v15828_v13 }
0x481b   :  { %14406 = vmatmul.mubr.msk.f32.vlgmr.msra.gmra.mrb[156].mxu1 %vm770_vm5, %v11003_v55 }
0x481c   :  { %14410 = vmatprep.mubr.msk.f32.mxu1 %vm15829_vm4, %v15828_v13 }
0x48ea   :  { %v17589_v15 = vpop.f32.mrb[154].mxu1 }
0x48eb   :  { %v14402_v6 = vpop.f32.mrb[155].mxu1 }
0x48ee   :  { %v11076_v28 = vpop.f32.mrb[156].mxu1 }
0x48ef   :  { %v11080_v29 = vmul.f32 0.17677669, %v11076_v28  ;;  %v14407_v31 = vpop.f32.mrb[157].mxu1 }
0x48f1   :  { %v11081_v30 = vsel %vm848_vm6, %v11080_v29, -inf }
0x48f2   :  { %11082 = vmax.xlane.f32.xlu1 %v11081_v30 }
0x4903   :  { %11171 = vrot.lane.b32.xlu1 %v17527_v8, %s15813_s4 }
0x4907   :  { %11169 = vrot.lane.b32.xlu1 %v17559_v57, %s15813_s4 }
0x490b   :  { %11337 = vrot.lane.b32.xlu1 %v17527_v8, %s15809_s14 }
0x497f   :  { %v11083_v1 = vpop.xlane.xlu1 %11082 }
0x4980   :  { %v11084_v5 = vsub.f32 %v11080_v29, %v11083_v1 }
0x4982   :  { %v11085_v9 = vmul.f32 1.442695, %v11084_v5 }
0x4983   :  { %v11172_v44 = vpop.permute.xlu1 %11171 }
0x4984   :  { %15271 = vpow2.f32 %v11085_v9 }
0x4987   :  { %v11170_v60 = vpop.permute.xlu1 %11169 }
0x498b   :  { %v11338_v24 = vpop.permute.xlu1 %11337 }
0x498e   :  { %v15272_v32 = vpop.eup %15271 }
0x498f   :  { %v11087_v40 = vsel %vm848_vm6, %v15272_v32, 0.0 }
0x4990   :  { %11088 = vadd.xlane.f32.xlu0 %v11087_v40 }
0x49a6   :  { %11093 = vrot.lane.b32.xlu0 %v17529_v42, %s15830_s17 }
0x4a1d   :  { %v11089_v43 = vpop.xlane.xlu0 %11088 }
0x4a1e   :  { %15273 = vrcp.f32 %v11089_v43 }
0x4a21   :  { %v11094_v22 = vpop.permute.xlu0 %11093 }
0x4a22   :  { %14409 = vmatpush3.msra.mxu1 %v11094_v22 }
0x4a23   :  { %14413 = vmatprep.subr.mxu1 %v15828_v13 }
0x4a28   :  { %v15274_v17 = vpop.eup %15273 }
0x4a29   :  { %v11091_v8 = vmul.f32 %v15274_v17, %v15272_v32 }
0x4a2b   :  { %14411 = vmatmul.mubr.msk.f32.vlgmr.msra.gmra.mrb[158].mxu1 %vm848_vm6, %v11091_v8 }
0x4a2c   :  { %14414 = vmatpush3.xpose.msk.msra.mxu1 %vm770_vm5, %v11172_v44  ;;  %14415 = vmatprep.mubr.msk.f32.mxu1 %vm15829_vm4, %v15828_v13 }
0x4a2d   :  { %14418 = vmatprep.subr.mxu1 %v15828_v13 }
0x4a2f   :  { %14416 = vmatmul.mubr.msk.f32.vlgmr.msra.gmra.mrb[160].mxu1 %vm770_vm5, %v11170_v60 }
0x4a30   :  { %14420 = vmatprep.mubr.msk.f32.mxu1 %vm15829_vm4, %v15828_v13 }
0x4afe   :  { %v17610_v45 = vpop.f32.mrb[158].mxu1 }
0x4aff   :  { %v14412_v47 = vpop.f32.mrb[159].mxu1 }
0x4b02   :  { %v11243_v35 = vpop.f32.mrb[160].mxu1 }
0x4b03   :  { %v11247_v33 = vmul.f32 0.17677669, %v11243_v35  ;;  %v14417_v26 = vpop.f32.mrb[161].mxu1 }
0x4b05   :  { %v11248_v23 = vsel %vm848_vm6, %v11247_v33, -inf }
0x4b06   :  { %11249 = vmax.xlane.f32.xlu0 %v11248_v23 }
0x4b1c   :  { %11259 = vrot.lane.b32.xlu0 %v17529_v42, %s15813_s4 }
0x4b20   :  { %11335 = vrot.lane.b32.xlu0 %v17559_v57, %s15809_s14 }
0x4b24   :  { %11677 = vrot.lane.b32.xlu0 %v17561_v59, %s15830_s17 }
0x4b28   :  { %11844 = vrot.lane.b32.xlu0 %v17561_v59, %s15813_s4 }
0x4b2c   :  { %12010 = vrot.lane.b32.xlu0 %v17561_v59, %s15809_s14 }
0x4b4b   :  { %11594 = vmax.xlane.f32.xlu0 %v11593_v50 }
0x4b93   :  { %v11250_v46 = vpop.xlane.xlu0 %11249 }
0x4b94   :  { %v11251_v49 = vsub.f32 %v11247_v33, %v11250_v46 }
0x4b96   :  { %v11252_v25 = vmul.f32 1.442695, %v11251_v49 }
0x4b97   :  { %v11260_v53 = vpop.permute.xlu0 %11259 }
0x4b98   :  { %15275 = vpow2.f32 %v11252_v25  ;;  %14419 = vmatpush3.msra.mxu1 %v11260_v53 }
0x4b99   :  { %14423 = vmatprep.subr.mxu1 %v15828_v13 }
0x4b9b   :  { %v11336_v34 = vpop.permute.xlu0 %11335 }
0x4b9f   :  { %v11678_v48 = vpop.permute.xlu0 %11677 }
0x4ba2   :  { %v15276_v27 = vpop.eup %15275 }
0x4ba3   :  { %v11254_v57 = vsel %vm848_vm6, %v15276_v27, 0.0  ;;  %v11845_v56 = vpop.permute.xlu0 %11844 }
0x4ba4   :  { %11255 = vadd.xlane.f32.xlu1 %v11254_v57 }
0x4ba7   :  { %v12011_v39 = vpop.permute.xlu0 %12010 }
0x4bb5   :  { %11679 = vrot.lane.b32.xlu1 %v17532_v18, %s15830_s17 }
0x4bb9   :  { %11846 = vrot.lane.b32.xlu1 %v17532_v18, %s15813_s4 }
0x4bbd   :  { %12012 = vrot.lane.b32.xlu1 %v17532_v18, %s15809_s14 }
0x4bd8   :  { %v11595_v38 = vpop.xlane.xlu0 %11594 }
0x4bd9   :  { %v11596_v51 = vsub.f32 %v11592_v61, %v11595_v38 }
0x4bdb   :  { %v11597_v14 = vmul.f32 1.442695, %v11596_v51 }
0x4c31   :  { %v11256_v59 = vpop.xlane.xlu1 %11255 }
0x4c32   :  { %15277 = vrcp.f32 %v11256_v59 }
0x4c33   :  { %15279 = vpow2.f32 %v11597_v14 }
0x4c35   :  { %v11680_v3 = vpop.permute.xlu1 %11679 }
0x4c36   :  { %14444 = vmatpush3.xpose.msk.msra.mxu0 %vm770_vm5, %v11680_v3 }
0x4c37   :  { %14453 = vmatprep.subr.mxu0 %v15828_v13 }
0x4c39   :  { %v11847_v37 = vpop.permute.xlu1 %11846  ;;  %14446 = vmatmul.mubr.msk.f32.vlgmr.msra.gmra.mrb[106].mxu0 %vm770_vm5, %v11678_v48 }
0x4c3a   :  { %14454 = vmatpush3.xpose.msk.msra.mxu0 %vm770_vm5, %v11847_v37  ;;  %14455 = vmatprep.mubr.msk.f32.mxu0 %vm15829_vm4, %v15828_v13 }
0x4c3b   :  { %14463 = vmatprep.subr.mxu0 %v15828_v13 }
0x4c3c   :  { %v15278_v18 = vpop.eup %15277 }
0x4c3d   :  { %v11258_v54 = vmul.f32 %v15278_v18, %v15276_v27  ;;  %v12013_v2 = vpop.permute.xlu1 %12012  ;;  %14456 = vmatmul.mubr.msk.f32.vlgmr.msra.gmra.mrb[108].mxu0 %vm770_vm5, %v11845_v56  ;;  %v15280_v32 = vpop.eup %15279 }
0x4c3e   :  { %14464 = vmatpush3.xpose.msk.msra.mxu0 %vm770_vm5, %v12013_v2  ;;  %14465 = vmatprep.mubr.msk.f32.mxu0 %vm15829_vm4, %v15828_v13  ;;  %v11599_v22 = vsel %vm848_vm6, %v15280_v32, 0.0 }
0x4c3f   :  { %14421 = vmatmul.mubr.msk.f32.vlgmr.msra.gmra.mrb[162].mxu1 %vm848_vm6, %v11258_v54  ;;  %14473 = vmatprep.subr.bf16.mxu0 %v15828_v13 }
0x4c40   :  { %14424 = vmatpush3.xpose.msk.msra.mxu1 %vm770_vm5, %v11338_v24  ;;  %14425 = vmatprep.mubr.msk.f32.mxu1 %vm15829_vm4, %v15828_v13 }
0x4c41   :  { %14466 = vmatmul.mubr.msk.f32.vlgmr.msra.gmra.mrb[110].mxu0 %vm770_vm5, %v12011_v39  ;;  %14428 = vmatprep.subr.mxu1 %v15828_v13 }
0x4c42   :  { %14489 = vmatprep.mubr.msk.bf16.mxu0 %vm15829_vm4, %v15828_v13 }
0x4c43   :  { %14426 = vmatmul.mubr.msk.f32.vlgmr.msra.gmra.mrb[164].mxu1 %vm770_vm5, %v11336_v34 }
0x4c44   :  { %14430 = vmatprep.mubr.msk.f32.mxu1 %vm15829_vm4, %v15828_v13 }
0x4d0c   :  { %v11751_v52 = vpop.f32.mrb[106].mxu0 }
0x4d0d   :  { %v11755_v12 = vmul.f32 0.17677669, %v11751_v52  ;;  %v14447_v16 = vpop.f32.mrb[107].mxu0 }
0x4d0f   :  { %v11756_v62 = vsel %vm848_vm6, %v11755_v12, -inf }
0x4d10   :  { %11757 = vmax.xlane.f32.xlu0 %v11756_v62  ;;  %v11918_v20 = vpop.f32.mrb[108].mxu0 }
0x4d11   :  { %v14457_v11 = vpop.f32.mrb[109].mxu0  ;;  %v11922_v40 = vmul.f32 0.17677669, %v11918_v20 }
0x4d12   :  { %v17657_v55 = vpop.f32.mrb[162].mxu1 }
0x4d13   :  { %v14422_v6 = vpop.f32.mrb[163].mxu1  ;;  %v11923_v17 = vsel %vm848_vm6, %v11922_v40, -inf }
0x4d14   :  { %v12084_v28 = vpop.f32.mrb[110].mxu0 }
0x4d15   :  { %v12088_v29 = vmul.f32 0.17677669, %v12084_v28  ;;  %v14467_v31 = vpop.f32.mrb[111].mxu0  ;;  %v15011_v28 = vld [vmem:[#allocation28 + $0x40] sm:$0xff]  }
0x4d16   :  { %v11409_v30 = vpop.f32.mrb[164].mxu1  ;;  %14474 = vmatpush3.bf16.msra.mxu0 %v15011_v28  ;;  %v15013_v31 = vld [vmem:[#allocation28 + $0x50] sm:$0xff]  }
0x4d17   :  { %v11413_v1 = vmul.f32 0.17677669, %v11409_v30  ;;  %v14427_v5 = vpop.f32.mrb[165].mxu1  ;;  %v12089_v9 = vsel %vm848_vm6, %v12088_v29, -inf  ;;  %14475 = vmatprep.subr.bf16.mxu0 %v15828_v13  ;;  %v15014_v30 = vld [vmem:[#allocation28 + $0x58] sm:$0xff]  }
0x4d18   :  { %12090 = vmax.xlane.f32.xlu0 %v12089_v9 }
0x4d19   :  { %v11414_v43 = vsel %vm848_vm6, %v11413_v1, -inf }
0x4d1a   :  { %11415 = vmax.xlane.f32.xlu1 %v11414_v43 }
0x4d1c   :  { %11600 = vadd.xlane.f32.xlu0 %v11599_v22  ;;  %v15018_v22 = vld [vmem:[#allocation28 + $0x78] sm:$0xff]  }
0x4d1e   :  { %11924 = vmax.xlane.f32.xlu1 %v11923_v17 }
0x4d9d   :  { %v11758_v44 = vpop.xlane.xlu0 %11757 }
0x4d9e   :  { %v11759_v8 = vsub.f32 %v11755_v12, %v11758_v44 }
0x4da0   :  { %v11760_v60 = vmul.f32 1.442695, %v11759_v8 }
0x4da2   :  { %15281 = vpow2.f32 %v11760_v60 }
0x4da5   :  { %v12091_v47 = vpop.xlane.xlu0 %12090 }
0x4da6   :  { %v12092_v35 = vsub.f32 %v12088_v29, %v12091_v47  ;;  %v15012_v29 = vld [vmem:[#allocation28 + $0x48] sm:$0xff]  }
0x4da7   :  { %v11416_v33 = vpop.xlane.xlu1 %11415  ;;  %14476 = vmatpush3.bf16.msra.mxu0 %v15012_v29 }
0x4da8   :  { %v12093_v26 = vmul.f32 1.442695, %v12092_v35  ;;  %v11417_v23 = vsub.f32 %v11413_v1, %v11416_v33  ;;  %14477 = vmatprep.subr.bf16.mxu0 %v15828_v13  ;;  %v15015_v1 = vld [vmem:[#allocation28 + $0x60] sm:$0xff]  }
0x4da9   :  { %v11601_v56 = vpop.xlane.xlu0 %11600 }
0x4daa   :  { %15283 = vpow2.f32 %v12093_v26  ;;  %v11418_v61 = vmul.f32 1.442695, %v11417_v23 }
0x4dab   :  { %v11925_v50 = vpop.xlane.xlu1 %11924  ;;  %14478 = vmatpush3.bf16.msra.mxu0 %v15013_v31  ;;  %v15027_v31 = vld [vmem:[#allocation29 + $0xa4] ss:$8 sps:$4 sm:$0xff]  }
0x4dac   :  { %v15282_v46 = vpop.eup %15281  ;;  %15285 = vpow2.f32 %v11418_v61  ;;  %v11926_v49 = vsub.f32 %v11922_v40, %v11925_v50  ;;  %14479 = vmatprep.subr.bf16.mxu0 %v15828_v13 }
0x4dad   :  { %v11762_v25 = vsel %vm848_vm6, %v15282_v46, 0.0 }
0x4dae   :  { %v11927_v53 = vmul.f32 1.442695, %v11926_v49  ;;  %11763 = vadd.xlane.f32.xlu1 %v11762_v25 }
0x4daf   :  { %14480 = vmatpush3.bf16.msra.mxu0 %v15014_v30  ;;  %v15025_v30 = vld [vmem:[#allocation29 + $0xa0] ss:$8 sps:$4 sm:$0xff]  }
0x4db0   :  { %15287 = vpow2.f32 %v11927_v53  ;;  %14481 = vmatprep.subr.bf16.mxu0 %v15828_v13 }
0x4db3   :  { %14482 = vmatpush3.bf16.msra.mxu0 %v15015_v1  ;;  %v15030_v1 = vld [vmem:[#allocation29 + $0xb4] ss:$8 sps:$4 sm:$0xff]  }
0x4db4   :  { %v15284_v27 = vpop.eup %15283  ;;  %14483 = vmatprep.subr.bf16.mxu0 %v15828_v13 }
0x4db5   :  { %v12095_v57 = vsel %vm848_vm6, %v15284_v27, 0.0 }
0x4db6   :  { %v15286_v24 = vpop.eup %15285  ;;  %12096 = vadd.xlane.f32.xlu1 %v12095_v57 }
0x4db7   :  { %v11420_v34 = vsel %vm848_vm6, %v15286_v24, 0.0 }
0x4dba   :  { %v15288_v59 = vpop.eup %15287  ;;  %11421 = vadd.xlane.f32.xlu1 %v11420_v34 }
0x4dbb   :  { %v11929_v48 = vsel %vm848_vm6, %v15288_v59, 0.0 }
0x4dbc   :  { %11930 = vadd.xlane.f32.xlu0 %v11929_v48 }
0x4dcb   :  { %11768 = vrot.lane.b32.xlu1 %v17534_v19, %s15830_s17 }
0x4dcf   :  { %11934 = vrot.lane.b32.xlu1 %v17534_v19, %s15813_s4 }
0x4dd2   :  { %11425 = vrot.lane.b32.xlu0 %v17529_v42, %s15809_s14 }
0x4dd6   :  { %12100 = vrot.lane.b32.xlu0 %v17534_v19, %s15809_s14 }
0x4e3b   :  { %v11764_v3 = vpop.xlane.xlu1 %11763 }
0x4e43   :  { %v12097_v37 = vpop.xlane.xlu1 %12096 }
0x4e47   :  { %v11422_v18 = vpop.xlane.xlu1 %11421 }
0x4e48   :  { %15289 = vrcp.f32 %v11422_v18 }
0x4e49   :  { %v11931_v54 = vpop.xlane.xlu0 %11930  ;;  %15291 = vrcp.f32 %v11601_v56  ;;  %v17716_v56 = vld [vmem:[%s17818_s13 + $0x18] sm:$0xff] }
0x4e4a   :  { %15293 = vrcp.f32 %v11764_v3 }
0x4e4b   :  { %15295 = vrcp.f32 %v11931_v54  ;;  %v11769_v14 = vpop.permute.xlu1 %11768 }
0x4e4c   :  { %15297 = vrcp.f32 %v12097_v37 }
0x4e4d   :  { %v11426_v2 = vpop.permute.xlu0 %11425 }
0x4e4e   :  { %14429 = vmatpush3.msra.mxu1 %v11426_v2 }
0x4e4f   :  { %14438 = vmatprep.subr.mxu1 %v15828_v13  ;;  %v11935_v62 = vpop.permute.xlu1 %11934 }
0x4e51   :  { %v12101_v11 = vpop.permute.xlu0 %12100 }
0x4e52   :  { %v15290_v39 = vpop.eup %15289 }
0x4e53   :  { %v11424_v38 = vmul.f32 %v15290_v39, %v15286_v24  ;;  %v15292_v51 = vpop.eup %15291 }
0x4e54   :  { %v11603_v42 = vmul.f32 %v15292_v51, %v15280_v32  ;;  %v15294_v52 = vpop.eup %15293  ;;  %v15017_v32 = vld [vmem:[#allocation28 + $0x70] sm:$0xff]  }
0x4e55   :  { %14431 = vmatmul.mubr.msk.f32.vlgmr.msra.gmra.mrb[166].mxu1 %vm848_vm6, %v11424_v38  ;;  %v11766_v12 = vmul.f32 %v15294_v52, %v15282_v46  ;;  %v15296_v16 = vpop.eup %15295  ;;  %v15019_v52 = vld [vmem:[#allocation29 + $0x80] ss:$8 sps:$4 sm:$0xff]  }
0x4e56   :  { %14439 = vmatpush3.msra.mxu1 %v17534_v19  ;;  %14440 = vmatprep.mubr.msk.f32.mxu1 %vm15829_vm4, %v15828_v13  ;;  %v11933_v19 = vmul.f32 %v15296_v16, %v15288_v59  ;;  %v15298_v20 = vpop.eup %15297  ;;  %v15024_v16 = vld [vmem:[#allocation29 + $0x94] ss:$8 sps:$4 sm:$0xff]  }
0x4e57   :  { %14448 = vmatprep.subr.mxu1 %v15828_v13  ;;  %v12099_v6 = vmul.f32 %v15298_v20, %v15284_v27 }
0x4e59   :  { %14441 = vmatmul.mubr.msk.f32.vlgmr.msra.gmra.mrb[168].mxu1 %vm848_vm6, %v11603_v42 }
0x4e5a   :  { %14449 = vmatpush3.msra.mxu1 %v11769_v14  ;;  %14450 = vmatprep.mubr.msk.f32.mxu1 %vm15829_vm4, %v15828_v13 }
0x4e5b   :  { %14458 = vmatprep.subr.mxu1 %v15828_v13 }
0x4e5d   :  { %14451 = vmatmul.mubr.msk.f32.vlgmr.msra.gmra.mrb[170].mxu1 %vm848_vm6, %v11766_v12  ;;  %v15021_v12 = vld [vmem:[#allocation29 + $0x84] ss:$8 sps:$4 sm:$0xff]  }
0x4e5e   :  { %14459 = vmatpush3.msra.mxu1 %v11935_v62  ;;  %14460 = vmatprep.mubr.msk.f32.mxu1 %vm15829_vm4, %v15828_v13  ;;  %v15022_v62 = vld [vmem:[#allocation29 + $0x90] ss:$8 sps:$4 sm:$0xff]  }
0x4e5f   :  { %14468 = vmatprep.subr.mxu1 %v15828_v13 }
0x4e61   :  { %14461 = vmatmul.mubr.msk.f32.vlgmr.msra.gmra.mrb[172].mxu1 %vm848_vm6, %v11933_v19 }
0x4e62   :  { %14469 = vmatpush3.msra.mxu1 %v12101_v11  ;;  %14470 = vmatprep.mubr.msk.f32.mxu1 %vm15829_vm4, %v15828_v13 }
0x4e63   :  { %12451 = vmatprep.subr.bf16.mxu1 %v15021_v12  ;;  %v15056_v12 = vld [vmem:[#allocation31 + $0xb0] sm:$0xff]  }
0x4e65   :  { %14471 = vmatmul.mubr.msk.f32.vlgmr.msra.gmra.mrb[174].mxu1 %vm848_vm6, %v12099_v6 }
0x4e66   :  { %12483 = vmatprep.mubr.bf16.mxu1 %v15827_v0  ;;  %v15016_v0 = vld [vmem:[#allocation28 + $0x68] sm:$0xff]   ;;  %12452 = vmatpush1.bf16.msra.mxu1 %v15019_v52  ;;  %v15055_v52 = vld [vmem:[#allocation31 + $0xf0] sm:$0xff]  }
0x4e67   :  { %14484 = vmatpush3.bf16.msra.mxu0 %v15016_v0  ;;  %12453 = vmatprep.subr.bf16.mxu1 %v15024_v16  ;;  %v15028_v0 = vld [vmem:[#allocation29 + $0xb0] ss:$8 sps:$4 sm:$0xff]  }
0x4e68   :  { %14485 = vmatprep.subr.bf16.mxu0 %v15828_v13  ;;  %v15058_v16 = vld [vmem:[#allocation31 + $0xb8] sm:$0xff]  }
0x4e6a   :  { %12454 = vmatpush1.bf16.msra.mxu1 %v15022_v62  ;;  %v12359_v62 = vld [vmem:[#allocation20 + $0x2] sm:$0x3] }
0x4e6b   :  { %14486 = vmatpush3.bf16.msra.mxu0 %v15017_v32  ;;  %12455 = vmatprep.subr.bf16.mxu1 %v15027_v31  ;;  %v15036_v32 = vld [vmem:[#allocation29 + $0xd4] ss:$8 sps:$4 sm:$0xff]  }
0x4e6c   :  { %14487 = vmatprep.subr.bf16.mxu0 %v15828_v13 }
0x4e6e   :  { %12456 = vmatpush1.bf16.msra.mxu1 %v15025_v30 }
0x4e6f   :  { %14488 = vmatpush3.bf16.msra.mxu0 %v15018_v22  ;;  %12457 = vmatprep.subr.bf16.mxu1 %v15030_v1  ;;  %v15037_v22 = vld [vmem:[#allocation29 + $0xe0] ss:$8 sps:$4 sm:$0xff]  }
0x4e72   :  { %12458 = vmatpush1.bf16.msra.mxu1 %v15028_v0 }
0x4f28   :  { %v11497_v5 = vpop.f32.mrb[166].mxu1 }
0x4f29   :  { %v14432_v9 = vpop.f32.mrb[167].mxu1 }
0x4f2a   :  { %v15031_v9 = vld [vmem:[#allocation29 + $0xc0] ss:$8 sps:$4 sm:$0xff]  }
0x4f2c   :  { %v11673_v40 = vpop.f32.mrb[168].mxu1 }
0x4f2d   :  { %v14442_v43 = vpop.f32.mrb[169].mxu1 }
0x4f2e   :  { %v15039_v43 = vld [vmem:[#allocation29 + $0xe4] ss:$8 sps:$4 sm:$0xff]  }
0x4f30   :  { %v11840_v17 = vpop.f32.mrb[170].mxu1 }
0x4f31   :  { %v14644_v44 = vpack.i.bf16 %v11840_v17, %v17610_v45  ;;  %v14452_v8 = vpop.f32.mrb[171].mxu1  ;;  %v15042_v17 = vld [vmem:[#allocation29 + $0xf4] ss:$8 sps:$4 sm:$0xff]  }
0x4f32   :  { %v15043_v8 = vld [vmem:[#allocation31 + $0xc0] sm:$0xff]  }
0x4f33   :  { %14645 = vrot.lane.b32.xlu1 %v14644_v44, %s15809_s14  ;;  %v15040_v44 = vld [vmem:[#allocation29 + $0xf0] ss:$8 sps:$4 sm:$0xff]   ;;  %13718 = vmatprep.subr.bf16.mxu0 %v15043_v8 }
0x4f34   :  { %v12006_v60 = vpop.f32.mrb[172].mxu1 }
0x4f35   :  { %v14649_v47 = vpack.i.bf16 %v12006_v60, %v17657_v55  ;;  %v14462_v35 = vpop.f32.mrb[173].mxu1  ;;  %v15044_v60 = vld [vmem:[#allocation31 + $0x80] sm:$0xff]  }
0x4f36   :  { %v15046_v35 = vld [vmem:[#allocation31 + $0x88] sm:$0xff]  }
0x4f37   :  { %14650 = vrot.lane.b32.xlu0 %v14649_v47, %s15813_s4  ;;  %v15045_v47 = vld [vmem:[#allocation31 + $0xc8] sm:$0xff]  }
0x4f38   :  { %v12172_v33 = vpop.f32.mrb[174].mxu1 }
0x4f39   :  { %v14654_v26 = vpack.i.bf16 %v12172_v33, %v11497_v5  ;;  %v14472_v23 = vpop.f32.mrb[175].mxu1  ;;  %v15033_v5 = vld [vmem:[#allocation29 + $0xc4] ss:$8 sps:$4 sm:$0xff]   ;;  %v15047_v33 = vld [vmem:[#allocation31 + $0xd0] sm:$0xff]  }
0x4f3a   :  { %12459 = vmatprep.subr.bf16.mxu1 %v15033_v5  ;;  %v15049_v23 = vld [vmem:[#allocation31 + $0xd8] sm:$0xff]  }
0x4f3b   :  { %14655 = vrot.lane.b32.xlu1 %v14654_v26, %s15830_s17  ;;  %12460 = vmatpush1.bf16.msra.mxu1 %v15031_v9  ;;  %v15048_v26 = vld [vmem:[#allocation31 + $0x90] sm:$0xff]  }
0x4f3c   :  { %12461 = vmatprep.subr.bf16.mxu1 %v15036_v32 }
0x4fa5   :  { %v14646_v61 = vpop.permute.xlu1 %14645 }
0x4fa6   :  { %v14648_v46 = vunpack.i.h.bf16 %v14646_v61  ;;  %v14647_v49 = vunpack.i.l.bf16 %v14646_v61  ;;  %v15050_v61 = vld [vmem:[#allocation31 + $0x98] sm:$0xff]  }
0x4fa8   :  { %v12188_v27 = vsel %vm770_vm5, %v11673_v40, %v14648_v46  ;;  %v11513_v55 = vsel %vm770_vm5, %v17589_v15, %v14647_v49  ;;  %v12303_v15 = vrot.slane %v17716_v56, %v16375_v4  ;;  %v15034_v40 = vld [vmem:[#allocation29 + $0xd0] ss:$8 sps:$4 sm:$0xff]   ;;  %v15052_v46 = vld [vmem:[#allocation31 + $0xa0] sm:$0xff]   ;;  %v15053_v49 = vld [vmem:[#allocation31 + $0xe8] sm:$0xff]  }
0x4fa9   :  { %v14651_v50 = vpop.permute.xlu0 %14650  ;;  %12462 = vmatpush1.bf16.msra.mxu1 %v15034_v40 }
0x4faa   :  { %v14653_v45 = vunpack.i.h.bf16 %v14651_v50  ;;  %v14652_v25 = vunpack.i.l.bf16 %v14651_v50  ;;  %12463 = vmatprep.subr.bf16.mxu1 %v15039_v43  ;;  %v15051_v50 = vld [vmem:[#allocation31 + $0xe0] sm:$0xff]  }
0x4fac   :  { %v12189_v34 = vsel %vm1445_vm7, %v12188_v27, %v14653_v45  ;;  %v11514_v59 = vsel %vm1445_vm7, %v11513_v55, %v14652_v25 }
0x4fad   :  { %v14656_v53 = vpop.permute.xlu1 %14655  ;;  %12464 = vmatpush1.bf16.msra.mxu1 %v15037_v22 }
0x4fae   :  { %v14658_v57 = vunpack.i.h.bf16 %v14656_v53  ;;  %v14657_v24 = vunpack.i.l.bf16 %v14656_v53  ;;  %12465 = vmatprep.subr.bf16.mxu1 %v15042_v17  ;;  %v12675_v17 = vrot.slane %v17716_v56, %v16380_v7 }
0x4fb0   :  { %v12190_v48 = vsel %vm1447_vm8, %v12189_v34, %v14658_v57  ;;  %v11515_v3 = vsel %vm1447_vm8, %v11514_v59, %v14657_v24  ;;  %v15309_v59 = vld [vmem:[%s17818_s13 + $0x10] sm:$0xff] }
0x4fb1   :  { %v12208_v37 = vpack.c.bf16 %v12190_v48, %v11515_v3  ;;  %12466 = vmatpush1.bf16.msra.mxu1 %v15040_v44  ;;  %v12331_v48 = vrot.slane %v15309_v59, %v16550_v41  ;;  %v15057_v41 = vld [vmem:[#allocation31 + $0xf8] sm:$0xff]  }
0x4fb2   :  { %14493 = vmatprep.subr.bf16.mxu1 %v15828_v13 }
0x4fb3   :  { %14490 = vmatmul.mubr.bf16.vlgmr.msra.gmra.mrb[112].mxu0 %v12208_v37 }
0x4fb4   :  { %13719 = vmatpush3.bf16.msra.mxu0 %v15044_v60 }
0x4fb5   :  { %13720 = vmatprep.subr.bf16.mxu0 %v15045_v47 }
0x4fb8   :  { %13721 = vmatpush3.bf16.msra.mxu0 %v15046_v35 }
0x4fb9   :  { %13722 = vmatprep.subr.bf16.mxu0 %v15047_v33 }
0x4fbc   :  { %13723 = vmatpush3.bf16.msra.mxu0 %v15048_v26  ;;  %v15059_v26 = vld [vmem:[%s17888_s9] sm:$0xff]  }
0x4fbd   :  { %13724 = vmatprep.subr.bf16.mxu0 %v15049_v23  ;;  %v15060_v23 = vld [vmem:[%s17888_s9 + $0x8] sm:$0xff]  }
0x4fc0   :  { %13725 = vmatpush3.bf16.msra.mxu0 %v15050_v61 }
0x4fc1   :  { %13726 = vmatprep.subr.bf16.mxu0 %v15051_v50 }
0x4fc4   :  { %13727 = vmatpush3.bf16.msra.mxu0 %v15052_v46 }
0x4fc5   :  { %13728 = vmatprep.subr.bf16.mxu0 %v15053_v49 }
0x5086   :  { %v12291_v18 = vpop.f32.mrb[112].mxu0 }
0x5087   :  { %v12298_v54 = vadd.f32 %v12291_v18, %v17517_v58  ;;  %v14491_v2 = vpop.f32.mrb[113].mxu0  ;;  %v12337_v18 = vrot.slane %v15309_v59, %v16588_v10  ;;  %v12364_v10 = vrot.slane %v12359_v62, %v16375_v4 }
0x5088   :  { %v12294_v39 = vpop.f32.mrb[114].mxu0 }
0x5089   :  { %v17721_v38 = vadd.f32 %v12303_v15, %v12298_v54  ;;  %v12299_v51 = vadd.f32 %v12294_v39, %v17520_v63  ;;  %v14492_v42 = vpop.f32.mrb[115].mxu0 }
0x508a   :  { %v15054_v42 = vld [vmem:[#allocation31 + $0xa8] sm:$0xff]  }
0x508b   :  { %v17724_v14 = vadd.f32 %v12303_v15, %v12299_v51  ;;  %12306 = vadd.xlane.f32.xlu0 %v17721_v38  ;;  %13729 = vmatpush3.bf16.msra.mxu0 %v15054_v42 }
0x508c   :  { %13730 = vmatprep.subr.bf16.mxu0 %v15055_v52 }
0x508d   :  { %12308 = vadd.xlane.f32.xlu1 %v17724_v14 }
0x508f   :  { %13731 = vmatpush3.bf16.msra.mxu0 %v15056_v12 }
0x5090   :  { %13732 = vmatprep.subr.bf16.mxu0 %v15057_v41 }
0x5093   :  { %13733 = vmatpush3.bf16.msra.mxu0 %v15058_v16 }
0x5118   :  { %v12307_v58 = vpop.xlane.xlu0 %12306 }
0x5119   :  { %v12310_v19 = vmul.f32 0.0078125, %v12307_v58  ;;  %v12368_v58 = vrot.slane %v12359_v62, %v16380_v7  ;;  %v13330_v62 = vld [vmem:[%s17889_s19] ss:$0 sm:$0xff] }
0x511a   :  { %v12309_v20 = vpop.xlane.xlu1 %12308 }
0x511b   :  { %v17729_v63 = vsub.f32 %v17721_v38, %v12310_v19  ;;  %v12311_v11 = vmul.f32 0.0078125, %v12309_v20 }
0x511d   :  { %v17732_v6 = vsub.f32 %v17724_v14, %v12311_v11  ;;  %v12314_v28 = vmul.f32 %v17729_v63, %v17729_v63 }
0x511f   :  { %12316 = vadd.xlane.f32.xlu0 %v12314_v28  ;;  %v12315_v29 = vmul.f32 %v17732_v6, %v17732_v6 }
0x5123   :  { %12318 = vadd.xlane.f32.xlu0 %v12315_v29 }
0x51ac   :  { %v12317_v45 = vpop.xlane.xlu0 %12316 }
0x51ad   :  { %v12320_v25 = vmul.f32 0.0078125, %v12317_v45  ;;  %v15061_v45 = vld [vmem:[%s17888_s9 + $0x10] sm:$0xff]  }
0x51af   :  { %v12322_v53 = vadd.f32 1e-05, %v12320_v25  ;;  %v15062_v25 = vld [vmem:[%s17888_s9 + $0x18] sm:$0xff]  }
0x51b0   :  { %v12319_v27 = vpop.xlane.xlu0 %12318 }
0x51b1   :  { %15299 = vrsqrt.f32 %v12322_v53  ;;  %v12321_v55 = vmul.f32 0.0078125, %v12319_v27  ;;  %v15063_v53 = vld [vmem:[%s17888_s9 + $0x20] sm:$0xff]   ;;  %v15064_v27 = vld [vmem:[%s17888_s9 + $0x28] sm:$0xff]  }
0x51b3   :  { %v12323_v57 = vadd.f32 1e-05, %v12321_v55  ;;  %v15065_v55 = vld [vmem:[%s17888_s9 + $0x30] sm:$0xff]  }
0x51b5   :  { %15301 = vrsqrt.f32 %v12323_v57  ;;  %v15066_v57 = vld [vmem:[%s17888_s9 + $0x38] sm:$0xff]  }
0x51bb   :  { %v15300_v24 = vpop.eup %15299 }
0x51bc   :  { %v12326_v34 = vmul.f32 %v15300_v24, %v17729_v63 }
0x51be   :  { %v12332_v15 = vmul.f32 %v12331_v48, %v12326_v34 }
0x51bf   :  { %v15302_v3 = vpop.eup %15301 }
0x51c0   :  { %v12327_v37 = vmul.f32 %v15302_v3, %v17732_v6  ;;  %v12338_v2 = vadd.f32 %v12337_v18, %v12332_v15  ;;  %v15310_v15 = vld [vmem:[#allocation32] sm:$0xf] }
0x51c1   :  { %v12709_v52 = vrot.slane %v15310_v15, %v16575_v36 }
0x51c2   :  { %v12333_v54 = vmul.f32 %v12331_v48, %v12327_v37 }
0x51c4   :  { %v12339_v39 = vadd.f32 %v12337_v18, %v12333_v54  ;;  %v12703_v18 = vrot.slane %v15310_v15, %v16393_v21 }
0x51c6   :  { %v12357_v51 = vpack.c.bf16 %v12339_v39, %v12338_v2 }
0x51c8   :  { %12484 = vmatmul.mubr.bf16.vlgmr.msra.gmra.mrb[176].mxu1 %v12357_v51 }
0x51c9   :  { %14509 = vmatprep.mubr.msk.bf16.mxu1 %vm15829_vm4, %v15828_v13  ;;  %14494 = vmatpush3.bf16.msra.mxu1 %v15059_v26 }
0x51ca   :  { %14495 = vmatprep.subr.bf16.mxu1 %v15828_v13 }
0x51cd   :  { %14496 = vmatpush3.bf16.msra.mxu1 %v15060_v23 }
0x51ce   :  { %14497 = vmatprep.subr.bf16.mxu1 %v15828_v13 }
0x51d1   :  { %14498 = vmatpush3.bf16.msra.mxu1 %v15061_v45 }
0x51d2   :  { %14499 = vmatprep.subr.bf16.mxu1 %v15828_v13 }
0x51d5   :  { %14500 = vmatpush3.bf16.msra.mxu1 %v15062_v25 }
0x51d6   :  { %14501 = vmatprep.subr.bf16.mxu1 %v15828_v13 }
0x51d9   :  { %14502 = vmatpush3.bf16.msra.mxu1 %v15063_v53 }
0x51da   :  { %14503 = vmatprep.subr.bf16.mxu1 %v15828_v13 }
0x51dd   :  { %14504 = vmatpush3.bf16.msra.mxu1 %v15064_v27 }
0x51de   :  { %14505 = vmatprep.subr.bf16.mxu1 %v15828_v13 }
0x51e1   :  { %14506 = vmatpush3.bf16.msra.mxu1 %v15065_v55 }
0x51e2   :  { %14507 = vmatprep.subr.bf16.mxu1 %v15828_v13 }
0x51e5   :  { %14508 = vmatpush3.bf16.msra.mxu1 %v15066_v57 }
0x529b   :  { %v12485_v19 = vpop.f32.mrb[176].mxu1 }
0x529c   :  { %v12486_v20 = vadd.f32 %v12485_v19, %v12364_v10  ;;  %v12487_v63 = vpop.f32.mrb[177].mxu1 }
0x529d   :  { %v12488_v11 = vadd.f32 %v12487_v63, %v12368_v58  ;;  %v12489_v6 = vpop.f32.mrb[178].mxu1 }
0x529e   :  { %v12490_v28 = vadd.f32 %v12489_v6, %v12364_v10  ;;  %v12491_v29 = vpop.f32.mrb[179].mxu1  ;;  %v12494_v30 = vmax.f32 %v12486_v20, 0.0 }
0x529f   :  { %v12492_v31 = vadd.f32 %v12491_v29, %v12368_v58  ;;  %v12495_v0 = vmax.f32 %v12488_v11, 0.0 }
0x52a0   :  { %v12496_v1 = vmax.f32 %v12490_v28, 0.0 }
0x52a1   :  { %v12497_v5 = vmax.f32 %v12492_v31, 0.0 }
0x52a2   :  { %v12531_v9 = vpack.c.bf16 %v12496_v1, %v12494_v30 }
0x52a3   :  { %v12532_v32 = vpack.c.bf16 %v12497_v5, %v12495_v0 }
0x52a5   :  { %12661 = vmatprep.mubr.bf16.mxu0 %v12532_v32 }
0x52a6   :  { %12662 = vmatmul.mubr.bf16.vlgmr.msra.gmra.mrb[116].mxu0 %v12531_v9 }
0x5379   :  { %v13734_v40 = vpop.f32.mrb[116].mxu0 }
0x537a   :  { %v13735_v4 = vpop.f32.mrb[117].mxu0 }
0x537b   :  { %v13736_v43 = vadd.f32 %v13735_v4, %v13734_v40  ;;  %v13737_v22 = vpop.f32.mrb[118].mxu0 }
0x537c   :  { %v13738_v44 = vpop.f32.mrb[119].mxu0 }
0x537d   :  { %v12670_v8 = vadd.f32 %v13736_v43, %v17721_v38  ;;  %v13739_v60 = vadd.f32 %v13738_v44, %v13737_v22 }
0x537f   :  { %v12671_v47 = vadd.f32 %v13739_v60, %v17724_v14  ;;  %v12676_v35 = vadd.f32 %v12675_v17, %v12670_v8 }
0x5381   :  { %12678 = vadd.xlane.f32.xlu1 %v12676_v35  ;;  %v12677_v33 = vadd.f32 %v12675_v17, %v12671_v47 }
0x5383   :  { %12680 = vadd.xlane.f32.xlu0 %v12677_v33 }
0x540e   :  { %v12679_v7 = vpop.xlane.xlu1 %12678 }
0x540f   :  { %v12682_v56 = vmul.f32 0.0078125, %v12679_v7 }
0x5410   :  { %v12681_v38 = vpop.xlane.xlu0 %12680 }
0x5411   :  { %v12684_v14 = vsub.f32 %v12676_v35, %v12682_v56  ;;  %v12683_v61 = vmul.f32 0.0078125, %v12681_v38 }
0x5413   :  { %v12685_v50 = vsub.f32 %v12677_v33, %v12683_v61  ;;  %v12686_v46 = vmul.f32 %v12684_v14, %v12684_v14 }
0x5415   :  { %12688 = vadd.xlane.f32.xlu1 %v12686_v46  ;;  %v12687_v49 = vmul.f32 %v12685_v50, %v12685_v50 }
0x5417   :  { %12690 = vadd.xlane.f32.xlu0 %v12687_v49 }
0x54a2   :  { %v12689_v24 = vpop.xlane.xlu1 %12688 }
0x54a3   :  { %v12692_v34 = vmul.f32 0.0078125, %v12689_v24 }
0x54a4   :  { %v12691_v59 = vpop.xlane.xlu0 %12690 }
0x54a5   :  { %v12694_v48 = vadd.f32 1e-05, %v12692_v34  ;;  %v12693_v3 = vmul.f32 0.0078125, %v12691_v59 }
0x54a7   :  { %15303 = vrsqrt.f32 %v12694_v48  ;;  %v12695_v37 = vadd.f32 1e-05, %v12693_v3 }
0x54a9   :  { %15305 = vrsqrt.f32 %v12695_v37 }
0x54b1   :  { %v15304_v54 = vpop.eup %15303 }
0x54b2   :  { %v12698_v2 = vmul.f32 %v15304_v54, %v12684_v14 }
0x54b3   :  { %v15306_v39 = vpop.eup %15305 }
0x54b4   :  { %v12699_v51 = vmul.f32 %v15306_v39, %v12685_v50  ;;  %v12704_v42 = vmul.f32 %v12703_v18, %v12698_v2 }
0x54b6   :  { %v12705_v13 = vmul.f32 %v12703_v18, %v12699_v51  ;;  %v12710_v12 = vadd.f32 %v12709_v52, %v12704_v42 }
0x54b8   :  { %v12711_v41 = vadd.f32 %v12709_v52, %v12705_v13 }
0x54ba   :  { %v12712_v16 = vpack.c.bf16 %v12711_v41, %v12710_v12 }
0x54bc   :  { %14510 = vmatmul.mubr.bf16.vlgmr.msra.gmra.mrb[180].mxu1 %v12712_v16 }
0x558f   :  { %v12818_v10 = vpop.f32.mrb[180].mxu1 }
0x5590   :  { %v12819_v21 = vadd.f32 %v13330_v62, %v12818_v10  ;;  %v14511_v58 = vpop.f32.mrb[181].mxu1 }
0x5591   :  { %v12821_v19 = vpop.f32.mrb[182].mxu1 }
0x5592   :  { %12825 = vst [vmem:[#allocation34] sm:$0xff] %v12819_v21  ;;  %v12822_v20 = vadd.f32 %v13330_v62, %v12821_v19  ;;  %v14512_v63 = vpop.f32.mrb[183].mxu1 }
0x5594   :  { %12826 = vst [vmem:[#allocation34 + $0x8] sm:$0xff] %v12822_v20 }
0x5595   :  { %15762 = shalt.err (!%p15759_p10)
}
0x5596   :  { %s17890_s14 = sld [smem:[#allocation61_spill]] }
0x559c   :  { %s15763_s4 = scalar_lea.hbm %s17890_s14, 256 }
0x559d   :  { %p15764_p11 = scmp.ne.s32.totalorder %s17890_s14, %s15763_s4  ;;  %p15767_p12 = scmp.lt.u32.totalorder %s15763_s4, %s17890_s14 }
0x559f   :  { %p15769_p13 = pnand %p15767_p12, %p15764_p11 }
0x55a1   :  { %15772 = shalt.err (!%p15769_p13)
}
0x55a2   :  { %12838 = dma.vmem_to_hbm [thread:$0]  %s12833_s3, 256, %s17890_s14, [#allocation4], %s17874_s7, %s17874_s7, %s17873_s1  }
0x55a3   :  { %15795 = dma.done.wait [#allocation4], 256  }
0x55a4   :  { %15796 = vsyncadd [#allocation4], 4294967040 }
0x55a5   :  { %12842 = vsyncpa [#allocation3], 1 }
0x55a6   :  { %12843 = vsyncpa [#allocation6], 1 }
0x55a7   :  { %12844 = vsyncpa [#allocation9], 1 }
0x55a8   :  { %12845 = vsyncpa [#allocation12], 1 }
0x55a9   :  { %12846 = vsyncpa [#allocation15], 1 }
0x55aa   :  { %12847 = vsyncpa [#allocation18], 1 }
0x55ab   :  { %12848 = vsyncpa [#allocation21], 1 }
0x55ac   :  { %12849 = vsyncpa [#allocation24], 1 }
0x55ad   :  { %12850 = vsyncpa [#allocation27], 1 }
0x55ae   :  { %12851 = vsyncpa [#allocation30], 1 }
0x55af   :  { %12852 = vsyncpa [#allocation33], 1 }
0x55b0   :  { %12853 = vsyncpa [#allocation4], 1 }

</bundles_post_ra>
